<compile_context>
chip_gen: v5e
topology: v5e:2x2
jax: 0.10.0
libtpu: 0.0.40
codegen_flags: <defaults>
</compile_context>

<pallas_src>
from math import sqrt

import jax
import jax.numpy as jnp
import numpy as np
from jax.experimental import pallas as pl
from jax.experimental.pallas import tpu as pltpu

_VMEM_LIMIT = 32 * 1024 * 1024
_NUM_CLASSES = 5
_OUT_LANES = 128          # fc3 output padded to a lane-dense 128-wide slab

# Architecture fixed by the PyTorch module (32x32x3 input).
_KH = _KW = 5
_STRIDE = 2
_PAD = 2
_CONV_DIMS = (
    # (H_in, W_in, C_in, C_out)
    (32, 32, 3, 16),
    (16, 16, 16, 64),
    (8, 8, 64, 32),
)


def _cdiv(a, b):
    return -(-a // b)


def _round_up(x, m):
    return _cdiv(x, m) * m


def _layer_dims():
    out = []
    for (h, w, ci, co) in _CONV_DIMS:
        ho = (h + 2 * _PAD - _KH) // _STRIDE + 1
        wo = (w + 2 * _PAD - _KW) // _STRIDE + 1
        out.append(dict(H=h, W=w, Ci=ci, Co=co, Ho=ho, Wo=wo,
                        Hh=(h + 2 * _PAD) // 2, K=w * ci, NC=wo * co))
    # activation of layer l feeds layer l+1 directly (rows are full width)
    assert out[0]["NC"] == out[1]["K"] and out[1]["NC"] == out[2]["K"]
    return out


_LAYERS = _layer_dims()


# ----------------------------------------------------------------------------
# One-time parameter preparation (hoisted out of the per-call forward trace).
# ----------------------------------------------------------------------------
def _banded_weights(w, w_in):
    """PyTorch conv weight (C_out, C_in, KH, KW) -> banded matrices
    (KH, W_in*C_in, Wo*C_out) in bf16.  Width padding and the width stride are
    folded into the band (structural zeros), so the kernel's row buffers hold
    only real width positions and all activation stores are full-row."""
    c_out, c_in, kh_, kw_ = w.shape
    wo = (w_in + 2 * _PAD - kw_) // _STRIDE + 1
    w_hwio = jnp.transpose(w, (2, 3, 1, 0))                      # (KH, KW, Ci, Co)
    wpos = jnp.arange(w_in)[:, None]
    ow = jnp.arange(wo)[None, :]
    kw_idx = wpos + _PAD - _STRIDE * ow                          # (W_in, Wo)
    valid = (kw_idx >= 0) & (kw_idx < kw_)
    band = w_hwio[:, jnp.clip(kw_idx, 0, kw_ - 1), :, :]         # (KH, W_in, Wo, Ci, Co)
    band = jnp.where(valid[None, :, :, None, None], band, 0.0)
    # rows ordered (w, ci), cols ordered (ow, co)
    band = band.transpose(0, 1, 3, 2, 4).reshape(kh_, w_in * c_in, wo * c_out)
    return band.astype(jnp.bfloat16)


def prepare_params(params):
    """Build kernel-side constants once: banded conv weights, ow-tiled biases,
    fc1 rows permuted from PyTorch's NCHW flatten to our NHWC flatten, and fc3
    padded to 128 output lanes."""
    l3 = _LAYERS[2]
    prep = {}
    for idx, (lay, name) in enumerate(zip(_LAYERS, ("conv1", "conv2", "conv3")), 1):
        prep[f"w{idx}b"] = _banded_weights(params[f"{name}_w"], lay["W"])
        prep[f"b{idx}t"] = (jnp.tile(params[f"{name}_b"], lay["Wo"])
                            .reshape(1, lay["NC"]).astype(jnp.float32))
    fw1 = params["fc1_w"].reshape(l3["Co"], l3["Ho"], l3["Wo"], -1)
    fw1 = fw1.transpose(1, 2, 0, 3).reshape(l3["Ho"] * l3["Wo"] * l3["Co"], -1)
    prep["fw1"] = fw1.astype(jnp.bfloat16)
    prep["fb1"] = params["fc1_b"].reshape(1, -1).astype(jnp.float32)
    prep["fw2"] = params["fc2_w"].astype(jnp.bfloat16)
    prep["fb2"] = params["fc2_b"].reshape(1, -1).astype(jnp.float32)
    n3 = params["fc3_w"].shape[1]
    prep["fw3"] = jnp.pad(params["fc3_w"], ((0, 0), (0, _OUT_LANES - n3))).astype(jnp.bfloat16)
    prep["fb3"] = jnp.pad(params["fc3_b"], (0, _OUT_LANES - n3)).reshape(1, -1).astype(jnp.float32)
    return prep


# ----------------------------------------------------------------------------
# Fused kernel.
# ----------------------------------------------------------------------------
def _make_fused_kernel(TB):
    L1, L2, L3 = _LAYERS

    def kernel(x_ref, w1, b1, w2, b2, w3, b3,
               fw1, fb1, fw2, fb2, fw3, fb3,
               o_ref, xp1, xp2, xp3, acc1, acc2, acc3):
        # Flat parity layout of a padded activation: row (p*Hh + q)*TB + b holds
        # padded image row r = 2*q + p of image b (full width, no W padding).

        def zero_pad_rows(xp, hh):
            # H-padding rows (padded rows 0, 1, Hp-2, Hp-1).  Re-zeroed every
            # grid step so the kernel is correct regardless of how the parallel
            # grid is split across TensorCores.
            z = jnp.zeros((TB, xp.shape[1]), xp.dtype)
            for p in (0, 1):
                for q in (0, hh - 1):
                    r0 = (p * hh + q) * TB
                    xp[r0:r0 + TB, :] = z

        def conv_band(xp, w_ref, acc, hh, ho):
            # acc[(oh, b), (ow, co)] = sum_kh lhs_kh @ band_kh   (f32 in VMEM)
            for kh in range(_KH):
                r0 = ((kh % 2) * hh + kh // 2) * TB
                lhs = xp[r0:r0 + ho * TB, :]                     # (Ho*TB, K) bf16
                prod = jnp.dot(lhs, w_ref[kh], preferred_element_type=jnp.float32)
                if kh == 0:
                    acc[...] = prod
                else:
                    acc[...] += prod

        def relu_scatter(acc, b_ref, xp_next, ho, hh_next):
            # bias + ReLU + bf16 cast; row-block oh lands on padded row oh+PAD
            # of the next conv's parity planes (full-row, lane-dense stores).
            bias = b_ref[...]
            for oh in range(ho):
                a = jnp.maximum(acc[oh * TB:(oh + 1) * TB, :] + bias, 0.0)
                r = oh + _PAD
                r0 = ((r % 2) * hh_next + r // 2) * TB
                xp_next[r0:r0 + TB, :] = a.astype(xp_next.dtype)

        # -- stage 0: raw NHWC input rows -> conv1's padded parity planes -----
        zero_pad_rows(xp1, L1["Hh"])
        zero_pad_rows(xp2, L2["Hh"])
        zero_pad_rows(xp3, L3["Hh"])
        for h in range(L1["H"]):
            r = h + _PAD
            r0 = ((r % 2) * L1["Hh"] + r // 2) * TB
            xp1[r0:r0 + TB, :] = x_ref[:, h, :]

        # -- conv stack: activations never leave VMEM -------------------------
        conv_band(xp1, w1, acc1, L1["Hh"], L1["Ho"])
        relu_scatter(acc1, b1, xp2, L1["Ho"], L2["Hh"])
        conv_band(xp2, w2, acc2, L2["Hh"], L2["Ho"])
        relu_scatter(acc2, b2, xp3, L2["Ho"], L3["Hh"])
        conv_band(xp3, w3, acc3, L3["Hh"], L3["Ho"])

        # -- FC head: conv3 bias/ReLU folded into fc1 (fw1 rows are in NHWC
        #    (h, w, c) order, grouped by output row oh) ------------------------
        b3v = b3[...]
        nc3 = L3["NC"]
        h1 = None
        for oh in range(L3["Ho"]):
            a = jnp.maximum(acc3[oh * TB:(oh + 1) * TB, :] + b3v, 0.0)
            a = a.astype(jnp.bfloat16)
            p = jnp.dot(a, fw1[oh * nc3:(oh + 1) * nc3, :],
                        preferred_element_type=jnp.float32)
            h1 = p if h1 is None else h1 + p
        h1 = jnp.maximum(h1 + fb1[...], 0.0).astype(jnp.bfloat16)
        h2 = jnp.dot(h1, fw2[...], preferred_element_type=jnp.float32)
        h2 = jnp.maximum(h2 + fb2[...], 0.0).astype(jnp.bfloat16)
        z = jnp.dot(h2, fw3[...], preferred_element_type=jnp.float32) + fb3[...]
        o_ref[...] = z.astype(o_ref.dtype)                       # (TB, 128) lane-dense

    return kernel


def _pick_batch_tile(N, tile_b):
    """Batch tile: multiple of 8 (sublane-aligned row blocks in the flat parity
    layout), large enough to feed the MXU (TB*Ho3 >= 128 at the default 32),
    and split into >= 2 grid steps for batches > 8 so both v7x TensorCores get
    work.  (pipeline_mode=pl.Buffered(1) on the resident weights was skipped —
    minor VMEM saving only.)"""
    TB = max(8, min(_round_up(tile_b, 8), _round_up(N, 8)))
    G = _cdiv(N, TB)
    if G == 1 and N > 8:
        TB = _round_up(_cdiv(N, 2), 8)
        G = _cdiv(N, TB)
    return TB, G, G * TB


# ----------------------------------------------------------------------------
# Forward pass (input NCHW, matching the PyTorch module).
# ----------------------------------------------------------------------------
def cnn_forward(prep, x_nchw, *, tile_b=32):
    L1, L2, L3 = _LAYERS
    N, C, H, W = x_nchw.shape
    assert (C, H, W) == (L1["Ci"], L1["H"], L1["W"]), "CNN expects NCHW 3x32x32 input"

    # Only trace-level glue in the forward: NCHW -> NHWC rows + bf16 cast.
    x = jnp.transpose(x_nchw, (0, 2, 3, 1)).reshape(N, H, W * C).astype(jnp.bfloat16)

    TB, G, Npad = _pick_batch_tile(N, tile_b)
    if Npad != N:
        x = jnp.pad(x, ((0, Npad - N), (0, 0), (0, 0)))

    out = pl.pallas_call(
        _make_fused_kernel(TB),
        out_shape=jax.ShapeDtypeStruct((Npad, _OUT_LANES), jnp.float32),
        grid=(G,),
        in_specs=[
            pl.BlockSpec((TB, H, W * C), lambda i: (i, 0, 0)),        # batch tile
            pl.BlockSpec(prep["w1b"].shape, lambda i: (0, 0, 0)),     # resident weights
            pl.BlockSpec(prep["b1t"].shape, lambda i: (0, 0)),
            pl.BlockSpec(prep["w2b"].shape, lambda i: (0, 0, 0)),
            pl.BlockSpec(prep["b2t"].shape, lambda i: (0, 0)),
            pl.BlockSpec(prep["w3b"].shape, lambda i: (0, 0, 0)),
            pl.BlockSpec(prep["b3t"].shape, lambda i: (0, 0)),
            pl.BlockSpec(prep["fw1"].shape, lambda i: (0, 0)),
            pl.BlockSpec(prep["fb1"].shape, lambda i: (0, 0)),
            pl.BlockSpec(prep["fw2"].shape, lambda i: (0, 0)),
            pl.BlockSpec(prep["fb2"].shape, lambda i: (0, 0)),
            pl.BlockSpec(prep["fw3"].shape, lambda i: (0, 0)),
            pl.BlockSpec(prep["fb3"].shape, lambda i: (0, 0)),
        ],
        out_specs=pl.BlockSpec((TB, _OUT_LANES), lambda i: (i, 0)),
        scratch_shapes=[
            pltpu.VMEM((2 * L1["Hh"] * TB, L1["K"]), jnp.bfloat16),   # padded parity planes
            pltpu.VMEM((2 * L2["Hh"] * TB, L2["K"]), jnp.bfloat16),
            pltpu.VMEM((2 * L3["Hh"] * TB, L3["K"]), jnp.bfloat16),
            pltpu.VMEM((L1["Ho"] * TB, L1["NC"]), jnp.float32),       # f32 accumulators
            pltpu.VMEM((L2["Ho"] * TB, L2["NC"]), jnp.float32),
            pltpu.VMEM((L3["Ho"] * TB, L3["NC"]), jnp.float32),
        ],
        compiler_params=pltpu.CompilerParams(
            dimension_semantics=("parallel",),
            vmem_limit_bytes=_VMEM_LIMIT,
        ),
    )(x, prep["w1b"], prep["b1t"], prep["w2b"], prep["b2t"],
      prep["w3b"], prep["b3t"], prep["fw1"], prep["fb1"],
      prep["fw2"], prep["fb2"], prep["fw3"], prep["fb3"])
    return out[:N, :_NUM_CLASSES]


# ----------------------------------------------------------------------------
# Parameter init (mirrors CNN.init_weights: normal(0, 1/sqrt(fan_in)), bias 0).
# FC weights stored as (n_in, n_out); fc1 rows in PyTorch's NCHW flatten order.
# ----------------------------------------------------------------------------
def init_params(key):
    keys = jax.random.split(key, 6)
    params = {}

    def conv_w(k, c_out, c_in, kh, kw):
        return jax.random.normal(k, (c_out, c_in, kh, kw), jnp.float32) / sqrt(kh * kw * c_in)

    def fc_w(k, n_out, n_in):
        return jax.random.normal(k, (n_in, n_out), jnp.float32) / sqrt(n_in)

    params["conv1_w"] = conv_w(keys[0], 16, 3, 5, 5)
    params["conv1_b"] = jnp.zeros((16,), jnp.float32)
    params["conv2_w"] = conv_w(keys[1], 64, 16, 5, 5)
    params["conv2_b"] = jnp.zeros((64,), jnp.float32)
    params["conv3_w"] = conv_w(keys[2], 32, 64, 5, 5)
    params["conv3_b"] = jnp.zeros((32,), jnp.float32)
    params["fc1_w"] = fc_w(keys[3], 64, 4 * 4 * 32)
    params["fc1_b"] = jnp.zeros((64,), jnp.float32)
    params["fc2_w"] = fc_w(keys[4], 32, 64)
    params["fc2_b"] = jnp.zeros((32,), jnp.float32)
    params["fc3_w"] = fc_w(keys[5], 5, 32)
    params["fc3_b"] = jnp.zeros((5,), jnp.float32)
    return params


# ----------------------------------------------------------------------------
# Pure-JAX reference with matching bf16 rounding points (for self-check).
# ----------------------------------------------------------------------------
def reference_forward(params, x_nchw):
    r = lambda t: t.astype(jnp.bfloat16).astype(jnp.float32)
    x = r(jnp.transpose(x_nchw, (0, 2, 3, 1)))

    def conv(x, w, b):
        y = jax.lax.conv_general_dilated(
            x, r(jnp.transpose(w, (2, 3, 1, 0))),
            window_strides=(2, 2), padding=((2, 2), (2, 2)),
            dimension_numbers=("NHWC", "HWIO", "NHWC"))
        return r(jnp.maximum(y + b, 0.0))

    x = conv(x, params["conv1_w"], params["conv1_b"])
    x = conv(x, params["conv2_w"], params["conv2_b"])
    x = conv(x, params["conv3_w"], params["conv3_b"])
    N = x.shape[0]
    feat = jnp.transpose(x, (0, 3, 1, 2)).reshape(N, -1)             # PyTorch NCHW flatten
    h = r(jnp.maximum(feat @ r(params["fc1_w"]) + params["fc1_b"], 0.0))
    h = r(jnp.maximum(h @ r(params["fc2_w"]) + params["fc2_b"], 0.0))
    return h @ r(params["fc3_w"]) + params["fc3_b"]


if __name__ == "__main__":
    key = jax.random.PRNGKey(0)
    pkey, xkey = jax.random.split(key)
    params = init_params(pkey)
    # Module architecture implies 32x32x3 inputs (flatten -> 4*4*32 = 512).
    x = jax.random.normal(xkey, (2, 3, 32, 32), jnp.float32)

    prep = prepare_params(params)            # one-time weight prep, hoisted out of forward
    fwd = jax.jit(cnn_forward)
    z = fwd(prep, x)
    jax.block_until_ready(z)
    assert z.shape == (2, _NUM_CLASSES) and z.dtype == jnp.float32

    z_ref = jax.jit(reference_forward)(params, x)
    jax.block_until_ready(z_ref)
    assert np.allclose(np.asarray(z), np.asarray(z_ref), rtol=3e-2, atol=3e-2), (
        "max abs diff", float(np.max(np.abs(np.asarray(z) - np.asarray(z_ref)))))

    print("KERNEL_OK")
</pallas_src>

<mosaic_0001>
module attributes {stable_mosaic.version = 11 : i64} {
  func.func @kernel(%arg0: i32, %arg1: memref<8x32x96xbf16, #tpu.memory_space<vmem>>, %arg2: memref<5x96x256xbf16, #tpu.memory_space<vmem>>, %arg3: memref<1x256xf32, #tpu.memory_space<vmem>>, %arg4: memref<5x256x512xbf16, #tpu.memory_space<vmem>>, %arg5: memref<1x512xf32, #tpu.memory_space<vmem>>, %arg6: memref<5x512x128xbf16, #tpu.memory_space<vmem>>, %arg7: memref<1x128xf32, #tpu.memory_space<vmem>>, %arg8: memref<512x64xbf16, #tpu.memory_space<vmem>>, %arg9: memref<1x64xf32, #tpu.memory_space<vmem>>, %arg10: memref<64x32xbf16, #tpu.memory_space<vmem>>, %arg11: memref<1x32xf32, #tpu.memory_space<vmem>>, %arg12: memref<32x128xbf16, #tpu.memory_space<vmem>>, %arg13: memref<1x128xf32, #tpu.memory_space<vmem>>, %arg14: memref<8x128xf32, #tpu.memory_space<vmem>>, %arg15: memref<288x96xbf16, #tpu.memory_space<vmem>>, %arg16: memref<160x256xbf16, #tpu.memory_space<vmem>>, %arg17: memref<96x512xbf16, #tpu.memory_space<vmem>>, %arg18: memref<128x256xf32, #tpu.memory_space<vmem>>, %arg19: memref<64x512xf32, #tpu.memory_space<vmem>>, %arg20: memref<32x128xf32, #tpu.memory_space<vmem>>) attributes {dimension_semantics = [#tpu.dimension_semantics<parallel>], iteration_bounds = array<i64: 1>, scalar_prefetch = 0 : i64, scratch_operands = 6 : i64, tpu.core_type = #tpu.core_type<tc>, window_params = [{transform_indices = @transform_0, window_bounds = array<i64: 8, 32, 96>}, {pipeline_mode = #tpu.pipeline_mode<synchronous>, transform_indices = @transform_1, window_bounds = array<i64: 5, 96, 256>}, {pipeline_mode = #tpu.pipeline_mode<synchronous>, transform_indices = @transform_2, window_bounds = array<i64: 1, 256>}, {pipeline_mode = #tpu.pipeline_mode<synchronous>, transform_indices = @transform_3, window_bounds = array<i64: 5, 256, 512>}, {pipeline_mode = #tpu.pipeline_mode<synchronous>, transform_indices = @transform_4, window_bounds = array<i64: 1, 512>}, {pipeline_mode = #tpu.pipeline_mode<synchronous>, transform_indices = @transform_5, window_bounds = array<i64: 5, 512, 128>}, {pipeline_mode = #tpu.pipeline_mode<synchronous>, transform_indices = @transform_6, window_bounds = array<i64: 1, 128>}, {pipeline_mode = #tpu.pipeline_mode<synchronous>, transform_indices = @transform_7, window_bounds = array<i64: 512, 64>}, {pipeline_mode = #tpu.pipeline_mode<synchronous>, transform_indices = @transform_8, window_bounds = array<i64: 1, 64>}, {pipeline_mode = #tpu.pipeline_mode<synchronous>, transform_indices = @transform_9, window_bounds = array<i64: 64, 32>}, {pipeline_mode = #tpu.pipeline_mode<synchronous>, transform_indices = @transform_10, window_bounds = array<i64: 1, 32>}, {pipeline_mode = #tpu.pipeline_mode<synchronous>, transform_indices = @transform_11, window_bounds = array<i64: 32, 128>}, {pipeline_mode = #tpu.pipeline_mode<synchronous>, transform_indices = @transform_12, window_bounds = array<i64: 1, 128>}, {transform_indices = @transform_13, window_bounds = array<i64: 8, 128>}]} {
    %cst = arith.constant 0.000000e+00 : bf16
    %0 = vector.broadcast %cst : bf16 to vector<8x96xbf16>
    %c0 = arith.constant 0 : index
    %c0_0 = arith.constant 0 : index
    %1 = vector.load %arg15[%c0, %c0_0] : memref<288x96xbf16, #tpu.memory_space<vmem>>, vector<8x96xbf16>
    tpu.vector_store %arg15[%c0, %c0_0], %0 {strides = array<i32>} : memref<288x96xbf16, #tpu.memory_space<vmem>>, vector<8x96xbf16>,
    %c136 = arith.constant 136 : index
    %c0_1 = arith.constant 0 : index
    %2 = vector.load %arg15[%c136, %c0_1] : memref<288x96xbf16, #tpu.memory_space<vmem>>, vector<8x96xbf16>
    tpu.vector_store %arg15[%c136, %c0_1], %0 {strides = array<i32>} : memref<288x96xbf16, #tpu.memory_space<vmem>>, vector<8x96xbf16>,
    %c144 = arith.constant 144 : index
    %c0_2 = arith.constant 0 : index
    %3 = vector.load %arg15[%c144, %c0_2] : memref<288x96xbf16, #tpu.memory_space<vmem>>, vector<8x96xbf16>
    tpu.vector_store %arg15[%c144, %c0_2], %0 {strides = array<i32>} : memref<288x96xbf16, #tpu.memory_space<vmem>>, vector<8x96xbf16>,
    %c280 = arith.constant 280 : index
    %c0_3 = arith.constant 0 : index
    %4 = vector.load %arg15[%c280, %c0_3] : memref<288x96xbf16, #tpu.memory_space<vmem>>, vector<8x96xbf16>
    tpu.vector_store %arg15[%c280, %c0_3], %0 {strides = array<i32>} : memref<288x96xbf16, #tpu.memory_space<vmem>>, vector<8x96xbf16>,
    %cst_4 = arith.constant 0.000000e+00 : bf16
    %5 = vector.broadcast %cst_4 : bf16 to vector<8x256xbf16>
    %c0_5 = arith.constant 0 : index
    %c0_6 = arith.constant 0 : index
    %6 = vector.load %arg16[%c0_5, %c0_6] : memref<160x256xbf16, #tpu.memory_space<vmem>>, vector<8x256xbf16>
    tpu.vector_store %arg16[%c0_5, %c0_6], %5 {strides = array<i32>} : memref<160x256xbf16, #tpu.memory_space<vmem>>, vector<8x256xbf16>,
    %c72 = arith.constant 72 : index
    %c0_7 = arith.constant 0 : index
    %7 = vector.load %arg16[%c72, %c0_7] : memref<160x256xbf16, #tpu.memory_space<vmem>>, vector<8x256xbf16>
    tpu.vector_store %arg16[%c72, %c0_7], %5 {strides = array<i32>} : memref<160x256xbf16, #tpu.memory_space<vmem>>, vector<8x256xbf16>,
    %c80 = arith.constant 80 : index
    %c0_8 = arith.constant 0 : index
    %8 = vector.load %arg16[%c80, %c0_8] : memref<160x256xbf16, #tpu.memory_space<vmem>>, vector<8x256xbf16>
    tpu.vector_store %arg16[%c80, %c0_8], %5 {strides = array<i32>} : memref<160x256xbf16, #tpu.memory_space<vmem>>, vector<8x256xbf16>,
    %c152 = arith.constant 152 : index
    %c0_9 = arith.constant 0 : index
    %9 = vector.load %arg16[%c152, %c0_9] : memref<160x256xbf16, #tpu.memory_space<vmem>>, vector<8x256xbf16>
    tpu.vector_store %arg16[%c152, %c0_9], %5 {strides = array<i32>} : memref<160x256xbf16, #tpu.memory_space<vmem>>, vector<8x256xbf16>,
    %cst_10 = arith.constant 0.000000e+00 : bf16
    %10 = vector.broadcast %cst_10 : bf16 to vector<8x512xbf16>
    %c0_11 = arith.constant 0 : index
    %c0_12 = arith.constant 0 : index
    %11 = vector.load %arg17[%c0_11, %c0_12] : memref<96x512xbf16, #tpu.memory_space<vmem>>, vector<8x512xbf16>
    tpu.vector_store %arg17[%c0_11, %c0_12], %10 {strides = array<i32>} : memref<96x512xbf16, #tpu.memory_space<vmem>>, vector<8x512xbf16>,
    %c40 = arith.constant 40 : index
    %c0_13 = arith.constant 0 : index
    %12 = vector.load %arg17[%c40, %c0_13] : memref<96x512xbf16, #tpu.memory_space<vmem>>, vector<8x512xbf16>
    tpu.vector_store %arg17[%c40, %c0_13], %10 {strides = array<i32>} : memref<96x512xbf16, #tpu.memory_space<vmem>>, vector<8x512xbf16>,
    %c48 = arith.constant 48 : index
    %c0_14 = arith.constant 0 : index
    %13 = vector.load %arg17[%c48, %c0_14] : memref<96x512xbf16, #tpu.memory_space<vmem>>, vector<8x512xbf16>
    tpu.vector_store %arg17[%c48, %c0_14], %10 {strides = array<i32>} : memref<96x512xbf16, #tpu.memory_space<vmem>>, vector<8x512xbf16>,
    %c88 = arith.constant 88 : index
    %c0_15 = arith.constant 0 : index
    %14 = vector.load %arg17[%c88, %c0_15] : memref<96x512xbf16, #tpu.memory_space<vmem>>, vector<8x512xbf16>
    tpu.vector_store %arg17[%c88, %c0_15], %10 {strides = array<i32>} : memref<96x512xbf16, #tpu.memory_space<vmem>>, vector<8x512xbf16>,
    %c0_16 = arith.constant 0 : index
    %c0_17 = arith.constant 0 : index
    %c0_18 = arith.constant 0 : index
    %15 = vector.load %arg1[%c0_16, %c0_17, %c0_18] : memref<8x32x96xbf16, #tpu.memory_space<vmem>>, vector<8x1x96xbf16>
    %16 = vector.shape_cast %15 : vector<8x1x96xbf16> to vector<8x96xbf16>
    %c8 = arith.constant 8 : index
    %c0_19 = arith.constant 0 : index
    %17 = vector.load %arg15[%c8, %c0_19] : memref<288x96xbf16, #tpu.memory_space<vmem>>, vector<8x96xbf16>
    tpu.vector_store %arg15[%c8, %c0_19], %16 {strides = array<i32>} : memref<288x96xbf16, #tpu.memory_space<vmem>>, vector<8x96xbf16>,
    %c0_20 = arith.constant 0 : index
    %c1 = arith.constant 1 : index
    %c0_21 = arith.constant 0 : index
    %18 = vector.load %arg1[%c0_20, %c1, %c0_21] : memref<8x32x96xbf16, #tpu.memory_space<vmem>>, vector<8x1x96xbf16>
    %19 = vector.shape_cast %18 : vector<8x1x96xbf16> to vector<8x96xbf16>
    %c152_22 = arith.constant 152 : index
    %c0_23 = arith.constant 0 : index
    %20 = vector.load %arg15[%c152_22, %c0_23] : memref<288x96xbf16, #tpu.memory_space<vmem>>, vector<8x96xbf16>
    tpu.vector_store %arg15[%c152_22, %c0_23], %19 {strides = array<i32>} : memref<288x96xbf16, #tpu.memory_space<vmem>>, vector<8x96xbf16>,
    %c0_24 = arith.constant 0 : index
    %c2 = arith.constant 2 : index
    %c0_25 = arith.constant 0 : index
    %21 = vector.load %arg1[%c0_24, %c2, %c0_25] : memref<8x32x96xbf16, #tpu.memory_space<vmem>>, vector<8x1x96xbf16>
    %22 = vector.shape_cast %21 : vector<8x1x96xbf16> to vector<8x96xbf16>
    %c16 = arith.constant 16 : index
    %c0_26 = arith.constant 0 : index
    %23 = vector.load %arg15[%c16, %c0_26] : memref<288x96xbf16, #tpu.memory_space<vmem>>, vector<8x96xbf16>
    tpu.vector_store %arg15[%c16, %c0_26], %22 {strides = array<i32>} : memref<288x96xbf16, #tpu.memory_space<vmem>>, vector<8x96xbf16>,
    %c0_27 = arith.constant 0 : index
    %c3 = arith.constant 3 : index
    %c0_28 = arith.constant 0 : index
    %24 = vector.load %arg1[%c0_27, %c3, %c0_28] : memref<8x32x96xbf16, #tpu.memory_space<vmem>>, vector<8x1x96xbf16>
    %25 = vector.shape_cast %24 : vector<8x1x96xbf16> to vector<8x96xbf16>
    %c160 = arith.constant 160 : index
    %c0_29 = arith.constant 0 : index
    %26 = vector.load %arg15[%c160, %c0_29] : memref<288x96xbf16, #tpu.memory_space<vmem>>, vector<8x96xbf16>
    tpu.vector_store %arg15[%c160, %c0_29], %25 {strides = array<i32>} : memref<288x96xbf16, #tpu.memory_space<vmem>>, vector<8x96xbf16>,
    %c0_30 = arith.constant 0 : index
    %c4 = arith.constant 4 : index
    %c0_31 = arith.constant 0 : index
    %27 = vector.load %arg1[%c0_30, %c4, %c0_31] : memref<8x32x96xbf16, #tpu.memory_space<vmem>>, vector<8x1x96xbf16>
    %28 = vector.shape_cast %27 : vector<8x1x96xbf16> to vector<8x96xbf16>
    %c24 = arith.constant 24 : index
    %c0_32 = arith.constant 0 : index
    %29 = vector.load %arg15[%c24, %c0_32] : memref<288x96xbf16, #tpu.memory_space<vmem>>, vector<8x96xbf16>
    tpu.vector_store %arg15[%c24, %c0_32], %28 {strides = array<i32>} : memref<288x96xbf16, #tpu.memory_space<vmem>>, vector<8x96xbf16>,
    %c0_33 = arith.constant 0 : index
    %c5 = arith.constant 5 : index
    %c0_34 = arith.constant 0 : index
    %30 = vector.load %arg1[%c0_33, %c5, %c0_34] : memref<8x32x96xbf16, #tpu.memory_space<vmem>>, vector<8x1x96xbf16>
    %31 = vector.shape_cast %30 : vector<8x1x96xbf16> to vector<8x96xbf16>
    %c168 = arith.constant 168 : index
    %c0_35 = arith.constant 0 : index
    %32 = vector.load %arg15[%c168, %c0_35] : memref<288x96xbf16, #tpu.memory_space<vmem>>, vector<8x96xbf16>
    tpu.vector_store %arg15[%c168, %c0_35], %31 {strides = array<i32>} : memref<288x96xbf16, #tpu.memory_space<vmem>>, vector<8x96xbf16>,
    %c0_36 = arith.constant 0 : index
    %c6 = arith.constant 6 : index
    %c0_37 = arith.constant 0 : index
    %33 = vector.load %arg1[%c0_36, %c6, %c0_37] : memref<8x32x96xbf16, #tpu.memory_space<vmem>>, vector<8x1x96xbf16>
    %34 = vector.shape_cast %33 : vector<8x1x96xbf16> to vector<8x96xbf16>
    %c32 = arith.constant 32 : index
    %c0_38 = arith.constant 0 : index
    %35 = vector.load %arg15[%c32, %c0_38] : memref<288x96xbf16, #tpu.memory_space<vmem>>, vector<8x96xbf16>
    tpu.vector_store %arg15[%c32, %c0_38], %34 {strides = array<i32>} : memref<288x96xbf16, #tpu.memory_space<vmem>>, vector<8x96xbf16>,
    %c0_39 = arith.constant 0 : index
    %c7 = arith.constant 7 : index
    %c0_40 = arith.constant 0 : index
    %36 = vector.load %arg1[%c0_39, %c7, %c0_40] : memref<8x32x96xbf16, #tpu.memory_space<vmem>>, vector<8x1x96xbf16>
    %37 = vector.shape_cast %36 : vector<8x1x96xbf16> to vector<8x96xbf16>
    %c176 = arith.constant 176 : index
    %c0_41 = arith.constant 0 : index
    %38 = vector.load %arg15[%c176, %c0_41] : memref<288x96xbf16, #tpu.memory_space<vmem>>, vector<8x96xbf16>
    tpu.vector_store %arg15[%c176, %c0_41], %37 {strides = array<i32>} : memref<288x96xbf16, #tpu.memory_space<vmem>>, vector<8x96xbf16>,
    %c0_42 = arith.constant 0 : index
    %c8_43 = arith.constant 8 : index
    %c0_44 = arith.constant 0 : index
    %39 = vector.load %arg1[%c0_42, %c8_43, %c0_44] : memref<8x32x96xbf16, #tpu.memory_space<vmem>>, vector<8x1x96xbf16>
    %40 = vector.shape_cast %39 : vector<8x1x96xbf16> to vector<8x96xbf16>
    %c40_45 = arith.constant 40 : index
    %c0_46 = arith.constant 0 : index
    %41 = vector.load %arg15[%c40_45, %c0_46] : memref<288x96xbf16, #tpu.memory_space<vmem>>, vector<8x96xbf16>
    tpu.vector_store %arg15[%c40_45, %c0_46], %40 {strides = array<i32>} : memref<288x96xbf16, #tpu.memory_space<vmem>>, vector<8x96xbf16>,
    %c0_47 = arith.constant 0 : index
    %c9 = arith.constant 9 : index
    %c0_48 = arith.constant 0 : index
    %42 = vector.load %arg1[%c0_47, %c9, %c0_48] : memref<8x32x96xbf16, #tpu.memory_space<vmem>>, vector<8x1x96xbf16>
    %43 = vector.shape_cast %42 : vector<8x1x96xbf16> to vector<8x96xbf16>
    %c184 = arith.constant 184 : index
    %c0_49 = arith.constant 0 : index
    %44 = vector.load %arg15[%c184, %c0_49] : memref<288x96xbf16, #tpu.memory_space<vmem>>, vector<8x96xbf16>
    tpu.vector_store %arg15[%c184, %c0_49], %43 {strides = array<i32>} : memref<288x96xbf16, #tpu.memory_space<vmem>>, vector<8x96xbf16>,
    %c0_50 = arith.constant 0 : index
    %c10 = arith.constant 10 : index
    %c0_51 = arith.constant 0 : index
    %45 = vector.load %arg1[%c0_50, %c10, %c0_51] : memref<8x32x96xbf16, #tpu.memory_space<vmem>>, vector<8x1x96xbf16>
    %46 = vector.shape_cast %45 : vector<8x1x96xbf16> to vector<8x96xbf16>
    %c48_52 = arith.constant 48 : index
    %c0_53 = arith.constant 0 : index
    %47 = vector.load %arg15[%c48_52, %c0_53] : memref<288x96xbf16, #tpu.memory_space<vmem>>, vector<8x96xbf16>
    tpu.vector_store %arg15[%c48_52, %c0_53], %46 {strides = array<i32>} : memref<288x96xbf16, #tpu.memory_space<vmem>>, vector<8x96xbf16>,
    %c0_54 = arith.constant 0 : index
    %c11 = arith.constant 11 : index
    %c0_55 = arith.constant 0 : index
    %48 = vector.load %arg1[%c0_54, %c11, %c0_55] : memref<8x32x96xbf16, #tpu.memory_space<vmem>>, vector<8x1x96xbf16>
    %49 = vector.shape_cast %48 : vector<8x1x96xbf16> to vector<8x96xbf16>
    %c192 = arith.constant 192 : index
    %c0_56 = arith.constant 0 : index
    %50 = vector.load %arg15[%c192, %c0_56] : memref<288x96xbf16, #tpu.memory_space<vmem>>, vector<8x96xbf16>
    tpu.vector_store %arg15[%c192, %c0_56], %49 {strides = array<i32>} : memref<288x96xbf16, #tpu.memory_space<vmem>>, vector<8x96xbf16>,
    %c0_57 = arith.constant 0 : index
    %c12 = arith.constant 12 : index
    %c0_58 = arith.constant 0 : index
    %51 = vector.load %arg1[%c0_57, %c12, %c0_58] : memref<8x32x96xbf16, #tpu.memory_space<vmem>>, vector<8x1x96xbf16>
    %52 = vector.shape_cast %51 : vector<8x1x96xbf16> to vector<8x96xbf16>
    %c56 = arith.constant 56 : index
    %c0_59 = arith.constant 0 : index
    %53 = vector.load %arg15[%c56, %c0_59] : memref<288x96xbf16, #tpu.memory_space<vmem>>, vector<8x96xbf16>
    tpu.vector_store %arg15[%c56, %c0_59], %52 {strides = array<i32>} : memref<288x96xbf16, #tpu.memory_space<vmem>>, vector<8x96xbf16>,
    %c0_60 = arith.constant 0 : index
    %c13 = arith.constant 13 : index
    %c0_61 = arith.constant 0 : index
    %54 = vector.load %arg1[%c0_60, %c13, %c0_61] : memref<8x32x96xbf16, #tpu.memory_space<vmem>>, vector<8x1x96xbf16>
    %55 = vector.shape_cast %54 : vector<8x1x96xbf16> to vector<8x96xbf16>
    %c200 = arith.constant 200 : index
    %c0_62 = arith.constant 0 : index
    %56 = vector.load %arg15[%c200, %c0_62] : memref<288x96xbf16, #tpu.memory_space<vmem>>, vector<8x96xbf16>
    tpu.vector_store %arg15[%c200, %c0_62], %55 {strides = array<i32>} : memref<288x96xbf16, #tpu.memory_space<vmem>>, vector<8x96xbf16>,
    %c0_63 = arith.constant 0 : index
    %c14 = arith.constant 14 : index
    %c0_64 = arith.constant 0 : index
    %57 = vector.load %arg1[%c0_63, %c14, %c0_64] : memref<8x32x96xbf16, #tpu.memory_space<vmem>>, vector<8x1x96xbf16>
    %58 = vector.shape_cast %57 : vector<8x1x96xbf16> to vector<8x96xbf16>
    %c64 = arith.constant 64 : index
    %c0_65 = arith.constant 0 : index
    %59 = vector.load %arg15[%c64, %c0_65] : memref<288x96xbf16, #tpu.memory_space<vmem>>, vector<8x96xbf16>
    tpu.vector_store %arg15[%c64, %c0_65], %58 {strides = array<i32>} : memref<288x96xbf16, #tpu.memory_space<vmem>>, vector<8x96xbf16>,
    %c0_66 = arith.constant 0 : index
    %c15 = arith.constant 15 : index
    %c0_67 = arith.constant 0 : index
    %60 = vector.load %arg1[%c0_66, %c15, %c0_67] : memref<8x32x96xbf16, #tpu.memory_space<vmem>>, vector<8x1x96xbf16>
    %61 = vector.shape_cast %60 : vector<8x1x96xbf16> to vector<8x96xbf16>
    %c208 = arith.constant 208 : index
    %c0_68 = arith.constant 0 : index
    %62 = vector.load %arg15[%c208, %c0_68] : memref<288x96xbf16, #tpu.memory_space<vmem>>, vector<8x96xbf16>
    tpu.vector_store %arg15[%c208, %c0_68], %61 {strides = array<i32>} : memref<288x96xbf16, #tpu.memory_space<vmem>>, vector<8x96xbf16>,
    %c0_69 = arith.constant 0 : index
    %c16_70 = arith.constant 16 : index
    %c0_71 = arith.constant 0 : index
    %63 = vector.load %arg1[%c0_69, %c16_70, %c0_71] : memref<8x32x96xbf16, #tpu.memory_space<vmem>>, vector<8x1x96xbf16>
    %64 = vector.shape_cast %63 : vector<8x1x96xbf16> to vector<8x96xbf16>
    %c72_72 = arith.constant 72 : index
    %c0_73 = arith.constant 0 : index
    %65 = vector.load %arg15[%c72_72, %c0_73] : memref<288x96xbf16, #tpu.memory_space<vmem>>, vector<8x96xbf16>
    tpu.vector_store %arg15[%c72_72, %c0_73], %64 {strides = array<i32>} : memref<288x96xbf16, #tpu.memory_space<vmem>>, vector<8x96xbf16>,
    %c0_74 = arith.constant 0 : index
    %c17 = arith.constant 17 : index
    %c0_75 = arith.constant 0 : index
    %66 = vector.load %arg1[%c0_74, %c17, %c0_75] : memref<8x32x96xbf16, #tpu.memory_space<vmem>>, vector<8x1x96xbf16>
    %67 = vector.shape_cast %66 : vector<8x1x96xbf16> to vector<8x96xbf16>
    %c216 = arith.constant 216 : index
    %c0_76 = arith.constant 0 : index
    %68 = vector.load %arg15[%c216, %c0_76] : memref<288x96xbf16, #tpu.memory_space<vmem>>, vector<8x96xbf16>
    tpu.vector_store %arg15[%c216, %c0_76], %67 {strides = array<i32>} : memref<288x96xbf16, #tpu.memory_space<vmem>>, vector<8x96xbf16>,
    %c0_77 = arith.constant 0 : index
    %c18 = arith.constant 18 : index
    %c0_78 = arith.constant 0 : index
    %69 = vector.load %arg1[%c0_77, %c18, %c0_78] : memref<8x32x96xbf16, #tpu.memory_space<vmem>>, vector<8x1x96xbf16>
    %70 = vector.shape_cast %69 : vector<8x1x96xbf16> to vector<8x96xbf16>
    %c80_79 = arith.constant 80 : index
    %c0_80 = arith.constant 0 : index
    %71 = vector.load %arg15[%c80_79, %c0_80] : memref<288x96xbf16, #tpu.memory_space<vmem>>, vector<8x96xbf16>
    tpu.vector_store %arg15[%c80_79, %c0_80], %70 {strides = array<i32>} : memref<288x96xbf16, #tpu.memory_space<vmem>>, vector<8x96xbf16>,
    %c0_81 = arith.constant 0 : index
    %c19 = arith.constant 19 : index
    %c0_82 = arith.constant 0 : index
    %72 = vector.load %arg1[%c0_81, %c19, %c0_82] : memref<8x32x96xbf16, #tpu.memory_space<vmem>>, vector<8x1x96xbf16>
    %73 = vector.shape_cast %72 : vector<8x1x96xbf16> to vector<8x96xbf16>
    %c224 = arith.constant 224 : index
    %c0_83 = arith.constant 0 : index
    %74 = vector.load %arg15[%c224, %c0_83] : memref<288x96xbf16, #tpu.memory_space<vmem>>, vector<8x96xbf16>
    tpu.vector_store %arg15[%c224, %c0_83], %73 {strides = array<i32>} : memref<288x96xbf16, #tpu.memory_space<vmem>>, vector<8x96xbf16>,
    %c0_84 = arith.constant 0 : index
    %c20 = arith.constant 20 : index
    %c0_85 = arith.constant 0 : index
    %75 = vector.load %arg1[%c0_84, %c20, %c0_85] : memref<8x32x96xbf16, #tpu.memory_space<vmem>>, vector<8x1x96xbf16>
    %76 = vector.shape_cast %75 : vector<8x1x96xbf16> to vector<8x96xbf16>
    %c88_86 = arith.constant 88 : index
    %c0_87 = arith.constant 0 : index
    %77 = vector.load %arg15[%c88_86, %c0_87] : memref<288x96xbf16, #tpu.memory_space<vmem>>, vector<8x96xbf16>
    tpu.vector_store %arg15[%c88_86, %c0_87], %76 {strides = array<i32>} : memref<288x96xbf16, #tpu.memory_space<vmem>>, vector<8x96xbf16>,
    %c0_88 = arith.constant 0 : index
    %c21 = arith.constant 21 : index
    %c0_89 = arith.constant 0 : index
    %78 = vector.load %arg1[%c0_88, %c21, %c0_89] : memref<8x32x96xbf16, #tpu.memory_space<vmem>>, vector<8x1x96xbf16>
    %79 = vector.shape_cast %78 : vector<8x1x96xbf16> to vector<8x96xbf16>
    %c232 = arith.constant 232 : index
    %c0_90 = arith.constant 0 : index
    %80 = vector.load %arg15[%c232, %c0_90] : memref<288x96xbf16, #tpu.memory_space<vmem>>, vector<8x96xbf16>
    tpu.vector_store %arg15[%c232, %c0_90], %79 {strides = array<i32>} : memref<288x96xbf16, #tpu.memory_space<vmem>>, vector<8x96xbf16>,
    %c0_91 = arith.constant 0 : index
    %c22 = arith.constant 22 : index
    %c0_92 = arith.constant 0 : index
    %81 = vector.load %arg1[%c0_91, %c22, %c0_92] : memref<8x32x96xbf16, #tpu.memory_space<vmem>>, vector<8x1x96xbf16>
    %82 = vector.shape_cast %81 : vector<8x1x96xbf16> to vector<8x96xbf16>
    %c96 = arith.constant 96 : index
    %c0_93 = arith.constant 0 : index
    %83 = vector.load %arg15[%c96, %c0_93] : memref<288x96xbf16, #tpu.memory_space<vmem>>, vector<8x96xbf16>
    tpu.vector_store %arg15[%c96, %c0_93], %82 {strides = array<i32>} : memref<288x96xbf16, #tpu.memory_space<vmem>>, vector<8x96xbf16>,
    %c0_94 = arith.constant 0 : index
    %c23 = arith.constant 23 : index
    %c0_95 = arith.constant 0 : index
    %84 = vector.load %arg1[%c0_94, %c23, %c0_95] : memref<8x32x96xbf16, #tpu.memory_space<vmem>>, vector<8x1x96xbf16>
    %85 = vector.shape_cast %84 : vector<8x1x96xbf16> to vector<8x96xbf16>
    %c240 = arith.constant 240 : index
    %c0_96 = arith.constant 0 : index
    %86 = vector.load %arg15[%c240, %c0_96] : memref<288x96xbf16, #tpu.memory_space<vmem>>, vector<8x96xbf16>
    tpu.vector_store %arg15[%c240, %c0_96], %85 {strides = array<i32>} : memref<288x96xbf16, #tpu.memory_space<vmem>>, vector<8x96xbf16>,
    %c0_97 = arith.constant 0 : index
    %c24_98 = arith.constant 24 : index
    %c0_99 = arith.constant 0 : index
    %87 = vector.load %arg1[%c0_97, %c24_98, %c0_99] : memref<8x32x96xbf16, #tpu.memory_space<vmem>>, vector<8x1x96xbf16>
    %88 = vector.shape_cast %87 : vector<8x1x96xbf16> to vector<8x96xbf16>
    %c104 = arith.constant 104 : index
    %c0_100 = arith.constant 0 : index
    %89 = vector.load %arg15[%c104, %c0_100] : memref<288x96xbf16, #tpu.memory_space<vmem>>, vector<8x96xbf16>
    tpu.vector_store %arg15[%c104, %c0_100], %88 {strides = array<i32>} : memref<288x96xbf16, #tpu.memory_space<vmem>>, vector<8x96xbf16>,
    %c0_101 = arith.constant 0 : index
    %c25 = arith.constant 25 : index
    %c0_102 = arith.constant 0 : index
    %90 = vector.load %arg1[%c0_101, %c25, %c0_102] : memref<8x32x96xbf16, #tpu.memory_space<vmem>>, vector<8x1x96xbf16>
    %91 = vector.shape_cast %90 : vector<8x1x96xbf16> to vector<8x96xbf16>
    %c248 = arith.constant 248 : index
    %c0_103 = arith.constant 0 : index
    %92 = vector.load %arg15[%c248, %c0_103] : memref<288x96xbf16, #tpu.memory_space<vmem>>, vector<8x96xbf16>
    tpu.vector_store %arg15[%c248, %c0_103], %91 {strides = array<i32>} : memref<288x96xbf16, #tpu.memory_space<vmem>>, vector<8x96xbf16>,
    %c0_104 = arith.constant 0 : index
    %c26 = arith.constant 26 : index
    %c0_105 = arith.constant 0 : index
    %93 = vector.load %arg1[%c0_104, %c26, %c0_105] : memref<8x32x96xbf16, #tpu.memory_space<vmem>>, vector<8x1x96xbf16>
    %94 = vector.shape_cast %93 : vector<8x1x96xbf16> to vector<8x96xbf16>
    %c112 = arith.constant 112 : index
    %c0_106 = arith.constant 0 : index
    %95 = vector.load %arg15[%c112, %c0_106] : memref<288x96xbf16, #tpu.memory_space<vmem>>, vector<8x96xbf16>
    tpu.vector_store %arg15[%c112, %c0_106], %94 {strides = array<i32>} : memref<288x96xbf16, #tpu.memory_space<vmem>>, vector<8x96xbf16>,
    %c0_107 = arith.constant 0 : index
    %c27 = arith.constant 27 : index
    %c0_108 = arith.constant 0 : index
    %96 = vector.load %arg1[%c0_107, %c27, %c0_108] : memref<8x32x96xbf16, #tpu.memory_space<vmem>>, vector<8x1x96xbf16>
    %97 = vector.shape_cast %96 : vector<8x1x96xbf16> to vector<8x96xbf16>
    %c256 = arith.constant 256 : index
    %c0_109 = arith.constant 0 : index
    %98 = vector.load %arg15[%c256, %c0_109] : memref<288x96xbf16, #tpu.memory_space<vmem>>, vector<8x96xbf16>
    tpu.vector_store %arg15[%c256, %c0_109], %97 {strides = array<i32>} : memref<288x96xbf16, #tpu.memory_space<vmem>>, vector<8x96xbf16>,
    %c0_110 = arith.constant 0 : index
    %c28 = arith.constant 28 : index
    %c0_111 = arith.constant 0 : index
    %99 = vector.load %arg1[%c0_110, %c28, %c0_111] : memref<8x32x96xbf16, #tpu.memory_space<vmem>>, vector<8x1x96xbf16>
    %100 = vector.shape_cast %99 : vector<8x1x96xbf16> to vector<8x96xbf16>
    %c120 = arith.constant 120 : index
    %c0_112 = arith.constant 0 : index
    %101 = vector.load %arg15[%c120, %c0_112] : memref<288x96xbf16, #tpu.memory_space<vmem>>, vector<8x96xbf16>
    tpu.vector_store %arg15[%c120, %c0_112], %100 {strides = array<i32>} : memref<288x96xbf16, #tpu.memory_space<vmem>>, vector<8x96xbf16>,
    %c0_113 = arith.constant 0 : index
    %c29 = arith.constant 29 : index
    %c0_114 = arith.constant 0 : index
    %102 = vector.load %arg1[%c0_113, %c29, %c0_114] : memref<8x32x96xbf16, #tpu.memory_space<vmem>>, vector<8x1x96xbf16>
    %103 = vector.shape_cast %102 : vector<8x1x96xbf16> to vector<8x96xbf16>
    %c264 = arith.constant 264 : index
    %c0_115 = arith.constant 0 : index
    %104 = vector.load %arg15[%c264, %c0_115] : memref<288x96xbf16, #tpu.memory_space<vmem>>, vector<8x96xbf16>
    tpu.vector_store %arg15[%c264, %c0_115], %103 {strides = array<i32>} : memref<288x96xbf16, #tpu.memory_space<vmem>>, vector<8x96xbf16>,
    %c0_116 = arith.constant 0 : index
    %c30 = arith.constant 30 : index
    %c0_117 = arith.constant 0 : index
    %105 = vector.load %arg1[%c0_116, %c30, %c0_117] : memref<8x32x96xbf16, #tpu.memory_space<vmem>>, vector<8x1x96xbf16>
    %106 = vector.shape_cast %105 : vector<8x1x96xbf16> to vector<8x96xbf16>
    %c128 = arith.constant 128 : index
    %c0_118 = arith.constant 0 : index
    %107 = vector.load %arg15[%c128, %c0_118] : memref<288x96xbf16, #tpu.memory_space<vmem>>, vector<8x96xbf16>
    tpu.vector_store %arg15[%c128, %c0_118], %106 {strides = array<i32>} : memref<288x96xbf16, #tpu.memory_space<vmem>>, vector<8x96xbf16>,
    %c0_119 = arith.constant 0 : index
    %c31 = arith.constant 31 : index
    %c0_120 = arith.constant 0 : index
    %108 = vector.load %arg1[%c0_119, %c31, %c0_120] : memref<8x32x96xbf16, #tpu.memory_space<vmem>>, vector<8x1x96xbf16>
    %109 = vector.shape_cast %108 : vector<8x1x96xbf16> to vector<8x96xbf16>
    %c272 = arith.constant 272 : index
    %c0_121 = arith.constant 0 : index
    %110 = vector.load %arg15[%c272, %c0_121] : memref<288x96xbf16, #tpu.memory_space<vmem>>, vector<8x96xbf16>
    tpu.vector_store %arg15[%c272, %c0_121], %109 {strides = array<i32>} : memref<288x96xbf16, #tpu.memory_space<vmem>>, vector<8x96xbf16>,
    %c0_122 = arith.constant 0 : index
    %c0_123 = arith.constant 0 : index
    %111 = vector.load %arg15[%c0_122, %c0_123] : memref<288x96xbf16, #tpu.memory_space<vmem>>, vector<128x96xbf16>
    %c0_124 = arith.constant 0 : index
    %c0_125 = arith.constant 0 : index
    %c0_126 = arith.constant 0 : index
    %112 = vector.load %arg2[%c0_124, %c0_125, %c0_126] : memref<5x96x256xbf16, #tpu.memory_space<vmem>>, vector<1x96x256xbf16>
    %113 = vector.shape_cast %112 : vector<1x96x256xbf16> to vector<96x256xbf16>
    %cst_127 = arith.constant dense<0.000000e+00> : vector<128x256xf32>
    %114 = tpu.matmul %111, %113, %cst_127 {dimension_numbers = #tpu.dot_dimension_numbers<[1], [0], [0], [1], [0, 0, 1, 1], [], []>} : vector<128x96xbf16>, vector<96x256xbf16>, vector<128x256xf32> -> vector<128x256xf32>
    %c0_128 = arith.constant 0 : index
    %c0_129 = arith.constant 0 : index
    %115 = vector.load %arg18[%c0_128, %c0_129] : memref<128x256xf32, #tpu.memory_space<vmem>>, vector<128x256xf32>
    tpu.vector_store %arg18[%c0_128, %c0_129], %114 {strides = array<i32>} : memref<128x256xf32, #tpu.memory_space<vmem>>, vector<128x256xf32>,
    %c144_130 = arith.constant 144 : index
    %c0_131 = arith.constant 0 : index
    %116 = vector.load %arg15[%c144_130, %c0_131] : memref<288x96xbf16, #tpu.memory_space<vmem>>, vector<128x96xbf16>
    %c1_132 = arith.constant 1 : index
    %c0_133 = arith.constant 0 : index
    %c0_134 = arith.constant 0 : index
    %117 = vector.load %arg2[%c1_132, %c0_133, %c0_134] : memref<5x96x256xbf16, #tpu.memory_space<vmem>>, vector<1x96x256xbf16>
    %118 = vector.shape_cast %117 : vector<1x96x256xbf16> to vector<96x256xbf16>
    %cst_135 = arith.constant dense<0.000000e+00> : vector<128x256xf32>
    %119 = tpu.matmul %116, %118, %cst_135 {dimension_numbers = #tpu.dot_dimension_numbers<[1], [0], [0], [1], [0, 0, 1, 1], [], []>} : vector<128x96xbf16>, vector<96x256xbf16>, vector<128x256xf32> -> vector<128x256xf32>
    %c0_136 = arith.constant 0 : index
    %c0_137 = arith.constant 0 : index
    %120 = vector.load %arg18[%c0_136, %c0_137] : memref<128x256xf32, #tpu.memory_space<vmem>>, vector<128x256xf32>
    %121 = arith.addf %120, %119 : vector<128x256xf32>
    %c0_138 = arith.constant 0 : index
    %c0_139 = arith.constant 0 : index
    %122 = vector.load %arg18[%c0_138, %c0_139] : memref<128x256xf32, #tpu.memory_space<vmem>>, vector<128x256xf32>
    tpu.vector_store %arg18[%c0_138, %c0_139], %121 {strides = array<i32>} : memref<128x256xf32, #tpu.memory_space<vmem>>, vector<128x256xf32>,
    %c8_140 = arith.constant 8 : index
    %c0_141 = arith.constant 0 : index
    %123 = vector.load %arg15[%c8_140, %c0_141] : memref<288x96xbf16, #tpu.memory_space<vmem>>, vector<128x96xbf16>
    %c2_142 = arith.constant 2 : index
    %c0_143 = arith.constant 0 : index
    %c0_144 = arith.constant 0 : index
    %124 = vector.load %arg2[%c2_142, %c0_143, %c0_144] : memref<5x96x256xbf16, #tpu.memory_space<vmem>>, vector<1x96x256xbf16>
    %125 = vector.shape_cast %124 : vector<1x96x256xbf16> to vector<96x256xbf16>
    %cst_145 = arith.constant dense<0.000000e+00> : vector<128x256xf32>
    %126 = tpu.matmul %123, %125, %cst_145 {dimension_numbers = #tpu.dot_dimension_numbers<[1], [0], [0], [1], [0, 0, 1, 1], [], []>} : vector<128x96xbf16>, vector<96x256xbf16>, vector<128x256xf32> -> vector<128x256xf32>
    %c0_146 = arith.constant 0 : index
    %c0_147 = arith.constant 0 : index
    %127 = vector.load %arg18[%c0_146, %c0_147] : memref<128x256xf32, #tpu.memory_space<vmem>>, vector<128x256xf32>
    %128 = arith.addf %127, %126 : vector<128x256xf32>
    %c0_148 = arith.constant 0 : index
    %c0_149 = arith.constant 0 : index
    %129 = vector.load %arg18[%c0_148, %c0_149] : memref<128x256xf32, #tpu.memory_space<vmem>>, vector<128x256xf32>
    tpu.vector_store %arg18[%c0_148, %c0_149], %128 {strides = array<i32>} : memref<128x256xf32, #tpu.memory_space<vmem>>, vector<128x256xf32>,
    %c152_150 = arith.constant 152 : index
    %c0_151 = arith.constant 0 : index
    %130 = vector.load %arg15[%c152_150, %c0_151] : memref<288x96xbf16, #tpu.memory_space<vmem>>, vector<128x96xbf16>
    %c3_152 = arith.constant 3 : index
    %c0_153 = arith.constant 0 : index
    %c0_154 = arith.constant 0 : index
    %131 = vector.load %arg2[%c3_152, %c0_153, %c0_154] : memref<5x96x256xbf16, #tpu.memory_space<vmem>>, vector<1x96x256xbf16>
    %132 = vector.shape_cast %131 : vector<1x96x256xbf16> to vector<96x256xbf16>
    %cst_155 = arith.constant dense<0.000000e+00> : vector<128x256xf32>
    %133 = tpu.matmul %130, %132, %cst_155 {dimension_numbers = #tpu.dot_dimension_numbers<[1], [0], [0], [1], [0, 0, 1, 1], [], []>} : vector<128x96xbf16>, vector<96x256xbf16>, vector<128x256xf32> -> vector<128x256xf32>
    %c0_156 = arith.constant 0 : index
    %c0_157 = arith.constant 0 : index
    %134 = vector.load %arg18[%c0_156, %c0_157] : memref<128x256xf32, #tpu.memory_space<vmem>>, vector<128x256xf32>
    %135 = arith.addf %134, %133 : vector<128x256xf32>
    %c0_158 = arith.constant 0 : index
    %c0_159 = arith.constant 0 : index
    %136 = vector.load %arg18[%c0_158, %c0_159] : memref<128x256xf32, #tpu.memory_space<vmem>>, vector<128x256xf32>
    tpu.vector_store %arg18[%c0_158, %c0_159], %135 {strides = array<i32>} : memref<128x256xf32, #tpu.memory_space<vmem>>, vector<128x256xf32>,
    %c16_160 = arith.constant 16 : index
    %c0_161 = arith.constant 0 : index
    %137 = vector.load %arg15[%c16_160, %c0_161] : memref<288x96xbf16, #tpu.memory_space<vmem>>, vector<128x96xbf16>
    %c4_162 = arith.constant 4 : index
    %c0_163 = arith.constant 0 : index
    %c0_164 = arith.constant 0 : index
    %138 = vector.load %arg2[%c4_162, %c0_163, %c0_164] : memref<5x96x256xbf16, #tpu.memory_space<vmem>>, vector<1x96x256xbf16>
    %139 = vector.shape_cast %138 : vector<1x96x256xbf16> to vector<96x256xbf16>
    %cst_165 = arith.constant dense<0.000000e+00> : vector<128x256xf32>
    %140 = tpu.matmul %137, %139, %cst_165 {dimension_numbers = #tpu.dot_dimension_numbers<[1], [0], [0], [1], [0, 0, 1, 1], [], []>} : vector<128x96xbf16>, vector<96x256xbf16>, vector<128x256xf32> -> vector<128x256xf32>
    %c0_166 = arith.constant 0 : index
    %c0_167 = arith.constant 0 : index
    %141 = vector.load %arg18[%c0_166, %c0_167] : memref<128x256xf32, #tpu.memory_space<vmem>>, vector<128x256xf32>
    %142 = arith.addf %141, %140 : vector<128x256xf32>
    %c0_168 = arith.constant 0 : index
    %c0_169 = arith.constant 0 : index
    %143 = vector.load %arg18[%c0_168, %c0_169] : memref<128x256xf32, #tpu.memory_space<vmem>>, vector<128x256xf32>
    tpu.vector_store %arg18[%c0_168, %c0_169], %142 {strides = array<i32>} : memref<128x256xf32, #tpu.memory_space<vmem>>, vector<128x256xf32>,
    %c0_170 = arith.constant 0 : index
    %c0_171 = arith.constant 0 : index
    %144 = vector.load %arg3[%c0_170, %c0_171] : memref<1x256xf32, #tpu.memory_space<vmem>>, vector<1x256xf32>
    %c0_172 = arith.constant 0 : index
    %c0_173 = arith.constant 0 : index
    %145 = vector.load %arg18[%c0_172, %c0_173] : memref<128x256xf32, #tpu.memory_space<vmem>>, vector<8x256xf32>
    %146 = vector.broadcast %144 : vector<1x256xf32> to vector<8x256xf32>
    %147 = arith.addf %145, %146 : vector<8x256xf32>
    %cst_174 = arith.constant 0.000000e+00 : f32
    %148 = vector.broadcast %cst_174 : f32 to vector<8x256xf32>
    %149 = arith.maximumf %147, %148 : vector<8x256xf32>
    %150 = arith.truncf %149 : vector<8x256xf32> to vector<8x256xbf16>
    %c8_175 = arith.constant 8 : index
    %c0_176 = arith.constant 0 : index
    %151 = vector.load %arg16[%c8_175, %c0_176] : memref<160x256xbf16, #tpu.memory_space<vmem>>, vector<8x256xbf16>
    tpu.vector_store %arg16[%c8_175, %c0_176], %150 {strides = array<i32>} : memref<160x256xbf16, #tpu.memory_space<vmem>>, vector<8x256xbf16>,
    %c8_177 = arith.constant 8 : index
    %c0_178 = arith.constant 0 : index
    %152 = vector.load %arg18[%c8_177, %c0_178] : memref<128x256xf32, #tpu.memory_space<vmem>>, vector<8x256xf32>
    %153 = vector.broadcast %144 : vector<1x256xf32> to vector<8x256xf32>
    %154 = arith.addf %152, %153 : vector<8x256xf32>
    %cst_179 = arith.constant 0.000000e+00 : f32
    %155 = vector.broadcast %cst_179 : f32 to vector<8x256xf32>
    %156 = arith.maximumf %154, %155 : vector<8x256xf32>
    %157 = arith.truncf %156 : vector<8x256xf32> to vector<8x256xbf16>
    %c88_180 = arith.constant 88 : index
    %c0_181 = arith.constant 0 : index
    %158 = vector.load %arg16[%c88_180, %c0_181] : memref<160x256xbf16, #tpu.memory_space<vmem>>, vector<8x256xbf16>
    tpu.vector_store %arg16[%c88_180, %c0_181], %157 {strides = array<i32>} : memref<160x256xbf16, #tpu.memory_space<vmem>>, vector<8x256xbf16>,
    %c16_182 = arith.constant 16 : index
    %c0_183 = arith.constant 0 : index
    %159 = vector.load %arg18[%c16_182, %c0_183] : memref<128x256xf32, #tpu.memory_space<vmem>>, vector<8x256xf32>
    %160 = vector.broadcast %144 : vector<1x256xf32> to vector<8x256xf32>
    %161 = arith.addf %159, %160 : vector<8x256xf32>
    %cst_184 = arith.constant 0.000000e+00 : f32
    %162 = vector.broadcast %cst_184 : f32 to vector<8x256xf32>
    %163 = arith.maximumf %161, %162 : vector<8x256xf32>
    %164 = arith.truncf %163 : vector<8x256xf32> to vector<8x256xbf16>
    %c16_185 = arith.constant 16 : index
    %c0_186 = arith.constant 0 : index
    %165 = vector.load %arg16[%c16_185, %c0_186] : memref<160x256xbf16, #tpu.memory_space<vmem>>, vector<8x256xbf16>
    tpu.vector_store %arg16[%c16_185, %c0_186], %164 {strides = array<i32>} : memref<160x256xbf16, #tpu.memory_space<vmem>>, vector<8x256xbf16>,
    %c24_187 = arith.constant 24 : index
    %c0_188 = arith.constant 0 : index
    %166 = vector.load %arg18[%c24_187, %c0_188] : memref<128x256xf32, #tpu.memory_space<vmem>>, vector<8x256xf32>
    %167 = vector.broadcast %144 : vector<1x256xf32> to vector<8x256xf32>
    %168 = arith.addf %166, %167 : vector<8x256xf32>
    %cst_189 = arith.constant 0.000000e+00 : f32
    %169 = vector.broadcast %cst_189 : f32 to vector<8x256xf32>
    %170 = arith.maximumf %168, %169 : vector<8x256xf32>
    %171 = arith.truncf %170 : vector<8x256xf32> to vector<8x256xbf16>
    %c96_190 = arith.constant 96 : index
    %c0_191 = arith.constant 0 : index
    %172 = vector.load %arg16[%c96_190, %c0_191] : memref<160x256xbf16, #tpu.memory_space<vmem>>, vector<8x256xbf16>
    tpu.vector_store %arg16[%c96_190, %c0_191], %171 {strides = array<i32>} : memref<160x256xbf16, #tpu.memory_space<vmem>>, vector<8x256xbf16>,
    %c32_192 = arith.constant 32 : index
    %c0_193 = arith.constant 0 : index
    %173 = vector.load %arg18[%c32_192, %c0_193] : memref<128x256xf32, #tpu.memory_space<vmem>>, vector<8x256xf32>
    %174 = vector.broadcast %144 : vector<1x256xf32> to vector<8x256xf32>
    %175 = arith.addf %173, %174 : vector<8x256xf32>
    %cst_194 = arith.constant 0.000000e+00 : f32
    %176 = vector.broadcast %cst_194 : f32 to vector<8x256xf32>
    %177 = arith.maximumf %175, %176 : vector<8x256xf32>
    %178 = arith.truncf %177 : vector<8x256xf32> to vector<8x256xbf16>
    %c24_195 = arith.constant 24 : index
    %c0_196 = arith.constant 0 : index
    %179 = vector.load %arg16[%c24_195, %c0_196] : memref<160x256xbf16, #tpu.memory_space<vmem>>, vector<8x256xbf16>
    tpu.vector_store %arg16[%c24_195, %c0_196], %178 {strides = array<i32>} : memref<160x256xbf16, #tpu.memory_space<vmem>>, vector<8x256xbf16>,
    %c40_197 = arith.constant 40 : index
    %c0_198 = arith.constant 0 : index
    %180 = vector.load %arg18[%c40_197, %c0_198] : memref<128x256xf32, #tpu.memory_space<vmem>>, vector<8x256xf32>
    %181 = vector.broadcast %144 : vector<1x256xf32> to vector<8x256xf32>
    %182 = arith.addf %180, %181 : vector<8x256xf32>
    %cst_199 = arith.constant 0.000000e+00 : f32
    %183 = vector.broadcast %cst_199 : f32 to vector<8x256xf32>
    %184 = arith.maximumf %182, %183 : vector<8x256xf32>
    %185 = arith.truncf %184 : vector<8x256xf32> to vector<8x256xbf16>
    %c104_200 = arith.constant 104 : index
    %c0_201 = arith.constant 0 : index
    %186 = vector.load %arg16[%c104_200, %c0_201] : memref<160x256xbf16, #tpu.memory_space<vmem>>, vector<8x256xbf16>
    tpu.vector_store %arg16[%c104_200, %c0_201], %185 {strides = array<i32>} : memref<160x256xbf16, #tpu.memory_space<vmem>>, vector<8x256xbf16>,
    %c48_202 = arith.constant 48 : index
    %c0_203 = arith.constant 0 : index
    %187 = vector.load %arg18[%c48_202, %c0_203] : memref<128x256xf32, #tpu.memory_space<vmem>>, vector<8x256xf32>
    %188 = vector.broadcast %144 : vector<1x256xf32> to vector<8x256xf32>
    %189 = arith.addf %187, %188 : vector<8x256xf32>
    %cst_204 = arith.constant 0.000000e+00 : f32
    %190 = vector.broadcast %cst_204 : f32 to vector<8x256xf32>
    %191 = arith.maximumf %189, %190 : vector<8x256xf32>
    %192 = arith.truncf %191 : vector<8x256xf32> to vector<8x256xbf16>
    %c32_205 = arith.constant 32 : index
    %c0_206 = arith.constant 0 : index
    %193 = vector.load %arg16[%c32_205, %c0_206] : memref<160x256xbf16, #tpu.memory_space<vmem>>, vector<8x256xbf16>
    tpu.vector_store %arg16[%c32_205, %c0_206], %192 {strides = array<i32>} : memref<160x256xbf16, #tpu.memory_space<vmem>>, vector<8x256xbf16>,
    %c56_207 = arith.constant 56 : index
    %c0_208 = arith.constant 0 : index
    %194 = vector.load %arg18[%c56_207, %c0_208] : memref<128x256xf32, #tpu.memory_space<vmem>>, vector<8x256xf32>
    %195 = vector.broadcast %144 : vector<1x256xf32> to vector<8x256xf32>
    %196 = arith.addf %194, %195 : vector<8x256xf32>
    %cst_209 = arith.constant 0.000000e+00 : f32
    %197 = vector.broadcast %cst_209 : f32 to vector<8x256xf32>
    %198 = arith.maximumf %196, %197 : vector<8x256xf32>
    %199 = arith.truncf %198 : vector<8x256xf32> to vector<8x256xbf16>
    %c112_210 = arith.constant 112 : index
    %c0_211 = arith.constant 0 : index
    %200 = vector.load %arg16[%c112_210, %c0_211] : memref<160x256xbf16, #tpu.memory_space<vmem>>, vector<8x256xbf16>
    tpu.vector_store %arg16[%c112_210, %c0_211], %199 {strides = array<i32>} : memref<160x256xbf16, #tpu.memory_space<vmem>>, vector<8x256xbf16>,
    %c64_212 = arith.constant 64 : index
    %c0_213 = arith.constant 0 : index
    %201 = vector.load %arg18[%c64_212, %c0_213] : memref<128x256xf32, #tpu.memory_space<vmem>>, vector<8x256xf32>
    %202 = vector.broadcast %144 : vector<1x256xf32> to vector<8x256xf32>
    %203 = arith.addf %201, %202 : vector<8x256xf32>
    %cst_214 = arith.constant 0.000000e+00 : f32
    %204 = vector.broadcast %cst_214 : f32 to vector<8x256xf32>
    %205 = arith.maximumf %203, %204 : vector<8x256xf32>
    %206 = arith.truncf %205 : vector<8x256xf32> to vector<8x256xbf16>
    %c40_215 = arith.constant 40 : index
    %c0_216 = arith.constant 0 : index
    %207 = vector.load %arg16[%c40_215, %c0_216] : memref<160x256xbf16, #tpu.memory_space<vmem>>, vector<8x256xbf16>
    tpu.vector_store %arg16[%c40_215, %c0_216], %206 {strides = array<i32>} : memref<160x256xbf16, #tpu.memory_space<vmem>>, vector<8x256xbf16>,
    %c72_217 = arith.constant 72 : index
    %c0_218 = arith.constant 0 : index
    %208 = vector.load %arg18[%c72_217, %c0_218] : memref<128x256xf32, #tpu.memory_space<vmem>>, vector<8x256xf32>
    %209 = vector.broadcast %144 : vector<1x256xf32> to vector<8x256xf32>
    %210 = arith.addf %208, %209 : vector<8x256xf32>
    %cst_219 = arith.constant 0.000000e+00 : f32
    %211 = vector.broadcast %cst_219 : f32 to vector<8x256xf32>
    %212 = arith.maximumf %210, %211 : vector<8x256xf32>
    %213 = arith.truncf %212 : vector<8x256xf32> to vector<8x256xbf16>
    %c120_220 = arith.constant 120 : index
    %c0_221 = arith.constant 0 : index
    %214 = vector.load %arg16[%c120_220, %c0_221] : memref<160x256xbf16, #tpu.memory_space<vmem>>, vector<8x256xbf16>
    tpu.vector_store %arg16[%c120_220, %c0_221], %213 {strides = array<i32>} : memref<160x256xbf16, #tpu.memory_space<vmem>>, vector<8x256xbf16>,
    %c80_222 = arith.constant 80 : index
    %c0_223 = arith.constant 0 : index
    %215 = vector.load %arg18[%c80_222, %c0_223] : memref<128x256xf32, #tpu.memory_space<vmem>>, vector<8x256xf32>
    %216 = vector.broadcast %144 : vector<1x256xf32> to vector<8x256xf32>
    %217 = arith.addf %215, %216 : vector<8x256xf32>
    %cst_224 = arith.constant 0.000000e+00 : f32
    %218 = vector.broadcast %cst_224 : f32 to vector<8x256xf32>
    %219 = arith.maximumf %217, %218 : vector<8x256xf32>
    %220 = arith.truncf %219 : vector<8x256xf32> to vector<8x256xbf16>
    %c48_225 = arith.constant 48 : index
    %c0_226 = arith.constant 0 : index
    %221 = vector.load %arg16[%c48_225, %c0_226] : memref<160x256xbf16, #tpu.memory_space<vmem>>, vector<8x256xbf16>
    tpu.vector_store %arg16[%c48_225, %c0_226], %220 {strides = array<i32>} : memref<160x256xbf16, #tpu.memory_space<vmem>>, vector<8x256xbf16>,
    %c88_227 = arith.constant 88 : index
    %c0_228 = arith.constant 0 : index
    %222 = vector.load %arg18[%c88_227, %c0_228] : memref<128x256xf32, #tpu.memory_space<vmem>>, vector<8x256xf32>
    %223 = vector.broadcast %144 : vector<1x256xf32> to vector<8x256xf32>
    %224 = arith.addf %222, %223 : vector<8x256xf32>
    %cst_229 = arith.constant 0.000000e+00 : f32
    %225 = vector.broadcast %cst_229 : f32 to vector<8x256xf32>
    %226 = arith.maximumf %224, %225 : vector<8x256xf32>
    %227 = arith.truncf %226 : vector<8x256xf32> to vector<8x256xbf16>
    %c128_230 = arith.constant 128 : index
    %c0_231 = arith.constant 0 : index
    %228 = vector.load %arg16[%c128_230, %c0_231] : memref<160x256xbf16, #tpu.memory_space<vmem>>, vector<8x256xbf16>
    tpu.vector_store %arg16[%c128_230, %c0_231], %227 {strides = array<i32>} : memref<160x256xbf16, #tpu.memory_space<vmem>>, vector<8x256xbf16>,
    %c96_232 = arith.constant 96 : index
    %c0_233 = arith.constant 0 : index
    %229 = vector.load %arg18[%c96_232, %c0_233] : memref<128x256xf32, #tpu.memory_space<vmem>>, vector<8x256xf32>
    %230 = vector.broadcast %144 : vector<1x256xf32> to vector<8x256xf32>
    %231 = arith.addf %229, %230 : vector<8x256xf32>
    %cst_234 = arith.constant 0.000000e+00 : f32
    %232 = vector.broadcast %cst_234 : f32 to vector<8x256xf32>
    %233 = arith.maximumf %231, %232 : vector<8x256xf32>
    %234 = arith.truncf %233 : vector<8x256xf32> to vector<8x256xbf16>
    %c56_235 = arith.constant 56 : index
    %c0_236 = arith.constant 0 : index
    %235 = vector.load %arg16[%c56_235, %c0_236] : memref<160x256xbf16, #tpu.memory_space<vmem>>, vector<8x256xbf16>
    tpu.vector_store %arg16[%c56_235, %c0_236], %234 {strides = array<i32>} : memref<160x256xbf16, #tpu.memory_space<vmem>>, vector<8x256xbf16>,
    %c104_237 = arith.constant 104 : index
    %c0_238 = arith.constant 0 : index
    %236 = vector.load %arg18[%c104_237, %c0_238] : memref<128x256xf32, #tpu.memory_space<vmem>>, vector<8x256xf32>
    %237 = vector.broadcast %144 : vector<1x256xf32> to vector<8x256xf32>
    %238 = arith.addf %236, %237 : vector<8x256xf32>
    %cst_239 = arith.constant 0.000000e+00 : f32
    %239 = vector.broadcast %cst_239 : f32 to vector<8x256xf32>
    %240 = arith.maximumf %238, %239 : vector<8x256xf32>
    %241 = arith.truncf %240 : vector<8x256xf32> to vector<8x256xbf16>
    %c136_240 = arith.constant 136 : index
    %c0_241 = arith.constant 0 : index
    %242 = vector.load %arg16[%c136_240, %c0_241] : memref<160x256xbf16, #tpu.memory_space<vmem>>, vector<8x256xbf16>
    tpu.vector_store %arg16[%c136_240, %c0_241], %241 {strides = array<i32>} : memref<160x256xbf16, #tpu.memory_space<vmem>>, vector<8x256xbf16>,
    %c112_242 = arith.constant 112 : index
    %c0_243 = arith.constant 0 : index
    %243 = vector.load %arg18[%c112_242, %c0_243] : memref<128x256xf32, #tpu.memory_space<vmem>>, vector<8x256xf32>
    %244 = vector.broadcast %144 : vector<1x256xf32> to vector<8x256xf32>
    %245 = arith.addf %243, %244 : vector<8x256xf32>
    %cst_244 = arith.constant 0.000000e+00 : f32
    %246 = vector.broadcast %cst_244 : f32 to vector<8x256xf32>
    %247 = arith.maximumf %245, %246 : vector<8x256xf32>
    %248 = arith.truncf %247 : vector<8x256xf32> to vector<8x256xbf16>
    %c64_245 = arith.constant 64 : index
    %c0_246 = arith.constant 0 : index
    %249 = vector.load %arg16[%c64_245, %c0_246] : memref<160x256xbf16, #tpu.memory_space<vmem>>, vector<8x256xbf16>
    tpu.vector_store %arg16[%c64_245, %c0_246], %248 {strides = array<i32>} : memref<160x256xbf16, #tpu.memory_space<vmem>>, vector<8x256xbf16>,
    %c120_247 = arith.constant 120 : index
    %c0_248 = arith.constant 0 : index
    %250 = vector.load %arg18[%c120_247, %c0_248] : memref<128x256xf32, #tpu.memory_space<vmem>>, vector<8x256xf32>
    %251 = vector.broadcast %144 : vector<1x256xf32> to vector<8x256xf32>
    %252 = arith.addf %250, %251 : vector<8x256xf32>
    %cst_249 = arith.constant 0.000000e+00 : f32
    %253 = vector.broadcast %cst_249 : f32 to vector<8x256xf32>
    %254 = arith.maximumf %252, %253 : vector<8x256xf32>
    %255 = arith.truncf %254 : vector<8x256xf32> to vector<8x256xbf16>
    %c144_250 = arith.constant 144 : index
    %c0_251 = arith.constant 0 : index
    %256 = vector.load %arg16[%c144_250, %c0_251] : memref<160x256xbf16, #tpu.memory_space<vmem>>, vector<8x256xbf16>
    tpu.vector_store %arg16[%c144_250, %c0_251], %255 {strides = array<i32>} : memref<160x256xbf16, #tpu.memory_space<vmem>>, vector<8x256xbf16>,
    %c0_252 = arith.constant 0 : index
    %c0_253 = arith.constant 0 : index
    %257 = vector.load %arg16[%c0_252, %c0_253] : memref<160x256xbf16, #tpu.memory_space<vmem>>, vector<64x256xbf16>
    %c0_254 = arith.constant 0 : index
    %c0_255 = arith.constant 0 : index
    %c0_256 = arith.constant 0 : index
    %258 = vector.load %arg4[%c0_254, %c0_255, %c0_256] : memref<5x256x512xbf16, #tpu.memory_space<vmem>>, vector<1x256x512xbf16>
    %259 = vector.shape_cast %258 : vector<1x256x512xbf16> to vector<256x512xbf16>
    %cst_257 = arith.constant dense<0.000000e+00> : vector<64x512xf32>
    %260 = tpu.matmul %257, %259, %cst_257 {dimension_numbers = #tpu.dot_dimension_numbers<[1], [0], [0], [1], [0, 0, 1, 1], [], []>} : vector<64x256xbf16>, vector<256x512xbf16>, vector<64x512xf32> -> vector<64x512xf32>
    %c0_258 = arith.constant 0 : index
    %c0_259 = arith.constant 0 : index
    %261 = vector.load %arg19[%c0_258, %c0_259] : memref<64x512xf32, #tpu.memory_space<vmem>>, vector<64x512xf32>
    tpu.vector_store %arg19[%c0_258, %c0_259], %260 {strides = array<i32>} : memref<64x512xf32, #tpu.memory_space<vmem>>, vector<64x512xf32>,
    %c80_260 = arith.constant 80 : index
    %c0_261 = arith.constant 0 : index
    %262 = vector.load %arg16[%c80_260, %c0_261] : memref<160x256xbf16, #tpu.memory_space<vmem>>, vector<64x256xbf16>
    %c1_262 = arith.constant 1 : index
    %c0_263 = arith.constant 0 : index
    %c0_264 = arith.constant 0 : index
    %263 = vector.load %arg4[%c1_262, %c0_263, %c0_264] : memref<5x256x512xbf16, #tpu.memory_space<vmem>>, vector<1x256x512xbf16>
    %264 = vector.shape_cast %263 : vector<1x256x512xbf16> to vector<256x512xbf16>
    %cst_265 = arith.constant dense<0.000000e+00> : vector<64x512xf32>
    %265 = tpu.matmul %262, %264, %cst_265 {dimension_numbers = #tpu.dot_dimension_numbers<[1], [0], [0], [1], [0, 0, 1, 1], [], []>} : vector<64x256xbf16>, vector<256x512xbf16>, vector<64x512xf32> -> vector<64x512xf32>
    %c0_266 = arith.constant 0 : index
    %c0_267 = arith.constant 0 : index
    %266 = vector.load %arg19[%c0_266, %c0_267] : memref<64x512xf32, #tpu.memory_space<vmem>>, vector<64x512xf32>
    %267 = arith.addf %266, %265 : vector<64x512xf32>
    %c0_268 = arith.constant 0 : index
    %c0_269 = arith.constant 0 : index
    %268 = vector.load %arg19[%c0_268, %c0_269] : memref<64x512xf32, #tpu.memory_space<vmem>>, vector<64x512xf32>
    tpu.vector_store %arg19[%c0_268, %c0_269], %267 {strides = array<i32>} : memref<64x512xf32, #tpu.memory_space<vmem>>, vector<64x512xf32>,
    %c8_270 = arith.constant 8 : index
    %c0_271 = arith.constant 0 : index
    %269 = vector.load %arg16[%c8_270, %c0_271] : memref<160x256xbf16, #tpu.memory_space<vmem>>, vector<64x256xbf16>
    %c2_272 = arith.constant 2 : index
    %c0_273 = arith.constant 0 : index
    %c0_274 = arith.constant 0 : index
    %270 = vector.load %arg4[%c2_272, %c0_273, %c0_274] : memref<5x256x512xbf16, #tpu.memory_space<vmem>>, vector<1x256x512xbf16>
    %271 = vector.shape_cast %270 : vector<1x256x512xbf16> to vector<256x512xbf16>
    %cst_275 = arith.constant dense<0.000000e+00> : vector<64x512xf32>
    %272 = tpu.matmul %269, %271, %cst_275 {dimension_numbers = #tpu.dot_dimension_numbers<[1], [0], [0], [1], [0, 0, 1, 1], [], []>} : vector<64x256xbf16>, vector<256x512xbf16>, vector<64x512xf32> -> vector<64x512xf32>
    %c0_276 = arith.constant 0 : index
    %c0_277 = arith.constant 0 : index
    %273 = vector.load %arg19[%c0_276, %c0_277] : memref<64x512xf32, #tpu.memory_space<vmem>>, vector<64x512xf32>
    %274 = arith.addf %273, %272 : vector<64x512xf32>
    %c0_278 = arith.constant 0 : index
    %c0_279 = arith.constant 0 : index
    %275 = vector.load %arg19[%c0_278, %c0_279] : memref<64x512xf32, #tpu.memory_space<vmem>>, vector<64x512xf32>
    tpu.vector_store %arg19[%c0_278, %c0_279], %274 {strides = array<i32>} : memref<64x512xf32, #tpu.memory_space<vmem>>, vector<64x512xf32>,
    %c88_280 = arith.constant 88 : index
    %c0_281 = arith.constant 0 : index
    %276 = vector.load %arg16[%c88_280, %c0_281] : memref<160x256xbf16, #tpu.memory_space<vmem>>, vector<64x256xbf16>
    %c3_282 = arith.constant 3 : index
    %c0_283 = arith.constant 0 : index
    %c0_284 = arith.constant 0 : index
    %277 = vector.load %arg4[%c3_282, %c0_283, %c0_284] : memref<5x256x512xbf16, #tpu.memory_space<vmem>>, vector<1x256x512xbf16>
    %278 = vector.shape_cast %277 : vector<1x256x512xbf16> to vector<256x512xbf16>
    %cst_285 = arith.constant dense<0.000000e+00> : vector<64x512xf32>
    %279 = tpu.matmul %276, %278, %cst_285 {dimension_numbers = #tpu.dot_dimension_numbers<[1], [0], [0], [1], [0, 0, 1, 1], [], []>} : vector<64x256xbf16>, vector<256x512xbf16>, vector<64x512xf32> -> vector<64x512xf32>
    %c0_286 = arith.constant 0 : index
    %c0_287 = arith.constant 0 : index
    %280 = vector.load %arg19[%c0_286, %c0_287] : memref<64x512xf32, #tpu.memory_space<vmem>>, vector<64x512xf32>
    %281 = arith.addf %280, %279 : vector<64x512xf32>
    %c0_288 = arith.constant 0 : index
    %c0_289 = arith.constant 0 : index
    %282 = vector.load %arg19[%c0_288, %c0_289] : memref<64x512xf32, #tpu.memory_space<vmem>>, vector<64x512xf32>
    tpu.vector_store %arg19[%c0_288, %c0_289], %281 {strides = array<i32>} : memref<64x512xf32, #tpu.memory_space<vmem>>, vector<64x512xf32>,
    %c16_290 = arith.constant 16 : index
    %c0_291 = arith.constant 0 : index
    %283 = vector.load %arg16[%c16_290, %c0_291] : memref<160x256xbf16, #tpu.memory_space<vmem>>, vector<64x256xbf16>
    %c4_292 = arith.constant 4 : index
    %c0_293 = arith.constant 0 : index
    %c0_294 = arith.constant 0 : index
    %284 = vector.load %arg4[%c4_292, %c0_293, %c0_294] : memref<5x256x512xbf16, #tpu.memory_space<vmem>>, vector<1x256x512xbf16>
    %285 = vector.shape_cast %284 : vector<1x256x512xbf16> to vector<256x512xbf16>
    %cst_295 = arith.constant dense<0.000000e+00> : vector<64x512xf32>
    %286 = tpu.matmul %283, %285, %cst_295 {dimension_numbers = #tpu.dot_dimension_numbers<[1], [0], [0], [1], [0, 0, 1, 1], [], []>} : vector<64x256xbf16>, vector<256x512xbf16>, vector<64x512xf32> -> vector<64x512xf32>
    %c0_296 = arith.constant 0 : index
    %c0_297 = arith.constant 0 : index
    %287 = vector.load %arg19[%c0_296, %c0_297] : memref<64x512xf32, #tpu.memory_space<vmem>>, vector<64x512xf32>
    %288 = arith.addf %287, %286 : vector<64x512xf32>
    %c0_298 = arith.constant 0 : index
    %c0_299 = arith.constant 0 : index
    %289 = vector.load %arg19[%c0_298, %c0_299] : memref<64x512xf32, #tpu.memory_space<vmem>>, vector<64x512xf32>
    tpu.vector_store %arg19[%c0_298, %c0_299], %288 {strides = array<i32>} : memref<64x512xf32, #tpu.memory_space<vmem>>, vector<64x512xf32>,
    %c0_300 = arith.constant 0 : index
    %c0_301 = arith.constant 0 : index
    %290 = vector.load %arg5[%c0_300, %c0_301] : memref<1x512xf32, #tpu.memory_space<vmem>>, vector<1x512xf32>
    %c0_302 = arith.constant 0 : index
    %c0_303 = arith.constant 0 : index
    %291 = vector.load %arg19[%c0_302, %c0_303] : memref<64x512xf32, #tpu.memory_space<vmem>>, vector<8x512xf32>
    %292 = vector.broadcast %290 : vector<1x512xf32> to vector<8x512xf32>
    %293 = arith.addf %291, %292 : vector<8x512xf32>
    %cst_304 = arith.constant 0.000000e+00 : f32
    %294 = vector.broadcast %cst_304 : f32 to vector<8x512xf32>
    %295 = arith.maximumf %293, %294 : vector<8x512xf32>
    %296 = arith.truncf %295 : vector<8x512xf32> to vector<8x512xbf16>
    %c8_305 = arith.constant 8 : index
    %c0_306 = arith.constant 0 : index
    %297 = vector.load %arg17[%c8_305, %c0_306] : memref<96x512xbf16, #tpu.memory_space<vmem>>, vector<8x512xbf16>
    tpu.vector_store %arg17[%c8_305, %c0_306], %296 {strides = array<i32>} : memref<96x512xbf16, #tpu.memory_space<vmem>>, vector<8x512xbf16>,
    %c8_307 = arith.constant 8 : index
    %c0_308 = arith.constant 0 : index
    %298 = vector.load %arg19[%c8_307, %c0_308] : memref<64x512xf32, #tpu.memory_space<vmem>>, vector<8x512xf32>
    %299 = vector.broadcast %290 : vector<1x512xf32> to vector<8x512xf32>
    %300 = arith.addf %298, %299 : vector<8x512xf32>
    %cst_309 = arith.constant 0.000000e+00 : f32
    %301 = vector.broadcast %cst_309 : f32 to vector<8x512xf32>
    %302 = arith.maximumf %300, %301 : vector<8x512xf32>
    %303 = arith.truncf %302 : vector<8x512xf32> to vector<8x512xbf16>
    %c56_310 = arith.constant 56 : index
    %c0_311 = arith.constant 0 : index
    %304 = vector.load %arg17[%c56_310, %c0_311] : memref<96x512xbf16, #tpu.memory_space<vmem>>, vector<8x512xbf16>
    tpu.vector_store %arg17[%c56_310, %c0_311], %303 {strides = array<i32>} : memref<96x512xbf16, #tpu.memory_space<vmem>>, vector<8x512xbf16>,
    %c16_312 = arith.constant 16 : index
    %c0_313 = arith.constant 0 : index
    %305 = vector.load %arg19[%c16_312, %c0_313] : memref<64x512xf32, #tpu.memory_space<vmem>>, vector<8x512xf32>
    %306 = vector.broadcast %290 : vector<1x512xf32> to vector<8x512xf32>
    %307 = arith.addf %305, %306 : vector<8x512xf32>
    %cst_314 = arith.constant 0.000000e+00 : f32
    %308 = vector.broadcast %cst_314 : f32 to vector<8x512xf32>
    %309 = arith.maximumf %307, %308 : vector<8x512xf32>
    %310 = arith.truncf %309 : vector<8x512xf32> to vector<8x512xbf16>
    %c16_315 = arith.constant 16 : index
    %c0_316 = arith.constant 0 : index
    %311 = vector.load %arg17[%c16_315, %c0_316] : memref<96x512xbf16, #tpu.memory_space<vmem>>, vector<8x512xbf16>
    tpu.vector_store %arg17[%c16_315, %c0_316], %310 {strides = array<i32>} : memref<96x512xbf16, #tpu.memory_space<vmem>>, vector<8x512xbf16>,
    %c24_317 = arith.constant 24 : index
    %c0_318 = arith.constant 0 : index
    %312 = vector.load %arg19[%c24_317, %c0_318] : memref<64x512xf32, #tpu.memory_space<vmem>>, vector<8x512xf32>
    %313 = vector.broadcast %290 : vector<1x512xf32> to vector<8x512xf32>
    %314 = arith.addf %312, %313 : vector<8x512xf32>
    %cst_319 = arith.constant 0.000000e+00 : f32
    %315 = vector.broadcast %cst_319 : f32 to vector<8x512xf32>
    %316 = arith.maximumf %314, %315 : vector<8x512xf32>
    %317 = arith.truncf %316 : vector<8x512xf32> to vector<8x512xbf16>
    %c64_320 = arith.constant 64 : index
    %c0_321 = arith.constant 0 : index
    %318 = vector.load %arg17[%c64_320, %c0_321] : memref<96x512xbf16, #tpu.memory_space<vmem>>, vector<8x512xbf16>
    tpu.vector_store %arg17[%c64_320, %c0_321], %317 {strides = array<i32>} : memref<96x512xbf16, #tpu.memory_space<vmem>>, vector<8x512xbf16>,
    %c32_322 = arith.constant 32 : index
    %c0_323 = arith.constant 0 : index
    %319 = vector.load %arg19[%c32_322, %c0_323] : memref<64x512xf32, #tpu.memory_space<vmem>>, vector<8x512xf32>
    %320 = vector.broadcast %290 : vector<1x512xf32> to vector<8x512xf32>
    %321 = arith.addf %319, %320 : vector<8x512xf32>
    %cst_324 = arith.constant 0.000000e+00 : f32
    %322 = vector.broadcast %cst_324 : f32 to vector<8x512xf32>
    %323 = arith.maximumf %321, %322 : vector<8x512xf32>
    %324 = arith.truncf %323 : vector<8x512xf32> to vector<8x512xbf16>
    %c24_325 = arith.constant 24 : index
    %c0_326 = arith.constant 0 : index
    %325 = vector.load %arg17[%c24_325, %c0_326] : memref<96x512xbf16, #tpu.memory_space<vmem>>, vector<8x512xbf16>
    tpu.vector_store %arg17[%c24_325, %c0_326], %324 {strides = array<i32>} : memref<96x512xbf16, #tpu.memory_space<vmem>>, vector<8x512xbf16>,
    %c40_327 = arith.constant 40 : index
    %c0_328 = arith.constant 0 : index
    %326 = vector.load %arg19[%c40_327, %c0_328] : memref<64x512xf32, #tpu.memory_space<vmem>>, vector<8x512xf32>
    %327 = vector.broadcast %290 : vector<1x512xf32> to vector<8x512xf32>
    %328 = arith.addf %326, %327 : vector<8x512xf32>
    %cst_329 = arith.constant 0.000000e+00 : f32
    %329 = vector.broadcast %cst_329 : f32 to vector<8x512xf32>
    %330 = arith.maximumf %328, %329 : vector<8x512xf32>
    %331 = arith.truncf %330 : vector<8x512xf32> to vector<8x512xbf16>
    %c72_330 = arith.constant 72 : index
    %c0_331 = arith.constant 0 : index
    %332 = vector.load %arg17[%c72_330, %c0_331] : memref<96x512xbf16, #tpu.memory_space<vmem>>, vector<8x512xbf16>
    tpu.vector_store %arg17[%c72_330, %c0_331], %331 {strides = array<i32>} : memref<96x512xbf16, #tpu.memory_space<vmem>>, vector<8x512xbf16>,
    %c48_332 = arith.constant 48 : index
    %c0_333 = arith.constant 0 : index
    %333 = vector.load %arg19[%c48_332, %c0_333] : memref<64x512xf32, #tpu.memory_space<vmem>>, vector<8x512xf32>
    %334 = vector.broadcast %290 : vector<1x512xf32> to vector<8x512xf32>
    %335 = arith.addf %333, %334 : vector<8x512xf32>
    %cst_334 = arith.constant 0.000000e+00 : f32
    %336 = vector.broadcast %cst_334 : f32 to vector<8x512xf32>
    %337 = arith.maximumf %335, %336 : vector<8x512xf32>
    %338 = arith.truncf %337 : vector<8x512xf32> to vector<8x512xbf16>
    %c32_335 = arith.constant 32 : index
    %c0_336 = arith.constant 0 : index
    %339 = vector.load %arg17[%c32_335, %c0_336] : memref<96x512xbf16, #tpu.memory_space<vmem>>, vector<8x512xbf16>
    tpu.vector_store %arg17[%c32_335, %c0_336], %338 {strides = array<i32>} : memref<96x512xbf16, #tpu.memory_space<vmem>>, vector<8x512xbf16>,
    %c56_337 = arith.constant 56 : index
    %c0_338 = arith.constant 0 : index
    %340 = vector.load %arg19[%c56_337, %c0_338] : memref<64x512xf32, #tpu.memory_space<vmem>>, vector<8x512xf32>
    %341 = vector.broadcast %290 : vector<1x512xf32> to vector<8x512xf32>
    %342 = arith.addf %340, %341 : vector<8x512xf32>
    %cst_339 = arith.constant 0.000000e+00 : f32
    %343 = vector.broadcast %cst_339 : f32 to vector<8x512xf32>
    %344 = arith.maximumf %342, %343 : vector<8x512xf32>
    %345 = arith.truncf %344 : vector<8x512xf32> to vector<8x512xbf16>
    %c80_340 = arith.constant 80 : index
    %c0_341 = arith.constant 0 : index
    %346 = vector.load %arg17[%c80_340, %c0_341] : memref<96x512xbf16, #tpu.memory_space<vmem>>, vector<8x512xbf16>
    tpu.vector_store %arg17[%c80_340, %c0_341], %345 {strides = array<i32>} : memref<96x512xbf16, #tpu.memory_space<vmem>>, vector<8x512xbf16>,
    %c0_342 = arith.constant 0 : index
    %c0_343 = arith.constant 0 : index
    %347 = vector.load %arg17[%c0_342, %c0_343] : memref<96x512xbf16, #tpu.memory_space<vmem>>, vector<32x512xbf16>
    %c0_344 = arith.constant 0 : index
    %c0_345 = arith.constant 0 : index
    %c0_346 = arith.constant 0 : index
    %348 = vector.load %arg6[%c0_344, %c0_345, %c0_346] : memref<5x512x128xbf16, #tpu.memory_space<vmem>>, vector<1x512x128xbf16>
    %349 = vector.shape_cast %348 : vector<1x512x128xbf16> to vector<512x128xbf16>
    %cst_347 = arith.constant dense<0.000000e+00> : vector<32x128xf32>
    %350 = tpu.matmul %347, %349, %cst_347 {dimension_numbers = #tpu.dot_dimension_numbers<[1], [0], [0], [1], [0, 0, 1, 1], [], []>} : vector<32x512xbf16>, vector<512x128xbf16>, vector<32x128xf32> -> vector<32x128xf32>
    %c0_348 = arith.constant 0 : index
    %c0_349 = arith.constant 0 : index
    %351 = vector.load %arg20[%c0_348, %c0_349] : memref<32x128xf32, #tpu.memory_space<vmem>>, vector<32x128xf32>
    tpu.vector_store %arg20[%c0_348, %c0_349], %350 {strides = array<i32>} : memref<32x128xf32, #tpu.memory_space<vmem>>, vector<32x128xf32>,
    %c48_350 = arith.constant 48 : index
    %c0_351 = arith.constant 0 : index
    %352 = vector.load %arg17[%c48_350, %c0_351] : memref<96x512xbf16, #tpu.memory_space<vmem>>, vector<32x512xbf16>
    %c1_352 = arith.constant 1 : index
    %c0_353 = arith.constant 0 : index
    %c0_354 = arith.constant 0 : index
    %353 = vector.load %arg6[%c1_352, %c0_353, %c0_354] : memref<5x512x128xbf16, #tpu.memory_space<vmem>>, vector<1x512x128xbf16>
    %354 = vector.shape_cast %353 : vector<1x512x128xbf16> to vector<512x128xbf16>
    %cst_355 = arith.constant dense<0.000000e+00> : vector<32x128xf32>
    %355 = tpu.matmul %352, %354, %cst_355 {dimension_numbers = #tpu.dot_dimension_numbers<[1], [0], [0], [1], [0, 0, 1, 1], [], []>} : vector<32x512xbf16>, vector<512x128xbf16>, vector<32x128xf32> -> vector<32x128xf32>
    %c0_356 = arith.constant 0 : index
    %c0_357 = arith.constant 0 : index
    %356 = vector.load %arg20[%c0_356, %c0_357] : memref<32x128xf32, #tpu.memory_space<vmem>>, vector<32x128xf32>
    %357 = arith.addf %356, %355 : vector<32x128xf32>
    %c0_358 = arith.constant 0 : index
    %c0_359 = arith.constant 0 : index
    %358 = vector.load %arg20[%c0_358, %c0_359] : memref<32x128xf32, #tpu.memory_space<vmem>>, vector<32x128xf32>
    tpu.vector_store %arg20[%c0_358, %c0_359], %357 {strides = array<i32>} : memref<32x128xf32, #tpu.memory_space<vmem>>, vector<32x128xf32>,
    %c8_360 = arith.constant 8 : index
    %c0_361 = arith.constant 0 : index
    %359 = vector.load %arg17[%c8_360, %c0_361] : memref<96x512xbf16, #tpu.memory_space<vmem>>, vector<32x512xbf16>
    %c2_362 = arith.constant 2 : index
    %c0_363 = arith.constant 0 : index
    %c0_364 = arith.constant 0 : index
    %360 = vector.load %arg6[%c2_362, %c0_363, %c0_364] : memref<5x512x128xbf16, #tpu.memory_space<vmem>>, vector<1x512x128xbf16>
    %361 = vector.shape_cast %360 : vector<1x512x128xbf16> to vector<512x128xbf16>
    %cst_365 = arith.constant dense<0.000000e+00> : vector<32x128xf32>
    %362 = tpu.matmul %359, %361, %cst_365 {dimension_numbers = #tpu.dot_dimension_numbers<[1], [0], [0], [1], [0, 0, 1, 1], [], []>} : vector<32x512xbf16>, vector<512x128xbf16>, vector<32x128xf32> -> vector<32x128xf32>
    %c0_366 = arith.constant 0 : index
    %c0_367 = arith.constant 0 : index
    %363 = vector.load %arg20[%c0_366, %c0_367] : memref<32x128xf32, #tpu.memory_space<vmem>>, vector<32x128xf32>
    %364 = arith.addf %363, %362 : vector<32x128xf32>
    %c0_368 = arith.constant 0 : index
    %c0_369 = arith.constant 0 : index
    %365 = vector.load %arg20[%c0_368, %c0_369] : memref<32x128xf32, #tpu.memory_space<vmem>>, vector<32x128xf32>
    tpu.vector_store %arg20[%c0_368, %c0_369], %364 {strides = array<i32>} : memref<32x128xf32, #tpu.memory_space<vmem>>, vector<32x128xf32>,
    %c56_370 = arith.constant 56 : index
    %c0_371 = arith.constant 0 : index
    %366 = vector.load %arg17[%c56_370, %c0_371] : memref<96x512xbf16, #tpu.memory_space<vmem>>, vector<32x512xbf16>
    %c3_372 = arith.constant 3 : index
    %c0_373 = arith.constant 0 : index
    %c0_374 = arith.constant 0 : index
    %367 = vector.load %arg6[%c3_372, %c0_373, %c0_374] : memref<5x512x128xbf16, #tpu.memory_space<vmem>>, vector<1x512x128xbf16>
    %368 = vector.shape_cast %367 : vector<1x512x128xbf16> to vector<512x128xbf16>
    %cst_375 = arith.constant dense<0.000000e+00> : vector<32x128xf32>
    %369 = tpu.matmul %366, %368, %cst_375 {dimension_numbers = #tpu.dot_dimension_numbers<[1], [0], [0], [1], [0, 0, 1, 1], [], []>} : vector<32x512xbf16>, vector<512x128xbf16>, vector<32x128xf32> -> vector<32x128xf32>
    %c0_376 = arith.constant 0 : index
    %c0_377 = arith.constant 0 : index
    %370 = vector.load %arg20[%c0_376, %c0_377] : memref<32x128xf32, #tpu.memory_space<vmem>>, vector<32x128xf32>
    %371 = arith.addf %370, %369 : vector<32x128xf32>
    %c0_378 = arith.constant 0 : index
    %c0_379 = arith.constant 0 : index
    %372 = vector.load %arg20[%c0_378, %c0_379] : memref<32x128xf32, #tpu.memory_space<vmem>>, vector<32x128xf32>
    tpu.vector_store %arg20[%c0_378, %c0_379], %371 {strides = array<i32>} : memref<32x128xf32, #tpu.memory_space<vmem>>, vector<32x128xf32>,
    %c16_380 = arith.constant 16 : index
    %c0_381 = arith.constant 0 : index
    %373 = vector.load %arg17[%c16_380, %c0_381] : memref<96x512xbf16, #tpu.memory_space<vmem>>, vector<32x512xbf16>
    %c4_382 = arith.constant 4 : index
    %c0_383 = arith.constant 0 : index
    %c0_384 = arith.constant 0 : index
    %374 = vector.load %arg6[%c4_382, %c0_383, %c0_384] : memref<5x512x128xbf16, #tpu.memory_space<vmem>>, vector<1x512x128xbf16>
    %375 = vector.shape_cast %374 : vector<1x512x128xbf16> to vector<512x128xbf16>
    %cst_385 = arith.constant dense<0.000000e+00> : vector<32x128xf32>
    %376 = tpu.matmul %373, %375, %cst_385 {dimension_numbers = #tpu.dot_dimension_numbers<[1], [0], [0], [1], [0, 0, 1, 1], [], []>} : vector<32x512xbf16>, vector<512x128xbf16>, vector<32x128xf32> -> vector<32x128xf32>
    %c0_386 = arith.constant 0 : index
    %c0_387 = arith.constant 0 : index
    %377 = vector.load %arg20[%c0_386, %c0_387] : memref<32x128xf32, #tpu.memory_space<vmem>>, vector<32x128xf32>
    %378 = arith.addf %377, %376 : vector<32x128xf32>
    %c0_388 = arith.constant 0 : index
    %c0_389 = arith.constant 0 : index
    %379 = vector.load %arg20[%c0_388, %c0_389] : memref<32x128xf32, #tpu.memory_space<vmem>>, vector<32x128xf32>
    tpu.vector_store %arg20[%c0_388, %c0_389], %378 {strides = array<i32>} : memref<32x128xf32, #tpu.memory_space<vmem>>, vector<32x128xf32>,
    %c0_390 = arith.constant 0 : index
    %c0_391 = arith.constant 0 : index
    %380 = vector.load %arg7[%c0_390, %c0_391] : memref<1x128xf32, #tpu.memory_space<vmem>>, vector<1x128xf32>
    %c0_392 = arith.constant 0 : index
    %c0_393 = arith.constant 0 : index
    %381 = vector.load %arg20[%c0_392, %c0_393] : memref<32x128xf32, #tpu.memory_space<vmem>>, vector<8x128xf32>
    %382 = vector.broadcast %380 : vector<1x128xf32> to vector<8x128xf32>
    %383 = arith.addf %381, %382 : vector<8x128xf32>
    %cst_394 = arith.constant 0.000000e+00 : f32
    %384 = vector.broadcast %cst_394 : f32 to vector<8x128xf32>
    %385 = arith.maximumf %383, %384 : vector<8x128xf32>
    %386 = arith.truncf %385 : vector<8x128xf32> to vector<8x128xbf16>
    %c0_395 = arith.constant 0 : index
    %c0_396 = arith.constant 0 : index
    %387 = vector.load %arg8[%c0_395, %c0_396] : memref<512x64xbf16, #tpu.memory_space<vmem>>, vector<128x64xbf16>
    %cst_397 = arith.constant dense<0.000000e+00> : vector<8x64xf32>
    %388 = tpu.matmul %386, %387, %cst_397 {dimension_numbers = #tpu.dot_dimension_numbers<[1], [0], [0], [1], [0, 0, 1, 1], [], []>} : vector<8x128xbf16>, vector<128x64xbf16>, vector<8x64xf32> -> vector<8x64xf32>
    %c8_398 = arith.constant 8 : index
    %c0_399 = arith.constant 0 : index
    %389 = vector.load %arg20[%c8_398, %c0_399] : memref<32x128xf32, #tpu.memory_space<vmem>>, vector<8x128xf32>
    %390 = vector.broadcast %380 : vector<1x128xf32> to vector<8x128xf32>
    %391 = arith.addf %389, %390 : vector<8x128xf32>
    %cst_400 = arith.constant 0.000000e+00 : f32
    %392 = vector.broadcast %cst_400 : f32 to vector<8x128xf32>
    %393 = arith.maximumf %391, %392 : vector<8x128xf32>
    %394 = arith.truncf %393 : vector<8x128xf32> to vector<8x128xbf16>
    %c128_401 = arith.constant 128 : index
    %c0_402 = arith.constant 0 : index
    %395 = vector.load %arg8[%c128_401, %c0_402] : memref<512x64xbf16, #tpu.memory_space<vmem>>, vector<128x64xbf16>
    %cst_403 = arith.constant dense<0.000000e+00> : vector<8x64xf32>
    %396 = tpu.matmul %394, %395, %cst_403 {dimension_numbers = #tpu.dot_dimension_numbers<[1], [0], [0], [1], [0, 0, 1, 1], [], []>} : vector<8x128xbf16>, vector<128x64xbf16>, vector<8x64xf32> -> vector<8x64xf32>
    %397 = arith.addf %388, %396 : vector<8x64xf32>
    %c16_404 = arith.constant 16 : index
    %c0_405 = arith.constant 0 : index
    %398 = vector.load %arg20[%c16_404, %c0_405] : memref<32x128xf32, #tpu.memory_space<vmem>>, vector<8x128xf32>
    %399 = vector.broadcast %380 : vector<1x128xf32> to vector<8x128xf32>
    %400 = arith.addf %398, %399 : vector<8x128xf32>
    %cst_406 = arith.constant 0.000000e+00 : f32
    %401 = vector.broadcast %cst_406 : f32 to vector<8x128xf32>
    %402 = arith.maximumf %400, %401 : vector<8x128xf32>
    %403 = arith.truncf %402 : vector<8x128xf32> to vector<8x128xbf16>
    %c256_407 = arith.constant 256 : index
    %c0_408 = arith.constant 0 : index
    %404 = vector.load %arg8[%c256_407, %c0_408] : memref<512x64xbf16, #tpu.memory_space<vmem>>, vector<128x64xbf16>
    %cst_409 = arith.constant dense<0.000000e+00> : vector<8x64xf32>
    %405 = tpu.matmul %403, %404, %cst_409 {dimension_numbers = #tpu.dot_dimension_numbers<[1], [0], [0], [1], [0, 0, 1, 1], [], []>} : vector<8x128xbf16>, vector<128x64xbf16>, vector<8x64xf32> -> vector<8x64xf32>
    %406 = arith.addf %397, %405 : vector<8x64xf32>
    %c24_410 = arith.constant 24 : index
    %c0_411 = arith.constant 0 : index
    %407 = vector.load %arg20[%c24_410, %c0_411] : memref<32x128xf32, #tpu.memory_space<vmem>>, vector<8x128xf32>
    %408 = vector.broadcast %380 : vector<1x128xf32> to vector<8x128xf32>
    %409 = arith.addf %407, %408 : vector<8x128xf32>
    %cst_412 = arith.constant 0.000000e+00 : f32
    %410 = vector.broadcast %cst_412 : f32 to vector<8x128xf32>
    %411 = arith.maximumf %409, %410 : vector<8x128xf32>
    %412 = arith.truncf %411 : vector<8x128xf32> to vector<8x128xbf16>
    %c384 = arith.constant 384 : index
    %c0_413 = arith.constant 0 : index
    %413 = vector.load %arg8[%c384, %c0_413] : memref<512x64xbf16, #tpu.memory_space<vmem>>, vector<128x64xbf16>
    %cst_414 = arith.constant dense<0.000000e+00> : vector<8x64xf32>
    %414 = tpu.matmul %412, %413, %cst_414 {dimension_numbers = #tpu.dot_dimension_numbers<[1], [0], [0], [1], [0, 0, 1, 1], [], []>} : vector<8x128xbf16>, vector<128x64xbf16>, vector<8x64xf32> -> vector<8x64xf32>
    %415 = arith.addf %406, %414 : vector<8x64xf32>
    %c0_415 = arith.constant 0 : index
    %c0_416 = arith.constant 0 : index
    %416 = vector.load %arg9[%c0_415, %c0_416] : memref<1x64xf32, #tpu.memory_space<vmem>>, vector<1x64xf32>
    %417 = vector.broadcast %416 : vector<1x64xf32> to vector<8x64xf32>
    %418 = arith.addf %415, %417 : vector<8x64xf32>
    %cst_417 = arith.constant 0.000000e+00 : f32
    %419 = vector.broadcast %cst_417 : f32 to vector<8x64xf32>
    %420 = arith.maximumf %418, %419 : vector<8x64xf32>
    %421 = arith.truncf %420 : vector<8x64xf32> to vector<8x64xbf16>
    %c0_418 = arith.constant 0 : index
    %c0_419 = arith.constant 0 : index
    %422 = vector.load %arg10[%c0_418, %c0_419] : memref<64x32xbf16, #tpu.memory_space<vmem>>, vector<64x32xbf16>
    %cst_420 = arith.constant dense<0.000000e+00> : vector<8x32xf32>
    %423 = tpu.matmul %421, %422, %cst_420 {dimension_numbers = #tpu.dot_dimension_numbers<[1], [0], [0], [1], [0, 0, 1, 1], [], []>} : vector<8x64xbf16>, vector<64x32xbf16>, vector<8x32xf32> -> vector<8x32xf32>
    %c0_421 = arith.constant 0 : index
    %c0_422 = arith.constant 0 : index
    %424 = vector.load %arg11[%c0_421, %c0_422] : memref<1x32xf32, #tpu.memory_space<vmem>>, vector<1x32xf32>
    %425 = vector.broadcast %424 : vector<1x32xf32> to vector<8x32xf32>
    %426 = arith.addf %423, %425 : vector<8x32xf32>
    %cst_423 = arith.constant 0.000000e+00 : f32
    %427 = vector.broadcast %cst_423 : f32 to vector<8x32xf32>
    %428 = arith.maximumf %426, %427 : vector<8x32xf32>
    %429 = arith.truncf %428 : vector<8x32xf32> to vector<8x32xbf16>
    %c0_424 = arith.constant 0 : index
    %c0_425 = arith.constant 0 : index
    %430 = vector.load %arg12[%c0_424, %c0_425] : memref<32x128xbf16, #tpu.memory_space<vmem>>, vector<32x128xbf16>
    %cst_426 = arith.constant dense<0.000000e+00> : vector<8x128xf32>
    %431 = tpu.matmul %429, %430, %cst_426 {dimension_numbers = #tpu.dot_dimension_numbers<[1], [0], [0], [1], [0, 0, 1, 1], [], []>} : vector<8x32xbf16>, vector<32x128xbf16>, vector<8x128xf32> -> vector<8x128xf32>
    %c0_427 = arith.constant 0 : index
    %c0_428 = arith.constant 0 : index
    %432 = vector.load %arg13[%c0_427, %c0_428] : memref<1x128xf32, #tpu.memory_space<vmem>>, vector<1x128xf32>
    %433 = vector.broadcast %432 : vector<1x128xf32> to vector<8x128xf32>
    %434 = arith.addf %431, %433 : vector<8x128xf32>
    %c0_429 = arith.constant 0 : index
    %c0_430 = arith.constant 0 : index
    %435 = vector.load %arg14[%c0_429, %c0_430] : memref<8x128xf32, #tpu.memory_space<vmem>>, vector<8x128xf32>
    tpu.vector_store %arg14[%c0_429, %c0_430], %434 {strides = array<i32>} : memref<8x128xf32, #tpu.memory_space<vmem>>, vector<8x128xf32>,
    return
  }
  func.func @transform_0(%arg0: i32) -> (i32, i32, i32) {
    %c0_i32 = arith.constant 0 : i32
    %c0_i32_0 = arith.constant 0 : i32
    %c0_i32_1 = arith.constant 0 : i32
    return %arg0, %c0_i32, %c0_i32_0 : i32, i32, i32
  }
  func.func @transform_1(%arg0: i32) -> (i32, i32, i32) {
    %c0_i32 = arith.constant 0 : i32
    %c0_i32_0 = arith.constant 0 : i32
    %c0_i32_1 = arith.constant 0 : i32
    %c0_i32_2 = arith.constant 0 : i32
    return %c0_i32, %c0_i32_0, %c0_i32_1 : i32, i32, i32
  }
  func.func @transform_2(%arg0: i32) -> (i32, i32) {
    %c0_i32 = arith.constant 0 : i32
    %c0_i32_0 = arith.constant 0 : i32
    %c0_i32_1 = arith.constant 0 : i32
    return %c0_i32, %c0_i32_0 : i32, i32
  }
  func.func @transform_3(%arg0: i32) -> (i32, i32, i32) {
    %c0_i32 = arith.constant 0 : i32
    %c0_i32_0 = arith.constant 0 : i32
    %c0_i32_1 = arith.constant 0 : i32
    %c0_i32_2 = arith.constant 0 : i32
    return %c0_i32, %c0_i32_0, %c0_i32_1 : i32, i32, i32
  }
  func.func @transform_4(%arg0: i32) -> (i32, i32) {
    %c0_i32 = arith.constant 0 : i32
    %c0_i32_0 = arith.constant 0 : i32
    %c0_i32_1 = arith.constant 0 : i32
    return %c0_i32, %c0_i32_0 : i32, i32
  }
  func.func @transform_5(%arg0: i32) -> (i32, i32, i32) {
    %c0_i32 = arith.constant 0 : i32
    %c0_i32_0 = arith.constant 0 : i32
    %c0_i32_1 = arith.constant 0 : i32
    %c0_i32_2 = arith.constant 0 : i32
    return %c0_i32, %c0_i32_0, %c0_i32_1 : i32, i32, i32
  }
  func.func @transform_6(%arg0: i32) -> (i32, i32) {
    %c0_i32 = arith.constant 0 : i32
    %c0_i32_0 = arith.constant 0 : i32
    %c0_i32_1 = arith.constant 0 : i32
    return %c0_i32, %c0_i32_0 : i32, i32
  }
  func.func @transform_7(%arg0: i32) -> (i32, i32) {
    %c0_i32 = arith.constant 0 : i32
    %c0_i32_0 = arith.constant 0 : i32
    %c0_i32_1 = arith.constant 0 : i32
    return %c0_i32, %c0_i32_0 : i32, i32
  }
  func.func @transform_8(%arg0: i32) -> (i32, i32) {
    %c0_i32 = arith.constant 0 : i32
    %c0_i32_0 = arith.constant 0 : i32
    %c0_i32_1 = arith.constant 0 : i32
    return %c0_i32, %c0_i32_0 : i32, i32
  }
  func.func @transform_9(%arg0: i32) -> (i32, i32) {
    %c0_i32 = arith.constant 0 : i32
    %c0_i32_0 = arith.constant 0 : i32
    %c0_i32_1 = arith.constant 0 : i32
    return %c0_i32, %c0_i32_0 : i32, i32
  }
  func.func @transform_10(%arg0: i32) -> (i32, i32) {
    %c0_i32 = arith.constant 0 : i32
    %c0_i32_0 = arith.constant 0 : i32
    %c0_i32_1 = arith.constant 0 : i32
    return %c0_i32, %c0_i32_0 : i32, i32
  }
  func.func @transform_11(%arg0: i32) -> (i32, i32) {
    %c0_i32 = arith.constant 0 : i32
    %c0_i32_0 = arith.constant 0 : i32
    %c0_i32_1 = arith.constant 0 : i32
    return %c0_i32, %c0_i32_0 : i32, i32
  }
  func.func @transform_12(%arg0: i32) -> (i32, i32) {
    %c0_i32 = arith.constant 0 : i32
    %c0_i32_0 = arith.constant 0 : i32
    %c0_i32_1 = arith.constant 0 : i32
    return %c0_i32, %c0_i32_0 : i32, i32
  }
  func.func @transform_13(%arg0: i32) -> (i32, i32) {
    %c0_i32 = arith.constant 0 : i32
    %c0_i32_0 = arith.constant 0 : i32
    return %arg0, %c0_i32 : i32, i32
  }
}

</mosaic_0001>

<bundles_post_ra>
// kernel: cnn_forward.1
= control target key start
LH: loop header
LB: loop body
LE: loop exit
PB: predicated region body
PF: predicated region fallthrough
CT: control target
= control target key end

     0   :  { %18 = vsyncpa [#allocation9], 0  ;;  %s16078_s0 = inlined_call_operand.vmem [shape: bf16[8,32,96], index: 0, kind: input, shape index: {}]   ;;  %s16079_s1 = inlined_call_operand.hbm [shape: bf16[5,96,256], index: 1, kind: input, shape index: {}]   ;;  %s16080_s2 = inlined_call_operand.hbm [shape: f32[1,256], index: 2, kind: input, shape index: {}]   ;;  %s16081_s3 = inlined_call_operand.hbm [shape: bf16[5,256,512], index: 3, kind: input, shape index: {}]   ;;  %s16082_s4 = inlined_call_operand.hbm [shape: f32[1,512], index: 4, kind: input, shape index: {}]   ;;  %s16083_s5 = inlined_call_operand.hbm [shape: bf16[5,512,128], index: 5, kind: input, shape index: {}]   ;;  %s16084_s6 = inlined_call_operand.hbm [shape: f32[1,128], index: 6, kind: input, shape index: {}]   ;;  %s16085_s7 = inlined_call_operand.vmem [shape: bf16[512,64], index: 7, kind: input, shape index: {}]   ;;  %s16086_s8 = inlined_call_operand.hbm [shape: f32[1,64], index: 8, kind: input, shape index: {}]   ;;  %s16087_s9 = inlined_call_operand.vmem [shape: bf16[64,32], index: 9, kind: input, shape index: {}]   ;;  %s16088_s10 = inlined_call_operand.hbm [shape: f32[1,32], index: 10, kind: input, shape index: {}]   ;;  %s16089_s11 = inlined_call_operand.hbm [shape: bf16[32,128], index: 11, kind: input, shape index: {}]   ;;  %s16090_s12 = inlined_call_operand.hbm [shape: f32[1,128], index: 12, kind: input, shape index: {}]   ;;  %s16091_s13 = inlined_call_operand.vmem [shape: f32[8,128], index: 13, kind: output, shape index: {}]  }
   0x1   :  { %19 = vsyncpa [#allocation11], 0 }
   0x2   :  { %20 = vsyncpa [#allocation14], 0 }
   0x3   :  { %21 = vsyncpa [#allocation17], 0 }
   0x4   :  { %22 = vsyncpa [#allocation20], 0  ;;  %s44_s27 = sshll.u32 %s16080_s2, 4  ;;  %s45_s27 = int_to_ptr.hbm [resolvable:$true] %s44_s27 }
   0x5   :  { %23 = vsyncpa [#allocation23], 0  ;;  %s13449_s28 = smov [#allocation10]   ;;  %s68_s15 = sshll.u32 %s16082_s4, 4  ;;  %s69_s15 = int_to_ptr.hbm [resolvable:$true] %s68_s15 }
   0x6   :  { %s46_s29 = sshll.u32 %s13449_s28, 4  ;;  %s13450_s16 = smov [#allocation13]   ;;  %s47_s29 = int_to_ptr.vmem [resolvable:$true] %s46_s29 }
   0x7   :  { %49 = dma.hbm_to_vmem [thread:$0]  %s45_s27, 32, %s47_s29, [#allocation11]  }
   0x8   :  { %s70_s17 = sshll.u32 %s13450_s16, 4  ;;  %s92_s20 = sshll.u32 %s16084_s6, 4  ;;  %s71_s17 = int_to_ptr.vmem [resolvable:$true] %s70_s17  ;;  %s93_s20 = int_to_ptr.hbm [resolvable:$true] %s92_s20 }
   0x9   :  { %73 = dma.hbm_to_vmem [thread:$0]  %s69_s15, 64, %s71_s17, [#allocation14]  }
   0xa   :  { %s118_s22 = sshll.u32 %s16088_s10, 4  ;;  %s13451_s23 = smov [#allocation16]   ;;  %s119_s22 = int_to_ptr.hbm [resolvable:$true] %s118_s22 }
   0xb   :  { %s94_s24 = sshll.u32 %s13451_s23, 4  ;;  %s13452_s4 = smov [#allocation19]   ;;  %s95_s24 = int_to_ptr.vmem [resolvable:$true] %s94_s24 }
   0xc   :  { %97 = dma.hbm_to_vmem [thread:$0]  %s93_s20, 16, %s95_s24, [#allocation17]  }
   0xd   :  { %s120_s25 = sshll.u32 %s13452_s4, 4  ;;  %s30_s28 = sshll.u32 %s16079_s1, 4  ;;  %s121_s25 = int_to_ptr.vmem [resolvable:$true] %s120_s25  ;;  %s31_s28 = int_to_ptr.hbm [resolvable:$true] %s30_s28 }
   0xe   :  { %123 = dma.hbm_to_vmem [thread:$0]  %s119_s22, 16, %s121_s25, [#allocation20]  }
   0xf   :  { %s13453_s6 = smov [#allocation8]   ;;  %s54_s10 = sshll.u32 %s16081_s3, 4  ;;  %s55_s10 = int_to_ptr.hbm [resolvable:$true] %s54_s10 }
  0x10   :  { %s32_s29 = sshll.u32 %s13453_s6, 4  ;;  %s13454_s15 = smov 128   ;;  %s33_s29 = int_to_ptr.vmem [resolvable:$true] %s32_s29 }
  0x11   :  { %s13455_s16 = smov 8   ;;  %s13456_s17 = smov [#allocation12]  }
  0x12   :  { %38 = dma.hbm_to_vmem [thread:$0]  %s31_s28, 7680, %s33_s29, [#allocation9], %s13454_s15, %s13454_s15, %s13455_s16  }
  0x13   :  { %s56_s18 = sshll.u32 %s13456_s17, 4  ;;  %s13457_s19 = smov 256   ;;  %s57_s18 = int_to_ptr.vmem [resolvable:$true] %s56_s18 }
  0x14   :  { %s13458_s20 = smov 16   ;;  %s78_s21 = sshll.u32 %s16083_s5, 4  ;;  %s79_s21 = int_to_ptr.hbm [resolvable:$true] %s78_s21 }
  0x15   :  { %62 = dma.hbm_to_vmem [thread:$0]  %s55_s10, 40960, %s57_s18, [#allocation11], %s13457_s19, %s13457_s19, %s13458_s20  }
  0x16   :  { %s13459_s22 = smov [#allocation15]   ;;  %s105_s4 = sshll.u32 %s16086_s8, 4  ;;  %s106_s4 = int_to_ptr.hbm [resolvable:$true] %s105_s4 }
  0x17   :  { %s80_s23 = sshll.u32 %s13459_s22, 4  ;;  %s13460_s25 = smov 64   ;;  %s81_s23 = int_to_ptr.vmem [resolvable:$true] %s80_s23 }
  0x18   :  { %s13461_s26 = smov 4   ;;  %s13462_s27 = smov [#allocation18]  }
  0x19   :  { %86 = dma.hbm_to_vmem [thread:$0]  %s79_s21, 20480, %s81_s23, [#allocation14], %s13460_s25, %s13460_s25, %s13461_s26  }
  0x1a   :  { %s107_s28 = sshll.u32 %s13462_s27, 4  ;;  %s128_s30 = sshll.u32 %s16089_s11, 4  ;;  %s108_s28 = int_to_ptr.vmem [resolvable:$true] %s107_s28  ;;  %s129_s30 = int_to_ptr.hbm [resolvable:$true] %s128_s30 }
  0x1b   :  { %110 = dma.hbm_to_vmem [thread:$0]  %s106_s4, 16, %s108_s28, [#allocation17]  }
  0x1c   :  { %s142_s10 = sshll.u32 %s16090_s12, 4  ;;  %s13463_s15 = smov [#allocation21]   ;;  %s143_s10 = int_to_ptr.hbm [resolvable:$true] %s142_s10 }
  0x1d   :  { %s130_s16 = sshll.u32 %s13463_s15, 4  ;;  %s13464_s8 = smov [#allocation22]   ;;  %s131_s16 = int_to_ptr.vmem [resolvable:$true] %s130_s16 }
  0x1e   :  { %136 = dma.hbm_to_vmem [thread:$0]  %s129_s30, 256, %s131_s16, [#allocation20], %s13460_s25, %s13460_s25, %s13461_s26  }
  0x1f   :  { %s144_s17 = sshll.u32 %s13464_s8, 4  ;;  %s145_s17 = int_to_ptr.vmem [resolvable:$true] %s144_s17 }
  0x20   :  { %147 = dma.hbm_to_vmem [thread:$0]  %s143_s10, 16, %s145_s17, [#allocation23]  }
  0x21   :  { %13437 = dma.done.wait [#allocation9], 7680  }
  0x22   :  { %13438 = vsyncadd [#allocation9], 4294959616 }
  0x23   :  { %13439 = dma.done.wait [#allocation11], 40992  }
  0x24   :  { %13440 = vsyncadd [#allocation11], 4294926304 }
  0x25   :  { %13441 = dma.done.wait [#allocation14], 20544  }
  0x26   :  { %13442 = vsyncadd [#allocation14], 4294946752 }
  0x27   :  { %13443 = dma.done.wait [#allocation17], 32  }
  0x28   :  { %13444 = vsyncadd [#allocation17], 4294967264 }
  0x29   :  { %13445 = dma.done.wait [#allocation20], 272  }
  0x2a   :  { %13446 = vsyncadd [#allocation20], 4294967024 }
  0x2b   :  { %13447 = dma.done.wait [#allocation23], 16  }
  0x2c   :  { %13448 = vsyncadd [#allocation23], 4294967280  ;;  %vm189_vm0 = vcmask 781312   ;;  %v13465_v0 = vmov 0   ;;  %v9678_v1 = vld [vmem:[#allocation8 + $0x50] sm:$0xf] }
  0x2d   :  { %190 = vst.msk [vmem:[#allocation2] sm:$0xf] %vm189_vm0, %v13465_v0  ;;  %v12497_v2 = vld [vmem:[#allocation8 + $0x54] sm:$0xf0]  ;;  %v12496_v3 = vld [vmem:[#allocation8 + $0x54] sm:$0xf] }
  0x2e   :  { %191 = vst.msk [vmem:[#allocation2 + $0x44] sm:$0xf] %vm189_vm0, %v13465_v0  ;;  %v9679_v4 = vor.u32 %v12497_v2, %v9678_v1  ;;  %v9680_v5 = vld [vmem:[#allocation8 + $0x58] sm:$0xf0]  ;;  %v9774_v6 = vld [vmem:[#allocation8 + $0xb0] sm:$0xf] }
  0x2f   :  { %v12517_v7 = vld [vmem:[#allocation8 + $0xb4] sm:$0xf0]  ;;  %v9683_v8 = vor.u32 %v12496_v3, %v9680_v5  ;;  %v12516_v10 = vld [vmem:[#allocation8 + $0xb4] sm:$0xf]  ;;  %v9776_v11 = vld [vmem:[#allocation8 + $0xb8] sm:$0xf0] }
  0x30   :  { %v9775_v9 = vor.u32 %v12517_v7, %v9774_v6  ;;  %v9670_v12 = vld [vmem:[#allocation8 + $0x40] sm:$0xf]  ;;  %1680 = vmatpush.bf16.msra.mxu0 %v9679_v4  ;;  %v9779_v13 = vor.u32 %v12516_v10, %v9776_v11  ;;  %v12495_v14 = vld [vmem:[#allocation8 + $0x44] sm:$0xf0]  ;;  %v12494_v15 = vld [vmem:[#allocation8 + $0x44] sm:$0xf] }
  0x31   :  { %v9672_v16 = vld [vmem:[#allocation8 + $0x48] sm:$0xf0]  ;;  %1729 = vmatpush.bf16.msra.mxu1 %v9683_v8  ;;  %v9671_v17 = vor.u32 %v12495_v14, %v9670_v12  ;;  %v9766_v19 = vld [vmem:[#allocation8 + $0xa0] sm:$0xf]  ;;  %v12515_v20 = vld [vmem:[#allocation8 + $0xa4] sm:$0xf0] }
  0x32   :  { %1963 = vmatpush.bf16.msra.mxu2 %v9775_v9  ;;  %v9675_v18 = vor.u32 %v12494_v15, %v9672_v16  ;;  %v12514_v21 = vld [vmem:[#allocation8 + $0xa4] sm:$0xf]  ;;  %2012 = vmatpush.bf16.msra.mxu3 %v9779_v13  ;;  %v9767_v22 = vor.u32 %v12515_v20, %v9766_v19  ;;  %v9768_v23 = vld [vmem:[#allocation8 + $0xa8] sm:$0xf0]  ;;  %v9662_v24 = vld [vmem:[#allocation8 + $0x30] sm:$0xf] }
  0x33   :  { %v12493_v25 = vld [vmem:[#allocation8 + $0x34] sm:$0xf0]  ;;  %v9771_v26 = vor.u32 %v12514_v21, %v9768_v23  ;;  %v12492_v27 = vld [vmem:[#allocation8 + $0x34] sm:$0xf]  ;;  %v9664_v28 = vld [vmem:[#allocation8 + $0x38] sm:$0xf0] }
  0x34   :  { %v9758_v29 = vld [vmem:[#allocation8 + $0x90] sm:$0xf]  ;;  %1681 = vmatpush.bf16.msra.mxu0 %v9671_v17  ;;  %v9663_v30 = vor.u32 %v12493_v25, %v9662_v24  ;;  %v12513_v31 = vld [vmem:[#allocation8 + $0x94] sm:$0xf0]  ;;  %v12512_v32 = vld [vmem:[#allocation8 + $0x94] sm:$0xf]  ;;  %v9667_v34 = vor.u32 %v12492_v27, %v9664_v28 }
  0x35   :  { %v9760_v33 = vld [vmem:[#allocation8 + $0x98] sm:$0xf0]  ;;  %1730 = vmatpush.bf16.msra.mxu1 %v9675_v18  ;;  %v9759_v35 = vor.u32 %v12513_v31, %v9758_v29  ;;  %v9654_v36 = vld [vmem:[#allocation8 + $0x20] sm:$0xf]  ;;  %v12491_v37 = vld [vmem:[#allocation8 + $0x24] sm:$0xf0] }
  0x36   :  { %1964 = vmatpush.bf16.msra.mxu2 %v9767_v22  ;;  %v12490_v38 = vld [vmem:[#allocation8 + $0x24] sm:$0xf]  ;;  %2013 = vmatpush.bf16.msra.mxu3 %v9771_v26  ;;  %v9763_v39 = vor.u32 %v12512_v32, %v9760_v33  ;;  %v9656_v40 = vld [vmem:[#allocation8 + $0x28] sm:$0xf0]  ;;  %v9750_v41 = vld [vmem:[#allocation8 + $0x80] sm:$0xf]  ;;  %v9655_v46 = vor.u32 %v12491_v37, %v9654_v36 }
  0x37   :  { %v12511_v42 = vld [vmem:[#allocation8 + $0x84] sm:$0xf0]  ;;  %v12510_v43 = vld [vmem:[#allocation8 + $0x84] sm:$0xf]  ;;  %v9752_v44 = vld [vmem:[#allocation8 + $0x88] sm:$0xf0]  ;;  %v9659_v50 = vor.u32 %v12490_v38, %v9656_v40 }
  0x38   :  { %v9646_v45 = vld [vmem:[#allocation8 + $0x10] sm:$0xf]  ;;  %vm231_vm1 = vcmask 1041409   ;;  %1682 = vmatpush.bf16.msra.mxu0 %v9663_v30  ;;  %v12489_v47 = vld [vmem:[#allocation8 + $0x14] sm:$0xf0]  ;;  %vm234_vm2 = vcmask 1042434   ;;  %v9751_v51 = vor.u32 %v12511_v42, %v9750_v41  ;;  %v9755_v55 = vor.u32 %v12510_v43, %v9752_v44 }
  0x39   :  { %v12488_v48 = vld [vmem:[#allocation8 + $0x14] sm:$0xf]  ;;  %v9648_v49 = vld [vmem:[#allocation8 + $0x18] sm:$0xf0]  ;;  %1731 = vmatpush.bf16.msra.mxu1 %v9667_v34  ;;  %v9742_v52 = vld [vmem:[#allocation8 + $0x70] sm:$0xf]  ;;  %v9647_v62 = vor.u32 %v12489_v47, %v9646_v45 }
  0x3a   :  { %1965 = vmatpush.bf16.msra.mxu2 %v9759_v35  ;;  %v12509_v53 = vld [vmem:[#allocation8 + $0x74] sm:$0xf0]  ;;  %v12508_v54 = vld [vmem:[#allocation8 + $0x74] sm:$0xf]  ;;  %vm237_vm3 = vcmask 1043459   ;;  %2014 = vmatpush.bf16.msra.mxu3 %v9763_v39  ;;  %vm240_vm4 = vcmask 1044484   ;;  %v9651_v63 = vor.u32 %v12488_v48, %v9648_v49 }
  0x3b   :  { %v9744_v56 = vld [vmem:[#allocation8 + $0x78] sm:$0xf0]  ;;  %v13570_v57 = vld [vmem:[#allocation8] sm:$0xf]  ;;  %v13572_v58 = vld [vmem:[#allocation8 + $0x4] sm:$0xf0]  ;;  %v9743_v4 = vor.u32 %v12509_v53, %v9742_v52 }
  0x3c   :  { %v13574_v59 = vld [vmem:[#allocation8 + $0x4] sm:$0xf]  ;;  %v13576_v60 = vld [vmem:[#allocation8 + $0x8] sm:$0xf0]  ;;  %v13578_v61 = vld [vmem:[#allocation8 + $0x60] sm:$0xf]  ;;  %1683 = vmatpush.bf16.msra.mxu0 %v9655_v46  ;;  %v9747_v5 = vor.u32 %v12508_v54, %v9744_v56  ;;  %v9639_v6 = vor.u32 %v13572_v58, %v13570_v57 }
  0x3d   :  { %vm243_vm5 = vcmask 1045509   ;;  %v13580_v1 = vld [vmem:[#allocation8 + $0x64] sm:$0xf0]  ;;  %v13582_v2 = vld [vmem:[#allocation8 + $0x64] sm:$0xf]  ;;  %vm246_vm6 = vcmask 1046534   ;;  %1732 = vmatpush.bf16.msra.mxu1 %v9659_v50  ;;  %v9643_v10 = vor.u32 %v13574_v59, %v13576_v60 }
  0x3e   :  { %v13584_v3 = vld [vmem:[#allocation8 + $0x68] sm:$0xf0]  ;;  %1966 = vmatpush.bf16.msra.mxu2 %v9751_v51  ;;  %v206_v7 = vld [vmem:[%s16078_s0] sm:$0x1]  ;;  %v207_v8 = vld [vmem:[%s16078_s0 + $0x10] sm:$0x1]  ;;  %2015 = vmatpush.bf16.msra.mxu3 %v9755_v55  ;;  %v9735_v17 = vor.u32 %v13580_v1, %v13578_v61 }
  0x3f   :  { %v208_v9 = vld [vmem:[%s16078_s0 + $0x20] sm:$0x1]  ;;  %vm249_vm7 = vcmask 1047559   ;;  %v209_v11 = vld [vmem:[%s16078_s0 + $0x30] sm:$0x1]  ;;  %v222_v14 = vunpack.c.l.b16 %v206_v7  ;;  %v223_v15 = vunpack.c.l.b16 %v207_v8  ;;  %194 = vst [vmem:[#allocation3] sm:$0xff] %v13465_v0  ;;  %v9739_v28 = vor.u32 %v13582_v2, %v13584_v3 }
  0x40   :  { %v210_v12 = vld [vmem:[%s16078_s0 + $0x40] sm:$0x1]  ;;  %v211_v13 = vld [vmem:[%s16078_s0 + $0x50] sm:$0x1]  ;;  %v224_v16 = vunpack.c.l.b16 %v208_v9  ;;  %v225_v20 = vunpack.c.l.b16 %v209_v11  ;;  %1684 = vmatpush.bf16.msra.mxu0 %v9647_v62  ;;  %192 = vst.msk [vmem:[#allocation2 + $0x48] sm:$0xf] %vm189_vm0, %v13465_v0 }
  0x41   :  { %v212_v18 = vld [vmem:[%s16078_s0 + $0x60] sm:$0x1]  ;;  %v213_v19 = vld [vmem:[%s16078_s0 + $0x70] sm:$0x1]  ;;  %v226_v21 = vunpack.c.l.b16 %v210_v12  ;;  %v227_v22 = vunpack.c.l.b16 %v211_v13  ;;  %v230_v25 = vrot.slane %v223_v15, 7  ;;  %1733 = vmatpush.bf16.msra.mxu1 %v9651_v63  ;;  %195 = vst [vmem:[#allocation3 + $0x48] sm:$0xff] %v13465_v0 }
  0x42   :  { %v228_v23 = vunpack.c.l.b16 %v212_v18  ;;  %v229_v24 = vunpack.c.l.b16 %v213_v19  ;;  %v233_v26 = vrot.slane %v224_v16, 6  ;;  %v254_v27 = vld [vmem:[%s16078_s0] sm:$0x1]  ;;  %1967 = vmatpush.bf16.msra.mxu2 %v9743_v4  ;;  %v236_v29 = vrot.slane %v225_v20, 5  ;;  %v255_v31 = vld [vmem:[%s16078_s0 + $0x10] sm:$0x1]  ;;  %2016 = vmatpush.bf16.msra.mxu3 %v9747_v5 }
  0x43   :  { %v239_v30 = vrot.slane %v226_v21, 4  ;;  %v270_v32 = vunpack.c.l.b16 %v254_v27  ;;  %v232_v33 = vsel %vm231_vm1, %v230_v25, %v222_v14  ;;  %v242_v34 = vrot.slane %v227_v22, 3  ;;  %196 = vst [vmem:[#allocation3 + $0x50] sm:$0xff] %v13465_v0  ;;  %v256_v36 = vld [vmem:[%s16078_s0 + $0x20] sm:$0x1] }
  0x44   :  { %v245_v35 = vrot.slane %v228_v23, 2  ;;  %v271_v37 = vunpack.c.l.b16 %v255_v31  ;;  %v235_v38 = vsel %vm234_vm2, %v233_v26, %v232_v33  ;;  %198 = vst [vmem:[#allocation4] sm:$0xff] %v13465_v0  ;;  %v257_v39 = vld [vmem:[%s16078_s0 + $0x30] sm:$0x1]  ;;  %v258_v40 = vld [vmem:[%s16078_s0 + $0x40] sm:$0x1]  ;;  %v272_v41 = vunpack.c.l.b16 %v256_v36  ;;  %1685 = vmatpush.bf16.msra.mxu0 %v9639_v6 }
  0x45   :  { %v278_v42 = vrot.slane %v270_v32, 1  ;;  %v238_v43 = vsel %vm237_vm3, %v236_v29, %v235_v38  ;;  %v248_v44 = vrot.slane %v229_v24, 1  ;;  %199 = vst [vmem:[#allocation4 + $0x8] sm:$0xff] %v13465_v0  ;;  %v259_v45 = vld [vmem:[%s16078_s0 + $0x50] sm:$0x1]  ;;  %v273_v47 = vunpack.c.l.b16 %v257_v39  ;;  %1734 = vmatpush.bf16.msra.mxu1 %v9643_v10 }
  0x46   :  { %v260_v46 = vld [vmem:[%s16078_s0 + $0x60] sm:$0x1]  ;;  %v274_v48 = vunpack.c.l.b16 %v258_v40  ;;  %1968 = vmatpush.bf16.msra.mxu2 %v9735_v17  ;;  %v241_v49 = vsel %vm240_vm4, %v239_v30, %v238_v43  ;;  %200 = vst [vmem:[#allocation4 + $0x50] sm:$0xff] %v13465_v0  ;;  %v261_v50 = vld [vmem:[%s16078_s0 + $0x70] sm:$0x1]  ;;  %v275_v51 = vunpack.c.l.b16 %v259_v45  ;;  %2017 = vmatpush.bf16.msra.mxu3 %v9739_v28  ;;  %v280_v57 = vrot.slane %v272_v41, 7 }
  0x47   :  { %v276_v52 = vunpack.c.l.b16 %v260_v46  ;;  %v279_v53 = vsel %vm231_vm1, %v271_v37, %v278_v42  ;;  %v9870_v54 = vld [vmem:[#allocation8 + $0x110] sm:$0xf]  ;;  %v244_v55 = vsel %vm243_vm5, %v242_v34, %v241_v49  ;;  %201 = vst [vmem:[#allocation4 + $0x58] sm:$0xff] %v13465_v0  ;;  %v277_v56 = vunpack.c.l.b16 %v261_v50  ;;  %v12537_v59 = vld [vmem:[#allocation8 + $0x114] sm:$0xf0] }
  0x48   :  { %v282_v58 = vrot.slane %v273_v47, 6  ;;  %v247_v60 = vsel %vm246_vm6, %v245_v35, %v244_v55  ;;  %202 = vst [vmem:[#allocation4 + $0x60] sm:$0xff] %v13465_v0  ;;  %v284_v61 = vrot.slane %v274_v48, 5  ;;  %v286_v62 = vrot.slane %v275_v51, 4  ;;  %v12536_v1 = vld [vmem:[#allocation8 + $0x114] sm:$0xf] }
  0x49   :  { %v288_v63 = vrot.slane %v276_v52, 3  ;;  %v250_v2 = vsel %vm249_vm7, %v248_v44, %v247_v60  ;;  %203 = vst [vmem:[#allocation4 + $0x68] sm:$0xff] %v13465_v0  ;;  %v281_v3 = vsel %vm234_vm2, %v280_v57, %v279_v53  ;;  %v290_v4 = vrot.slane %v277_v56, 2  ;;  %v9872_v6 = vld [vmem:[#allocation8 + $0x118] sm:$0xf0] }
  0x4a   :  { %v9871_v5 = vor.u32 %v12537_v59, %v9870_v54  ;;  %v295_v7 = vld [vmem:[%s16078_s0] sm:$0x2]  ;;  %v251_v8 = vpack.c.b16 %v250_v2, %v250_v2  ;;  %vm1653_vm8 = vcmask 785408   ;;  %v283_v9 = vsel %vm237_vm3, %v282_v58, %v281_v3  ;;  %v296_v11 = vld [vmem:[%s16078_s0 + $0x10] sm:$0x2] }
  0x4b   :  { %v9875_v10 = vor.u32 %v12536_v1, %v9872_v6  ;;  %v297_v0 = vld [vmem:[%s16078_s0 + $0x20] sm:$0x2]  ;;  %v298_v12 = vld [vmem:[%s16078_s0 + $0x30] sm:$0x2]  ;;  %v311_v13 = vunpack.c.l.b16 %v295_v7  ;;  %v285_v14 = vsel %vm240_vm4, %v284_v61, %v283_v9  ;;  %v312_v18 = vunpack.c.l.b16 %v296_v11  ;;  %v377_v26 = vld [vmem:[%s16078_s0] sm:$0x4] }
  0x4c   :  { %2310 = vmatpush.bf16.msrb.mxu0 %v9871_v5  ;;  %v299_v15 = vld [vmem:[%s16078_s0 + $0x40] sm:$0x2]  ;;  %v300_v16 = vld [vmem:[%s16078_s0 + $0x50] sm:$0x2]  ;;  %v313_v19 = vunpack.c.l.b16 %v297_v0  ;;  %v314_v20 = vunpack.c.l.b16 %v298_v12  ;;  %253 = vst.msk [vmem:[#allocation2 + $0x4] sm:$0xf] %vm189_vm0, %v251_v8  ;;  %v287_v21 = vsel %vm243_vm5, %v286_v62, %v285_v14  ;;  %v393_v47 = vunpack.c.l.b16 %v377_v26 }
  0x4d   :  { %v301_v17 = vld [vmem:[%s16078_s0 + $0x60] sm:$0x2]  ;;  %2359 = vmatpush.bf16.msrb.mxu1 %v9875_v10  ;;  %v302_v22 = vld [vmem:[%s16078_s0 + $0x70] sm:$0x2]  ;;  %v315_v23 = vunpack.c.l.b16 %v299_v15  ;;  %v316_v24 = vunpack.c.l.b16 %v300_v16  ;;  %v289_v27 = vsel %vm246_vm6, %v288_v63, %v287_v21  ;;  %v319_v29 = vrot.slane %v311_v13, 2 }
  0x4e   :  { %v317_v25 = vunpack.c.l.b16 %v301_v17  ;;  %v318_v28 = vunpack.c.l.b16 %v302_v22  ;;  %v320_v30 = vrot.slane %v312_v18, 1  ;;  %v378_v31 = vld [vmem:[%s16078_s0 + $0x10] sm:$0x4]  ;;  %v379_v32 = vld [vmem:[%s16078_s0 + $0x20] sm:$0x4]  ;;  %v291_v33 = vsel %vm249_vm7, %v290_v4, %v289_v27 }
  0x4f   :  { %v323_v34 = vrot.slane %v314_v20, 7  ;;  %v325_v35 = vrot.slane %v315_v23, 6  ;;  %v327_v36 = vrot.slane %v316_v24, 5  ;;  %v380_v37 = vld [vmem:[%s16078_s0 + $0x30] sm:$0x4]  ;;  %v292_v38 = vpack.c.b16 %v291_v33, %v291_v33 }
  0x50   :  { %v321_v39 = vsel %vm231_vm1, %v320_v30, %v319_v29  ;;  %v329_v40 = vrot.slane %v317_v25, 4  ;;  %v331_v41 = vrot.slane %v318_v28, 3  ;;  %v381_v42 = vld [vmem:[%s16078_s0 + $0x40] sm:$0x4]  ;;  %v382_v43 = vld [vmem:[%s16078_s0 + $0x50] sm:$0x4]  ;;  %v394_v48 = vunpack.c.l.b16 %v378_v31 }
  0x51   :  { %v322_v44 = vsel %vm234_vm2, %v313_v19, %v321_v39  ;;  %v383_v45 = vld [vmem:[%s16078_s0 + $0x60] sm:$0x4]  ;;  %v384_v46 = vld [vmem:[%s16078_s0 + $0x70] sm:$0x4]  ;;  %v395_v49 = vunpack.c.l.b16 %v379_v32  ;;  %v336_v50 = vld [vmem:[%s16078_s0] sm:$0x2]  ;;  %v396_v52 = vunpack.c.l.b16 %v380_v37  ;;  %v397_v53 = vunpack.c.l.b16 %v381_v42 }
  0x52   :  { %294 = vst.msk [vmem:[#allocation2 + $0x4c] sm:$0xf] %vm189_vm0, %v292_v38  ;;  %v324_v51 = vsel %vm237_vm3, %v323_v34, %v322_v44  ;;  %v398_v54 = vunpack.c.l.b16 %v382_v43  ;;  %v337_v55 = vld [vmem:[%s16078_s0 + $0x10] sm:$0x2]  ;;  %v338_v56 = vld [vmem:[%s16078_s0 + $0x20] sm:$0x2]  ;;  %v399_v58 = vunpack.c.l.b16 %v383_v45  ;;  %v400_v59 = vunpack.c.l.b16 %v384_v46 }
  0x53   :  { %v326_v57 = vsel %vm240_vm4, %v325_v35, %v324_v51  ;;  %v401_v60 = vrot.slane %v393_v47, 4  ;;  %v339_v61 = vld [vmem:[%s16078_s0 + $0x30] sm:$0x2]  ;;  %v340_v62 = vld [vmem:[%s16078_s0 + $0x40] sm:$0x2]  ;;  %v402_v2 = vrot.slane %v394_v48, 3  ;;  %v352_v13 = vunpack.c.l.b16 %v336_v50 }
  0x54   :  { %v12478_v63 = vld [vmem:[#allocation2] sm:$0xff]  ;;  %v328_v1 = vsel %vm243_vm5, %v327_v36, %v326_v57  ;;  %v404_v3 = vrot.slane %v395_v49, 2  ;;  %v406_v4 = vrot.slane %v396_v52, 1  ;;  %v341_v5 = vld [vmem:[%s16078_s0 + $0x50] sm:$0x2]  ;;  %v409_v7 = vrot.slane %v398_v54, 7 }
  0x55   :  { %v330_v6 = vsel %vm246_vm6, %v329_v40, %v328_v1  ;;  %v411_v8 = vrot.slane %v399_v58, 6  ;;  %v413_v9 = vrot.slane %v400_v59, 5  ;;  %v342_v10 = vld [vmem:[%s16078_s0 + $0x60] sm:$0x2]  ;;  %9684 = vmatmul.msk.bf16.vlgmr.msra.gmra.mxu0 %vm1653_vm8, %v12478_v63  ;;  %9692 = vmatmul.msk.bf16.vlgmr.msra.gmra.mxu1 %vm1653_vm8, %v12478_v63  ;;  %v403_v0 = vsel %vm231_vm1, %v402_v2, %v401_v60  ;;  %v343_v12 = vld [vmem:[%s16078_s0 + $0x70] sm:$0x2] }
  0x56   :  { %v332_v11 = vsel %vm249_vm7, %v331_v41, %v330_v6  ;;  %v353_v14 = vunpack.c.l.b16 %v337_v55  ;;  %v405_v16 = vsel %vm234_vm2, %v404_v3, %v403_v0  ;;  %v354_v17 = vunpack.c.l.b16 %v338_v56  ;;  %v418_v19 = vld [vmem:[%s16078_s0] sm:$0x4]  ;;  %v419_v24 = vld [vmem:[%s16078_s0 + $0x10] sm:$0x4]  ;;  %v12534_v54 = vld [vmem:[#allocation8 + $0x104] sm:$0xf] }
  0x57   :  { %v333_v15 = vpack.c.b16 %v332_v11, %v332_v11  ;;  %v355_v18 = vunpack.c.l.b16 %v339_v61  ;;  %v407_v20 = vsel %vm237_vm3, %v406_v4, %v405_v16  ;;  %v356_v21 = vunpack.c.l.b16 %v340_v62  ;;  %v420_v25 = vld [vmem:[%s16078_s0 + $0x20] sm:$0x4]  ;;  %v421_v26 = vld [vmem:[%s16078_s0 + $0x30] sm:$0x4]  ;;  %v9864_v59 = vld [vmem:[#allocation8 + $0x108] sm:$0xf0] }
  0x58   :  { %v357_v22 = vunpack.c.l.b16 %v341_v5  ;;  %v358_v23 = vunpack.c.l.b16 %v342_v10  ;;  %v408_v28 = vsel %vm240_vm4, %v397_v53, %v407_v20  ;;  %v359_v29 = vunpack.c.l.b16 %v343_v12  ;;  %v422_v36 = vld [vmem:[%s16078_s0 + $0x40] sm:$0x4]  ;;  %v423_v41 = vld [vmem:[%s16078_s0 + $0x50] sm:$0x4]  ;;  %v12535_v53 = vld [vmem:[#allocation8 + $0x104] sm:$0xf0] }
  0x59   :  { %v12498_v27 = vld [vmem:[#allocation2 + $0x48] sm:$0xff]  ;;  %335 = vst.msk [vmem:[#allocation2 + $0x8] sm:$0xf] %vm189_vm0, %v333_v15  ;;  %v360_v30 = vrot.slane %v352_v13, 3  ;;  %v361_v31 = vrot.slane %v353_v14, 2  ;;  %v410_v32 = vsel %vm243_vm5, %v409_v7, %v408_v28  ;;  %v363_v33 = vrot.slane %v354_v17, 1 }
  0x5a   :  { %v366_v34 = vrot.slane %v356_v21, 7  ;;  %v368_v35 = vrot.slane %v357_v22, 6  ;;  %9780 = vmatmul.msk.bf16.vlgmr.msra.gmra.mxu2 %vm1653_vm8, %v12498_v27  ;;  %9788 = vmatmul.msk.bf16.vlgmr.msra.gmra.mxu3 %vm1653_vm8, %v12498_v27  ;;  %v412_v37 = vsel %vm246_vm6, %v411_v8, %v410_v32  ;;  %v370_v39 = vrot.slane %v358_v23, 5  ;;  %v424_v42 = vld [vmem:[%s16078_s0 + $0x60] sm:$0x4] }
  0x5b   :  { %v362_v38 = vsel %vm231_vm1, %v361_v31, %v360_v30  ;;  %v372_v40 = vrot.slane %v359_v29, 4  ;;  %v414_v43 = vsel %vm249_vm7, %v413_v9, %v412_v37  ;;  %v425_v45 = vld [vmem:[%s16078_s0 + $0x70] sm:$0x4]  ;;  %v434_v46 = vunpack.c.l.b16 %v418_v19  ;;  %v459_v60 = vld [vmem:[%s16078_s0] sm:$0x8] }
  0x5c   :  { %v364_v44 = vsel %vm234_vm2, %v363_v33, %v362_v38  ;;  %v435_v47 = vunpack.c.l.b16 %v419_v24  ;;  %v415_v48 = vpack.c.b16 %v414_v43, %v414_v43  ;;  %v436_v50 = vunpack.c.l.b16 %v420_v25  ;;  %v9862_v52 = vld [vmem:[#allocation8 + $0x100] sm:$0xf]  ;;  %v461_v3 = vld [vmem:[%s16078_s0 + $0x20] sm:$0x8]  ;;  %v541_v24 = vld [vmem:[%s16078_s0 + $0x4] sm:$0x1] }
  0x5d   :  { %v365_v49 = vsel %vm237_vm3, %v355_v18, %v364_v44  ;;  %v437_v51 = vunpack.c.l.b16 %v421_v26  ;;  %v438_v56 = vunpack.c.l.b16 %v422_v36  ;;  %v439_v57 = vunpack.c.l.b16 %v423_v41  ;;  %v460_v61 = vld [vmem:[%s16078_s0 + $0x10] sm:$0x8]  ;;  %v463_v12 = vld [vmem:[%s16078_s0 + $0x40] sm:$0x8]  ;;  %v542_v25 = vld [vmem:[%s16078_s0 + $0x14] sm:$0x1] }
  0x5e   :  { %v367_v55 = vsel %vm240_vm4, %v366_v34, %v365_v49  ;;  %v440_v58 = vunpack.c.l.b16 %v424_v42  ;;  %417 = vst.msk [vmem:[#allocation2 + $0xc] sm:$0xf] %vm189_vm0, %v415_v48  ;;  %v441_v63 = vunpack.c.l.b16 %v425_v45  ;;  %v442_v1 = vrot.slane %v434_v46, 5  ;;  %v462_v8 = vld [vmem:[%s16078_s0 + $0x30] sm:$0x8] }
  0x5f   :  { %v369_v62 = vsel %vm243_vm5, %v368_v35, %v367_v55  ;;  %v443_v2 = vrot.slane %v435_v47, 4  ;;  %v445_v5 = vrot.slane %v436_v50, 3  ;;  %v447_v6 = vrot.slane %v437_v51, 2  ;;  %v464_v13 = vld [vmem:[%s16078_s0 + $0x50] sm:$0x8] }
  0x60   :  { %v371_v4 = vsel %vm246_vm6, %v370_v39, %v369_v62  ;;  %v449_v7 = vrot.slane %v438_v56, 1  ;;  %v452_v11 = vrot.slane %v440_v58, 7  ;;  %v454_v0 = vrot.slane %v441_v63, 6  ;;  %v13815_v18 = vld [vmem:[%s16078_s0 + $0x60] sm:$0x8] }
  0x61   :  { %v373_v9 = vsel %vm249_vm7, %v372_v40, %v371_v4  ;;  %v444_v10 = vsel %vm231_vm1, %v443_v2, %v442_v1  ;;  %v9863_v16 = vor.u32 %v12535_v53, %v9862_v52  ;;  %v9867_v17 = vor.u32 %v12534_v54, %v9864_v59  ;;  %v466_v19 = vld [vmem:[%s16078_s0 + $0x70] sm:$0x8]  ;;  %v543_v30 = vld [vmem:[%s16078_s0 + $0x24] sm:$0x1]  ;;  %v544_v31 = vld [vmem:[%s16078_s0 + $0x34] sm:$0x1] }
  0x62   :  { %v374_v14 = vpack.c.b16 %v373_v9, %v373_v9  ;;  %v446_v15 = vsel %vm234_vm2, %v445_v5, %v444_v10  ;;  %v475_v21 = vunpack.c.l.b16 %v459_v60  ;;  %v476_v22 = vunpack.c.l.b16 %v460_v61  ;;  %v545_v36 = vld [vmem:[%s16078_s0 + $0x44] sm:$0x1]  ;;  %v546_v37 = vld [vmem:[%s16078_s0 + $0x54] sm:$0x1]  ;;  %v501_v58 = vld [vmem:[%s16078_s0 + $0x10] sm:$0x8] }
  0x63   :  { %v448_v20 = vsel %vm237_vm3, %v447_v6, %v446_v15  ;;  %v477_v23 = vunpack.c.l.b16 %v461_v3  ;;  %2311 = vmatpush.bf16.msrb.mxu0 %v9863_v16  ;;  %2360 = vmatpush.bf16.msrb.mxu1 %v9867_v17  ;;  %v478_v27 = vunpack.c.l.b16 %v462_v8  ;;  %v479_v28 = vunpack.c.l.b16 %v463_v12  ;;  %v547_v43 = vld [vmem:[%s16078_s0 + $0x64] sm:$0x1]  ;;  %v548_v48 = vld [vmem:[%s16078_s0 + $0x74] sm:$0x1]  ;;  %v502_v63 = vld [vmem:[%s16078_s0 + $0x20] sm:$0x8] }
  0x64   :  { %376 = vst.msk [vmem:[#allocation2 + $0x50] sm:$0xf] %vm189_vm0, %v374_v14  ;;  %v450_v26 = vsel %vm240_vm4, %v449_v7, %v448_v20  ;;  %v480_v29 = vunpack.c.l.b16 %v464_v13  ;;  %v481_v33 = vunpack.c.l.b16 %v13815_v18  ;;  %v482_v34 = vunpack.c.l.b16 %v466_v19  ;;  %v503_v1 = vld [vmem:[%s16078_s0 + $0x30] sm:$0x8]  ;;  %v504_v6 = vld [vmem:[%s16078_s0 + $0x40] sm:$0x8] }
  0x65   :  { %v451_v32 = vsel %vm243_vm5, %v439_v57, %v450_v26  ;;  %v483_v35 = vrot.slane %v475_v21, 6  ;;  %v12479_v38 = vld [vmem:[#allocation2 + $0x8] sm:$0xff]  ;;  %v484_v40 = vrot.slane %v476_v22, 5  ;;  %v486_v41 = vrot.slane %v477_v23, 4  ;;  %v500_v57 = vld [vmem:[%s16078_s0] sm:$0x8] }
  0x66   :  { %v453_v39 = vsel %vm246_vm6, %v452_v11, %v451_v32  ;;  %v488_v42 = vrot.slane %v478_v27, 3  ;;  %v490_v45 = vrot.slane %v479_v28, 2  ;;  %v492_v46 = vrot.slane %v480_v29, 1  ;;  %9685 = vmatmul.msk.bf16.gmra.mxu0 %vm1653_vm8, %v12479_v38  ;;  %9693 = vmatmul.msk.bf16.gmra.mxu1 %vm1653_vm8, %v12479_v38  ;;  %v505_v11 = vld [vmem:[%s16078_s0 + $0x50] sm:$0x8] }
  0x67   :  { %v455_v44 = vsel %vm249_vm7, %v454_v0, %v453_v39  ;;  %v495_v47 = vrot.slane %v482_v34, 7  ;;  %v485_v50 = vsel %vm231_vm1, %v484_v40, %v483_v35  ;;  %v557_v51 = vunpack.c.l.b16 %v541_v24  ;;  %v506_v14 = vld [vmem:[%s16078_s0 + $0x60] sm:$0x8]  ;;  %v13885_v15 = vld [vmem:[%s16078_s0 + $0x70] sm:$0x8] }
  0x68   :  { %v456_v49 = vpack.c.b16 %v455_v44, %v455_v44  ;;  %v558_v52 = vunpack.c.l.b16 %v542_v25  ;;  %v487_v53 = vsel %vm234_vm2, %v486_v41, %v485_v50  ;;  %v559_v54 = vunpack.c.l.b16 %v543_v30  ;;  %v582_v25 = vld [vmem:[%s16078_s0 + $0x4] sm:$0x1]  ;;  %v583_v26 = vld [vmem:[%s16078_s0 + $0x14] sm:$0x1] }
  0x69   :  { %v560_v55 = vunpack.c.l.b16 %v544_v31  ;;  %v561_v56 = vunpack.c.l.b16 %v545_v36  ;;  %v489_v59 = vsel %vm237_vm3, %v488_v42, %v487_v53  ;;  %v562_v60 = vunpack.c.l.b16 %v546_v37  ;;  %v584_v31 = vld [vmem:[%s16078_s0 + $0x24] sm:$0x1]  ;;  %v585_v32 = vld [vmem:[%s16078_s0 + $0x34] sm:$0x1] }
  0x6a   :  { %458 = vst.msk [vmem:[#allocation2 + $0x54] sm:$0xf] %vm189_vm0, %v456_v49  ;;  %v563_v61 = vunpack.c.l.b16 %v547_v43  ;;  %v564_v62 = vunpack.c.l.b16 %v548_v48  ;;  %v491_v2 = vsel %vm240_vm4, %v490_v45, %v489_v59  ;;  %v565_v3 = vrot.slane %v558_v52, 7  ;;  %v587_v43 = vld [vmem:[%s16078_s0 + $0x54] sm:$0x1] }
  0x6b   :  { %v567_v4 = vrot.slane %v559_v54, 6  ;;  %v569_v5 = vrot.slane %v560_v55, 5  ;;  %v493_v7 = vsel %vm243_vm5, %v492_v46, %v491_v2  ;;  %v571_v8 = vrot.slane %v561_v56, 4  ;;  %v589_v48 = vld [vmem:[%s16078_s0 + $0x74] sm:$0x1] }
  0x6c   :  { %v573_v9 = vrot.slane %v562_v60, 3  ;;  %v575_v10 = vrot.slane %v563_v61, 2  ;;  %v494_v0 = vsel %vm246_vm6, %v481_v33, %v493_v7  ;;  %v566_v12 = vsel %vm231_vm1, %v565_v3, %v557_v51  ;;  %v586_v33 = vld [vmem:[%s16078_s0 + $0x44] sm:$0x1]  ;;  %v9854_v54 = vld [vmem:[#allocation8 + $0xf0] sm:$0xf] }
  0x6d   :  { %v577_v13 = vrot.slane %v564_v62, 1  ;;  %v516_v16 = vunpack.c.l.b16 %v500_v57  ;;  %v496_v17 = vsel %vm249_vm7, %v495_v47, %v494_v0  ;;  %v568_v18 = vsel %vm234_vm2, %v567_v4, %v566_v12  ;;  %v588_v47 = vld [vmem:[%s16078_s0 + $0x64] sm:$0x1]  ;;  %v12533_v55 = vld [vmem:[#allocation8 + $0xf4] sm:$0xf0] }
  0x6e   :  { %v517_v19 = vunpack.c.l.b16 %v501_v58  ;;  %v518_v20 = vunpack.c.l.b16 %v502_v63  ;;  %v497_v21 = vpack.c.b16 %v496_v17, %v496_v17  ;;  %v570_v22 = vsel %vm237_vm3, %v569_v5, %v568_v18  ;;  %v12532_v60 = vld [vmem:[#allocation8 + $0xf4] sm:$0xf]  ;;  %v9856_v61 = vld [vmem:[#allocation8 + $0xf8] sm:$0xf0]  ;;  %v624_v4 = vld [vmem:[%s16078_s0 + $0x14] sm:$0x2] }
  0x6f   :  { %v519_v23 = vunpack.c.l.b16 %v503_v1  ;;  %v520_v24 = vunpack.c.l.b16 %v504_v6  ;;  %v572_v27 = vsel %vm240_vm4, %v571_v8, %v570_v22  ;;  %v521_v28 = vunpack.c.l.b16 %v505_v11  ;;  %v623_v62 = vld [vmem:[%s16078_s0 + $0x4] sm:$0x2] }
  0x70   :  { %v522_v29 = vunpack.c.l.b16 %v506_v14  ;;  %v523_v30 = vunpack.c.l.b16 %v13885_v15  ;;  %499 = vst.msk [vmem:[#allocation2 + $0x10] sm:$0xf] %vm189_vm0, %v497_v21  ;;  %v574_v35 = vsel %vm243_vm5, %v573_v9, %v572_v27  ;;  %v524_v36 = vrot.slane %v516_v16, 7  ;;  %v625_v9 = vld [vmem:[%s16078_s0 + $0x24] sm:$0x2] }
  0x71   :  { %v12499_v34 = vld [vmem:[#allocation2 + $0x50] sm:$0xff]  ;;  %v525_v37 = vrot.slane %v517_v19, 6  ;;  %v527_v38 = vrot.slane %v518_v20, 5  ;;  %v576_v39 = vsel %vm246_vm6, %v575_v10, %v574_v35  ;;  %v529_v40 = vrot.slane %v519_v23, 4  ;;  %v627_v14 = vld [vmem:[%s16078_s0 + $0x44] sm:$0x2] }
  0x72   :  { %v531_v41 = vrot.slane %v520_v24, 3  ;;  %v533_v42 = vrot.slane %v521_v28, 2  ;;  %9781 = vmatmul.msk.bf16.gmra.mxu2 %vm1653_vm8, %v12499_v34  ;;  %9789 = vmatmul.msk.bf16.gmra.mxu3 %vm1653_vm8, %v12499_v34  ;;  %v578_v44 = vsel %vm249_vm7, %v577_v13, %v576_v39  ;;  %v535_v46 = vrot.slane %v522_v29, 1  ;;  %v626_v13 = vld [vmem:[%s16078_s0 + $0x34] sm:$0x2] }
  0x73   :  { %v526_v45 = vsel %vm231_vm1, %v525_v37, %v524_v36  ;;  %v598_v49 = vunpack.c.l.b16 %v582_v25  ;;  %v579_v50 = vpack.c.b16 %v578_v44, %v578_v44  ;;  %v599_v52 = vunpack.c.l.b16 %v583_v26  ;;  %v628_v19 = vld [vmem:[%s16078_s0 + $0x54] sm:$0x2]  ;;  %v629_v20 = vld [vmem:[%s16078_s0 + $0x64] sm:$0x2]  ;;  %v707_v36 = vld [vmem:[%s16078_s0 + $0x24] sm:$0x4] }
  0x74   :  { %v528_v51 = vsel %vm234_vm2, %v527_v38, %v526_v45  ;;  %v600_v53 = vunpack.c.l.b16 %v584_v31  ;;  %v601_v57 = vunpack.c.l.b16 %v585_v32  ;;  %v602_v58 = vunpack.c.l.b16 %v586_v33  ;;  %v630_v24 = vld [vmem:[%s16078_s0 + $0x74] sm:$0x2]  ;;  %v706_v31 = vld [vmem:[%s16078_s0 + $0x14] sm:$0x4] }
  0x75   :  { %v530_v56 = vsel %vm237_vm3, %v529_v40, %v528_v51  ;;  %v603_v59 = vunpack.c.l.b16 %v587_v43  ;;  %581 = vst.msk [vmem:[#allocation2 + $0x14] sm:$0xf] %vm189_vm0, %v579_v50  ;;  %v604_v1 = vunpack.c.l.b16 %v588_v47  ;;  %v605_v2 = vunpack.c.l.b16 %v589_v48  ;;  %v708_v37 = vld [vmem:[%s16078_s0 + $0x34] sm:$0x4]  ;;  %v13976_v43 = vld [vmem:[%s16078_s0 + $0x44] sm:$0x4] }
  0x76   :  { %v532_v63 = vsel %vm240_vm4, %v531_v41, %v530_v56  ;;  %v606_v3 = vrot.slane %v598_v49, 1  ;;  %v608_v6 = vrot.slane %v600_v53, 7  ;;  %v610_v7 = vrot.slane %v601_v57, 6  ;;  %v710_v48 = vld [vmem:[%s16078_s0 + $0x54] sm:$0x4] }
  0x77   :  { %v534_v5 = vsel %vm243_vm5, %v533_v42, %v532_v63  ;;  %v612_v8 = vrot.slane %v602_v58, 5  ;;  %v614_v0 = vrot.slane %v603_v59, 4  ;;  %v616_v12 = vrot.slane %v604_v1, 3  ;;  %v711_v53 = vld [vmem:[%s16078_s0 + $0x64] sm:$0x4] }
  0x78   :  { %v536_v10 = vsel %vm246_vm6, %v535_v46, %v534_v5  ;;  %v607_v11 = vsel %vm231_vm1, %v599_v52, %v606_v3  ;;  %v618_v17 = vrot.slane %v605_v2, 2  ;;  %v9855_v18 = vor.u32 %v12533_v55, %v9854_v54  ;;  %v712_v54 = vld [vmem:[%s16078_s0 + $0x74] sm:$0x4]  ;;  %v664_v59 = vld [vmem:[%s16078_s0 + $0x4] sm:$0x2] }
  0x79   :  { %v537_v15 = vsel %vm249_vm7, %v523_v30, %v536_v10  ;;  %v609_v16 = vsel %vm234_vm2, %v608_v6, %v607_v11  ;;  %v9859_v23 = vor.u32 %v12532_v60, %v9856_v61  ;;  %v639_v25 = vunpack.c.l.b16 %v623_v62  ;;  %v705_v30 = vld [vmem:[%s16078_s0 + $0x4] sm:$0x4]  ;;  %v665_v1 = vld [vmem:[%s16078_s0 + $0x14] sm:$0x2]  ;;  %v666_v2 = vld [vmem:[%s16078_s0 + $0x24] sm:$0x2] }
  0x7a   :  { %v538_v21 = vpack.c.b16 %v537_v15, %v537_v15  ;;  %v611_v22 = vsel %vm237_vm3, %v610_v7, %v609_v16  ;;  %2312 = vmatpush.bf16.msrb.mxu0 %v9855_v18  ;;  %v640_v27 = vunpack.c.l.b16 %v624_v4  ;;  %v641_v28 = vunpack.c.l.b16 %v625_v9  ;;  %v667_v7 = vld [vmem:[%s16078_s0 + $0x34] sm:$0x2] }
  0x7b   :  { %v613_v26 = vsel %vm240_vm4, %v612_v8, %v611_v22  ;;  %v642_v29 = vunpack.c.l.b16 %v626_v13  ;;  %2361 = vmatpush.bf16.msrb.mxu1 %v9859_v23  ;;  %v643_v33 = vunpack.c.l.b16 %v627_v14  ;;  %v644_v34 = vunpack.c.l.b16 %v628_v19  ;;  %v668_v8 = vld [vmem:[%s16078_s0 + $0x44] sm:$0x2] }
  0x7c   :  { %540 = vst.msk [vmem:[#allocation2 + $0x58] sm:$0xf] %vm189_vm0, %v538_v21  ;;  %v615_v32 = vsel %vm243_vm5, %v614_v0, %v613_v26  ;;  %v645_v35 = vunpack.c.l.b16 %v629_v20  ;;  %v12480_v38 = vld [vmem:[#allocation2 + $0x10] sm:$0xff]  ;;  %v646_v40 = vunpack.c.l.b16 %v630_v24  ;;  %v647_v41 = vrot.slane %v639_v25, 2 }
  0x7d   :  { %v617_v39 = vsel %vm246_vm6, %v616_v12, %v615_v32  ;;  %v648_v42 = vrot.slane %v640_v27, 1  ;;  %v651_v45 = vrot.slane %v642_v29, 7  ;;  %v653_v46 = vrot.slane %v643_v33, 6  ;;  %9686 = vmatmul.msk.bf16.gmra.mxu0 %vm1653_vm8, %v12480_v38  ;;  %9694 = vmatmul.msk.bf16.gmra.mxu1 %vm1653_vm8, %v12480_v38  ;;  %v669_v12 = vld [vmem:[%s16078_s0 + $0x54] sm:$0x2] }
  0x7e   :  { %v619_v44 = vsel %vm249_vm7, %v618_v17, %v617_v39  ;;  %v655_v47 = vrot.slane %v644_v34, 5  ;;  %v657_v51 = vrot.slane %v645_v35, 4  ;;  %v659_v52 = vrot.slane %v646_v40, 3  ;;  %v670_v17 = vld [vmem:[%s16078_s0 + $0x64] sm:$0x2] }
  0x7f   :  { %v620_v49 = vpack.c.b16 %v619_v44, %v619_v44  ;;  %v649_v50 = vsel %vm231_vm1, %v648_v42, %v647_v41  ;;  %v721_v56 = vunpack.c.l.b16 %v705_v30  ;;  %v722_v57 = vunpack.c.l.b16 %v706_v31  ;;  %v671_v20 = vld [vmem:[%s16078_s0 + $0x74] sm:$0x2]  ;;  %v746_v27 = vld [vmem:[%s16078_s0 + $0x4] sm:$0x4]  ;;  %v747_v32 = vld [vmem:[%s16078_s0 + $0x14] sm:$0x4] }
  0x80   :  { %v650_v55 = vsel %vm234_vm2, %v641_v28, %v649_v50  ;;  %v723_v58 = vunpack.c.l.b16 %v707_v36  ;;  %v724_v61 = vunpack.c.l.b16 %v708_v37  ;;  %v725_v62 = vunpack.c.l.b16 %v13976_v43  ;;  %v748_v33 = vld [vmem:[%s16078_s0 + $0x24] sm:$0x4]  ;;  %v749_v34 = vld [vmem:[%s16078_s0 + $0x34] sm:$0x4] }
  0x81   :  { %622 = vst.msk [vmem:[#allocation2 + $0x5c] sm:$0xf] %vm189_vm0, %v620_v49  ;;  %v652_v60 = vsel %vm237_vm3, %v651_v45, %v650_v55  ;;  %v726_v63 = vunpack.c.l.b16 %v710_v48  ;;  %v727_v4 = vunpack.c.l.b16 %v711_v53  ;;  %v728_v5 = vunpack.c.l.b16 %v712_v54  ;;  %v750_v44 = vld [vmem:[%s16078_s0 + $0x44] sm:$0x4]  ;;  %v751_v49 = vld [vmem:[%s16078_s0 + $0x54] sm:$0x4] }
  0x82   :  { %v654_v3 = vsel %vm240_vm4, %v653_v46, %v652_v60  ;;  %v729_v6 = vrot.slane %v721_v56, 4  ;;  %v730_v10 = vrot.slane %v722_v57, 3  ;;  %v732_v11 = vrot.slane %v723_v58, 2  ;;  %v752_v50 = vld [vmem:[%s16078_s0 + $0x64] sm:$0x4] }
  0x83   :  { %v656_v9 = vsel %vm243_vm5, %v655_v47, %v654_v3  ;;  %v734_v0 = vrot.slane %v724_v61, 1  ;;  %v737_v14 = vrot.slane %v726_v63, 7  ;;  %v739_v15 = vrot.slane %v727_v4, 6  ;;  %v753_v53 = vld [vmem:[%s16078_s0 + $0x74] sm:$0x4] }
  0x84   :  { %v658_v13 = vsel %vm246_vm6, %v657_v51, %v656_v9  ;;  %v741_v16 = vrot.slane %v728_v5, 5  ;;  %v731_v19 = vsel %vm231_vm1, %v730_v10, %v729_v6  ;;  %v680_v21 = vunpack.c.l.b16 %v664_v59  ;;  %v787_v60 = vld [vmem:[%s16078_s0 + $0x4] sm:$0x8]  ;;  %v788_v61 = vld [vmem:[%s16078_s0 + $0x14] sm:$0x8] }
  0x85   :  { %v660_v18 = vsel %vm249_vm7, %v659_v52, %v658_v13  ;;  %v681_v22 = vunpack.c.l.b16 %v665_v1  ;;  %v733_v24 = vsel %vm234_vm2, %v732_v11, %v731_v19  ;;  %v682_v25 = vunpack.c.l.b16 %v666_v2  ;;  %v789_v3 = vld [vmem:[%s16078_s0 + $0x24] sm:$0x8]  ;;  %v790_v4 = vld [vmem:[%s16078_s0 + $0x34] sm:$0x8] }
  0x86   :  { %v661_v23 = vpack.c.b16 %v660_v18, %v660_v18  ;;  %v683_v26 = vunpack.c.l.b16 %v667_v7  ;;  %v735_v28 = vsel %vm237_vm3, %v734_v0, %v733_v24  ;;  %v684_v29 = vunpack.c.l.b16 %v668_v8  ;;  %v791_v5 = vld [vmem:[%s16078_s0 + $0x44] sm:$0x8]  ;;  %v792_v10 = vld [vmem:[%s16078_s0 + $0x54] sm:$0x8] }
  0x87   :  { %v685_v30 = vunpack.c.l.b16 %v669_v12  ;;  %v686_v31 = vunpack.c.l.b16 %v670_v17  ;;  %v736_v36 = vsel %vm240_vm4, %v725_v62, %v735_v28  ;;  %v687_v37 = vunpack.c.l.b16 %v671_v20  ;;  %v793_v18 = vld [vmem:[%s16078_s0 + $0x64] sm:$0x8]  ;;  %v794_v19 = vld [vmem:[%s16078_s0 + $0x74] sm:$0x8]  ;;  %v869_v28 = vld [vmem:[%s16078_s0 + $0x8] sm:$0x1] }
  0x88   :  { %v12500_v35 = vld [vmem:[#allocation2 + $0x58] sm:$0xff]  ;;  %663 = vst.msk [vmem:[#allocation2 + $0x18] sm:$0xf] %vm189_vm0, %v661_v23  ;;  %v688_v38 = vrot.slane %v680_v21, 3  ;;  %v689_v39 = vrot.slane %v681_v22, 2  ;;  %v738_v40 = vsel %vm243_vm5, %v737_v14, %v736_v36  ;;  %v691_v41 = vrot.slane %v682_v25, 1 }
  0x89   :  { %v694_v42 = vrot.slane %v684_v29, 7  ;;  %v696_v43 = vrot.slane %v685_v30, 6  ;;  %9782 = vmatmul.msk.bf16.gmra.mxu2 %vm1653_vm8, %v12500_v35  ;;  %9790 = vmatmul.msk.bf16.gmra.mxu3 %vm1653_vm8, %v12500_v35  ;;  %v740_v45 = vsel %vm246_vm6, %v739_v15, %v738_v40  ;;  %v698_v47 = vrot.slane %v686_v31, 5  ;;  %v870_v29 = vld [vmem:[%s16078_s0 + $0x18] sm:$0x1] }
  0x8a   :  { %v690_v46 = vsel %vm231_vm1, %v689_v39, %v688_v38  ;;  %v700_v48 = vrot.slane %v687_v37, 4  ;;  %v742_v51 = vsel %vm249_vm7, %v741_v16, %v740_v45  ;;  %v762_v54 = vunpack.c.l.b16 %v746_v27  ;;  %v872_v35 = vld [vmem:[%s16078_s0 + $0x38] sm:$0x1]  ;;  %v873_v40 = vld [vmem:[%s16078_s0 + $0x48] sm:$0x1] }
  0x8b   :  { %v692_v52 = vsel %vm234_vm2, %v691_v41, %v690_v46  ;;  %v763_v55 = vunpack.c.l.b16 %v747_v32  ;;  %v743_v56 = vpack.c.b16 %v742_v51, %v742_v51  ;;  %v764_v58 = vunpack.c.l.b16 %v748_v33  ;;  %v874_v46 = vld [vmem:[%s16078_s0 + $0x58] sm:$0x1] }
  0x8c   :  { %v693_v57 = vsel %vm237_vm3, %v683_v26, %v692_v52  ;;  %v765_v59 = vunpack.c.l.b16 %v749_v34  ;;  %v766_v63 = vunpack.c.l.b16 %v750_v44  ;;  %v767_v1 = vunpack.c.l.b16 %v751_v49  ;;  %v871_v34 = vld [vmem:[%s16078_s0 + $0x28] sm:$0x1]  ;;  %v876_v51 = vld [vmem:[%s16078_s0 + $0x78] sm:$0x1] }
  0x8d   :  { %v695_v62 = vsel %vm240_vm4, %v694_v42, %v693_v57  ;;  %v768_v2 = vunpack.c.l.b16 %v752_v50  ;;  %745 = vst.msk [vmem:[#allocation2 + $0x1c] sm:$0xf] %vm189_vm0, %v743_v56  ;;  %v769_v7 = vunpack.c.l.b16 %v753_v53  ;;  %v770_v8 = vrot.slane %v762_v54, 5  ;;  %v875_v50 = vld [vmem:[%s16078_s0 + $0x68] sm:$0x1] }
  0x8e   :  { %v697_v6 = vsel %vm243_vm5, %v696_v43, %v695_v62  ;;  %v771_v9 = vrot.slane %v763_v55, 4  ;;  %v773_v0 = vrot.slane %v764_v58, 3  ;;  %v775_v12 = vrot.slane %v765_v59, 2  ;;  %v829_v62 = vld [vmem:[%s16078_s0 + $0x14] sm:$0x8] }
  0x8f   :  { %v699_v11 = vsel %vm246_vm6, %v698_v47, %v697_v6  ;;  %v777_v13 = vrot.slane %v766_v63, 1  ;;  %v780_v16 = vrot.slane %v768_v2, 7  ;;  %v782_v17 = vrot.slane %v769_v7, 6 }
  0x90   :  { %v701_v14 = vsel %vm249_vm7, %v700_v48, %v699_v11  ;;  %v772_v15 = vsel %vm231_vm1, %v771_v9, %v770_v8  ;;  %v803_v22 = vunpack.c.l.b16 %v787_v60  ;;  %v804_v23 = vunpack.c.l.b16 %v788_v61  ;;  %v828_v61 = vld [vmem:[%s16078_s0 + $0x4] sm:$0x8]  ;;  %v831_v9 = vld [vmem:[%s16078_s0 + $0x34] sm:$0x8] }
  0x91   :  { %v702_v20 = vpack.c.b16 %v701_v14, %v701_v14  ;;  %v774_v21 = vsel %vm234_vm2, %v773_v0, %v772_v15  ;;  %v805_v25 = vunpack.c.l.b16 %v789_v3  ;;  %v806_v26 = vunpack.c.l.b16 %v790_v4  ;;  %v830_v4 = vld [vmem:[%s16078_s0 + $0x24] sm:$0x8]  ;;  %v833_v14 = vld [vmem:[%s16078_s0 + $0x54] sm:$0x8] }
  0x92   :  { %v776_v24 = vsel %vm237_vm3, %v775_v12, %v774_v21  ;;  %v807_v27 = vunpack.c.l.b16 %v791_v5  ;;  %v808_v31 = vunpack.c.l.b16 %v792_v10  ;;  %v809_v32 = vunpack.c.l.b16 %v793_v18  ;;  %v834_v18 = vld [vmem:[%s16078_s0 + $0x64] sm:$0x8] }
  0x93   :  { %704 = vst.msk [vmem:[#allocation2 + $0x60] sm:$0xf] %vm189_vm0, %v702_v20  ;;  %v778_v30 = vsel %vm240_vm4, %v777_v13, %v776_v24  ;;  %v810_v33 = vunpack.c.l.b16 %v794_v19  ;;  %v811_v37 = vrot.slane %v803_v22, 6  ;;  %v812_v38 = vrot.slane %v804_v23, 5  ;;  %v832_v13 = vld [vmem:[%s16078_s0 + $0x44] sm:$0x8] }
  0x94   :  { %v779_v36 = vsel %vm243_vm5, %v767_v1, %v778_v30  ;;  %v814_v39 = vrot.slane %v805_v25, 4  ;;  %v12481_v41 = vld [vmem:[#allocation2 + $0x18] sm:$0xff]  ;;  %v816_v43 = vrot.slane %v806_v26, 3  ;;  %v818_v44 = vrot.slane %v807_v27, 2  ;;  %v14157_v19 = vld [vmem:[%s16078_s0 + $0x74] sm:$0x8] }
  0x95   :  { %v781_v42 = vsel %vm246_vm6, %v780_v16, %v779_v36  ;;  %v820_v45 = vrot.slane %v808_v31, 1  ;;  %v813_v48 = vsel %vm231_vm1, %v812_v38, %v811_v37  ;;  %v823_v49 = vrot.slane %v810_v33, 7  ;;  %9687 = vmatmul.msk.bf16.gmra.mxu0 %vm1653_vm8, %v12481_v41  ;;  %9695 = vmatmul.msk.bf16.gmra.mxu1 %vm1653_vm8, %v12481_v41  ;;  %v910_v25 = vld [vmem:[%s16078_s0 + $0x8] sm:$0x1]  ;;  %v911_v26 = vld [vmem:[%s16078_s0 + $0x18] sm:$0x1] }
  0x96   :  { %v783_v47 = vsel %vm249_vm7, %v782_v17, %v781_v42  ;;  %v885_v52 = vunpack.c.l.b16 %v869_v28  ;;  %v815_v54 = vsel %vm234_vm2, %v814_v39, %v813_v48  ;;  %v886_v55 = vunpack.c.l.b16 %v870_v29  ;;  %v912_v31 = vld [vmem:[%s16078_s0 + $0x28] sm:$0x1]  ;;  %v915_v38 = vld [vmem:[%s16078_s0 + $0x58] sm:$0x1] }
  0x97   :  { %v784_v53 = vpack.c.b16 %v783_v47, %v783_v47  ;;  %v887_v56 = vunpack.c.l.b16 %v871_v34  ;;  %v817_v57 = vsel %vm237_vm3, %v816_v43, %v815_v54  ;;  %v888_v58 = vunpack.c.l.b16 %v872_v35  ;;  %v914_v33 = vld [vmem:[%s16078_s0 + $0x48] sm:$0x1] }
  0x98   :  { %v889_v59 = vunpack.c.l.b16 %v873_v40  ;;  %v890_v60 = vunpack.c.l.b16 %v874_v46  ;;  %v819_v63 = vsel %vm240_vm4, %v818_v44, %v817_v57  ;;  %v891_v1 = vunpack.c.l.b16 %v875_v50  ;;  %v916_v44 = vld [vmem:[%s16078_s0 + $0x68] sm:$0x1] }
  0x99   :  { %786 = vst.msk [vmem:[#allocation2 + $0x64] sm:$0xf] %vm189_vm0, %v784_v53  ;;  %v892_v2 = vunpack.c.l.b16 %v876_v51  ;;  %v893_v3 = vrot.slane %v886_v55, 7  ;;  %v821_v5 = vsel %vm243_vm5, %v820_v45, %v819_v63  ;;  %v895_v6 = vrot.slane %v887_v56, 6 }
  0x9a   :  { %v897_v7 = vrot.slane %v888_v58, 5  ;;  %v899_v8 = vrot.slane %v889_v59, 4  ;;  %v822_v10 = vsel %vm246_vm6, %v809_v32, %v821_v5  ;;  %v901_v0 = vrot.slane %v890_v60, 3  ;;  %v913_v32 = vld [vmem:[%s16078_s0 + $0x38] sm:$0x1] }
  0x9b   :  { %v894_v11 = vsel %vm231_vm1, %v893_v3, %v885_v52  ;;  %v903_v12 = vrot.slane %v891_v1, 2  ;;  %v824_v15 = vsel %vm249_vm7, %v823_v49, %v822_v10  ;;  %v905_v17 = vrot.slane %v892_v2, 1  ;;  %v917_v49 = vld [vmem:[%s16078_s0 + $0x78] sm:$0x1]  ;;  %v9846_v58 = vld [vmem:[#allocation8 + $0xe0] sm:$0xf] }
  0x9c   :  { %v896_v16 = vsel %vm234_vm2, %v895_v6, %v894_v11  ;;  %v844_v20 = vunpack.c.l.b16 %v828_v61  ;;  %v825_v21 = vpack.c.b16 %v824_v15, %v824_v15  ;;  %v845_v23 = vunpack.c.l.b16 %v829_v62  ;;  %v951_v59 = vld [vmem:[%s16078_s0 + $0x8] sm:$0x2]  ;;  %v12531_v1 = vld [vmem:[#allocation8 + $0xe4] sm:$0xf0]  ;;  %v12530_v2 = vld [vmem:[#allocation8 + $0xe4] sm:$0xf] }
  0x9d   :  { %v898_v22 = vsel %vm237_vm3, %v897_v7, %v896_v16  ;;  %v846_v24 = vunpack.c.l.b16 %v830_v4  ;;  %v847_v28 = vunpack.c.l.b16 %v831_v9  ;;  %v848_v29 = vunpack.c.l.b16 %v832_v13  ;;  %v952_v3 = vld [vmem:[%s16078_s0 + $0x18] sm:$0x2]  ;;  %v953_v13 = vld [vmem:[%s16078_s0 + $0x28] sm:$0x2] }
  0x9e   :  { %v900_v27 = vsel %vm240_vm4, %v899_v8, %v898_v22  ;;  %v849_v30 = vunpack.c.l.b16 %v833_v14  ;;  %827 = vst.msk [vmem:[#allocation2 + $0x20] sm:$0xf] %vm189_vm0, %v825_v21  ;;  %v850_v35 = vunpack.c.l.b16 %v834_v18  ;;  %v851_v36 = vunpack.c.l.b16 %v14157_v19  ;;  %v9848_v8 = vld [vmem:[#allocation8 + $0xe8] sm:$0xf0]  ;;  %v954_v9 = vld [vmem:[%s16078_s0 + $0x38] sm:$0x2] }
  0x9f   :  { %v902_v34 = vsel %vm243_vm5, %v901_v0, %v900_v27  ;;  %v852_v37 = vrot.slane %v844_v20, 7  ;;  %v853_v41 = vrot.slane %v845_v23, 6  ;;  %v855_v42 = vrot.slane %v846_v24, 5  ;;  %v955_v18 = vld [vmem:[%s16078_s0 + $0x48] sm:$0x2] }
  0xa0   :  { %v12501_v39 = vld [vmem:[#allocation2 + $0x60] sm:$0xff]  ;;  %v904_v40 = vsel %vm246_vm6, %v903_v12, %v902_v34  ;;  %v857_v43 = vrot.slane %v847_v28, 4  ;;  %v859_v46 = vrot.slane %v848_v29, 3  ;;  %v861_v47 = vrot.slane %v849_v30, 2  ;;  %v956_v19 = vld [vmem:[%s16078_s0 + $0x58] sm:$0x2] }
  0xa1   :  { %v906_v45 = vsel %vm249_vm7, %v905_v17, %v904_v40  ;;  %v863_v48 = vrot.slane %v850_v35, 1  ;;  %9783 = vmatmul.msk.bf16.gmra.mxu2 %vm1653_vm8, %v12501_v39  ;;  %9791 = vmatmul.msk.bf16.gmra.mxu3 %vm1653_vm8, %v12501_v39  ;;  %v854_v51 = vsel %vm231_vm1, %v853_v41, %v852_v37  ;;  %v926_v52 = vunpack.c.l.b16 %v910_v25  ;;  %v957_v23 = vld [vmem:[%s16078_s0 + $0x68] sm:$0x2]  ;;  %v958_v24 = vld [vmem:[%s16078_s0 + $0x78] sm:$0x2] }
  0xa2   :  { %v907_v50 = vpack.c.b16 %v906_v45, %v906_v45  ;;  %v927_v53 = vunpack.c.l.b16 %v911_v26  ;;  %v856_v54 = vsel %vm234_vm2, %v855_v42, %v854_v51  ;;  %v928_v55 = vunpack.c.l.b16 %v912_v31  ;;  %v1033_v30 = vld [vmem:[%s16078_s0 + $0x8] sm:$0x4]  ;;  %v1034_v31 = vld [vmem:[%s16078_s0 + $0x18] sm:$0x4] }
  0xa3   :  { %v929_v56 = vunpack.c.l.b16 %v913_v32  ;;  %v930_v57 = vunpack.c.l.b16 %v914_v33  ;;  %v858_v60 = vsel %vm237_vm3, %v857_v43, %v856_v54  ;;  %v931_v61 = vunpack.c.l.b16 %v915_v38  ;;  %v1036_v37 = vld [vmem:[%s16078_s0 + $0x38] sm:$0x4]  ;;  %v14243_v38 = vld [vmem:[%s16078_s0 + $0x48] sm:$0x4] }
  0xa4   :  { %909 = vst.msk [vmem:[#allocation2 + $0x24] sm:$0xf] %vm189_vm0, %v907_v50  ;;  %v932_v62 = vunpack.c.l.b16 %v916_v44  ;;  %v933_v63 = vunpack.c.l.b16 %v917_v49  ;;  %v860_v4 = vsel %vm240_vm4, %v859_v46, %v858_v60  ;;  %v934_v5 = vrot.slane %v926_v52, 1  ;;  %v1038_v44 = vld [vmem:[%s16078_s0 + $0x58] sm:$0x4] }
  0xa5   :  { %v936_v6 = vrot.slane %v928_v55, 7  ;;  %v938_v7 = vrot.slane %v929_v56, 6  ;;  %v862_v10 = vsel %vm243_vm5, %v861_v47, %v860_v4  ;;  %v940_v11 = vrot.slane %v930_v57, 5  ;;  %v1039_v49 = vld [vmem:[%s16078_s0 + $0x68] sm:$0x4] }
  0xa6   :  { %v942_v0 = vrot.slane %v931_v61, 4  ;;  %v944_v12 = vrot.slane %v932_v62, 3  ;;  %v864_v14 = vsel %vm246_vm6, %v863_v48, %v862_v10  ;;  %v935_v15 = vsel %vm231_vm1, %v927_v53, %v934_v5  ;;  %v1040_v54 = vld [vmem:[%s16078_s0 + $0x78] sm:$0x4] }
  0xa7   :  { %v946_v16 = vrot.slane %v933_v63, 2  ;;  %v9847_v17 = vor.u32 %v12531_v1, %v9846_v58  ;;  %v865_v20 = vsel %vm249_vm7, %v851_v36, %v864_v14  ;;  %v937_v21 = vsel %vm234_vm2, %v936_v6, %v935_v15  ;;  %v1035_v36 = vld [vmem:[%s16078_s0 + $0x28] sm:$0x4]  ;;  %v992_v63 = vld [vmem:[%s16078_s0 + $0x8] sm:$0x2] }
  0xa8   :  { %v9851_v22 = vor.u32 %v12530_v2, %v9848_v8  ;;  %v967_v25 = vunpack.c.l.b16 %v951_v59  ;;  %v866_v26 = vpack.c.b16 %v865_v20, %v865_v20  ;;  %v939_v27 = vsel %vm237_vm3, %v938_v7, %v937_v21  ;;  %v993_v1 = vld [vmem:[%s16078_s0 + $0x18] sm:$0x2]  ;;  %v994_v6 = vld [vmem:[%s16078_s0 + $0x28] sm:$0x2] }
  0xa9   :  { %2313 = vmatpush.bf16.msrb.mxu0 %v9847_v17  ;;  %v968_v28 = vunpack.c.l.b16 %v952_v3  ;;  %v969_v29 = vunpack.c.l.b16 %v953_v13  ;;  %v941_v32 = vsel %vm240_vm4, %v940_v11, %v939_v27  ;;  %v970_v33 = vunpack.c.l.b16 %v954_v9  ;;  %v995_v7 = vld [vmem:[%s16078_s0 + $0x38] sm:$0x2]  ;;  %v998_v20 = vld [vmem:[%s16078_s0 + $0x68] sm:$0x2] }
  0xaa   :  { %2362 = vmatpush.bf16.msrb.mxu1 %v9851_v22  ;;  %v971_v34 = vunpack.c.l.b16 %v955_v18  ;;  %v972_v35 = vunpack.c.l.b16 %v956_v19  ;;  %868 = vst.msk [vmem:[#allocation2 + $0x68] sm:$0xf] %vm189_vm0, %v866_v26  ;;  %v943_v40 = vsel %vm243_vm5, %v942_v0, %v941_v32  ;;  %v973_v41 = vunpack.c.l.b16 %v957_v23  ;;  %v996_v0 = vld [vmem:[%s16078_s0 + $0x48] sm:$0x2]  ;;  %v999_v21 = vld [vmem:[%s16078_s0 + $0x78] sm:$0x2] }
  0xab   :  { %v12482_v39 = vld [vmem:[#allocation2 + $0x20] sm:$0xff]  ;;  %v974_v42 = vunpack.c.l.b16 %v958_v24  ;;  %v975_v43 = vrot.slane %v967_v25, 2  ;;  %v945_v45 = vsel %vm246_vm6, %v944_v12, %v943_v40  ;;  %v976_v46 = vrot.slane %v968_v28, 1  ;;  %v1075_v32 = vld [vmem:[%s16078_s0 + $0x18] sm:$0x4] }
  0xac   :  { %v979_v47 = vrot.slane %v970_v33, 7  ;;  %v981_v48 = vrot.slane %v971_v34, 6  ;;  %9688 = vmatmul.msk.bf16.gmra.mxu0 %vm1653_vm8, %v12482_v39  ;;  %9696 = vmatmul.msk.bf16.gmra.mxu1 %vm1653_vm8, %v12482_v39  ;;  %v947_v50 = vsel %vm249_vm7, %v946_v16, %v945_v45  ;;  %v983_v51 = vrot.slane %v972_v35, 5  ;;  %v997_v16 = vld [vmem:[%s16078_s0 + $0x58] sm:$0x2] }
  0xad   :  { %v985_v52 = vrot.slane %v973_v41, 4  ;;  %v987_v53 = vrot.slane %v974_v42, 3  ;;  %v948_v55 = vpack.c.b16 %v947_v50, %v947_v50  ;;  %v977_v56 = vsel %vm231_vm1, %v976_v46, %v975_v43  ;;  %v1078_v39 = vld [vmem:[%s16078_s0 + $0x48] sm:$0x4] }
  0xae   :  { %v1049_v57 = vunpack.c.l.b16 %v1033_v30  ;;  %v1050_v58 = vunpack.c.l.b16 %v1034_v31  ;;  %v978_v59 = vsel %vm234_vm2, %v969_v29, %v977_v56  ;;  %v1051_v60 = vunpack.c.l.b16 %v1035_v36  ;;  %v1074_v31 = vld [vmem:[%s16078_s0 + $0x8] sm:$0x4] }
  0xaf   :  { %v1052_v61 = vunpack.c.l.b16 %v1036_v37  ;;  %v1053_v62 = vunpack.c.l.b16 %v14243_v38  ;;  %950 = vst.msk [vmem:[#allocation2 + $0x6c] sm:$0xf] %vm189_vm0, %v948_v55  ;;  %v980_v2 = vsel %vm237_vm3, %v979_v47, %v978_v59  ;;  %v1054_v3 = vunpack.c.l.b16 %v1038_v44  ;;  %v1076_v37 = vld [vmem:[%s16078_s0 + $0x28] sm:$0x4]  ;;  %v1077_v38 = vld [vmem:[%s16078_s0 + $0x38] sm:$0x4] }
  0xb0   :  { %v1055_v4 = vunpack.c.l.b16 %v1039_v49  ;;  %v1056_v5 = vunpack.c.l.b16 %v1040_v54  ;;  %v982_v8 = vsel %vm240_vm4, %v981_v48, %v980_v2  ;;  %v1057_v9 = vrot.slane %v1049_v57, 4  ;;  %v14318_v49 = vld [vmem:[%s16078_s0 + $0x58] sm:$0x4]  ;;  %v12529_v2 = vld [vmem:[#allocation8 + $0xd4] sm:$0xf0] }
  0xb1   :  { %v1058_v10 = vrot.slane %v1050_v58, 3  ;;  %v1060_v11 = vrot.slane %v1051_v60, 2  ;;  %v984_v12 = vsel %vm243_vm5, %v983_v51, %v982_v8  ;;  %v1062_v13 = vrot.slane %v1052_v61, 1  ;;  %v1081_v54 = vld [vmem:[%s16078_s0 + $0x78] sm:$0x4] }
  0xb2   :  { %v1065_v14 = vrot.slane %v1054_v3, 7  ;;  %v1067_v15 = vrot.slane %v1055_v4, 6  ;;  %v986_v17 = vsel %vm246_vm6, %v985_v52, %v984_v12  ;;  %v1069_v19 = vrot.slane %v1056_v5, 5  ;;  %v12528_v3 = vld [vmem:[#allocation8 + $0xd4] sm:$0xf] }
  0xb3   :  { %v1059_v18 = vsel %vm231_vm1, %v1058_v10, %v1057_v9  ;;  %v1008_v22 = vunpack.c.l.b16 %v992_v63  ;;  %v988_v23 = vsel %vm249_vm7, %v987_v53, %v986_v17  ;;  %v1009_v25 = vunpack.c.l.b16 %v993_v1  ;;  %v1080_v53 = vld [vmem:[%s16078_s0 + $0x68] sm:$0x4]  ;;  %v9838_v1 = vld [vmem:[#allocation8 + $0xd0] sm:$0xf]  ;;  %v1115_v4 = vld [vmem:[%s16078_s0 + $0x8] sm:$0x8] }
  0xb4   :  { %v1061_v24 = vsel %vm234_vm2, %v1060_v11, %v1059_v18  ;;  %v1010_v26 = vunpack.c.l.b16 %v994_v6  ;;  %v989_v27 = vpack.c.b16 %v988_v23, %v988_v23  ;;  %v1011_v29 = vunpack.c.l.b16 %v995_v7  ;;  %v1116_v5 = vld [vmem:[%s16078_s0 + $0x18] sm:$0x8]  ;;  %v9840_v10 = vld [vmem:[#allocation8 + $0xd8] sm:$0xf0]  ;;  %v1117_v11 = vld [vmem:[%s16078_s0 + $0x28] sm:$0x8] }
  0xb5   :  { %v1063_v28 = vsel %vm237_vm3, %v1062_v13, %v1061_v24  ;;  %v1012_v30 = vunpack.c.l.b16 %v996_v0  ;;  %v1013_v34 = vunpack.c.l.b16 %v997_v16  ;;  %v1014_v35 = vunpack.c.l.b16 %v998_v20  ;;  %v1119_v20 = vld [vmem:[%s16078_s0 + $0x48] sm:$0x8] }
  0xb6   :  { %v1064_v33 = vsel %vm240_vm4, %v1053_v62, %v1063_v28  ;;  %v1015_v36 = vunpack.c.l.b16 %v999_v21  ;;  %v12502_v40 = vld [vmem:[#allocation2 + $0x68] sm:$0xff]  ;;  %991 = vst.msk [vmem:[#allocation2 + $0x28] sm:$0xf] %vm189_vm0, %v989_v27  ;;  %v1016_v42 = vrot.slane %v1008_v22, 3  ;;  %v1017_v43 = vrot.slane %v1009_v25, 2 }
  0xb7   :  { %v1066_v41 = vsel %vm243_vm5, %v1065_v14, %v1064_v33  ;;  %v1019_v44 = vrot.slane %v1010_v26, 1  ;;  %v1022_v46 = vrot.slane %v1012_v30, 7  ;;  %v1024_v47 = vrot.slane %v1013_v34, 6  ;;  %9784 = vmatmul.msk.bf16.gmra.mxu2 %vm1653_vm8, %v12502_v40  ;;  %9792 = vmatmul.msk.bf16.gmra.mxu3 %vm1653_vm8, %v12502_v40  ;;  %v1120_v25 = vld [vmem:[%s16078_s0 + $0x58] sm:$0x8] }
  0xb8   :  { %v1068_v45 = vsel %vm246_vm6, %v1067_v15, %v1066_v41  ;;  %v1026_v48 = vrot.slane %v1014_v35, 5  ;;  %v1018_v51 = vsel %vm231_vm1, %v1017_v43, %v1016_v42  ;;  %v1028_v52 = vrot.slane %v1015_v36, 4  ;;  %v1118_v15 = vld [vmem:[%s16078_s0 + $0x38] sm:$0x8]  ;;  %v14360_v26 = vld [vmem:[%s16078_s0 + $0x68] sm:$0x8] }
  0xb9   :  { %v1070_v50 = vsel %vm249_vm7, %v1069_v19, %v1068_v45  ;;  %v1090_v55 = vunpack.c.l.b16 %v1074_v31  ;;  %v1020_v57 = vsel %vm234_vm2, %v1019_v44, %v1018_v51  ;;  %v1091_v58 = vunpack.c.l.b16 %v1075_v32  ;;  %v1122_v27 = vld [vmem:[%s16078_s0 + $0x78] sm:$0x8]  ;;  %v1197_v36 = vld [vmem:[%s16078_s0 + $0xc] sm:$0x1]  ;;  %v1200_v43 = vld [vmem:[%s16078_s0 + $0x3c] sm:$0x1] }
  0xba   :  { %v1071_v56 = vpack.c.b16 %v1070_v50, %v1070_v50  ;;  %v1092_v59 = vunpack.c.l.b16 %v1076_v37  ;;  %v1021_v60 = vsel %vm237_vm3, %v1011_v29, %v1020_v57  ;;  %v1093_v61 = vunpack.c.l.b16 %v1077_v38  ;;  %v1198_v37 = vld [vmem:[%s16078_s0 + $0x1c] sm:$0x1]  ;;  %v1199_v42 = vld [vmem:[%s16078_s0 + $0x2c] sm:$0x1] }
  0xbb   :  { %v1094_v62 = vunpack.c.l.b16 %v1078_v39  ;;  %v1095_v63 = vunpack.c.l.b16 %v14318_v49  ;;  %v1023_v6 = vsel %vm240_vm4, %v1022_v46, %v1021_v60  ;;  %v1096_v7 = vunpack.c.l.b16 %v1080_v53  ;;  %v1201_v49 = vld [vmem:[%s16078_s0 + $0x4c] sm:$0x1] }
  0xbc   :  { %1073 = vst.msk [vmem:[#allocation2 + $0x2c] sm:$0xf] %vm189_vm0, %v1071_v56  ;;  %v1097_v8 = vunpack.c.l.b16 %v1081_v54  ;;  %v1098_v9 = vrot.slane %v1090_v55, 5  ;;  %v1025_v0 = vsel %vm243_vm5, %v1024_v47, %v1023_v6  ;;  %v1099_v12 = vrot.slane %v1091_v58, 4  ;;  %v1202_v54 = vld [vmem:[%s16078_s0 + $0x5c] sm:$0x1] }
  0xbd   :  { %v1101_v13 = vrot.slane %v1092_v59, 3  ;;  %v1103_v14 = vrot.slane %v1093_v61, 2  ;;  %v1027_v16 = vsel %vm246_vm6, %v1026_v48, %v1025_v0  ;;  %v1105_v17 = vrot.slane %v1094_v62, 1  ;;  %v1203_v58 = vld [vmem:[%s16078_s0 + $0x6c] sm:$0x1] }
  0xbe   :  { %v1108_v18 = vrot.slane %v1096_v7, 7  ;;  %v1110_v19 = vrot.slane %v1097_v8, 6  ;;  %v1029_v21 = vsel %vm249_vm7, %v1028_v52, %v1027_v16  ;;  %v1100_v22 = vsel %vm231_vm1, %v1099_v12, %v1098_v9  ;;  %v1204_v59 = vld [vmem:[%s16078_s0 + $0x7c] sm:$0x1]  ;;  %v1156_v6 = vld [vmem:[%s16078_s0 + $0x8] sm:$0x8] }
  0xbf   :  { %v9839_v23 = vor.u32 %v12529_v2, %v9838_v1  ;;  %v9843_v24 = vor.u32 %v12528_v3, %v9840_v10  ;;  %v1030_v28 = vpack.c.b16 %v1029_v21, %v1029_v21  ;;  %v1102_v29 = vsel %vm234_vm2, %v1101_v13, %v1100_v22  ;;  %v1157_v7 = vld [vmem:[%s16078_s0 + $0x18] sm:$0x8]  ;;  %v1158_v0 = vld [vmem:[%s16078_s0 + $0x28] sm:$0x8] }
  0xc0   :  { %v1131_v30 = vunpack.c.l.b16 %v1115_v4  ;;  %v1132_v31 = vunpack.c.l.b16 %v1116_v5  ;;  %v1104_v32 = vsel %vm237_vm3, %v1103_v14, %v1102_v29  ;;  %v1133_v33 = vunpack.c.l.b16 %v1117_v11  ;;  %v1159_v16 = vld [vmem:[%s16078_s0 + $0x38] sm:$0x8]  ;;  %v1160_v21 = vld [vmem:[%s16078_s0 + $0x48] sm:$0x8] }
  0xc1   :  { %2314 = vmatpush.bf16.msrb.mxu0 %v9839_v23  ;;  %2363 = vmatpush.bf16.msrb.mxu1 %v9843_v24  ;;  %v1134_v34 = vunpack.c.l.b16 %v1118_v15  ;;  %v1135_v35 = vunpack.c.l.b16 %v1119_v20  ;;  %1032 = vst.msk [vmem:[#allocation2 + $0x70] sm:$0xf] %vm189_vm0, %v1030_v28  ;;  %v1106_v38 = vsel %vm240_vm4, %v1105_v17, %v1104_v32  ;;  %v1136_v39 = vunpack.c.l.b16 %v1120_v25  ;;  %v1161_v22 = vld [vmem:[%s16078_s0 + $0x58] sm:$0x8] }
  0xc2   :  { %v1137_v40 = vunpack.c.l.b16 %v14360_v26  ;;  %v1138_v41 = vunpack.c.l.b16 %v1122_v27  ;;  %v1107_v45 = vsel %vm243_vm5, %v1095_v63, %v1106_v38  ;;  %v1139_v46 = vrot.slane %v1131_v30, 6  ;;  %v1162_v26 = vld [vmem:[%s16078_s0 + $0x68] sm:$0x8]  ;;  %v14433_v27 = vld [vmem:[%s16078_s0 + $0x78] sm:$0x8] }
  0xc3   :  { %v12483_v44 = vld [vmem:[#allocation2 + $0x28] sm:$0xff]  ;;  %v1140_v47 = vrot.slane %v1132_v31, 5  ;;  %v1142_v48 = vrot.slane %v1133_v33, 4  ;;  %v1109_v50 = vsel %vm246_vm6, %v1108_v18, %v1107_v45  ;;  %v1144_v51 = vrot.slane %v1134_v34, 3  ;;  %v14442_v34 = vld [vmem:[%s16078_s0 + $0x1c] sm:$0x1] }
  0xc4   :  { %v1146_v52 = vrot.slane %v1135_v35, 2  ;;  %v1148_v53 = vrot.slane %v1136_v39, 1  ;;  %9689 = vmatmul.msk.bf16.gmra.mxu0 %vm1653_vm8, %v12483_v44  ;;  %9697 = vmatmul.msk.bf16.gmra.mxu1 %vm1653_vm8, %v12483_v44  ;;  %v1111_v55 = vsel %vm249_vm7, %v1110_v19, %v1109_v50  ;;  %v1151_v57 = vrot.slane %v1138_v41, 7  ;;  %v1238_v33 = vld [vmem:[%s16078_s0 + $0xc] sm:$0x1] }
  0xc5   :  { %v1141_v56 = vsel %vm231_vm1, %v1140_v47, %v1139_v46  ;;  %v1213_v60 = vunpack.c.l.b16 %v1197_v36  ;;  %v1112_v61 = vpack.c.b16 %v1111_v55, %v1111_v55  ;;  %v1214_v63 = vunpack.c.l.b16 %v1198_v37  ;;  %v1240_v39 = vld [vmem:[%s16078_s0 + $0x2c] sm:$0x1]  ;;  %v1243_v46 = vld [vmem:[%s16078_s0 + $0x5c] sm:$0x1] }
  0xc6   :  { %v1143_v62 = vsel %vm234_vm2, %v1142_v48, %v1141_v56  ;;  %v1215_v1 = vunpack.c.l.b16 %v1199_v42  ;;  %v1216_v3 = vunpack.c.l.b16 %v1200_v43  ;;  %v1217_v4 = vunpack.c.l.b16 %v1201_v49  ;;  %v1242_v41 = vld [vmem:[%s16078_s0 + $0x4c] sm:$0x1] }
  0xc7   :  { %v1145_v2 = vsel %vm237_vm3, %v1144_v51, %v1143_v62  ;;  %v1218_v5 = vunpack.c.l.b16 %v1202_v54  ;;  %1114 = vst.msk [vmem:[#allocation2 + $0x74] sm:$0xf] %vm189_vm0, %v1112_v61  ;;  %v1219_v9 = vunpack.c.l.b16 %v1203_v58  ;;  %v1220_v10 = vunpack.c.l.b16 %v1204_v59  ;;  %v9966_v62 = vld [vmem:[#allocation8 + $0x170] sm:$0xf] }
  0xc8   :  { %v1147_v8 = vsel %vm240_vm4, %v1146_v52, %v1145_v2  ;;  %v1221_v11 = vrot.slane %v1214_v63, 7  ;;  %v1223_v13 = vrot.slane %v1215_v1, 6  ;;  %v1225_v14 = vrot.slane %v1216_v3, 5  ;;  %v1244_v52 = vld [vmem:[%s16078_s0 + $0x6c] sm:$0x1] }
  0xc9   :  { %v1149_v12 = vsel %vm243_vm5, %v1148_v53, %v1147_v8  ;;  %v1227_v15 = vrot.slane %v1217_v4, 4  ;;  %v1229_v19 = vrot.slane %v1218_v5, 3  ;;  %v1231_v20 = vrot.slane %v1219_v9, 2  ;;  %v12557_v63 = vld [vmem:[#allocation8 + $0x174] sm:$0xf0] }
  0xca   :  { %v1150_v17 = vsel %vm246_vm6, %v1137_v40, %v1149_v12  ;;  %v1222_v18 = vsel %vm231_vm1, %v1221_v11, %v1213_v60  ;;  %v1233_v25 = vrot.slane %v1220_v10, 1  ;;  %v1172_v28 = vunpack.c.l.b16 %v1156_v6  ;;  %v1241_v40 = vld [vmem:[%s16078_s0 + $0x3c] sm:$0x1]  ;;  %v12556_v5 = vld [vmem:[#allocation8 + $0x174] sm:$0xf] }
  0xcb   :  { %v1152_v23 = vsel %vm249_vm7, %v1151_v57, %v1150_v17  ;;  %v1224_v24 = vsel %vm234_vm2, %v1223_v13, %v1222_v18  ;;  %v1173_v31 = vunpack.c.l.b16 %v1157_v7  ;;  %v1174_v32 = vunpack.c.l.b16 %v1158_v0  ;;  %v1245_v57 = vld [vmem:[%s16078_s0 + $0x7c] sm:$0x1]  ;;  %v9968_v6 = vld [vmem:[#allocation8 + $0x178] sm:$0xf0]  ;;  %v9830_v7 = vld [vmem:[#allocation8 + $0xc0] sm:$0xf] }
  0xcc   :  { %v1153_v29 = vpack.c.b16 %v1152_v23, %v1152_v23  ;;  %v1226_v30 = vsel %vm237_vm3, %v1225_v14, %v1224_v24  ;;  %v1175_v36 = vunpack.c.l.b16 %v1159_v16  ;;  %v1176_v37 = vunpack.c.l.b16 %v1160_v21  ;;  %v12527_v8 = vld [vmem:[#allocation8 + $0xc4] sm:$0xf0]  ;;  %v12526_v12 = vld [vmem:[#allocation8 + $0xc4] sm:$0xf]  ;;  %v9832_v13 = vld [vmem:[#allocation8 + $0xc8] sm:$0xf0] }
  0xcd   :  { %v1228_v35 = vsel %vm240_vm4, %v1227_v15, %v1226_v30  ;;  %v1177_v38 = vunpack.c.l.b16 %v1161_v22  ;;  %v1178_v43 = vunpack.c.l.b16 %v1162_v26  ;;  %v1179_v44 = vunpack.c.l.b16 %v14433_v27  ;;  %v9958_v18 = vld [vmem:[#allocation8 + $0x160] sm:$0xf]  ;;  %v12554_v30 = vld [vmem:[#allocation8 + $0x164] sm:$0xf] }
  0xce   :  { %1155 = vst.msk [vmem:[#allocation2 + $0x30] sm:$0xf] %vm189_vm0, %v1153_v29  ;;  %v1230_v42 = vsel %vm243_vm5, %v1229_v19, %v1228_v35  ;;  %v1180_v45 = vrot.slane %v1172_v28, 7  ;;  %v12503_v47 = vld [vmem:[#allocation2 + $0x70] sm:$0xff]  ;;  %v1181_v49 = vrot.slane %v1173_v31, 6  ;;  %v1183_v50 = vrot.slane %v1174_v32, 5 }
  0xcf   :  { %v1232_v48 = vsel %vm246_vm6, %v1231_v20, %v1230_v42  ;;  %v1185_v51 = vrot.slane %v1175_v36, 4  ;;  %v1187_v54 = vrot.slane %v1176_v37, 3  ;;  %v1189_v55 = vrot.slane %v1177_v38, 2  ;;  %9785 = vmatmul.msk.bf16.gmra.mxu2 %vm1653_vm8, %v12503_v47  ;;  %9793 = vmatmul.msk.bf16.gmra.mxu3 %vm1653_vm8, %v12503_v47  ;;  %v1279_v19 = vld [vmem:[%s16078_s0 + $0xc] sm:$0x2] }
  0xd0   :  { %v1234_v53 = vsel %vm249_vm7, %v1233_v25, %v1232_v48  ;;  %v1191_v56 = vrot.slane %v1178_v43, 1  ;;  %v1182_v59 = vsel %vm231_vm1, %v1181_v49, %v1180_v45  ;;  %v1254_v60 = vunpack.c.l.b16 %v1238_v33  ;;  %v1280_v20 = vld [vmem:[%s16078_s0 + $0x1c] sm:$0x2]  ;;  %v12555_v25 = vld [vmem:[#allocation8 + $0x164] sm:$0xf0] }
  0xd1   :  { %v1235_v58 = vpack.c.b16 %v1234_v53, %v1234_v53  ;;  %v1255_v61 = vunpack.c.l.b16 %v14442_v34  ;;  %v1184_v1 = vsel %vm234_vm2, %v1183_v50, %v1182_v59  ;;  %v1256_v2 = vunpack.c.l.b16 %v1240_v39  ;;  %v9960_v31 = vld [vmem:[#allocation8 + $0x168] sm:$0xf0]  ;;  %v1281_v36 = vld [vmem:[%s16078_s0 + $0x2c] sm:$0x2]  ;;  %v1361_v50 = vld [vmem:[%s16078_s0 + $0xc] sm:$0x4] }
  0xd2   :  { %v1257_v3 = vunpack.c.l.b16 %v1241_v40  ;;  %v1258_v4 = vunpack.c.l.b16 %v1242_v41  ;;  %v1186_v9 = vsel %vm237_vm3, %v1185_v51, %v1184_v1  ;;  %v1259_v10 = vunpack.c.l.b16 %v1243_v46  ;;  %v1282_v37 = vld [vmem:[%s16078_s0 + $0x3c] sm:$0x2]  ;;  %v1283_v38 = vld [vmem:[%s16078_s0 + $0x4c] sm:$0x2]  ;;  %v1362_v51 = vld [vmem:[%s16078_s0 + $0x1c] sm:$0x4] }
  0xd3   :  { %1237 = vst.msk [vmem:[#allocation2 + $0x34] sm:$0xf] %vm189_vm0, %v1235_v58  ;;  %v1260_v11 = vunpack.c.l.b16 %v1244_v52  ;;  %v1261_v0 = vunpack.c.l.b16 %v1245_v57  ;;  %v1188_v14 = vsel %vm240_vm4, %v1187_v54, %v1186_v9  ;;  %v1262_v15 = vrot.slane %v1254_v60, 1  ;;  %v1284_v43 = vld [vmem:[%s16078_s0 + $0x5c] sm:$0x2] }
  0xd4   :  { %v1264_v16 = vrot.slane %v1256_v2, 7  ;;  %v1266_v17 = vrot.slane %v1257_v3, 6  ;;  %v1190_v21 = vsel %vm243_vm5, %v1189_v55, %v1188_v14  ;;  %v1268_v22 = vrot.slane %v1258_v4, 5  ;;  %v1286_v45 = vld [vmem:[%s16078_s0 + $0x7c] sm:$0x2] }
  0xd5   :  { %v1270_v23 = vrot.slane %v1259_v10, 4  ;;  %v1272_v24 = vrot.slane %v1260_v11, 3  ;;  %v1192_v26 = vsel %vm246_vm6, %v1191_v56, %v1190_v21  ;;  %v1263_v27 = vsel %vm231_vm1, %v1255_v61, %v1262_v15  ;;  %v1363_v57 = vld [vmem:[%s16078_s0 + $0x2c] sm:$0x4]  ;;  %v1366_v1 = vld [vmem:[%s16078_s0 + $0x5c] sm:$0x4] }
  0xd6   :  { %v1274_v28 = vrot.slane %v1261_v0, 2  ;;  %v9967_v29 = vor.u32 %v12557_v63, %v9966_v62  ;;  %v1193_v32 = vsel %vm249_vm7, %v1179_v44, %v1192_v26  ;;  %v1265_v33 = vsel %vm234_vm2, %v1264_v16, %v1263_v27  ;;  %v1285_v44 = vld [vmem:[%s16078_s0 + $0x6c] sm:$0x2]  ;;  %v1364_v62 = vld [vmem:[%s16078_s0 + $0x3c] sm:$0x4] }
  0xd7   :  { %v9971_v34 = vor.u32 %v12556_v5, %v9968_v6  ;;  %v9831_v35 = vor.u32 %v12527_v8, %v9830_v7  ;;  %v1194_v39 = vpack.c.b16 %v1193_v32, %v1193_v32  ;;  %v1267_v40 = vsel %vm237_vm3, %v1266_v17, %v1265_v33  ;;  %v1365_v63 = vld [vmem:[%s16078_s0 + $0x4c] sm:$0x4]  ;;  %v1368_v11 = vld [vmem:[%s16078_s0 + $0x7c] sm:$0x4]  ;;  %v1323_v26 = vld [vmem:[%s16078_s0 + $0x3c] sm:$0x2] }
  0xd8   :  { %2657 = vmatpush.bf16.msrb.mxu2 %v9967_v29  ;;  %v9835_v41 = vor.u32 %v12526_v12, %v9832_v13  ;;  %v9959_v42 = vor.u32 %v12555_v25, %v9958_v18  ;;  %v1269_v46 = vsel %vm240_vm4, %v1268_v22, %v1267_v40  ;;  %v9963_v47 = vor.u32 %v12554_v30, %v9960_v31  ;;  %v1367_v6 = vld [vmem:[%s16078_s0 + $0x6c] sm:$0x4]  ;;  %v1322_v25 = vld [vmem:[%s16078_s0 + $0x2c] sm:$0x2] }
  0xd9   :  { %2706 = vmatpush.bf16.msrb.mxu3 %v9971_v34  ;;  %2315 = vmatpush.bf16.msrb.mxu0 %v9831_v35  ;;  %v1295_v48 = vunpack.c.l.b16 %v1279_v19  ;;  %v1296_v49 = vunpack.c.l.b16 %v1280_v20  ;;  %1196 = vst.msk [vmem:[#allocation2 + $0x78] sm:$0xf] %vm189_vm0, %v1194_v39  ;;  %v1271_v53 = vsel %vm243_vm5, %v1270_v23, %v1269_v46  ;;  %v1297_v54 = vunpack.c.l.b16 %v1281_v36  ;;  %v1320_v19 = vld [vmem:[%s16078_s0 + $0xc] sm:$0x2]  ;;  %v1325_v36 = vld [vmem:[%s16078_s0 + $0x5c] sm:$0x2] }
  0xda   :  { %v12484_v52 = vld [vmem:[#allocation2 + $0x30] sm:$0xff]  ;;  %2364 = vmatpush.bf16.msrb.mxu1 %v9835_v41  ;;  %v1298_v55 = vunpack.c.l.b16 %v1282_v37  ;;  %v1299_v56 = vunpack.c.l.b16 %v1283_v38  ;;  %v1273_v58 = vsel %vm246_vm6, %v1272_v24, %v1271_v53  ;;  %v1300_v59 = vunpack.c.l.b16 %v1284_v43  ;;  %v1321_v24 = vld [vmem:[%s16078_s0 + $0x1c] sm:$0x2]  ;;  %v1324_v31 = vld [vmem:[%s16078_s0 + $0x4c] sm:$0x2] }
  0xdb   :  { %v1301_v60 = vunpack.c.l.b16 %v1285_v44  ;;  %v1302_v61 = vunpack.c.l.b16 %v1286_v45  ;;  %9690 = vmatmul.msk.bf16.gmra.mxu0 %vm1653_vm8, %v12484_v52  ;;  %9698 = vmatmul.msk.bf16.gmra.mxu1 %vm1653_vm8, %v12484_v52  ;;  %v1275_v2 = vsel %vm249_vm7, %v1274_v28, %v1273_v58  ;;  %v1303_v3 = vrot.slane %v1295_v48, 2  ;;  %v1326_v40 = vld [vmem:[%s16078_s0 + $0x6c] sm:$0x2]  ;;  %v1327_v41 = vld [vmem:[%s16078_s0 + $0x7c] sm:$0x2] }
  0xdc   :  { %v1304_v4 = vrot.slane %v1296_v49, 1  ;;  %v1307_v5 = vrot.slane %v1298_v55, 7  ;;  %v1276_v7 = vpack.c.b16 %v1275_v2, %v1275_v2  ;;  %2658 = vmatpush.bf16.msrb.mxu2 %v9959_v42  ;;  %v1309_v8 = vrot.slane %v1299_v56, 6  ;;  %v1404_v58 = vld [vmem:[%s16078_s0 + $0x2c] sm:$0x4] }
  0xdd   :  { %2707 = vmatpush.bf16.msrb.mxu3 %v9963_v47  ;;  %v1311_v9 = vrot.slane %v1300_v59, 5  ;;  %v1313_v10 = vrot.slane %v1301_v60, 4  ;;  %v1315_v12 = vrot.slane %v1302_v61, 3  ;;  %v1377_v13 = vunpack.c.l.b16 %v1361_v50 }
  0xde   :  { %v1305_v0 = vsel %vm231_vm1, %v1304_v4, %v1303_v3  ;;  %v1378_v14 = vunpack.c.l.b16 %v1362_v51  ;;  %1278 = vst.msk [vmem:[#allocation2 + $0x7c] sm:$0xf] %vm189_vm0, %v1276_v7  ;;  %v1379_v16 = vunpack.c.l.b16 %v1363_v57  ;;  %v1380_v17 = vunpack.c.l.b16 %v1364_v62  ;;  %v1402_v51 = vld [vmem:[%s16078_s0 + $0xc] sm:$0x4]  ;;  %v1403_v57 = vld [vmem:[%s16078_s0 + $0x1c] sm:$0x4] }
  0xdf   :  { %v1306_v15 = vsel %vm234_vm2, %v1297_v54, %v1305_v0  ;;  %v1381_v18 = vunpack.c.l.b16 %v1365_v63  ;;  %v1382_v21 = vunpack.c.l.b16 %v1366_v1  ;;  %v1383_v22 = vunpack.c.l.b16 %v1367_v6  ;;  %v1405_v3 = vld [vmem:[%s16078_s0 + $0x3c] sm:$0x4]  ;;  %v1406_v4 = vld [vmem:[%s16078_s0 + $0x4c] sm:$0x4]  ;;  %v14595_v6 = vpop.f32.mrf.mxu1 }
  0xe0   :  { %v1308_v20 = vsel %vm237_vm3, %v1307_v5, %v1306_v15  ;;  %v1384_v23 = vunpack.c.l.b16 %v1368_v11  ;;  %v1385_v28 = vrot.slane %v1377_v13, 4  ;;  %v1386_v29 = vrot.slane %v1378_v14, 3  ;;  %v14593_v5 = vpop.f32.mrf.mxu0  ;;  %v1409_v11 = vld [vmem:[%s16078_s0 + $0x7c] sm:$0x4] }
  0xe1   :  { %v1310_v27 = vsel %vm240_vm4, %v1309_v8, %v1308_v20  ;;  %v1388_v30 = vrot.slane %v1379_v16, 2  ;;  %v1390_v33 = vrot.slane %v1380_v17, 1  ;;  %v1393_v34 = vrot.slane %v1382_v21, 7  ;;  %v1407_v14 = vld [vmem:[%s16078_s0 + $0x5c] sm:$0x4] }
  0xe2   :  { %v1312_v32 = vsel %vm243_vm5, %v1311_v9, %v1310_v27  ;;  %v1395_v35 = vrot.slane %v1383_v22, 6  ;;  %v1387_v38 = vsel %vm231_vm1, %v1386_v29, %v1385_v28  ;;  %v1397_v39 = vrot.slane %v1384_v23, 5  ;;  %v9950_v17 = vld [vmem:[#allocation8 + $0x150] sm:$0xf]  ;;  %v12553_v22 = vld [vmem:[#allocation8 + $0x154] sm:$0xf0] }
  0xe3   :  { %v1314_v37 = vsel %vm246_vm6, %v1313_v10, %v1312_v32  ;;  %v1336_v42 = vunpack.c.l.b16 %v1320_v19  ;;  %v1389_v44 = vsel %vm234_vm2, %v1388_v30, %v1387_v38  ;;  %v1337_v45 = vunpack.c.l.b16 %v1321_v24  ;;  %v1408_v10 = vld [vmem:[%s16078_s0 + $0x6c] sm:$0x4]  ;;  %v12552_v23 = vld [vmem:[#allocation8 + $0x154] sm:$0xf] }
  0xe4   :  { %v1316_v43 = vsel %vm249_vm7, %v1315_v12, %v1314_v37  ;;  %v1338_v46 = vunpack.c.l.b16 %v1322_v25  ;;  %v1391_v48 = vsel %vm237_vm3, %v1390_v33, %v1389_v44  ;;  %v1339_v49 = vunpack.c.l.b16 %v1323_v26  ;;  %v9952_v28 = vld [vmem:[#allocation8 + $0x158] sm:$0xf0] }
  0xe5   :  { %v1317_v47 = vpack.c.b16 %v1316_v43, %v1316_v43  ;;  %v1340_v50 = vunpack.c.l.b16 %v1324_v31  ;;  %v12504_v52 = vld [vmem:[#allocation2 + $0x78] sm:$0xff]  ;;  %v1392_v53 = vsel %vm240_vm4, %v1381_v18, %v1391_v48  ;;  %v1341_v54 = vunpack.c.l.b16 %v1325_v36  ;;  %v9942_v36 = vld [vmem:[#allocation8 + $0x140] sm:$0xf] }
  0xe6   :  { %v1342_v55 = vunpack.c.l.b16 %v1326_v40  ;;  %v1343_v56 = vunpack.c.l.b16 %v1327_v41  ;;  %v1394_v59 = vsel %vm243_vm5, %v1393_v34, %v1392_v53  ;;  %v1344_v60 = vrot.slane %v1336_v42, 3  ;;  %9786 = vmatmul.msk.bf16.gmra.mxu2 %vm1653_vm8, %v12504_v52  ;;  %9794 = vmatmul.msk.bf16.gmra.mxu3 %vm1653_vm8, %v12504_v52  ;;  %v12551_v41 = vld [vmem:[#allocation8 + $0x144] sm:$0xf0]  ;;  %v12550_v42 = vld [vmem:[#allocation8 + $0x144] sm:$0xf]  ;;  %v1970_v53 = vpop.f32.mrf.mxu2 }
  0xe7   :  { %1319 = vst.msk [vmem:[#allocation2 + $0x38] sm:$0xf] %vm189_vm0, %v1317_v47  ;;  %v1345_v61 = vrot.slane %v1337_v45, 2  ;;  %v1347_v62 = vrot.slane %v1338_v46, 1  ;;  %v1396_v63 = vsel %vm246_vm6, %v1395_v35, %v1394_v59  ;;  %v1350_v1 = vrot.slane %v1340_v50, 7 }
  0xe8   :  { %v1352_v2 = vrot.slane %v1341_v54, 6  ;;  %v1398_v7 = vsel %vm249_vm7, %v1397_v39, %v1396_v63  ;;  %v1354_v9 = vrot.slane %v1342_v55, 5  ;;  %v1418_v0 = vunpack.c.l.b16 %v1402_v51  ;;  %v9944_v43 = vld [vmem:[#allocation8 + $0x148] sm:$0xf0]  ;;  %v10062_v50 = vld [vmem:[#allocation8 + $0x1d0] sm:$0xf]  ;;  %v2019_v54 = vpop.f32.mrf.mxu3 }
  0xe9   :  { %v1346_v8 = vsel %vm231_vm1, %v1345_v61, %v1344_v60  ;;  %v1399_v12 = vpack.c.b16 %v1398_v7, %v1398_v7  ;;  %v1419_v15 = vunpack.c.l.b16 %v1403_v57  ;;  %v1420_v16 = vunpack.c.l.b16 %v1404_v58  ;;  %v12577_v51 = vld [vmem:[#allocation8 + $0x1d4] sm:$0xf0]  ;;  %v12576_v52 = vld [vmem:[#allocation8 + $0x1d4] sm:$0xf]  ;;  %v10064_v60 = vld [vmem:[#allocation8 + $0x1d8] sm:$0xf0]  ;;  %v14620_v61 = vpop.f32.mrf.mxu0 }
  0xea   :  { %v1348_v13 = vsel %vm234_vm2, %v1347_v62, %v1346_v8  ;;  %v1356_v19 = vrot.slane %v1343_v56, 4  ;;  %v1421_v20 = vunpack.c.l.b16 %v1405_v3  ;;  %v1422_v21 = vunpack.c.l.b16 %v1406_v4  ;;  %v12549_v58 = vld [vmem:[#allocation8 + $0x134] sm:$0xf0]  ;;  %v14622_v62 = vpop.f32.mrf.mxu1  ;;  %v9936_v3 = vld [vmem:[#allocation8 + $0x138] sm:$0xf0] }
  0xeb   :  { %v1349_v18 = vsel %vm237_vm3, %v1339_v49, %v1348_v13  ;;  %1401 = vst.msk [vmem:[#allocation2 + $0x3c] sm:$0xf] %vm189_vm0, %v1399_v12  ;;  %v1424_v25 = vunpack.c.l.b16 %v1408_v10  ;;  %v1425_v26 = vunpack.c.l.b16 %v1409_v11  ;;  %v1426_v27 = vrot.slane %v1418_v0, 5  ;;  %v9934_v49 = vld [vmem:[#allocation8 + $0x130] sm:$0xf] }
  0xec   :  { %v1351_v24 = vsel %vm240_vm4, %v1350_v1, %v1349_v18  ;;  %v1427_v30 = vrot.slane %v1419_v15, 4  ;;  %v1429_v31 = vrot.slane %v1420_v16, 3  ;;  %v1431_v32 = vrot.slane %v1421_v20, 2  ;;  %v9926_v13 = vld [vmem:[#allocation8 + $0x120] sm:$0xf] }
  0xed   :  { %v1353_v29 = vsel %vm243_vm5, %v1352_v2, %v1351_v24  ;;  %v1423_v34 = vunpack.c.l.b16 %v1407_v14  ;;  %v1433_v35 = vrot.slane %v1422_v21, 1  ;;  %v9951_v39 = vor.u32 %v12553_v22, %v9950_v17  ;;  %v12548_v2 = vld [vmem:[#allocation8 + $0x134] sm:$0xf]  ;;  %v12546_v14 = vld [vmem:[#allocation8 + $0x124] sm:$0xf] }
  0xee   :  { %v1355_v33 = vsel %vm246_vm6, %v1354_v9, %v1353_v29  ;;  %v1428_v38 = vsel %vm231_vm1, %v1427_v30, %v1426_v27  ;;  %v9955_v40 = vor.u32 %v12552_v23, %v9952_v28  ;;  %v1436_v46 = vrot.slane %v1424_v25, 7  ;;  %v9928_v15 = vld [vmem:[#allocation8 + $0x128] sm:$0xf0]  ;;  %v12518_v22 = vld [vmem:[#allocation2 + $0x4] sm:$0xff]  ;;  %v10054_v25 = vld [vmem:[#allocation8 + $0x1c0] sm:$0xf] }
  0xef   :  { %v1357_v37 = vsel %vm249_vm7, %v1356_v19, %v1355_v33  ;;  %v1430_v45 = vsel %vm234_vm2, %v1429_v31, %v1428_v38  ;;  %v1438_v47 = vrot.slane %v1425_v26, 6  ;;  %2659 = vmatpush.bf16.msrb.mxu2 %v9951_v39  ;;  %v9943_v56 = vor.u32 %v12551_v41, %v9942_v36  ;;  %v12575_v26 = vld [vmem:[#allocation8 + $0x1c4] sm:$0xf0]  ;;  %v12574_v27 = vld [vmem:[#allocation8 + $0x1c4] sm:$0xf] }
  0xf0   :  { %v1358_v44 = vpack.c.b16 %v1357_v37, %v1357_v37  ;;  %v1432_v48 = vsel %vm237_vm3, %v1431_v32, %v1430_v45  ;;  %2708 = vmatpush.bf16.msrb.mxu3 %v9955_v40  ;;  %v9947_v57 = vor.u32 %v12550_v42, %v9944_v43  ;;  %v10063_v59 = vor.u32 %v12577_v51, %v10062_v50  ;;  %v14638_v16 = vpop.f32.mrf.mxu3  ;;  %v10056_v31 = vld [vmem:[#allocation8 + $0x1c8] sm:$0xf0]  ;;  %v12538_v37 = vld [vmem:[#allocation2 + $0x4c] sm:$0xff]  ;;  %v10046_v43 = vld [vmem:[#allocation8 + $0x1b0] sm:$0xf] }
  0xf1   :  { %v1434_v55 = vsel %vm240_vm4, %v1433_v35, %v1432_v48  ;;  %v10067_v4 = vor.u32 %v12576_v52, %v10064_v60  ;;  %v14626_v7 = vadd.f32 %v1970_v53, %v14593_v5  ;;  %v14629_v8 = vadd.f32 %v2019_v54, %v14595_v6  ;;  %v12547_v5 = vld [vmem:[#allocation8 + $0x124] sm:$0xf0]  ;;  %v14636_v6 = vpop.f32.mrf.mxu2  ;;  %v1692_v19 = vpop.f32.mrf.mxu0  ;;  %v12519_v40 = vld [vmem:[#allocation2 + $0xc] sm:$0xff]  ;;  %v12572_v45 = vld [vmem:[#allocation8 + $0x1b4] sm:$0xf] }
  0xf2   :  { %1360 = vst.msk [vmem:[#allocation2 + $0x80] sm:$0xf] %vm189_vm0, %v1358_v44  ;;  %v12485_v63 = vld [vmem:[#allocation2 + $0x38] sm:$0xff]  ;;  %v1435_v1 = vsel %vm243_vm5, %v1423_v34, %v1434_v55  ;;  %3004 = vmatpush.bf16.msra.mxu0 %v10063_v59  ;;  %v9935_v0 = vor.u32 %v12549_v58, %v9934_v49  ;;  %v9939_v12 = vor.u32 %v12548_v2, %v9936_v3  ;;  %v1741_v20 = vpop.f32.mrf.mxu1  ;;  %v12573_v44 = vld [vmem:[#allocation8 + $0x1b4] sm:$0xf0]  ;;  %vm9537_vm9 = vcmask 523264  }
  0xf3   :  { %v1437_v9 = vsel %vm246_vm6, %v1436_v46, %v1435_v1  ;;  %9691 = vmatmul.msk.bf16.gmra.mxu0 %vm1653_vm8, %v12485_v63  ;;  %9699 = vmatmul.msk.bf16.gmra.mxu1 %vm1653_vm8, %v12485_v63  ;;  %v9927_v17 = vor.u32 %v12547_v5, %v9926_v13  ;;  %v9931_v18 = vor.u32 %v12546_v14, %v9928_v15  ;;  %v10048_v49 = vld [vmem:[#allocation8 + $0x1b8] sm:$0xf0]  ;;  %v12539_v55 = vld [vmem:[#allocation2 + $0x54] sm:$0xff]  ;;  %v10040_v14 = vld [vmem:[#allocation8 + $0x1a8] sm:$0xf0]  ;;  %vm9576_vm10 = vcmask 261120  }
  0xf4   :  { %v1439_v10 = vsel %vm249_vm7, %v1438_v47, %v1437_v9  ;;  %2660 = vmatpush.bf16.msrb.mxu2 %v9943_v56  ;;  %2709 = vmatpush.bf16.msrb.mxu3 %v9947_v57  ;;  %v10055_v30 = vor.u32 %v12575_v26, %v10054_v25  ;;  %v10059_v34 = vor.u32 %v12574_v27, %v10056_v31  ;;  %v12520_v56 = vld [vmem:[#allocation2 + $0x14] sm:$0xff]  ;;  %v12521_v9 = vld [vmem:[#allocation2 + $0x1c] sm:$0xff]  ;;  %v12522_v26 = vld [vmem:[#allocation2 + $0x24] sm:$0xff] }
  0xf5   :  { %v1440_v11 = vpack.c.b16 %v1439_v10, %v1439_v10  ;;  %3053 = vmatpush.bf16.msra.mxu1 %v10067_v4  ;;  %v10047_v48 = vor.u32 %v12573_v44, %v10046_v43  ;;  %v10051_v50 = vor.u32 %v12572_v45, %v10048_v49  ;;  %v12540_v4 = vld [vmem:[#allocation2 + $0x5c] sm:$0xff]  ;;  %v10038_v10 = vld [vmem:[#allocation8 + $0x1a0] sm:$0xf]  ;;  %v12568_v31 = vld [vmem:[#allocation8 + $0x194] sm:$0xf] }
  0xf6   :  { %3005 = vmatpush.bf16.msra.mxu0 %v10055_v30  ;;  %v10030_v27 = vld [vmem:[#allocation8 + $0x190] sm:$0xf]  ;;  %v12569_v30 = vld [vmem:[#allocation8 + $0x194] sm:$0xf0]  ;;  %v1443_v43 = vld [vmem:[%s16078_s0 + $0xc] sm:$0x8] }
  0xf7   :  { %1442 = vst.msk [vmem:[#allocation2 + $0x84] sm:$0xf] %vm189_vm0, %v1440_v11  ;;  %v12571_v11 = vld [vmem:[#allocation8 + $0x1a4] sm:$0xf0]  ;;  %v1444_v44 = vld [vmem:[%s16078_s0 + $0x1c] sm:$0x8]  ;;  %v1459_v49 = vunpack.c.l.b16 %v1443_v43 }
  0xf8   :  { %2661 = vmatpush.bf16.msrb.mxu2 %v9935_v0  ;;  %2710 = vmatpush.bf16.msrb.mxu3 %v9939_v12  ;;  %v2024_v24 = vpop.f32.mrf.mxu3  ;;  %v12570_v0 = vld [vmem:[#allocation8 + $0x1a4] sm:$0xf]  ;;  %v10039_v5 = vor.u32 %v12571_v11, %v10038_v10  ;;  %v1484_v45 = vld [vmem:[%s16078_s0 + $0xc] sm:$0x8]  ;;  %v1450_v43 = vld [vmem:[%s16078_s0 + $0x7c] sm:$0x8] }
  0xf9   :  { %v1975_v23 = vpop.f32.mrf.mxu2  ;;  %v14644_v29 = vadd.f32 %v2024_v24, %v1741_v20  ;;  %v14646_v32 = vpop.f32.mrf.mxu0  ;;  %3054 = vmatpush.bf16.msra.mxu1 %v10059_v34  ;;  %v10043_v15 = vor.u32 %v12570_v0, %v10040_v14  ;;  %v10031_v34 = vor.u32 %v12569_v30, %v10030_v27  ;;  %v1447_v11 = vld [vmem:[%s16078_s0 + $0x4c] sm:$0x8] }
  0xfa   :  { %v14642_v28 = vadd.f32 %v1975_v23, %v1692_v19  ;;  %v14648_v33 = vpop.f32.mrf.mxu1  ;;  %3006 = vmatpush.bf16.msra.mxu0 %v10047_v48  ;;  %v1445_v48 = vld [vmem:[%s16078_s0 + $0x2c] sm:$0x8] }
  0xfc   :  { %2662 = vmatpush.bf16.msrb.mxu2 %v9927_v17  ;;  %2711 = vmatpush.bf16.msrb.mxu3 %v9931_v18 }
  0xfd   :  { %3055 = vmatpush.bf16.msra.mxu1 %v10051_v50  ;;  %v1460_v50 = vunpack.c.l.b16 %v1444_v44 }
  0xfe   :  { %v12505_v21 = vld [vmem:[#allocation2 + $0x80] sm:$0xff]  ;;  %3007 = vmatpush.bf16.msra.mxu0 %v10039_v5  ;;  %v1467_v5 = vrot.slane %v1459_v49, 6 }
  0xff   :  { %9787 = vmatmul.msk.bf16.gmra.mxu2 %vm1653_vm8, %v12505_v21  ;;  %9795 = vmatmul.msk.bf16.gmra.mxu3 %vm1653_vm8, %v12505_v21  ;;  %v12541_v21 = vld [vmem:[#allocation2 + $0x64] sm:$0xff]  ;;  %v1468_v14 = vrot.slane %v1460_v50, 5  ;;  %v12523_v50 = vld [vmem:[#allocation2 + $0x2c] sm:$0xff] }
 0x100   :  { %v14654_v36 = vpop.f32.mrf.mxu3 }
 0x101   :  { %v14652_v35 = vpop.f32.mrf.mxu2  ;;  %v1697_v38 = vpop.f32.mrf.mxu0  ;;  %3056 = vmatpush.bf16.msra.mxu1 %v10043_v15  ;;  %v1488_v15 = vld [vmem:[%s16078_s0 + $0x4c] sm:$0x8] }
 0x102   :  { %v1746_v39 = vpop.f32.mrf.mxu1  ;;  %3008 = vmatpush.bf16.msra.mxu0 %v10031_v34 }
 0x103   :  { %9876 = vmatmul.msk.bf16.vlgmr.msrb.gmra.mxu0 %vm1653_vm8, %v12518_v22  ;;  %9884 = vmatmul.msk.bf16.vlgmr.msrb.gmra.mxu1 %vm1653_vm8, %v12518_v22 }
 0x109   :  { %v14664_v51 = vpop.f32.mrf.mxu0 }
 0x10a   :  { %v14666_v52 = vpop.f32.mrf.mxu1 }
 0x10c   :  { %v1980_v41 = vpop.f32.mrf.mxu2  ;;  %v2029_v42 = vpop.f32.mrf.mxu3 }
 0x10d   :  { %v14658_v46 = vadd.f32 %v1980_v41, %v1697_v38  ;;  %v14660_v47 = vadd.f32 %v2029_v42, %v1746_v39 }
 0x10f   :  { %9972 = vmatmul.msk.bf16.vlgmr.msrb.gmra.mxu2 %vm1653_vm8, %v12538_v37  ;;  %9980 = vmatmul.msk.bf16.vlgmr.msrb.gmra.mxu3 %vm1653_vm8, %v12538_v37  ;;  %v10032_v37 = vld [vmem:[#allocation8 + $0x198] sm:$0xf0] }
 0x110   :  { %v10035_v38 = vor.u32 %v12568_v31, %v10032_v37  ;;  %v1469_v31 = vsel %vm231_vm1, %v1468_v14, %v1467_v5  ;;  %v1490_v37 = vld [vmem:[%s16078_s0 + $0x6c] sm:$0x8] }
 0x112   :  { %v1702_v57 = vpop.f32.mrf.mxu0  ;;  %v1751_v58 = vpop.f32.mrf.mxu1  ;;  %3057 = vmatpush.bf16.msra.mxu1 %v10035_v38 }
 0x113   :  { %9877 = vmatmul.msk.bf16.gmra.mxu0 %vm1653_vm8, %v12519_v40  ;;  %9885 = vmatmul.msk.bf16.gmra.mxu1 %vm1653_vm8, %v12519_v40 }
 0x114   :  { %v14668_v53 = vpop.f32.mrf.mxu2  ;;  %v14670_v54 = vpop.f32.mrf.mxu3 }
 0x11a   :  { %v14680_v2 = vpop.f32.mrf.mxu0  ;;  %v14682_v3 = vpop.f32.mrf.mxu1 }
 0x11f   :  { %9973 = vmatmul.msk.bf16.gmra.mxu2 %vm1653_vm8, %v12539_v55  ;;  %9981 = vmatmul.msk.bf16.gmra.mxu3 %vm1653_vm8, %v12539_v55  ;;  %v1485_v55 = vld [vmem:[%s16078_s0 + $0x1c] sm:$0x8] }
 0x123   :  { %9878 = vmatmul.msk.bf16.gmra.mxu0 %vm1653_vm8, %v12520_v56  ;;  %9886 = vmatmul.msk.bf16.gmra.mxu1 %vm1653_vm8, %v12520_v56  ;;  %v1486_v56 = vld [vmem:[%s16078_s0 + $0x2c] sm:$0x8] }
 0x124   :  { %v1985_v59 = vpop.f32.mrf.mxu2  ;;  %v2034_v60 = vpop.f32.mrf.mxu3  ;;  %v1502_v10 = vunpack.c.l.b16 %v1486_v56  ;;  %v1466_v56 = vunpack.c.l.b16 %v1450_v43 }
 0x125   :  { %v14676_v63 = vadd.f32 %v1985_v59, %v1702_v57  ;;  %v14678_v1 = vadd.f32 %v2034_v60, %v1751_v58  ;;  %v1500_v57 = vunpack.c.l.b16 %v1484_v45  ;;  %v12542_v58 = vld [vmem:[#allocation2 + $0x6c] sm:$0xff]  ;;  %v1446_v59 = vld [vmem:[%s16078_s0 + $0x3c] sm:$0x8]  ;;  %v1461_v60 = vunpack.c.l.b16 %v1445_v48 }
 0x126   :  { %v1462_v0 = vunpack.c.l.b16 %v1446_v59  ;;  %v1506_v48 = vunpack.c.l.b16 %v1490_v37 }
 0x127   :  { %v1508_v27 = vrot.slane %v1500_v57, 7 }
 0x128   :  { %v1472_v34 = vrot.slane %v1462_v0, 3 }
 0x129   :  { %v1707_v17 = vpop.f32.mrf.mxu0  ;;  %v1756_v18 = vpop.f32.mrf.mxu1 }
 0x12c   :  { %v14686_v12 = vpop.f32.mrf.mxu2  ;;  %v14688_v13 = vpop.f32.mrf.mxu3 }
 0x12f   :  { %9974 = vmatmul.msk.bf16.gmra.mxu2 %vm1653_vm8, %v12540_v4  ;;  %9982 = vmatmul.msk.bf16.gmra.mxu3 %vm1653_vm8, %v12540_v4  ;;  %v1487_v4 = vld [vmem:[%s16078_s0 + $0x3c] sm:$0x8] }
 0x131   :  { %v14696_v24 = vpop.f32.mrf.mxu0  ;;  %v14698_v25 = vpop.f32.mrf.mxu1 }
 0x132   :  { %16092 = vst [vmem:[#allocation30_spill] sm:$0xff] %v14698_v25 }
 0x133   :  { %9879 = vmatmul.msk.bf16.gmra.mxu0 %vm1653_vm8, %v12521_v9  ;;  %9887 = vmatmul.msk.bf16.gmra.mxu1 %vm1653_vm8, %v12521_v9  ;;  %v1501_v9 = vunpack.c.l.b16 %v1485_v55  ;;  %v1449_v55 = vld [vmem:[%s16078_s0 + $0x6c] sm:$0x8] }
 0x135   :  { %v1509_v49 = vrot.slane %v1501_v9, 6  ;;  %v1491_v9 = vld [vmem:[%s16078_s0 + $0x7c] sm:$0x8] }
 0x136   :  { %v1507_v37 = vunpack.c.l.b16 %v1491_v9 }
 0x137   :  { %v1510_v0 = vsel %vm231_vm1, %v1509_v49, %v1508_v27 }
 0x13a   :  { %v1990_v19 = vpop.f32.mrf.mxu2  ;;  %v2039_v20 = vpop.f32.mrf.mxu3 }
 0x13b   :  { %v14692_v22 = vadd.f32 %v1990_v19, %v1707_v17  ;;  %v14694_v23 = vadd.f32 %v2039_v20, %v1756_v18  ;;  %v1503_v17 = vunpack.c.l.b16 %v1487_v4  ;;  %v1448_v18 = vld [vmem:[%s16078_s0 + $0x5c] sm:$0x8]  ;;  %v1463_v19 = vunpack.c.l.b16 %v1447_v11 }
 0x13c   :  { %v1470_v20 = vrot.slane %v1461_v60, 4  ;;  %v1464_v30 = vunpack.c.l.b16 %v1448_v18  ;;  %v1511_v60 = vrot.slane %v1502_v10, 5  ;;  %v1465_v4 = vunpack.c.l.b16 %v1449_v55 }
 0x13d   :  { %v1474_v45 = vrot.slane %v1463_v19, 2  ;;  %v1479_v18 = vrot.slane %v1466_v56, 7 }
 0x13e   :  { %v1471_v44 = vsel %vm234_vm2, %v1470_v20, %v1469_v31  ;;  %v1476_v59 = vrot.slane %v1464_v30, 1  ;;  %v1512_v19 = vsel %vm234_vm2, %v1511_v60, %v1510_v0  ;;  %v12567_v30 = vld [vmem:[#allocation8 + $0x184] sm:$0xf0]  ;;  %v12566_v31 = vld [vmem:[#allocation8 + $0x184] sm:$0xf] }
 0x13f   :  { %9975 = vmatmul.msk.bf16.gmra.mxu2 %vm1653_vm8, %v12541_v21  ;;  %9983 = vmatmul.msk.bf16.gmra.mxu3 %vm1653_vm8, %v12541_v21  ;;  %v1489_v21 = vld [vmem:[%s16078_s0 + $0x5c] sm:$0x8]  ;;  %v1473_v57 = vsel %vm237_vm3, %v1472_v34, %v1471_v44 }
 0x140   :  { %v1505_v38 = vunpack.c.l.b16 %v1489_v21  ;;  %v1475_v11 = vsel %vm240_vm4, %v1474_v45, %v1473_v57  ;;  %v10022_v21 = vld [vmem:[#allocation8 + $0x180] sm:$0xf]  ;;  %v10024_v45 = vld [vmem:[#allocation8 + $0x188] sm:$0xf0] }
 0x141   :  { %v14704_v39 = vpop.f32.mrf.mxu0  ;;  %v14706_v40 = vpop.f32.mrf.mxu1  ;;  %v10023_v44 = vor.u32 %v12567_v30, %v10022_v21  ;;  %v10027_v55 = vor.u32 %v12566_v31, %v10024_v45  ;;  %v12544_v30 = vld [vmem:[#allocation2 + $0x7c] sm:$0xff] }
 0x142   :  { %v14708_v41 = vpop.f32.mrf.mxu2  ;;  %v14710_v42 = vpop.f32.mrf.mxu3  ;;  %v1517_v57 = vrot.slane %v1505_v38, 2 }
 0x143   :  { %9880 = vmatmul.msk.bf16.gmra.mxu0 %vm1653_vm8, %v12522_v26  ;;  %9888 = vmatmul.msk.bf16.gmra.mxu1 %vm1653_vm8, %v12522_v26  ;;  %16093 = vst [vmem:[#allocation31_spill] sm:$0xff] %v14710_v42  ;;  %v1504_v26 = vunpack.c.l.b16 %v1488_v15  ;;  %v1477_v15 = vsel %vm243_vm5, %v1476_v59, %v1475_v11  ;;  %v1519_v59 = vrot.slane %v1506_v48, 1 }
 0x144   :  { %v1478_v34 = vsel %vm246_vm6, %v1465_v4, %v1477_v15  ;;  %3009 = vmatpush.bf16.msra.mxu0 %v10023_v44  ;;  %3058 = vmatpush.bf16.msra.mxu1 %v10027_v55 }
 0x145   :  { %v1515_v49 = vrot.slane %v1504_v26, 3  ;;  %v1480_v56 = vsel %vm249_vm7, %v1479_v18, %v1478_v34  ;;  %v12543_v26 = vld [vmem:[#allocation2 + $0x74] sm:$0xff] }
 0x146   :  { %v1481_v60 = vpack.c.b16 %v1480_v56, %v1480_v56  ;;  %v12558_v56 = vld [vmem:[#allocation2 + $0x8] sm:$0xff] }
 0x148   :  { %1483 = vst.msk [vmem:[#allocation2 + $0x40] sm:$0xf] %vm189_vm0, %v1481_v60 }
 0x149   :  { %v14767_v5 = vpop.f32.mrf.mxu0  ;;  %v14769_v14 = vpop.f32.mrf.mxu1 }
 0x14a   :  { %16094 = vst [vmem:[#allocation32_spill] sm:$0xff] %v14767_v5  ;;  %v10222_v5 = vld [vmem:[#allocation12 + $0xc8] sm:$0xf] }
 0x14b   :  { %16095 = vst [vmem:[#allocation33_spill] sm:$0xff] %v14769_v14 }
 0x14f   :  { %9976 = vmatmul.msk.bf16.gmra.mxu2 %vm1653_vm8, %v12542_v58  ;;  %9984 = vmatmul.msk.bf16.gmra.mxu3 %vm1653_vm8, %v12542_v58  ;;  %v1513_v58 = vrot.slane %v1503_v17, 4  ;;  %v12525_v31 = vld [vmem:[#allocation2 + $0x3c] sm:$0xff] }
 0x151   :  { %v1514_v27 = vsel %vm237_vm3, %v1513_v58, %v1512_v19  ;;  %v12524_v58 = vld [vmem:[#allocation2 + $0x34] sm:$0xff] }
 0x152   :  { %v1995_v10 = vpop.f32.mrf.mxu2  ;;  %v2044_v20 = vpop.f32.mrf.mxu3  ;;  %v1516_v4 = vsel %vm240_vm4, %v1515_v49, %v1514_v27 }
 0x153   :  { %9881 = vmatmul.msk.bf16.gmra.mxu0 %vm1653_vm8, %v12523_v50  ;;  %9889 = vmatmul.msk.bf16.gmra.mxu1 %vm1653_vm8, %v12523_v50  ;;  %v14778_v17 = vadd.f32 %v1995_v10, %v14704_v39  ;;  %v14781_v43 = vadd.f32 %v2044_v20, %v14706_v40  ;;  %v1518_v50 = vsel %vm243_vm5, %v1517_v57, %v1516_v4 }
 0x154   :  { %v1520_v39 = vsel %vm246_vm6, %v1519_v59, %v1518_v50 }
 0x155   :  { %v1521_v40 = vsel %vm249_vm7, %v1507_v37, %v1520_v39 }
 0x156   :  { %v1522_v11 = vpack.c.b16 %v1521_v40, %v1521_v40 }
 0x158   :  { %1524 = vst.msk [vmem:[#allocation2 + $0x88] sm:$0xf] %vm189_vm0, %v1522_v11  ;;  %v1717_v9 = vpop.f32.mrf.mxu0  ;;  %v1766_v38 = vpop.f32.mrf.mxu1 }
 0x15a   :  { %v14792_v48 = vpop.f32.mrf.mxu2  ;;  %v14794_v0 = vpop.f32.mrf.mxu3 }
 0x15b   :  { %16096 = vst [vmem:[#allocation34_spill] sm:$0xff] %v14792_v48 }
 0x15c   :  { %16097 = vst [vmem:[#allocation35_spill] sm:$0xff] %v14794_v0  ;;  %v12649_v0 = vld [vmem:[#allocation12 + $0x1f4] sm:$0xf0] }
 0x15f   :  { %9977 = vmatmul.msk.bf16.gmra.mxu2 %vm1653_vm8, %v12543_v26  ;;  %9985 = vmatmul.msk.bf16.gmra.mxu3 %vm1653_vm8, %v12543_v26  ;;  %v12545_v55 = vld [vmem:[#allocation2 + $0x84] sm:$0xff] }
 0x160   :  { %v14798_v15 = vpop.f32.mrf.mxu0  ;;  %v14800_v18 = vpop.f32.mrf.mxu1 }
 0x161   :  { %16098 = vst [vmem:[#allocation36_spill] sm:$0xff] %v14798_v15  ;;  %v10366_v15 = vld [vmem:[#allocation12 + $0x1e8] sm:$0xf] }
 0x162   :  { %16099 = vst [vmem:[#allocation37_spill] sm:$0xff] %v14800_v18  ;;  %v10367_v14 = vor.u32 %v12649_v0, %v10366_v15  ;;  %v10206_v15 = vld [vmem:[#allocation12 + $0xa8] sm:$0xf] }
 0x163   :  { %9882 = vmatmul.msk.bf16.gmra.mxu0 %vm1653_vm8, %v12524_v58  ;;  %9890 = vmatmul.msk.bf16.gmra.mxu1 %vm1653_vm8, %v12524_v58 }
 0x164   :  { %3907 = vmatpush.bf16.msrb.mxu1 %v10367_v14 }
 0x169   :  { %v2000_v19 = vpop.f32.mrf.mxu2  ;;  %v2049_v10 = vpop.f32.mrf.mxu3 }
 0x16a   :  { %v14802_v20 = vadd.f32 %v2000_v19, %v1717_v9  ;;  %v14804_v21 = vadd.f32 %v2049_v10, %v1766_v38  ;;  %v12559_v38 = vld [vmem:[#allocation2 + $0x10] sm:$0xff] }
 0x16f   :  { %9978 = vmatmul.msk.bf16.gmra.mxu2 %vm1653_vm8, %v12544_v30  ;;  %9986 = vmatmul.msk.bf16.gmra.mxu3 %vm1653_vm8, %v12544_v30 }
 0x170   :  { %v1722_v34 = vpop.f32.mrf.mxu0  ;;  %v1771_v37 = vpop.f32.mrf.mxu1 }
 0x171   :  { %v14810_v27 = vpop.f32.mrf.mxu2  ;;  %v14812_v44 = vpop.f32.mrf.mxu3 }
 0x172   :  { %16100 = vst [vmem:[#allocation38_spill] sm:$0xff] %v14810_v27 }
 0x173   :  { %9883 = vmatmul.msk.bf16.gmra.mxu0 %vm1653_vm8, %v12525_v31  ;;  %9891 = vmatmul.msk.bf16.gmra.mxu1 %vm1653_vm8, %v12525_v31  ;;  %16101 = vst [vmem:[#allocation39_spill] sm:$0xff] %v14812_v44  ;;  %v12560_v31 = vld [vmem:[#allocation2 + $0x18] sm:$0xff] }
 0x178   :  { %v14814_v45 = vpop.f32.mrf.mxu0  ;;  %v14816_v49 = vpop.f32.mrf.mxu1 }
 0x179   :  { %16102 = vst [vmem:[#allocation40_spill] sm:$0xff] %v14814_v45 }
 0x17a   :  { %16103 = vst [vmem:[#allocation41_spill] sm:$0xff] %v14816_v49 }
 0x17f   :  { %9979 = vmatmul.msk.bf16.gmra.mxu2 %vm1653_vm8, %v12545_v55  ;;  %9987 = vmatmul.msk.bf16.gmra.mxu3 %vm1653_vm8, %v12545_v55 }
 0x180   :  { %v2317_v57 = vpop.f32.mrf.mxu0  ;;  %v2366_v59 = vpop.f32.mrf.mxu1 }
 0x181   :  { %v14821_v60 = vadd.f32 %v2317_v57, %v14626_v7  ;;  %v14824_v4 = vadd.f32 %v2366_v59, %v14629_v8  ;;  %v10230_v57 = vld [vmem:[#allocation12 + $0xe0] sm:$0xf]  ;;  %v12616_v59 = vld [vmem:[#allocation12 + $0xec] sm:$0xf0] }
 0x182   :  { %v2005_v50 = vpop.f32.mrf.mxu2  ;;  %v2054_v39 = vpop.f32.mrf.mxu3 }
 0x183   :  { %v14826_v40 = vadd.f32 %v2005_v50, %v1722_v34  ;;  %v14828_v11 = vadd.f32 %v2054_v39, %v1771_v37  ;;  %10068 = vmatmul.msk.bf16.vlgmr.msra.gmra.mxu0 %vm1653_vm8, %v12558_v56  ;;  %10076 = vmatmul.msk.bf16.vlgmr.msra.gmra.mxu1 %vm1653_vm8, %v12558_v56  ;;  %v10231_v50 = vor.u32 %v12616_v59, %v10230_v57  ;;  %v10358_v39 = vld [vmem:[#allocation12 + $0x1e0] sm:$0xf] }
 0x184   :  { %v10214_v59 = vld [vmem:[#allocation12 + $0xc0] sm:$0xf] }
 0x185   :  { %3762 = vmatpush.bf16.msra.mxu2 %v10231_v50  ;;  %v12612_v50 = vld [vmem:[#allocation12 + $0xcc] sm:$0xf0] }
 0x188   :  { %v14832_v26 = vpop.f32.mrf.mxu0  ;;  %v14834_v9 = vpop.f32.mrf.mxu1 }
 0x18a   :  { %v14890_v18 = vpop.f32.mrf.mxu2  ;;  %v14892_v27 = vpop.f32.mrf.mxu3 }
 0x18b   :  { %16108 = vst [vmem:[#allocation46_spill] sm:$0xff] %v14890_v18 }
 0x18c   :  { %16109 = vst [vmem:[#allocation47_spill] sm:$0xff] %v14892_v27  ;;  %v12617_v27 = vld [vmem:[#allocation12 + $0xf4] sm:$0xf0] }
 0x190   :  { %v2322_v7 = vpop.f32.mrf.mxu0  ;;  %v2371_v58 = vpop.f32.mrf.mxu1 }
 0x191   :  { %v14837_v8 = vadd.f32 %v2322_v7, %v14642_v28  ;;  %v14840_v19 = vadd.f32 %v2371_v58, %v14644_v29 }
 0x193   :  { %10069 = vmatmul.msk.bf16.gmra.mxu0 %vm1653_vm8, %v12559_v38  ;;  %10077 = vmatmul.msk.bf16.gmra.mxu1 %vm1653_vm8, %v12559_v38  ;;  %v12648_v38 = vld [vmem:[#allocation12 + $0x1ec] sm:$0xf0] }
 0x194   :  { %v10359_v7 = vor.u32 %v12648_v38, %v10358_v39  ;;  %v10215_v39 = vor.u32 %v12612_v50, %v10214_v59  ;;  %v10342_v38 = vld [vmem:[#allocation12 + $0x1c0] sm:$0xf] }
 0x195   :  { %v10198_v50 = vld [vmem:[#allocation12 + $0xa0] sm:$0xf] }
 0x196   :  { %3791 = vmatpush.bf16.msra.mxu3 %v10359_v7  ;;  %v12644_v7 = vld [vmem:[#allocation12 + $0x1cc] sm:$0xf0]  ;;  %3763 = vmatpush.bf16.msra.mxu2 %v10215_v39 }
 0x197   :  { %v10343_v49 = vor.u32 %v12644_v7, %v10342_v38  ;;  %v12608_v39 = vld [vmem:[#allocation12 + $0xac] sm:$0xf0] }
 0x198   :  { %v14844_v10 = vpop.f32.mrf.mxu0  ;;  %v14846_v30 = vpop.f32.mrf.mxu1  ;;  %v10199_v38 = vor.u32 %v12608_v39, %v10198_v50  ;;  %v12640_v7 = vld [vmem:[#allocation12 + $0x1ac] sm:$0xf0] }
 0x19a   :  { %3792 = vmatpush.bf16.msra.mxu3 %v10343_v49  ;;  %v10326_v49 = vld [vmem:[#allocation12 + $0x1a0] sm:$0xf]  ;;  %3764 = vmatpush.bf16.msra.mxu2 %v10199_v38  ;;  %v12604_v38 = vld [vmem:[#allocation12 + $0x8c] sm:$0xf0] }
 0x19b   :  { %v10327_v44 = vor.u32 %v12640_v7, %v10326_v49  ;;  %v12636_v7 = vld [vmem:[#allocation12 + $0x18c] sm:$0xf0] }
 0x19e   :  { %3793 = vmatpush.bf16.msra.mxu3 %v10327_v44  ;;  %v10182_v44 = vld [vmem:[#allocation12 + $0x80] sm:$0xf] }
 0x19f   :  { %v10183_v49 = vor.u32 %v12604_v38, %v10182_v44 }
 0x1a0   :  { %v2327_v34 = vpop.f32.mrf.mxu0  ;;  %v2376_v37 = vpop.f32.mrf.mxu1 }
 0x1a1   :  { %v14849_v55 = vadd.f32 %v2327_v34, %v14658_v46  ;;  %v14852_v28 = vadd.f32 %v2376_v37, %v14660_v47  ;;  %v12561_v46 = vld [vmem:[#allocation2 + $0x20] sm:$0xff]  ;;  %3765 = vmatpush.bf16.msra.mxu2 %v10183_v49 }
 0x1a3   :  { %10070 = vmatmul.msk.bf16.gmra.mxu0 %vm1653_vm8, %v12560_v31  ;;  %10078 = vmatmul.msk.bf16.gmra.mxu1 %vm1653_vm8, %v12560_v31 }
 0x1a8   :  { %v14856_v29 = vpop.f32.mrf.mxu0  ;;  %v14858_v56 = vpop.f32.mrf.mxu1 }
 0x1b0   :  { %v2332_v58 = vpop.f32.mrf.mxu0  ;;  %v2381_v47 = vpop.f32.mrf.mxu1 }
 0x1b1   :  { %v14861_v34 = vadd.f32 %v2332_v58, %v14676_v63  ;;  %v14864_v31 = vadd.f32 %v2381_v47, %v14678_v1  ;;  %v12562_v63 = vld [vmem:[#allocation2 + $0x28] sm:$0xff] }
 0x1b3   :  { %10071 = vmatmul.msk.bf16.gmra.mxu0 %vm1653_vm8, %v12561_v46  ;;  %10079 = vmatmul.msk.bf16.gmra.mxu1 %vm1653_vm8, %v12561_v46 }
 0x1b8   :  { %v14868_v37 = vpop.f32.mrf.mxu0  ;;  %v14870_v57 = vpop.f32.mrf.mxu1 }
 0x1c0   :  { %v2337_v58 = vpop.f32.mrf.mxu0  ;;  %v2386_v1 = vpop.f32.mrf.mxu1 }
 0x1c1   :  { %v14873_v47 = vadd.f32 %v2337_v58, %v14692_v22  ;;  %v14876_v46 = vadd.f32 %v2386_v1, %v14694_v23  ;;  %v12563_v22 = vld [vmem:[#allocation2 + $0x30] sm:$0xff] }
 0x1c3   :  { %10072 = vmatmul.msk.bf16.gmra.mxu0 %vm1653_vm8, %v12562_v63  ;;  %10080 = vmatmul.msk.bf16.gmra.mxu1 %vm1653_vm8, %v12562_v63 }
 0x1c8   :  { %v14880_v45 = vpop.f32.mrf.mxu0  ;;  %v14882_v59 = vpop.f32.mrf.mxu1 }
 0x1c9   :  { %16104 = vst [vmem:[#allocation42_spill] sm:$0xff] %v14880_v45  ;;  %v10270_v45 = vld [vmem:[#allocation12 + $0x128] sm:$0xf] }
 0x1ca   :  { %16105 = vst [vmem:[#allocation43_spill] sm:$0xff] %v14882_v59 }
 0x1d0   :  { %v2342_v58 = vpop.f32.mrf.mxu0  ;;  %v2391_v23 = vpop.f32.mrf.mxu1 }
 0x1d1   :  { %v14885_v1 = vadd.f32 %v2342_v58, %v14778_v17  ;;  %v14888_v63 = vadd.f32 %v2391_v23, %v14781_v43  ;;  %v10310_v17 = vld [vmem:[#allocation12 + $0x180] sm:$0xf]  ;;  %v10238_v58 = vld [vmem:[#allocation12 + $0xe8] sm:$0xf]  ;;  %v14900_v43 = vpop.f32.mrf.mxu2  ;;  %v14902_v23 = vpop.f32.mrf.mxu3 }
 0x1d2   :  { %v10311_v18 = vor.u32 %v12636_v7, %v10310_v17  ;;  %v12613_v17 = vld [vmem:[#allocation12 + $0xd4] sm:$0xf0]  ;;  %v10350_v7 = vld [vmem:[#allocation12 + $0x1c8] sm:$0xf] }
 0x1d3   :  { %16106 = vst [vmem:[#allocation44_spill] sm:$0xff] %v14885_v1  ;;  %10073 = vmatmul.msk.bf16.gmra.mxu0 %vm1653_vm8, %v12563_v22  ;;  %10081 = vmatmul.msk.bf16.gmra.mxu1 %vm1653_vm8, %v12563_v22  ;;  %v10239_v22 = vor.u32 %v12617_v27, %v10238_v58  ;;  %v12645_v1 = vld [vmem:[#allocation12 + $0x1d4] sm:$0xf0]  ;;  %v10334_v27 = vld [vmem:[#allocation12 + $0x1a8] sm:$0xf] }
 0x1d4   :  { %16107 = vst [vmem:[#allocation45_spill] sm:$0xff] %v14888_v63  ;;  %3794 = vmatpush.bf16.msra.mxu3 %v10311_v18  ;;  %v10223_v63 = vor.u32 %v12613_v17, %v10222_v5  ;;  %v10351_v0 = vor.u32 %v12645_v1, %v10350_v7  ;;  %v12609_v18 = vld [vmem:[#allocation12 + $0xb4] sm:$0xf0]  ;;  %v10318_v58 = vld [vmem:[#allocation12 + $0x188] sm:$0xf] }
 0x1d5   :  { %3878 = vmatpush.bf16.msrb.mxu0 %v10239_v22  ;;  %v10207_v14 = vor.u32 %v12609_v18, %v10206_v15  ;;  %v12605_v1 = vld [vmem:[#allocation12 + $0x94] sm:$0xf0]  ;;  %v10166_v7 = vld [vmem:[#allocation12 + $0x60] sm:$0xf]  ;;  %v12600_v15 = vld [vmem:[#allocation12 + $0x6c] sm:$0xf0] }
 0x1d6   :  { %3908 = vmatpush.bf16.msrb.mxu1 %v10351_v0  ;;  %v12637_v17 = vld [vmem:[#allocation12 + $0x194] sm:$0xf0]  ;;  %v10167_v0 = vor.u32 %v12600_v15, %v10166_v7  ;;  %v10294_v18 = vld [vmem:[#allocation12 + $0x160] sm:$0xf] }
 0x1d7   :  { %v10150_v7 = vld [vmem:[#allocation12 + $0x40] sm:$0xf] }
 0x1d8   :  { %v14896_v50 = vpop.f32.mrf.mxu0  ;;  %v14898_v39 = vpop.f32.mrf.mxu1  ;;  %3766 = vmatpush.bf16.msra.mxu2 %v10167_v0  ;;  %v12628_v0 = vld [vmem:[#allocation12 + $0x14c] sm:$0xf0] }
 0x1d9   :  { %16110 = vst [vmem:[#allocation48_spill] sm:$0xff] %v14896_v50  ;;  %v12564_v50 = vld [vmem:[#allocation2 + $0x38] sm:$0xff]  ;;  %3879 = vmatpush.bf16.msrb.mxu0 %v10223_v63  ;;  %v10319_v63 = vor.u32 %v12637_v17, %v10318_v58 }
 0x1da   :  { %16111 = vst [vmem:[#allocation49_spill] sm:$0xff] %v14898_v39 }
 0x1dd   :  { %3880 = vmatpush.bf16.msrb.mxu0 %v10207_v14 }
 0x1e0   :  { %v2347_v39 = vpop.f32.mrf.mxu0  ;;  %v2396_v48 = vpop.f32.mrf.mxu1 }
 0x1e1   :  { %v14905_v44 = vadd.f32 %v2347_v39, %v14802_v20  ;;  %v14908_v38 = vadd.f32 %v2396_v48, %v14804_v21  ;;  %v12641_v20 = vld [vmem:[#allocation12 + $0x1b4] sm:$0xf0]  ;;  %v14912_v48 = vpop.f32.mrf.mxu2  ;;  %v14914_v21 = vpop.f32.mrf.mxu3 }
 0x1e2   :  { %v10335_v39 = vor.u32 %v12641_v20, %v10334_v27  ;;  %v12632_v27 = vld [vmem:[#allocation12 + $0x16c] sm:$0xf0] }
 0x1e3   :  { %16112 = vst [vmem:[#allocation50_spill] sm:$0xff] %v14905_v44  ;;  %10074 = vmatmul.msk.bf16.gmra.mxu0 %vm1653_vm8, %v12564_v50  ;;  %10082 = vmatmul.msk.bf16.gmra.mxu1 %vm1653_vm8, %v12564_v50  ;;  %v10190_v50 = vld [vmem:[#allocation12 + $0x88] sm:$0xf]  ;;  %v10295_v20 = vor.u32 %v12632_v27, %v10294_v18  ;;  %v12597_v18 = vld [vmem:[#allocation12 + $0x54] sm:$0xf0] }
 0x1e4   :  { %16113 = vst [vmem:[#allocation51_spill] sm:$0xff] %v14908_v38  ;;  %3909 = vmatpush.bf16.msrb.mxu1 %v10335_v39  ;;  %v10191_v22 = vor.u32 %v12605_v1, %v10190_v50  ;;  %v10174_v38 = vld [vmem:[#allocation12 + $0x68] sm:$0xf]  ;;  %v12633_v39 = vld [vmem:[#allocation12 + $0x174] sm:$0xf0] }
 0x1e5   :  { %v10302_v44 = vld [vmem:[#allocation12 + $0x168] sm:$0xf]  ;;  %3795 = vmatpush.bf16.msra.mxu3 %v10295_v20 }
 0x1e6   :  { %3881 = vmatpush.bf16.msrb.mxu0 %v10191_v22  ;;  %v10303_v59 = vor.u32 %v12633_v39, %v10302_v44  ;;  %v10158_v44 = vld [vmem:[#allocation12 + $0x48] sm:$0xf] }
 0x1e7   :  { %v10286_v20 = vld [vmem:[#allocation12 + $0x148] sm:$0xf]  ;;  %v10159_v39 = vor.u32 %v12597_v18, %v10158_v44  ;;  %v12588_v44 = vld [vmem:[#allocation12 + $0xc] sm:$0xf0]  ;;  %v10246_v18 = vld [vmem:[#allocation12 + $0x100] sm:$0xf] }
 0x1e8   :  { %v14916_v49 = vpop.f32.mrf.mxu0  ;;  %v14918_v5 = vpop.f32.mrf.mxu1  ;;  %3910 = vmatpush.bf16.msrb.mxu1 %v10319_v63 }
 0x1e9   :  { %16114 = vst [vmem:[#allocation52_spill] sm:$0xff] %v14916_v49  ;;  %v12601_v49 = vld [vmem:[#allocation12 + $0x74] sm:$0xf0]  ;;  %v14920_v58 = vpop.f32.mrf.mxu2  ;;  %v14922_v22 = vpop.f32.mrf.mxu3 }
 0x1ea   :  { %16115 = vst [vmem:[#allocation53_spill] sm:$0xff] %v14918_v5  ;;  %v10175_v14 = vor.u32 %v12601_v49, %v10174_v38  ;;  %v12565_v5 = vld [vmem:[#allocation2 + $0x40] sm:$0xff]  ;;  %v10278_v49 = vld [vmem:[#allocation12 + $0x140] sm:$0xf] }
 0x1eb   :  { %v12596_v38 = vld [vmem:[#allocation12 + $0x4c] sm:$0xf0]  ;;  %v10279_v27 = vor.u32 %v12628_v0, %v10278_v49 }
 0x1ec   :  { %3882 = vmatpush.bf16.msrb.mxu0 %v10175_v14  ;;  %3911 = vmatpush.bf16.msrb.mxu1 %v10303_v59  ;;  %v10151_v15 = vor.u32 %v12596_v38, %v10150_v7  ;;  %v12629_v14 = vld [vmem:[#allocation12 + $0x154] sm:$0xf0]  ;;  %v10262_v59 = vld [vmem:[#allocation12 + $0x120] sm:$0xf]  ;;  %v10142_v38 = vld [vmem:[#allocation12 + $0x28] sm:$0xf] }
 0x1ed   :  { %3796 = vmatpush.bf16.msra.mxu3 %v10279_v27 }
 0x1ee   :  { %3767 = vmatpush.bf16.msra.mxu2 %v10151_v15  ;;  %v10118_v15 = vld [vmem:[#allocation12] sm:$0xf] }
 0x1ef   :  { %v10119_v27 = vor.u32 %v12588_v44, %v10118_v15 }
 0x1f0   :  { %v2352_v50 = vpop.f32.mrf.mxu0  ;;  %v2401_v1 = vpop.f32.mrf.mxu1  ;;  %3883 = vmatpush.bf16.msrb.mxu0 %v10159_v39 }
 0x1f1   :  { %v14925_v17 = vadd.f32 %v2352_v50, %v14826_v40  ;;  %v14928_v63 = vadd.f32 %v2401_v1, %v14828_v11  ;;  %v10134_v40 = vld [vmem:[#allocation12 + $0x20] sm:$0xf]  ;;  %v10287_v11 = vor.u32 %v12629_v14, %v10286_v20  ;;  %v12592_v50 = vld [vmem:[#allocation12 + $0x2c] sm:$0xf0]  ;;  %v10126_v14 = vld [vmem:[#allocation12 + $0x8] sm:$0xf]  ;;  %v14936_v39 = vpop.f32.mrf.mxu2 }
 0x1f2   :  { %v12624_v1 = vld [vmem:[#allocation12 + $0x12c] sm:$0xf0] }
 0x1f3   :  { %16116 = vst [vmem:[#allocation54_spill] sm:$0xff] %v14925_v17  ;;  %10075 = vmatmul.msk.bf16.gmra.mxu0 %vm1653_vm8, %v12565_v5  ;;  %10083 = vmatmul.msk.bf16.gmra.mxu1 %vm1653_vm8, %v12565_v5  ;;  %v10263_v7 = vor.u32 %v12624_v1, %v10262_v59  ;;  %v12593_v17 = vld [vmem:[#allocation12 + $0x34] sm:$0xf0]  ;;  %v12620_v20 = vld [vmem:[#allocation12 + $0x10c] sm:$0xf0] }
 0x1f4   :  { %16117 = vst [vmem:[#allocation55_spill] sm:$0xff] %v14928_v63  ;;  %v10135_v63 = vor.u32 %v12592_v50, %v10134_v40  ;;  %3912 = vmatpush.bf16.msrb.mxu1 %v10287_v11  ;;  %v10143_v42 = vor.u32 %v12593_v17, %v10142_v38  ;;  %v12625_v5 = vld [vmem:[#allocation12 + $0x134] sm:$0xf0]  ;;  %v14938_v17 = vpop.f32.mrf.mxu3  ;;  %v10254_v50 = vld [vmem:[#allocation12 + $0x108] sm:$0xf] }
 0x1f5   :  { %v10271_v49 = vor.u32 %v12625_v5, %v10270_v45  ;;  %3797 = vmatpush.bf16.msra.mxu3 %v10263_v7  ;;  %v12589_v40 = vld [vmem:[#allocation12 + $0x14] sm:$0xf0]  ;;  %v10247_v45 = vor.u32 %v12620_v20, %v10246_v18  ;;  %v3196_v1 = vld [vmem:[#allocation10] sm:$0x3]  ;;  %v2786_v7 = vadd.f32 %v14902_v23, %v14824_v4  ;;  %v2094_v20 = vadd.f32 %v14638_v16, %v14622_v62 }
 0x1f6   :  { %3768 = vmatpush.bf16.msra.mxu2 %v10135_v63  ;;  %3884 = vmatpush.bf16.msrb.mxu0 %v10143_v42  ;;  %v10127_v11 = vor.u32 %v12589_v40, %v10126_v14  ;;  %v12621_v59 = vld [vmem:[#allocation12 + $0x114] sm:$0xf0]  ;;  %v2785_v42 = vadd.f32 %v14900_v43, %v14821_v60  ;;  %v14944_v38 = vperm.slane %v3196_v1, 0  ;;  %v14946_v5 = vperm.slane %v3196_v1, 1 }
 0x1f7   :  { %v10255_v63 = vor.u32 %v12621_v59, %v10254_v50  ;;  %v2441_v43 = vadd.f32 %v14834_v9, %v2094_v20 }
 0x1f8   :  { %v14932_v0 = vpop.f32.mrf.mxu0  ;;  %v14934_v25 = vpop.f32.mrf.mxu1  ;;  %3913 = vmatpush.bf16.msrb.mxu1 %v10271_v49 }
 0x1f9   :  { %3798 = vmatpush.bf16.msra.mxu3 %v10247_v45  ;;  %v2674_v23 = vpop.f32.mrf.mxu2  ;;  %v2788_v59 = vadd.f32 %v14914_v21, %v2441_v43 }
 0x1fa   :  { %3769 = vmatpush.bf16.msra.mxu2 %v10119_v27  ;;  %3885 = vmatpush.bf16.msrb.mxu0 %v10127_v11  ;;  %v2093_v27 = vadd.f32 %v14636_v6, %v14620_v61 }
 0x1fc   :  { %3914 = vmatpush.bf16.msrb.mxu1 %v10255_v63  ;;  %v2440_v4 = vadd.f32 %v14832_v26, %v2093_v27  ;;  %v2723_v40 = vpop.f32.mrf.mxu3 }
 0x1fe   :  { %v2787_v50 = vadd.f32 %v14912_v48, %v2440_v4  ;;  %v2790_v48 = vadd.f32 %v14922_v22, %v14840_v19  ;;  %v2098_v19 = vadd.f32 %v14654_v36, %v14648_v33 }
 0x200   :  { %v3011_v49 = vpop.f32.mrf.mxu0  ;;  %v3060_v15 = vpop.f32.mrf.mxu1 }
 0x201   :  { %v3132_v44 = vadd.f32 %v3011_v49, %v2785_v42  ;;  %v3133_v18 = vadd.f32 %v3060_v15, %v2786_v7  ;;  %v10086_v7 = vld [vmem:[#allocation3] sm:$0xf]  ;;  %v12578_v49 = vld [vmem:[#allocation3 + $0x4] sm:$0xf]  ;;  %v2789_v15 = vadd.f32 %v14920_v58, %v14837_v8  ;;  %v2676_v21 = vpop.f32.mrf.mxu2  ;;  %v2097_v8 = vadd.f32 %v14652_v35, %v14646_v32 }
 0x203   :  { %v3204_v14 = vadd.f32 %v14944_v38, %v3132_v44  ;;  %v3205_v60 = vadd.f32 %v14946_v5, %v3133_v18 }
 0x204   :  { %v2725_v44 = vpop.f32.mrf.mxu3 }
 0x205   :  { %v3206_v45 = vmax.f32 %v3204_v14, 0.0  ;;  %v3207_v11 = vmax.f32 %v3205_v60, 0.0 }
 0x207   :  { %v3208_v61 = vpack.c.bf16 %v3207_v11, %v3206_v45 }
 0x208   :  { %v3013_v6 = vpop.f32.mrf.mxu0  ;;  %v3062_v1 = vpop.f32.mrf.mxu1 }
 0x209   :  { %3209 = vst [vmem:[#allocation3 + $0x8] sm:$0xff] %v3208_v61  ;;  %v3134_v62 = vadd.f32 %v3013_v6, %v2787_v50  ;;  %v3135_v16 = vadd.f32 %v3062_v1, %v2788_v59  ;;  %v2444_v50 = vadd.f32 %v14844_v10, %v2097_v8  ;;  %v2445_v59 = vadd.f32 %v14846_v30, %v2098_v19 }
 0x20b   :  { %v3212_v63 = vadd.f32 %v14944_v38, %v3134_v62  ;;  %v3213_v26 = vadd.f32 %v14946_v5, %v3135_v16  ;;  %v2791_v33 = vadd.f32 %v14936_v39, %v2444_v50  ;;  %v2792_v36 = vadd.f32 %v14938_v17, %v2445_v59  ;;  %v2679_v62 = vpop.f32.mrf.mxu2  ;;  %v10232_v50 = vld [vmem:[#allocation12 + $0xf0] sm:$0xf0] }
 0x20c   :  { %v2728_v16 = vpop.f32.mrf.mxu3  ;;  %v2794_v39 = vadd.f32 %v2723_v40, %v14852_v28 }
 0x20d   :  { %v3214_v42 = vmax.f32 %v3212_v63, 0.0  ;;  %v3215_v9 = vmax.f32 %v3213_v26, 0.0 }
 0x20f   :  { %v3216_v18 = vpack.c.bf16 %v3215_v9, %v3214_v42 }
 0x210   :  { %v3016_v27 = vpop.f32.mrf.mxu0  ;;  %v3065_v20 = vpop.f32.mrf.mxu1  ;;  %v12579_v14 = vld [vmem:[#allocation3 + $0x4] sm:$0xf0]  ;;  %v10088_v60 = vld [vmem:[#allocation3 + $0x8] sm:$0xf0] }
 0x211   :  { %3217 = vst [vmem:[#allocation3 + $0x58] sm:$0xff] %v3216_v18  ;;  %v3136_v4 = vadd.f32 %v3016_v27, %v2789_v15  ;;  %v3137_v43 = vadd.f32 %v3065_v20, %v2790_v48  ;;  %v14964_v45 = vor.u32 %v12579_v14, %v10086_v7  ;;  %v14966_v11 = vor.u32 %v12578_v49, %v10088_v60 }
 0x212   :  { %v2793_v7 = vadd.f32 %v2674_v23, %v14849_v55  ;;  %v2101_v27 = vadd.f32 %v14668_v53, %v14664_v51  ;;  %v2102_v20 = vadd.f32 %v14670_v54, %v14666_v52 }
 0x213   :  { %v3220_v58 = vadd.f32 %v14944_v38, %v3136_v4  ;;  %v3221_v22 = vadd.f32 %v14946_v5, %v3137_v43  ;;  %3770 = vmatmul.bf16.vlgmr.msra.gmra.mxu2 %v14964_v45  ;;  %3799 = vmatmul.bf16.vlgmr.msra.gmra.mxu3 %v14966_v11  ;;  %v14990_v14 = vpop.f32.mrf.mxu2 }
 0x214   :  { %3886 = vmatmul.bf16.vlgmr.msrb.gmra.mxu0 %v14964_v45  ;;  %3915 = vmatmul.bf16.vlgmr.msrb.gmra.mxu1 %v14966_v11  ;;  %v14992_v60 = vpop.f32.mrf.mxu3  ;;  %v2448_v23 = vadd.f32 %v14856_v29, %v2101_v27  ;;  %v2449_v40 = vadd.f32 %v14858_v56, %v2102_v20  ;;  %v10344_v27 = vld [vmem:[#allocation12 + $0x1d0] sm:$0xf0] }
 0x215   :  { %v3222_v32 = vmax.f32 %v3220_v58, 0.0  ;;  %v3223_v35 = vmax.f32 %v3221_v22, 0.0  ;;  %v12614_v22 = vld [vmem:[#allocation12 + $0xe4] sm:$0xf] }
 0x216   :  { %v2795_v8 = vadd.f32 %v2676_v21, %v2448_v23  ;;  %v2796_v19 = vadd.f32 %v2725_v44, %v2449_v40  ;;  %v10235_v59 = vor.u32 %v12614_v22, %v10232_v50  ;;  %v10328_v22 = vld [vmem:[#allocation12 + $0x1b0] sm:$0xf0] }
 0x217   :  { %v3224_v61 = vpack.c.bf16 %v3223_v35, %v3222_v32  ;;  %v12646_v32 = vld [vmem:[#allocation12 + $0x1e4] sm:$0xf]  ;;  %v10360_v35 = vld [vmem:[#allocation12 + $0x1f0] sm:$0xf0] }
 0x218   :  { %v3018_v6 = vpop.f32.mrf.mxu0  ;;  %v3067_v1 = vpop.f32.mrf.mxu1  ;;  %v10363_v56 = vor.u32 %v12646_v32, %v10360_v35  ;;  %3820 = vmatpush.bf16.msrb.mxu2 %v10235_v59 }
 0x219   :  { %3225 = vst [vmem:[#allocation3 + $0x10] sm:$0xff] %v3224_v61  ;;  %v3138_v63 = vadd.f32 %v3018_v6, %v2791_v33  ;;  %v3139_v26 = vadd.f32 %v3067_v1, %v2792_v36  ;;  %v2797_v6 = vadd.f32 %v2679_v62, %v14861_v34  ;;  %v2798_v1 = vadd.f32 %v2728_v16, %v14864_v31  ;;  %v12642_v16 = vld [vmem:[#allocation12 + $0x1c4] sm:$0xf] }
 0x21a   :  { %3849 = vmatpush.bf16.msrb.mxu3 %v10363_v56  ;;  %v2105_v34 = vadd.f32 %v14686_v12, %v14680_v2  ;;  %v2106_v31 = vadd.f32 %v14688_v13, %v14682_v3 }
 0x21b   :  { %v3228_v42 = vadd.f32 %v14944_v38, %v3138_v63  ;;  %v3229_v10 = vadd.f32 %v14946_v5, %v3139_v26  ;;  %v2684_v36 = vpop.f32.mrf.mxu2 }
 0x21c   :  { %v2733_v21 = vpop.f32.mrf.mxu3  ;;  %v2452_v2 = vadd.f32 %v14868_v37, %v2105_v34  ;;  %v2453_v3 = vadd.f32 %v14870_v57, %v2106_v31  ;;  %v10200_v37 = vld [vmem:[#allocation12 + $0xb0] sm:$0xf0]  ;;  %v12638_v57 = vld [vmem:[#allocation12 + $0x1a4] sm:$0xf]  ;;  %v2801_v35 = vadd.f32 %v2684_v36, %v14873_v47 }
 0x21d   :  { %v3230_v9 = vmax.f32 %v3228_v42, 0.0  ;;  %v3231_v30 = vmax.f32 %v3229_v10, 0.0  ;;  %v16119_v47 = vld [vmem:[#allocation31_spill] sm:$0xff] }
 0x21e   :  { %v2799_v23 = vadd.f32 %v14990_v14, %v2452_v2  ;;  %v2800_v40 = vadd.f32 %v14992_v60, %v2453_v3  ;;  %v10331_v14 = vor.u32 %v12638_v57, %v10328_v22  ;;  %v16121_v34 = vld [vmem:[#allocation43_spill] sm:$0xff] }
 0x21f   :  { %v3232_v49 = vpack.c.bf16 %v3231_v30, %v3230_v9  ;;  %v12598_v3 = vld [vmem:[#allocation12 + $0x64] sm:$0xf] }
 0x220   :  { %v3021_v17 = vpop.f32.mrf.mxu0  ;;  %v3070_v15 = vpop.f32.mrf.mxu1  ;;  %v10094_v26 = vld [vmem:[#allocation3 + $0x10] sm:$0xf]  ;;  %v12580_v30 = vld [vmem:[#allocation3 + $0x14] sm:$0xf] }
 0x221   :  { %3233 = vst [vmem:[#allocation3 + $0x60] sm:$0xff] %v3232_v49  ;;  %v3140_v48 = vadd.f32 %v3021_v17, %v2793_v7  ;;  %v3141_v18 = vadd.f32 %v3070_v15, %v2794_v39 }
 0x223   :  { %v3236_v55 = vadd.f32 %v14944_v38, %v3140_v48  ;;  %v3237_v28 = vadd.f32 %v14946_v5, %v3141_v18  ;;  %v12610_v48 = vld [vmem:[#allocation12 + $0xc4] sm:$0xf]  ;;  %v10216_v18 = vld [vmem:[#allocation12 + $0xd0] sm:$0xf0] }
 0x224   :  { %v10219_v62 = vor.u32 %v12610_v48, %v10216_v18  ;;  %v16120_v48 = vld [vmem:[#allocation42_spill] sm:$0xff] }
 0x225   :  { %v3238_v4 = vmax.f32 %v3236_v55, 0.0  ;;  %v3239_v43 = vmax.f32 %v3237_v28, 0.0  ;;  %v10347_v28 = vor.u32 %v12642_v16, %v10344_v27 }
 0x226   :  { %3821 = vmatpush.bf16.msrb.mxu2 %v10219_v62 }
 0x227   :  { %v3240_v51 = vpack.c.bf16 %v3239_v43, %v3238_v4  ;;  %3850 = vmatpush.bf16.msrb.mxu3 %v10347_v28  ;;  %v2686_v4 = vpop.f32.mrf.mxu2  ;;  %v2735_v43 = vpop.f32.mrf.mxu3 }
 0x228   :  { %v3023_v53 = vpop.f32.mrf.mxu0  ;;  %v3072_v58 = vpop.f32.mrf.mxu1 }
 0x229   :  { %3241 = vst [vmem:[#allocation3 + $0x18] sm:$0xff] %v3240_v51  ;;  %v3142_v52 = vadd.f32 %v3023_v53, %v2795_v8  ;;  %v3143_v54 = vadd.f32 %v3072_v58, %v2796_v19 }
 0x22b   :  { %v3244_v33 = vadd.f32 %v14944_v38, %v3142_v52  ;;  %v3245_v29 = vadd.f32 %v14946_v5, %v3143_v54  ;;  %v12606_v52 = vld [vmem:[#allocation12 + $0xa4] sm:$0xf]  ;;  %3851 = vmatpush.bf16.msrb.mxu3 %v10331_v14 }
 0x22c   :  { %v10203_v54 = vor.u32 %v12606_v52, %v10200_v37  ;;  %v10646_v52 = vld [vmem:[#allocation12 + $0x3e0] sm:$0xf]  ;;  %v12720_v37 = vld [vmem:[#allocation12 + $0x3ec] sm:$0xf0] }
 0x22d   :  { %v3246_v44 = vmax.f32 %v3244_v33, 0.0  ;;  %v3247_v61 = vmax.f32 %v3245_v29, 0.0  ;;  %v2802_v33 = vadd.f32 %v2733_v21, %v14876_v46  ;;  %v10647_v57 = vor.u32 %v12720_v37, %v10646_v52 }
 0x22e   :  { %3822 = vmatpush.bf16.msrb.mxu2 %v10203_v54 }
 0x22f   :  { %v3248_v63 = vpack.c.bf16 %v3247_v61, %v3246_v44  ;;  %v2689_v61 = vpop.f32.mrf.mxu2  ;;  %4488 = vmatpush.bf16.msra.mxu1 %v10647_v57 }
 0x230   :  { %v3026_v42 = vpop.f32.mrf.mxu0  ;;  %v3075_v10 = vpop.f32.mrf.mxu1  ;;  %v12581_v9 = vld [vmem:[#allocation3 + $0x14] sm:$0xf0]  ;;  %v10096_v7 = vld [vmem:[#allocation3 + $0x18] sm:$0xf0] }
 0x231   :  { %3249 = vst [vmem:[#allocation3 + $0x68] sm:$0xff] %v3248_v63  ;;  %v3144_v39 = vadd.f32 %v3026_v42, %v2797_v6  ;;  %v3145_v49 = vadd.f32 %v3075_v10, %v2798_v1  ;;  %v15002_v17 = vor.u32 %v12581_v9, %v10094_v26  ;;  %v15004_v15 = vor.u32 %v12580_v30, %v10096_v7  ;;  %v2738_v6 = vpop.f32.mrf.mxu3  ;;  %v12602_v26 = vld [vmem:[#allocation12 + $0x84] sm:$0xf]  ;;  %v10184_v42 = vld [vmem:[#allocation12 + $0x90] sm:$0xf0] }
 0x232   :  { %v2109_v10 = vadd.f32 %v14708_v41, %v14696_v24  ;;  %v10187_v9 = vor.u32 %v12602_v26, %v10184_v42  ;;  %v12634_v30 = vld [vmem:[#allocation12 + $0x184] sm:$0xf]  ;;  %v10312_v7 = vld [vmem:[#allocation12 + $0x190] sm:$0xf0] }
 0x233   :  { %v3252_v20 = vadd.f32 %v14944_v38, %v3144_v39  ;;  %v3253_v55 = vadd.f32 %v14946_v5, %v3145_v49  ;;  %3775 = vmatmul.bf16.gmra.mxu2 %v15002_v17  ;;  %3804 = vmatmul.bf16.gmra.mxu3 %v15004_v15  ;;  %v16118_v39 = vld [vmem:[#allocation30_spill] sm:$0xff]  ;;  %v10315_v49 = vor.u32 %v12634_v30, %v10312_v7  ;;  %v12684_v7 = vld [vmem:[#allocation12 + $0x2cc] sm:$0xf0] }
 0x234   :  { %3891 = vmatmul.bf16.gmra.mxu0 %v15002_v17  ;;  %3920 = vmatmul.bf16.gmra.mxu1 %v15004_v15  ;;  %v2110_v36 = vadd.f32 %v16119_v47, %v16118_v39  ;;  %v2456_v18 = vadd.f32 %v16120_v48, %v2109_v10  ;;  %v10502_v30 = vld [vmem:[#allocation12 + $0x2c0] sm:$0xf]  ;;  %v16124_v39 = vld [vmem:[#allocation32_spill] sm:$0xff] }
 0x235   :  { %v3254_v12 = vmax.f32 %v3252_v20, 0.0  ;;  %v3255_v13 = vmax.f32 %v3253_v55, 0.0  ;;  %3823 = vmatpush.bf16.msrb.mxu2 %v10187_v9  ;;  %3852 = vmatpush.bf16.msrb.mxu3 %v10315_v49  ;;  %v10630_v49 = vld [vmem:[#allocation12 + $0x3c0] sm:$0xf]  ;;  %v12716_v48 = vld [vmem:[#allocation12 + $0x3cc] sm:$0xf0] }
 0x236   :  { %v2457_v31 = vadd.f32 %v16121_v34, %v2110_v36  ;;  %v2803_v24 = vadd.f32 %v2686_v4, %v2456_v18  ;;  %v16127_v36 = vld [vmem:[#allocation35_spill] sm:$0xff] }
 0x237   :  { %v3256_v8 = vpack.c.bf16 %v3255_v13, %v3254_v12  ;;  %v10168_v12 = vld [vmem:[#allocation12 + $0x70] sm:$0xf0]  ;;  %v12594_v18 = vld [vmem:[#allocation12 + $0x44] sm:$0xf] }
 0x238   :  { %v3028_v19 = vpop.f32.mrf.mxu0  ;;  %v3077_v51 = vpop.f32.mrf.mxu1  ;;  %v2804_v41 = vadd.f32 %v2735_v43, %v2457_v31  ;;  %v10171_v13 = vor.u32 %v12598_v3, %v10168_v12  ;;  %v12680_v3 = vld [vmem:[#allocation12 + $0x2ac] sm:$0xf0]  ;;  %v10614_v12 = vld [vmem:[#allocation12 + $0x3a0] sm:$0xf] }
 0x239   :  { %3257 = vst [vmem:[#allocation3 + $0x20] sm:$0xff] %v3256_v8  ;;  %v3146_v53 = vadd.f32 %v3028_v19, %v2799_v23  ;;  %v3147_v58 = vadd.f32 %v3077_v51, %v2800_v40  ;;  %v12630_v23 = vld [vmem:[#allocation12 + $0x164] sm:$0xf]  ;;  %v10296_v40 = vld [vmem:[#allocation12 + $0x170] sm:$0xf0]  ;;  %v15032_v19 = vpop.f32.mrf.mxu2  ;;  %v15034_v51 = vpop.f32.mrf.mxu3 }
 0x23a   :  { %v10518_v8 = vld [vmem:[#allocation12 + $0x2e0] sm:$0xf]  ;;  %v10299_v43 = vor.u32 %v12630_v23, %v10296_v40  ;;  %3824 = vmatpush.bf16.msrb.mxu2 %v10171_v13  ;;  %v16129_v13 = vld [vmem:[#allocation49_spill] sm:$0xff] }
 0x23b   :  { %v3260_v50 = vadd.f32 %v14944_v38, %v3146_v53  ;;  %v3261_v59 = vadd.f32 %v14946_v5, %v3147_v58  ;;  %v12688_v58 = vld [vmem:[#allocation12 + $0x2ec] sm:$0xf0] }
 0x23c   :  { %v10519_v54 = vor.u32 %v12688_v58, %v10518_v8  ;;  %3853 = vmatpush.bf16.msrb.mxu3 %v10299_v43  ;;  %v12712_v58 = vld [vmem:[#allocation12 + $0x3ac] sm:$0xf0] }
 0x23d   :  { %v3262_v60 = vmax.f32 %v3260_v50, 0.0  ;;  %v3263_v32 = vmax.f32 %v3261_v59, 0.0  ;;  %v16122_v59 = vld [vmem:[#allocation44_spill] sm:$0xff]  ;;  %v10615_v52 = vor.u32 %v12712_v58, %v10614_v12 }
 0x23e   :  { %4459 = vmatpush.bf16.msra.mxu0 %v10519_v54  ;;  %v2805_v14 = vadd.f32 %v2689_v61, %v16122_v59  ;;  %v16125_v61 = vld [vmem:[#allocation34_spill] sm:$0xff] }
 0x23f   :  { %v3264_v29 = vpack.c.bf16 %v3263_v32, %v3262_v60  ;;  %v16123_v60 = vld [vmem:[#allocation45_spill] sm:$0xff]  ;;  %v2113_v47 = vadd.f32 %v16125_v61, %v16124_v39  ;;  %v12672_v39 = vld [vmem:[#allocation12 + $0x26c] sm:$0xf0]  ;;  %v10582_v61 = vld [vmem:[#allocation12 + $0x360] sm:$0xf] }
 0x240   :  { %v3031_v56 = vpop.f32.mrf.mxu0  ;;  %v3080_v44 = vpop.f32.mrf.mxu1  ;;  %v2806_v32 = vadd.f32 %v2738_v6, %v16123_v60  ;;  %v16126_v6 = vld [vmem:[#allocation33_spill] sm:$0xff]  ;;  %v10470_v60 = vld [vmem:[#allocation12 + $0x280] sm:$0xf] }
 0x241   :  { %3265 = vst [vmem:[#allocation3 + $0x70] sm:$0xff] %v3264_v29  ;;  %v3148_v1 = vadd.f32 %v3031_v56, %v2801_v35  ;;  %v3149_v63 = vadd.f32 %v3080_v44, %v2802_v33  ;;  %v10102_v33 = vld [vmem:[#allocation3 + $0x20] sm:$0xf]  ;;  %v2694_v40 = vpop.f32.mrf.mxu2  ;;  %v2743_v8 = vpop.f32.mrf.mxu3 }
 0x243   :  { %v3268_v46 = vadd.f32 %v14944_v38, %v3148_v1  ;;  %v3269_v21 = vadd.f32 %v14946_v5, %v3149_v63  ;;  %v12582_v1 = vld [vmem:[#allocation3 + $0x24] sm:$0xf] }
 0x245   :  { %v3270_v62 = vmax.f32 %v3268_v46, 0.0  ;;  %v3271_v16 = vmax.f32 %v3269_v21, 0.0  ;;  %v2114_v46 = vadd.f32 %v16127_v36, %v16126_v6  ;;  %v10503_v21 = vor.u32 %v12684_v7, %v10502_v30  ;;  %v10454_v7 = vld [vmem:[#allocation12 + $0x260] sm:$0xf] }
 0x246   :  { %v10455_v36 = vor.u32 %v12672_v39, %v10454_v7  ;;  %v12692_v7 = vld [vmem:[#allocation12 + $0x30c] sm:$0xf0] }
 0x247   :  { %v3272_v27 = vpack.c.bf16 %v3271_v16, %v3270_v62  ;;  %v10631_v62 = vor.u32 %v12716_v48, %v10630_v49  ;;  %v10152_v16 = vld [vmem:[#allocation12 + $0x50] sm:$0xf0]  ;;  %v2461_v23 = vadd.f32 %v16129_v13, %v2114_v46  ;;  %4460 = vmatpush.bf16.msra.mxu0 %v10503_v21  ;;  %v12704_v46 = vld [vmem:[#allocation12 + $0x36c] sm:$0xf0]  ;;  %v16130_v49 = vld [vmem:[#allocation50_spill] sm:$0xff] }
 0x248   :  { %v3033_v20 = vpop.f32.mrf.mxu0  ;;  %v3082_v55 = vpop.f32.mrf.mxu1  ;;  %v10583_v21 = vor.u32 %v12704_v46, %v10582_v61  ;;  %v2809_v48 = vadd.f32 %v2694_v40, %v16130_v49  ;;  %v12700_v40 = vld [vmem:[#allocation12 + $0x34c] sm:$0xf0]  ;;  %v12647_v46 = vld [vmem:[#allocation12 + $0x1ec] sm:$0xf] }
 0x249   :  { %3273 = vst [vmem:[#allocation3 + $0x28] sm:$0xff] %v3272_v27  ;;  %v3150_v28 = vadd.f32 %v3033_v20, %v2803_v24  ;;  %v3151_v2 = vadd.f32 %v3082_v55, %v2804_v41  ;;  %v12626_v24 = vld [vmem:[#allocation12 + $0x144] sm:$0xf]  ;;  %v10280_v41 = vld [vmem:[#allocation12 + $0x150] sm:$0xf0]  ;;  %v16128_v27 = vld [vmem:[#allocation48_spill] sm:$0xff]  ;;  %v10155_v55 = vor.u32 %v12594_v18, %v10152_v16  ;;  %4489 = vmatpush.bf16.msra.mxu1 %v10631_v62  ;;  %v2745_v62 = vpop.f32.mrf.mxu3 }
 0x24a   :  { %v2460_v20 = vadd.f32 %v16128_v27, %v2113_v47  ;;  %v2808_v54 = vadd.f32 %v15034_v51, %v2461_v23  ;;  %v10136_v51 = vld [vmem:[#allocation12 + $0x30] sm:$0xf0]  ;;  %v16131_v18 = vld [vmem:[#allocation51_spill] sm:$0xff]  ;;  %v10566_v23 = vld [vmem:[#allocation12 + $0x340] sm:$0xf] }
 0x24b   :  { %v3276_v53 = vadd.f32 %v14944_v38, %v3150_v28  ;;  %v3277_v4 = vadd.f32 %v14946_v5, %v3151_v2  ;;  %v10283_v28 = vor.u32 %v12626_v24, %v10280_v41  ;;  %v10486_v2 = vld [vmem:[#allocation12 + $0x2a0] sm:$0xf]  ;;  %3825 = vmatpush.bf16.msrb.mxu2 %v10155_v55 }
 0x24c   :  { %v10487_v43 = vor.u32 %v12680_v3, %v10486_v2  ;;  %v2807_v37 = vadd.f32 %v15032_v19, %v2460_v20  ;;  %v10438_v55 = vld [vmem:[#allocation12 + $0x240] sm:$0xf]  ;;  %v16132_v2 = vld [vmem:[#allocation36_spill] sm:$0xff] }
 0x24d   :  { %v3278_v22 = vmax.f32 %v3276_v53, 0.0  ;;  %v3279_v50 = vmax.f32 %v3277_v4, 0.0  ;;  %3854 = vmatpush.bf16.msrb.mxu3 %v10283_v28  ;;  %4490 = vmatpush.bf16.msra.mxu1 %v10615_v52  ;;  %v12668_v28 = vld [vmem:[#allocation12 + $0x24c] sm:$0xf0]  ;;  %v16133_v3 = vld [vmem:[#allocation38_spill] sm:$0xff] }
 0x24e   :  { %4461 = vmatpush.bf16.msra.mxu0 %v10487_v43  ;;  %v2117_v12 = vadd.f32 %v16133_v3, %v16132_v2  ;;  %v10439_v13 = vor.u32 %v12668_v28, %v10438_v55 }
 0x24f   :  { %v3280_v35 = vpack.c.bf16 %v3279_v50, %v3278_v22 }
 0x250   :  { %v3036_v29 = vpop.f32.mrf.mxu0  ;;  %v3085_v56 = vpop.f32.mrf.mxu1  ;;  %v12583_v44 = vld [vmem:[#allocation3 + $0x24] sm:$0xf0]  ;;  %v10104_v63 = vld [vmem:[#allocation3 + $0x28] sm:$0xf0] }
 0x251   :  { %3281 = vst [vmem:[#allocation3 + $0x78] sm:$0xff] %v3280_v35  ;;  %v3152_v26 = vadd.f32 %v3036_v29, %v2805_v14  ;;  %v3153_v42 = vadd.f32 %v3085_v56, %v2806_v32  ;;  %v15040_v10 = vor.u32 %v12583_v44, %v10102_v33  ;;  %v15042_v9 = vor.u32 %v12582_v1, %v10104_v63  ;;  %v12676_v32 = vld [vmem:[#allocation12 + $0x28c] sm:$0xf0]  ;;  %v10598_v33 = vld [vmem:[#allocation12 + $0x380] sm:$0xf]  ;;  %v2748_v2 = vpop.f32.mrf.mxu3 }
 0x252   :  { %v10471_v35 = vor.u32 %v12676_v32, %v10470_v60  ;;  %v12708_v29 = vld [vmem:[#allocation12 + $0x38c] sm:$0xf0]  ;;  %v12590_v56 = vld [vmem:[#allocation12 + $0x24] sm:$0xf]  ;;  %v10422_v32 = vld [vmem:[#allocation12 + $0x220] sm:$0xf] }
 0x253   :  { %v3284_v34 = vadd.f32 %v14944_v38, %v3152_v26  ;;  %v3285_v31 = vadd.f32 %v14946_v5, %v3153_v42  ;;  %3780 = vmatmul.bf16.gmra.mxu2 %v15040_v10  ;;  %3809 = vmatmul.bf16.gmra.mxu3 %v15042_v9  ;;  %v10599_v1 = vor.u32 %v12708_v29, %v10598_v33  ;;  %v12622_v63 = vld [vmem:[#allocation12 + $0x124] sm:$0xf]  ;;  %v10264_v26 = vld [vmem:[#allocation12 + $0x130] sm:$0xf0]  ;;  %v10550_v33 = vld [vmem:[#allocation12 + $0x320] sm:$0xf] }
 0x254   :  { %3896 = vmatmul.bf16.gmra.mxu0 %v15040_v10  ;;  %3925 = vmatmul.bf16.gmra.mxu1 %v15042_v9  ;;  %v10139_v42 = vor.u32 %v12590_v56, %v10136_v51  ;;  %v10267_v30 = vor.u32 %v12622_v63, %v10264_v26  ;;  %v16137_v29 = vld [vmem:[#allocation53_spill] sm:$0xff]  ;;  %v12696_v51 = vld [vmem:[#allocation12 + $0x32c] sm:$0xf0]  ;;  %v10406_v63 = vld [vmem:[#allocation12 + $0x200] sm:$0xf] }
 0x255   :  { %v3286_v53 = vmax.f32 %v3284_v34, 0.0  ;;  %v3287_v4 = vmax.f32 %v3285_v31, 0.0  ;;  %4462 = vmatpush.bf16.msra.mxu0 %v10471_v35  ;;  %4491 = vmatpush.bf16.msra.mxu1 %v10599_v1  ;;  %v2810_v34 = vadd.f32 %v2743_v8, %v16131_v18  ;;  %v2696_v31 = vpop.f32.mrf.mxu2  ;;  %v16134_v8 = vld [vmem:[#allocation37_spill] sm:$0xff]  ;;  %v12664_v35 = vld [vmem:[#allocation12 + $0x22c] sm:$0xf0]  ;;  %v10551_v26 = vor.u32 %v12696_v51, %v10550_v33 }
 0x256   :  { %3826 = vmatpush.bf16.msrb.mxu2 %v10139_v42  ;;  %3855 = vmatpush.bf16.msrb.mxu3 %v10267_v30  ;;  %v10423_v1 = vor.u32 %v12664_v35, %v10422_v32  ;;  %v12660_v42 = vld [vmem:[#allocation12 + $0x20c] sm:$0xf0]  ;;  %v10534_v30 = vld [vmem:[#allocation12 + $0x300] sm:$0xf] }
 0x257   :  { %v3288_v57 = vpack.c.bf16 %v3287_v4, %v3286_v53  ;;  %v12586_v53 = vld [vmem:[#allocation12 + $0x4] sm:$0xf]  ;;  %v10535_v18 = vor.u32 %v12692_v7, %v10534_v30  ;;  %v16140_v33 = vld [vmem:[#allocation40_spill] sm:$0xff] }
 0x258   :  { %v3038_v22 = vpop.f32.mrf.mxu0  ;;  %v3087_v50 = vpop.f32.mrf.mxu1  ;;  %v16135_v4 = vld [vmem:[#allocation39_spill] sm:$0xff]  ;;  %v12639_v30 = vld [vmem:[#allocation12 + $0x1ac] sm:$0xf] }
 0x259   :  { %3289 = vst [vmem:[#allocation3 + $0x30] sm:$0xff] %v3288_v57  ;;  %v3154_v59 = vadd.f32 %v3038_v22, %v2807_v37  ;;  %v3155_v14 = vadd.f32 %v3087_v50, %v2808_v54  ;;  %4463 = vmatpush.bf16.msra.mxu0 %v10455_v36  ;;  %4492 = vmatpush.bf16.msra.mxu1 %v10583_v21  ;;  %v10120_v54 = vld [vmem:[#allocation12 + $0x10] sm:$0xf0]  ;;  %v12618_v57 = vld [vmem:[#allocation12 + $0x104] sm:$0xf]  ;;  %v16136_v50 = vld [vmem:[#allocation52_spill] sm:$0xff] }
 0x25a   :  { %v2118_v43 = vadd.f32 %v16135_v4, %v16134_v8  ;;  %v10567_v37 = vor.u32 %v12700_v40, %v10566_v23  ;;  %v10248_v22 = vld [vmem:[#allocation12 + $0x110] sm:$0xf0]  ;;  %v10240_v36 = vld [vmem:[#allocation12 + $0xf8] sm:$0xf0] }
 0x25b   :  { %v3292_v44 = vadd.f32 %v14944_v38, %v3154_v59  ;;  %v3293_v19 = vadd.f32 %v14946_v5, %v3155_v14  ;;  %v2464_v59 = vadd.f32 %v16136_v50, %v2117_v12  ;;  %v10123_v14 = vor.u32 %v12586_v53, %v10120_v54  ;;  %v16138_v8 = vld [vmem:[#allocation54_spill] sm:$0xff] }
 0x25c   :  { %v10251_v60 = vor.u32 %v12618_v57, %v10248_v22  ;;  %v2465_v56 = vadd.f32 %v16137_v29, %v2118_v43  ;;  %v16139_v43 = vld [vmem:[#allocation55_spill] sm:$0xff]  ;;  %v16141_v29 = vld [vmem:[#allocation46_spill] sm:$0xff] }
 0x25d   :  { %v3294_v47 = vmax.f32 %v3292_v44, 0.0  ;;  %v3295_v6 = vmax.f32 %v3293_v19, 0.0  ;;  %4464 = vmatpush.bf16.msra.mxu0 %v10439_v13  ;;  %4493 = vmatpush.bf16.msra.mxu1 %v10567_v37  ;;  %v2811_v39 = vadd.f32 %v2696_v31, %v2464_v59  ;;  %v12643_v31 = vld [vmem:[#allocation12 + $0x1cc] sm:$0xf]  ;;  %v2699_v28 = vpop.f32.mrf.mxu2 }
 0x25e   :  { %3827 = vmatpush.bf16.msrb.mxu2 %v10123_v14  ;;  %3856 = vmatpush.bf16.msrb.mxu3 %v10251_v60  ;;  %v2812_v61 = vadd.f32 %v2745_v62, %v2465_v56  ;;  %v10352_v62 = vld [vmem:[#allocation12 + $0x1d8] sm:$0xf0]  ;;  %v2813_v4 = vadd.f32 %v2699_v28, %v16138_v8  ;;  %v2121_v56 = vadd.f32 %v16141_v29, %v16140_v33  ;;  %v12685_v29 = vld [vmem:[#allocation12 + $0x2d4] sm:$0xf0] }
 0x25f   :  { %v3296_v16 = vpack.c.bf16 %v3295_v6, %v3294_v47  ;;  %v12615_v6 = vld [vmem:[#allocation12 + $0xec] sm:$0xf]  ;;  %v10355_v23 = vor.u32 %v12643_v31, %v10352_v62  ;;  %v10320_v28 = vld [vmem:[#allocation12 + $0x198] sm:$0xf0] }
 0x260   :  { %v3041_v24 = vpop.f32.mrf.mxu0  ;;  %v3090_v41 = vpop.f32.mrf.mxu1  ;;  %v10110_v37 = vld [vmem:[#allocation3 + $0x30] sm:$0xf]  ;;  %v12584_v50 = vld [vmem:[#allocation3 + $0x34] sm:$0xf]  ;;  %v2468_v7 = vadd.f32 %v14932_v0, %v2121_v56  ;;  %v10376_v8 = vld [vmem:[#allocation3 + $0x58] sm:$0xf0] }
 0x261   :  { %3297 = vst [vmem:[#allocation3 + $0x80] sm:$0xff] %v3296_v16  ;;  %v3156_v27 = vadd.f32 %v3041_v24, %v2809_v48  ;;  %v3157_v20 = vadd.f32 %v3090_v41, %v2810_v34  ;;  %v10407_v48 = vor.u32 %v12660_v42, %v10406_v63  ;;  %v10243_v34 = vor.u32 %v12615_v6, %v10240_v36  ;;  %v10368_v16 = vld [vmem:[#allocation12 + $0x1f8] sm:$0xf0]  ;;  %v12611_v24 = vld [vmem:[#allocation12 + $0xcc] sm:$0xf] }
 0x262   :  { %v10224_v41 = vld [vmem:[#allocation12 + $0xd8] sm:$0xf0]  ;;  %4465 = vmatpush.bf16.msra.mxu0 %v10423_v1  ;;  %4494 = vmatpush.bf16.msra.mxu1 %v10551_v26  ;;  %v10371_v55 = vor.u32 %v12647_v46, %v10368_v16  ;;  %v12607_v26 = vld [vmem:[#allocation12 + $0xac] sm:$0xf]  ;;  %v10638_v56 = vld [vmem:[#allocation12 + $0x3c8] sm:$0xf] }
 0x263   :  { %v3300_v58 = vadd.f32 %v14944_v38, %v3156_v27  ;;  %v3301_v52 = vadd.f32 %v14946_v5, %v3157_v20  ;;  %3936 = vmatpush.bf16.msra.mxu2 %v10243_v34  ;;  %v10227_v3 = vor.u32 %v12611_v24, %v10224_v41  ;;  %v10208_v42 = vld [vmem:[#allocation12 + $0xb8] sm:$0xf0] }
 0x264   :  { %3965 = vmatpush.bf16.msra.mxu3 %v10371_v55  ;;  %v10336_v6 = vld [vmem:[#allocation12 + $0x1b8] sm:$0xf0]  ;;  %v12635_v55 = vld [vmem:[#allocation12 + $0x18c] sm:$0xf] }
 0x265   :  { %v3302_v44 = vmax.f32 %v3300_v58, 0.0  ;;  %v3303_v19 = vmax.f32 %v3301_v52, 0.0  ;;  %v2814_v58 = vadd.f32 %v2748_v2, %v16139_v43  ;;  %v10323_v2 = vor.u32 %v12635_v55, %v10320_v28  ;;  %v10606_v55 = vld [vmem:[#allocation12 + $0x388] sm:$0xf]  ;;  %v10144_v28 = vld [vmem:[#allocation12 + $0x38] sm:$0xf0] }
 0x266   :  { %4466 = vmatpush.bf16.msra.mxu0 %v10407_v48  ;;  %4495 = vmatpush.bf16.msra.mxu1 %v10535_v18 }
 0x267   :  { %v3304_v47 = vpack.c.bf16 %v3303_v19, %v3302_v44  ;;  %3937 = vmatpush.bf16.msra.mxu2 %v10227_v3  ;;  %v16142_v44 = vld [vmem:[#allocation41_spill] sm:$0xff]  ;;  %v16143_v19 = vld [vmem:[#allocation47_spill] sm:$0xff] }
 0x268   :  { %v3043_v21 = vpop.f32.mrf.mxu0  ;;  %v3092_v49 = vpop.f32.mrf.mxu1  ;;  %3966 = vmatpush.bf16.msra.mxu3 %v10355_v23  ;;  %v2122_v1 = vadd.f32 %v16143_v19, %v16142_v44  ;;  %v12717_v44 = vld [vmem:[#allocation12 + $0x3d4] sm:$0xf0] }
 0x269   :  { %3305 = vst [vmem:[#allocation3 + $0x38] sm:$0xff] %v3304_v47  ;;  %v3158_v27 = vadd.f32 %v3043_v21, %v2811_v39  ;;  %v3159_v20 = vadd.f32 %v3092_v49, %v2812_v61  ;;  %v2701_v39 = vpop.f32.mrf.mxu2  ;;  %v2750_v61 = vpop.f32.mrf.mxu3  ;;  %v10211_v47 = vor.u32 %v12607_v26, %v10208_v42  ;;  %v10339_v49 = vor.u32 %v12639_v30, %v10336_v6  ;;  %v10288_v30 = vld [vmem:[#allocation12 + $0x158] sm:$0xf0]  ;;  %v12713_v6 = vld [vmem:[#allocation12 + $0x3b4] sm:$0xf0] }
 0x26a   :  { %v2469_v36 = vadd.f32 %v14934_v25, %v2122_v1  ;;  %v2815_v48 = vadd.f32 %v2701_v39, %v2468_v7  ;;  %v12595_v1 = vld [vmem:[#allocation12 + $0x4c] sm:$0xf]  ;;  %v10639_v26 = vor.u32 %v12717_v44, %v10638_v56  ;;  %v10494_v7 = vld [vmem:[#allocation12 + $0x2a8] sm:$0xf]  ;;  %v12681_v39 = vld [vmem:[#allocation12 + $0x2b4] sm:$0xf0] }
 0x26b   :  { %v3308_v12 = vadd.f32 %v14944_v38, %v3158_v27  ;;  %v3309_v13 = vadd.f32 %v14946_v5, %v3159_v20  ;;  %3938 = vmatpush.bf16.msra.mxu2 %v10211_v47  ;;  %v12603_v27 = vld [vmem:[#allocation12 + $0x8c] sm:$0xf]  ;;  %v10192_v20 = vld [vmem:[#allocation12 + $0x98] sm:$0xf0]  ;;  %v10622_v47 = vld [vmem:[#allocation12 + $0x3a8] sm:$0xf] }
 0x26c   :  { %v2816_v18 = vadd.f32 %v2750_v61, %v2469_v36  ;;  %3967 = vmatpush.bf16.msra.mxu3 %v10339_v49  ;;  %v10195_v62 = vor.u32 %v12603_v27, %v10192_v20  ;;  %v10495_v36 = vor.u32 %v12681_v39, %v10494_v7  ;;  %v10384_v49 = vld [vmem:[#allocation3 + $0x68] sm:$0xf0]  ;;  %v12677_v20 = vld [vmem:[#allocation12 + $0x294] sm:$0xf0] }
 0x26d   :  { %v3310_v40 = vmax.f32 %v3308_v12, 0.0  ;;  %v3311_v53 = vmax.f32 %v3309_v13, 0.0  ;;  %v10374_v13 = vld [vmem:[#allocation3 + $0x50] sm:$0xf]  ;;  %v10478_v27 = vld [vmem:[#allocation12 + $0x288] sm:$0xf] }
 0x26e   :  { %v12619_v44 = vld [vmem:[#allocation12 + $0x10c] sm:$0xf]  ;;  %v10392_v7 = vld [vmem:[#allocation3 + $0x78] sm:$0xf0] }
 0x26f   :  { %v3312_v52 = vpack.c.bf16 %v3311_v53, %v3310_v40  ;;  %3939 = vmatpush.bf16.msra.mxu2 %v10195_v62  ;;  %v12651_v40 = vld [vmem:[#allocation3 + $0x54] sm:$0xf0]  ;;  %v12650_v53 = vld [vmem:[#allocation3 + $0x54] sm:$0xf]  ;;  %v12591_v62 = vld [vmem:[#allocation12 + $0x2c] sm:$0xf] }
 0x270   :  { %v3046_v54 = vpop.f32.mrf.mxu0  ;;  %v3095_v57 = vpop.f32.mrf.mxu1  ;;  %v12585_v22 = vld [vmem:[#allocation3 + $0x34] sm:$0xf0]  ;;  %v10112_v59 = vld [vmem:[#allocation3 + $0x38] sm:$0xf0]  ;;  %3968 = vmatpush.bf16.msra.mxu3 %v10323_v2  ;;  %v15094_v43 = vor.u32 %v12650_v53, %v10376_v8  ;;  %v10590_v8 = vld [vmem:[#allocation12 + $0x368] sm:$0xf] }
 0x271   :  { %3313 = vst [vmem:[#allocation3 + $0x88] sm:$0xff] %v3312_v52  ;;  %v3160_v14 = vadd.f32 %v3046_v54, %v2813_v4  ;;  %v3161_v60 = vadd.f32 %v3095_v57, %v2814_v58  ;;  %v15074_v32 = vor.u32 %v12585_v22, %v10110_v37  ;;  %v15076_v35 = vor.u32 %v12584_v50, %v10112_v59  ;;  %v12631_v58 = vld [vmem:[#allocation12 + $0x16c] sm:$0xf]  ;;  %v10304_v37 = vld [vmem:[#allocation12 + $0x178] sm:$0xf0] }
 0x272   :  { %v15092_v4 = vor.u32 %v12651_v40, %v10374_v13  ;;  %v10526_v54 = vld [vmem:[#allocation12 + $0x2e8] sm:$0xf]  ;;  %v12689_v57 = vld [vmem:[#allocation12 + $0x2f4] sm:$0xf0]  ;;  %v10307_v22 = vor.u32 %v12631_v58, %v10304_v37  ;;  %v10272_v13 = vld [vmem:[#allocation12 + $0x138] sm:$0xf0] }
 0x273   :  { %v3316_v51 = vadd.f32 %v14944_v38, %v3160_v14  ;;  %v3317_v63 = vadd.f32 %v14946_v5, %v3161_v60  ;;  %3785 = vmatmul.bf16.gmra.mxu2 %v15074_v32  ;;  %3814 = vmatmul.bf16.gmra.mxu3 %v15076_v35  ;;  %v10527_v50 = vor.u32 %v12689_v57, %v10526_v54  ;;  %v10654_v59 = vld [vmem:[#allocation12 + $0x3e8] sm:$0xf]  ;;  %v12721_v14 = vld [vmem:[#allocation12 + $0x3f4] sm:$0xf0] }
 0x274   :  { %3901 = vmatmul.bf16.gmra.mxu0 %v15074_v32  ;;  %3930 = vmatmul.bf16.gmra.mxu1 %v15076_v35  ;;  %v10510_v60 = vld [vmem:[#allocation12 + $0x2c8] sm:$0xf]  ;;  %v10655_v33 = vor.u32 %v12721_v14, %v10654_v59  ;;  %v12673_v53 = vld [vmem:[#allocation12 + $0x274] sm:$0xf0] }
 0x275   :  { %v3318_v46 = vmax.f32 %v3316_v51, 0.0  ;;  %v3319_v21 = vmax.f32 %v3317_v63, 0.0  ;;  %3969 = vmatpush.bf16.msra.mxu3 %v10307_v22  ;;  %4575 = vmatpush.bf16.msrb.mxu0 %v10527_v50  ;;  %v10511_v19 = vor.u32 %v12685_v29, %v10510_v60  ;;  %v10160_v51 = vld [vmem:[#allocation12 + $0x58] sm:$0xf0]  ;;  %v12627_v63 = vld [vmem:[#allocation12 + $0x14c] sm:$0xf] }
 0x276   :  { %4604 = vmatpush.bf16.msrb.mxu1 %v10655_v33  ;;  %v10163_v42 = vor.u32 %v12595_v1, %v10160_v51  ;;  %v10291_v61 = vor.u32 %v12627_v63, %v10288_v30  ;;  %v10446_v57 = vld [vmem:[#allocation12 + $0x248] sm:$0xf]  ;;  %v12669_v22 = vld [vmem:[#allocation12 + $0x254] sm:$0xf0]  ;;  %v12587_v60 = vld [vmem:[#allocation12 + $0xc] sm:$0xf] }
 0x277   :  { %v3320_v34 = vpack.c.bf16 %v3319_v21, %v3318_v46  ;;  %v10623_v46 = vor.u32 %v12713_v6, %v10622_v47  ;;  %v12653_v21 = vld [vmem:[#allocation3 + $0x64] sm:$0xf0]  ;;  %v10447_v59 = vor.u32 %v12669_v22, %v10446_v57  ;;  %v12701_v14 = vld [vmem:[#allocation12 + $0x354] sm:$0xf0]  ;;  %v10128_v33 = vld [vmem:[#allocation12 + $0x18] sm:$0xf0] }
 0x278   :  { %v3048_v16 = vpop.f32.mrf.mxu0  ;;  %v3097_v0 = vpop.f32.mrf.mxu1  ;;  %v10574_v50 = vld [vmem:[#allocation12 + $0x348] sm:$0xf]  ;;  %v10131_v56 = vor.u32 %v12587_v60, %v10128_v33  ;;  %v12665_v63 = vld [vmem:[#allocation12 + $0x234] sm:$0xf0]  ;;  %v10398_v57 = vld [vmem:[#allocation3 + $0x80] sm:$0xf] }
 0x279   :  { %3321 = vst [vmem:[#allocation3 + $0x40] sm:$0xff] %v3320_v34  ;;  %v3162_v24 = vadd.f32 %v3048_v16, %v2815_v48  ;;  %v3163_v41 = vadd.f32 %v3097_v0, %v2816_v18  ;;  %4576 = vmatpush.bf16.msrb.mxu0 %v10511_v19  ;;  %3970 = vmatpush.bf16.msra.mxu3 %v10291_v61  ;;  %v10382_v34 = vld [vmem:[#allocation3 + $0x60] sm:$0xf]  ;;  %v12652_v16 = vld [vmem:[#allocation3 + $0x64] sm:$0xf] }
 0x27a   :  { %4605 = vmatpush.bf16.msrb.mxu1 %v10639_v26  ;;  %v10575_v29 = vor.u32 %v12701_v14, %v10574_v50  ;;  %v10256_v19 = vld [vmem:[#allocation12 + $0x118] sm:$0xf0]  ;;  %v10430_v1 = vld [vmem:[#allocation12 + $0x228] sm:$0xf]  ;;  %v12655_v30 = vld [vmem:[#allocation3 + $0x74] sm:$0xf0] }
 0x27b   :  { %v3324_v31 = vadd.f32 %v14944_v38, %v3162_v24  ;;  %v3325_v25 = vadd.f32 %v14946_v5, %v3163_v41  ;;  %v12599_v38 = vld [vmem:[#allocation12 + $0x6c] sm:$0xf]  ;;  %v10176_v5 = vld [vmem:[#allocation12 + $0x78] sm:$0xf0]  ;;  %v15102_v24 = vor.u32 %v12653_v21, %v10382_v34  ;;  %v15104_v41 = vor.u32 %v12652_v16, %v10384_v49  ;;  %v10558_v26 = vld [vmem:[#allocation12 + $0x328] sm:$0xf] }
 0x27c   :  { %v10179_v52 = vor.u32 %v12599_v38, %v10176_v5  ;;  %v12705_v38 = vld [vmem:[#allocation12 + $0x374] sm:$0xf0]  ;;  %v10259_v51 = vor.u32 %v12619_v44, %v10256_v19  ;;  %v10431_v39 = vor.u32 %v12665_v63, %v10430_v1  ;;  %v10414_v47 = vld [vmem:[#allocation12 + $0x208] sm:$0xf]  ;;  %v10390_v21 = vld [vmem:[#allocation3 + $0x70] sm:$0xf] }
 0x27d   :  { %v3326_v3 = vmax.f32 %v3324_v31, 0.0  ;;  %v3327_v12 = vmax.f32 %v3325_v25, 0.0  ;;  %4577 = vmatpush.bf16.msrb.mxu0 %v10495_v36  ;;  %v10479_v31 = vor.u32 %v12677_v20, %v10478_v27  ;;  %v12709_v25 = vld [vmem:[#allocation12 + $0x394] sm:$0xf0]  ;;  %v10591_v37 = vor.u32 %v12705_v38, %v10590_v8  ;;  %v10542_v36 = vld [vmem:[#allocation12 + $0x308] sm:$0xf] }
 0x27e   :  { %3940 = vmatpush.bf16.msra.mxu2 %v10179_v52  ;;  %4606 = vmatpush.bf16.msrb.mxu1 %v10623_v46  ;;  %v10607_v2 = vor.u32 %v12709_v25, %v10606_v55  ;;  %v12661_v6 = vld [vmem:[#allocation12 + $0x214] sm:$0xf0]  ;;  %v12654_v49 = vld [vmem:[#allocation3 + $0x74] sm:$0xf]  ;;  %v12686_v27 = vld [vmem:[#allocation12 + $0x2e4] sm:$0xf] }
 0x27f   :  { %v3328_v23 = vpack.c.bf16 %v3327_v12, %v3326_v3  ;;  %v10147_v3 = vor.u32 %v12591_v62, %v10144_v28  ;;  %v12623_v12 = vld [vmem:[#allocation12 + $0x12c] sm:$0xf]  ;;  %v12693_v46 = vld [vmem:[#allocation12 + $0x314] sm:$0xf0]  ;;  %v15114_v34 = vor.u32 %v12654_v49, %v10392_v7  ;;  %v10520_v20 = vld [vmem:[#allocation12 + $0x2f0] sm:$0xf0] }
 0x280   :  { %v10275_v40 = vor.u32 %v12623_v12, %v10272_v13  ;;  %v10543_v16 = vor.u32 %v12693_v46, %v10542_v36  ;;  %v12718_v55 = vld [vmem:[#allocation12 + $0x3e4] sm:$0xf]  ;;  %v10648_v25 = vld [vmem:[#allocation12 + $0x3f0] sm:$0xf0]  ;;  %v10806_v49 = vld [vmem:[#allocation12 + $0x4e0] sm:$0xf] }
 0x281   :  { %3329 = vst [vmem:[#allocation3 + $0x90] sm:$0xff] %v3328_v23  ;;  %v10462_v23 = vld [vmem:[#allocation12 + $0x268] sm:$0xf]  ;;  %4578 = vmatpush.bf16.msrb.mxu0 %v10479_v31  ;;  %v10523_v31 = vor.u32 %v12686_v27, %v10520_v20  ;;  %v12682_v62 = vld [vmem:[#allocation12 + $0x2c4] sm:$0xf] }
 0x282   :  { %3941 = vmatpush.bf16.msra.mxu2 %v10163_v42  ;;  %4607 = vmatpush.bf16.msrb.mxu1 %v10607_v2  ;;  %v10463_v52 = vor.u32 %v12673_v53, %v10462_v23  ;;  %v12697_v42 = vld [vmem:[#allocation12 + $0x334] sm:$0xf0]  ;;  %v10504_v28 = vld [vmem:[#allocation12 + $0x2d0] sm:$0xf0]  ;;  %v10651_v2 = vor.u32 %v12718_v55, %v10648_v25  ;;  %v12656_v22 = vld [vmem:[#allocation3 + $0x84] sm:$0xf] }
 0x283   :  { %3828 = vmatmul.bf16.vlgmr.msrb.gmra.mxu2 %v14964_v45  ;;  %3857 = vmatmul.bf16.vlgmr.msrb.gmra.mxu3 %v14966_v11  ;;  %v10559_v61 = vor.u32 %v12697_v42, %v10558_v26  ;;  %v10632_v12 = vld [vmem:[#allocation12 + $0x3d0] sm:$0xf0]  ;;  %v10507_v13 = vor.u32 %v12682_v62, %v10504_v28  ;;  %v12678_v60 = vld [vmem:[#allocation12 + $0x2a4] sm:$0xf]  ;;  %v10934_v20 = vld [vmem:[#allocation12 + $0x5e0] sm:$0xf] }
 0x284   :  { %4467 = vmatmul.bf16.vlgmr.msra.gmra.mxu0 %v15092_v4  ;;  %4496 = vmatmul.bf16.vlgmr.msra.gmra.mxu1 %v15094_v43  ;;  %v10488_v33 = vld [vmem:[#allocation12 + $0x2b0] sm:$0xf0]  ;;  %v12674_v26 = vld [vmem:[#allocation12 + $0x284] sm:$0xf]  ;;  %v12792_v55 = vld [vmem:[#allocation12 + $0x5ec] sm:$0xf0] }
 0x285   :  { %3971 = vmatpush.bf16.msra.mxu3 %v10275_v40  ;;  %4579 = vmatpush.bf16.msrb.mxu0 %v10463_v52  ;;  %v10616_v44 = vld [vmem:[#allocation12 + $0x3b0] sm:$0xf0]  ;;  %v12702_v36 = vld [vmem:[#allocation12 + $0x364] sm:$0xf]  ;;  %v12756_v25 = vld [vmem:[#allocation12 + $0x4cc] sm:$0xf0] }
 0x286   :  { %3942 = vmatpush.bf16.msra.mxu2 %v10147_v3  ;;  %4608 = vmatpush.bf16.msrb.mxu1 %v10591_v37  ;;  %v12714_v3 = vld [vmem:[#allocation12 + $0x3c4] sm:$0xf]  ;;  %v10472_v42 = vld [vmem:[#allocation12 + $0x290] sm:$0xf0]  ;;  %v12788_v62 = vld [vmem:[#allocation12 + $0x5cc] sm:$0xf0] }
 0x287   :  { %v10635_v23 = vor.u32 %v12714_v3, %v10632_v12  ;;  %v10475_v7 = vor.u32 %v12674_v26, %v10472_v42  ;;  %v10440_v3 = vld [vmem:[#allocation12 + $0x250] sm:$0xf0]  ;;  %v12698_v12 = vld [vmem:[#allocation12 + $0x344] sm:$0xf]  ;;  %v10758_v42 = vld [vmem:[#allocation12 + $0x480] sm:$0xf] }
 0x289   :  { %4580 = vmatpush.bf16.msrb.mxu0 %v10447_v59  ;;  %3972 = vmatpush.bf16.msra.mxu3 %v10259_v51 }
 0x28a   :  { %4609 = vmatpush.bf16.msrb.mxu1 %v10575_v29  ;;  %3943 = vmatpush.bf16.msra.mxu2 %v10131_v56  ;;  %v12710_v29 = vld [vmem:[#allocation12 + $0x3a4] sm:$0xf]  ;;  %v10491_v56 = vor.u32 %v12678_v60, %v10488_v33  ;;  %v10902_v60 = vld [vmem:[#allocation12 + $0x5a0] sm:$0xf]  ;;  %v12784_v33 = vld [vmem:[#allocation12 + $0x5ac] sm:$0xf0] }
 0x28b   :  { %v10619_v19 = vor.u32 %v12710_v29, %v10616_v44 }
 0x28d   :  { %4581 = vmatpush.bf16.msrb.mxu0 %v10431_v39  ;;  %4546 = vmatpush.bf16.msrb.mxu3 %v10651_v2  ;;  %v10600_v39 = vld [vmem:[#allocation12 + $0x390] sm:$0xf0]  ;;  %v12666_v2 = vld [vmem:[#allocation12 + $0x244] sm:$0xf] }
 0x28e   :  { %4610 = vmatpush.bf16.msrb.mxu1 %v10559_v61  ;;  %4517 = vmatpush.bf16.msrb.mxu2 %v10523_v31  ;;  %v10790_v31 = vld [vmem:[#allocation12 + $0x4c0] sm:$0xf] }
 0x28f   :  { %v10791_v28 = vor.u32 %v12756_v25, %v10790_v31 }
 0x291   :  { %v3887_v48 = vpop.f32.mrf.mxu0  ;;  %v3916_v18 = vpop.f32.mrf.mxu1  ;;  %4547 = vmatpush.bf16.msrb.mxu3 %v10635_v23  ;;  %v10443_v23 = vor.u32 %v12666_v2, %v10440_v3  ;;  %v12772_v3 = vld [vmem:[#allocation12 + $0x54c] sm:$0xf0] }
 0x292   :  { %v15100_v0 = vadd.f32 %v3916_v18, %v3887_v48  ;;  %v10415_v48 = vor.u32 %v12661_v6, %v10414_v47  ;;  %v15112_v18 = vor.u32 %v12655_v30, %v10390_v21  ;;  %4611 = vmatpush.bf16.msrb.mxu1 %v10543_v16  ;;  %4518 = vmatpush.bf16.msrb.mxu2 %v10507_v13  ;;  %v12706_v30 = vld [vmem:[#allocation12 + $0x384] sm:$0xf]  ;;  %v10456_v6 = vld [vmem:[#allocation12 + $0x270] sm:$0xf0] }
 0x293   :  { %3833 = vmatmul.bf16.gmra.mxu2 %v15002_v17  ;;  %3862 = vmatmul.bf16.gmra.mxu3 %v15004_v15  ;;  %v10603_v61 = vor.u32 %v12706_v30, %v10600_v39  ;;  %v12670_v47 = vld [vmem:[#allocation12 + $0x264] sm:$0xf]  ;;  %v10584_v21 = vld [vmem:[#allocation12 + $0x370] sm:$0xf0]  ;;  %v12748_v30 = vld [vmem:[#allocation12 + $0x48c] sm:$0xf0] }
 0x294   :  { %4472 = vmatmul.bf16.gmra.mxu0 %v15102_v24  ;;  %4501 = vmatmul.bf16.gmra.mxu1 %v15104_v41  ;;  %v10459_v46 = vor.u32 %v12670_v47, %v10456_v6  ;;  %v10587_v16 = vor.u32 %v12702_v36, %v10584_v21  ;;  %v10759_v39 = vor.u32 %v12748_v30, %v10758_v42  ;;  %v12662_v47 = vld [vmem:[#allocation12 + $0x224] sm:$0xf]  ;;  %v10424_v6 = vld [vmem:[#allocation12 + $0x230] sm:$0xf0]  ;;  %v10694_v42 = vld [vmem:[#allocation12 + $0x400] sm:$0xf] }
 0x295   :  { %4582 = vmatpush.bf16.msrb.mxu0 %v10415_v48  ;;  %4548 = vmatpush.bf16.msrb.mxu3 %v10619_v19  ;;  %v12760_v48 = vld [vmem:[#allocation12 + $0x4ec] sm:$0xf0]  ;;  %v12694_v21 = vld [vmem:[#allocation12 + $0x324] sm:$0xf] }
 0x296   :  { %v3771_v5 = vpop.f32.mrf.mxu2  ;;  %v3800_v58 = vpop.f32.mrf.mxu3  ;;  %4519 = vmatpush.bf16.msrb.mxu2 %v10491_v56  ;;  %v10807_v27 = vor.u32 %v12760_v48, %v10806_v49  ;;  %v10903_v56 = vor.u32 %v12784_v33, %v10902_v60  ;;  %v10552_v49 = vld [vmem:[#allocation12 + $0x330] sm:$0xf0]  ;;  %v10742_v48 = vld [vmem:[#allocation12 + $0x460] sm:$0xf]  ;;  %v12736_v33 = vld [vmem:[#allocation12 + $0x42c] sm:$0xf0] }
 0x297   :  { %v15110_v54 = vadd.f32 %v3800_v58, %v3771_v5  ;;  %v12657_v5 = vld [vmem:[#allocation3 + $0x84] sm:$0xf0]  ;;  %v10400_v58 = vld [vmem:[#allocation3 + $0x88] sm:$0xf0]  ;;  %v12732_v30 = vld [vmem:[#allocation12 + $0x40c] sm:$0xf0] }
 0x298   :  { %v15130_v59 = vor.u32 %v12657_v5, %v10398_v57  ;;  %v15132_v14 = vor.u32 %v12656_v22, %v10400_v58  ;;  %v10568_v5 = vld [vmem:[#allocation12 + $0x350] sm:$0xf0]  ;;  %v10774_v58 = vld [vmem:[#allocation12 + $0x4a0] sm:$0xf] }
 0x299   :  { %v15120_v40 = vpop.f32.mrf.mxu0  ;;  %v15122_v53 = vpop.f32.mrf.mxu1  ;;  %4549 = vmatpush.bf16.msrb.mxu3 %v10603_v61  ;;  %5220 = vmatpush.bf16.msra.mxu0 %v10807_v27  ;;  %v10571_v22 = vor.u32 %v12698_v12, %v10568_v5  ;;  %v12780_v61 = vld [vmem:[#allocation12 + $0x58c] sm:$0xf0]  ;;  %v12658_v12 = vld [vmem:[#allocation12 + $0x204] sm:$0xf] }
 0x29a   :  { %16144 = vst [vmem:[#allocation30_spill] sm:$0xff] %v15122_v53  ;;  %4520 = vmatpush.bf16.msrb.mxu2 %v10475_v7  ;;  %v10886_v7 = vld [vmem:[#allocation12 + $0x580] sm:$0xf]  ;;  %v12744_v27 = vld [vmem:[#allocation12 + $0x46c] sm:$0xf0] }
 0x29b   :  { %v10887_v36 = vor.u32 %v12780_v61, %v10886_v7  ;;  %v10743_v31 = vor.u32 %v12744_v27, %v10742_v48  ;;  %v10822_v7 = vld [vmem:[#allocation12 + $0x500] sm:$0xf]  ;;  %v12764_v61 = vld [vmem:[#allocation12 + $0x50c] sm:$0xf0]  ;;  %v10512_v27 = vld [vmem:[#allocation12 + $0x2d8] sm:$0xf0] }
 0x29d   :  { %4550 = vmatpush.bf16.msrb.mxu3 %v10587_v16  ;;  %5221 = vmatpush.bf16.msra.mxu0 %v10791_v28  ;;  %v10555_v16 = vor.u32 %v12694_v21, %v10552_v49  ;;  %v10854_v28 = vld [vmem:[#allocation12 + $0x540] sm:$0xf]  ;;  %v12719_v21 = vld [vmem:[#allocation12 + $0x3ec] sm:$0xf]  ;;  %v10656_v49 = vld [vmem:[#allocation12 + $0x3f8] sm:$0xf0] }
 0x29e   :  { %v15124_v8 = vpop.f32.mrf.mxu2  ;;  %v15126_v38 = vpop.f32.mrf.mxu3  ;;  %4521 = vmatpush.bf16.msrb.mxu2 %v10459_v46  ;;  %v10427_v46 = vor.u32 %v12662_v47, %v10424_v6  ;;  %v12687_v47 = vld [vmem:[#allocation12 + $0x2ec] sm:$0xf]  ;;  %v10528_v6 = vld [vmem:[#allocation12 + $0x2f8] sm:$0xf0]  ;;  %v10659_v48 = vor.u32 %v12719_v21, %v10656_v49 }
 0x29f   :  { %v12722_v21 = vld [vmem:[#allocation3 + $0xc] sm:$0xf] }
 0x2a1   :  { %4551 = vmatpush.bf16.msrb.mxu3 %v10571_v22  ;;  %v10710_v22 = vld [vmem:[#allocation12 + $0x420] sm:$0xf] }
 0x2a2   :  { %4522 = vmatpush.bf16.msrb.mxu2 %v10443_v23  ;;  %v10855_v23 = vor.u32 %v12772_v3, %v10854_v28  ;;  %v10496_v3 = vld [vmem:[#allocation12 + $0x2b8] sm:$0xf0] }
 0x2a3   :  { %3838 = vmatmul.bf16.gmra.mxu2 %v15040_v10  ;;  %3867 = vmatmul.bf16.gmra.mxu3 %v15042_v9 }
 0x2a4   :  { %4477 = vmatmul.bf16.gmra.mxu0 %v15112_v18  ;;  %4506 = vmatmul.bf16.gmra.mxu1 %v15114_v34 }
 0x2a5   :  { %4552 = vmatpush.bf16.msrb.mxu3 %v10555_v16  ;;  %v12683_v16 = vld [vmem:[#allocation12 + $0x2cc] sm:$0xf] }
 0x2a6   :  { %4523 = vmatpush.bf16.msrb.mxu2 %v10427_v46  ;;  %v10531_v46 = vor.u32 %v12687_v47, %v10528_v6  ;;  %v10664_v47 = vld [vmem:[#allocation3 + $0x10] sm:$0xf0] }
 0x2b1   :  { %v3892_v52 = vpop.f32.mrf.mxu0  ;;  %v3921_v37 = vpop.f32.mrf.mxu1 }
 0x2b2   :  { %v15128_v50 = vadd.f32 %v3921_v37, %v3892_v52  ;;  %v12752_v52 = vld [vmem:[#allocation12 + $0x4ac] sm:$0xf0] }
 0x2b3   :  { %3843 = vmatmul.bf16.gmra.mxu2 %v15074_v32  ;;  %3872 = vmatmul.bf16.gmra.mxu3 %v15076_v35  ;;  %v10775_v29 = vor.u32 %v12752_v52, %v10774_v58  ;;  %v12690_v58 = vld [vmem:[#allocation12 + $0x304] sm:$0xf]  ;;  %v10536_v52 = vld [vmem:[#allocation12 + $0x310] sm:$0xf0] }
 0x2b4   :  { %4482 = vmatmul.bf16.gmra.mxu0 %v15130_v59  ;;  %4511 = vmatmul.bf16.gmra.mxu1 %v15132_v14  ;;  %v10539_v60 = vor.u32 %v12690_v58, %v10536_v52 }
 0x2b5   :  { %5222 = vmatpush.bf16.msra.mxu0 %v10775_v29  ;;  %v10838_v29 = vld [vmem:[#allocation12 + $0x520] sm:$0xf] }
 0x2b6   :  { %v3776_v1 = vpop.f32.mrf.mxu2  ;;  %v3805_v51 = vpop.f32.mrf.mxu3  ;;  %4553 = vmatpush.bf16.msrb.mxu3 %v10539_v60 }
 0x2b7   :  { %v15138_v63 = vadd.f32 %v3805_v51, %v3776_v1 }
 0x2b9   :  { %v15144_v37 = vpop.f32.mrf.mxu0  ;;  %v15146_v57 = vpop.f32.mrf.mxu1  ;;  %5223 = vmatpush.bf16.msra.mxu0 %v10759_v39  ;;  %v10695_v39 = vor.u32 %v12732_v30, %v10694_v42 }
 0x2ba   :  { %16145 = vst [vmem:[#allocation31_spill] sm:$0xff] %v15144_v37  ;;  %v12860_v37 = vld [vmem:[#allocation12 + $0x7cc] sm:$0xf0] }
 0x2bb   :  { %16146 = vst [vmem:[#allocation42_spill] sm:$0xff] %v15146_v57 }
 0x2bd   :  { %5224 = vmatpush.bf16.msra.mxu0 %v10743_v31 }
 0x2be   :  { %v15148_v44 = vpop.f32.mrf.mxu2  ;;  %v15150_v19 = vpop.f32.mrf.mxu3 }
 0x2c3   :  { %3944 = vmatmul.bf16.vlgmr.msra.gmra.mxu2 %v14964_v45  ;;  %3973 = vmatmul.bf16.vlgmr.msra.gmra.mxu3 %v14966_v11  ;;  %v10935_v45 = vor.u32 %v12792_v55, %v10934_v20  ;;  %v10918_v11 = vld [vmem:[#allocation12 + $0x5c0] sm:$0xf] }
 0x2c4   :  { %4583 = vmatmul.bf16.vlgmr.msrb.gmra.mxu0 %v15092_v4  ;;  %4612 = vmatmul.bf16.vlgmr.msrb.gmra.mxu1 %v15094_v43  ;;  %v10919_v13 = vor.u32 %v12788_v62, %v10918_v11  ;;  %v10870_v20 = vld [vmem:[#allocation12 + $0x560] sm:$0xf]  ;;  %v12740_v62 = vld [vmem:[#allocation12 + $0x44c] sm:$0xf0] }
 0x2c5   :  { %5249 = vmatpush.bf16.msra.mxu1 %v10935_v45  ;;  %v10726_v11 = vld [vmem:[#allocation12 + $0x440] sm:$0xf]  ;;  %4662 = vmatpush.bf16.msra.mxu3 %v10659_v48 }
 0x2c6   :  { %v10727_v2 = vor.u32 %v12740_v62, %v10726_v11 }
 0x2c8   :  { %5225 = vmatpush.bf16.msra.mxu0 %v10727_v2  ;;  %v12679_v2 = vld [vmem:[#allocation12 + $0x2ac] sm:$0xf] }
 0x2c9   :  { %5250 = vmatpush.bf16.msra.mxu1 %v10919_v13  ;;  %v10408_v13 = vld [vmem:[#allocation12 + $0x210] sm:$0xf0] }
 0x2ca   :  { %v10411_v5 = vor.u32 %v12658_v12, %v10408_v13  ;;  %v12711_v12 = vld [vmem:[#allocation12 + $0x3ac] sm:$0xf]  ;;  %v10499_v13 = vor.u32 %v12679_v2, %v10496_v3  ;;  %v12761_v2 = vld [vmem:[#allocation12 + $0x4f4] sm:$0xf0] }
 0x2cc   :  { %4524 = vmatpush.bf16.msrb.mxu2 %v10411_v5 }
 0x2cd   :  { %5251 = vmatpush.bf16.msra.mxu1 %v10903_v56  ;;  %v12768_v56 = vld [vmem:[#allocation12 + $0x52c] sm:$0xf0] }
 0x2d0   :  { %4633 = vmatpush.bf16.msra.mxu2 %v10531_v46  ;;  %v10662_v46 = vld [vmem:[#allocation3 + $0x8] sm:$0xf] }
 0x2d1   :  { %v3897_v1 = vpop.f32.mrf.mxu0  ;;  %v3926_v51 = vpop.f32.mrf.mxu1  ;;  %5252 = vmatpush.bf16.msra.mxu1 %v10887_v36  ;;  %v10823_v36 = vor.u32 %v12764_v61, %v10822_v7  ;;  %v12723_v61 = vld [vmem:[#allocation3 + $0xc] sm:$0xf0] }
 0x2d2   :  { %v15152_v26 = vadd.f32 %v3926_v51, %v3897_v1  ;;  %v10711_v1 = vor.u32 %v12736_v33, %v10710_v22  ;;  %v10839_v51 = vor.u32 %v12768_v56, %v10838_v29  ;;  %v10480_v29 = vld [vmem:[#allocation12 + $0x298] sm:$0xf0]  ;;  %v12707_v56 = vld [vmem:[#allocation12 + $0x38c] sm:$0xf]  ;;  %v15184_v48 = vor.u32 %v12723_v61, %v10662_v46 }
 0x2d3   :  { %3949 = vmatmul.bf16.gmra.mxu2 %v15002_v17  ;;  %3978 = vmatmul.bf16.gmra.mxu3 %v15004_v15  ;;  %v12776_v17 = vld [vmem:[#allocation12 + $0x56c] sm:$0xf0]  ;;  %v12667_v61 = vld [vmem:[#allocation12 + $0x24c] sm:$0xf] }
 0x2d4   :  { %4588 = vmatmul.bf16.gmra.mxu0 %v15102_v24  ;;  %4617 = vmatmul.bf16.gmra.mxu1 %v15104_v41  ;;  %v10871_v45 = vor.u32 %v12776_v17, %v10870_v20  ;;  %v12715_v20 = vld [vmem:[#allocation12 + $0x3cc] sm:$0xf]  ;;  %v10515_v17 = vor.u32 %v12683_v16, %v10512_v27  ;;  %v15186_v16 = vor.u32 %v12722_v21, %v10664_v47  ;;  %v10448_v47 = vld [vmem:[#allocation12 + $0x258] sm:$0xf0] }
 0x2d5   :  { %5226 = vmatpush.bf16.msra.mxu0 %v10711_v1  ;;  %v10451_v21 = vor.u32 %v12667_v61, %v10448_v47  ;;  %v10432_v61 = vld [vmem:[#allocation12 + $0x238] sm:$0xf0] }
 0x2d6   :  { %v3781_v55 = vpop.f32.mrf.mxu2  ;;  %v3810_v15 = vpop.f32.mrf.mxu3  ;;  %5253 = vmatpush.bf16.msra.mxu1 %v10871_v45  ;;  %4634 = vmatpush.bf16.msra.mxu2 %v10515_v17  ;;  %v10464_v17 = vld [vmem:[#allocation12 + $0x278] sm:$0xf0] }
 0x2d7   :  { %v15158_v25 = vadd.f32 %v3810_v15, %v3781_v55  ;;  %v10640_v55 = vld [vmem:[#allocation12 + $0x3d8] sm:$0xf0] }
 0x2d8   :  { %v10643_v45 = vor.u32 %v12715_v20, %v10640_v55  ;;  %v12671_v20 = vld [vmem:[#allocation12 + $0x26c] sm:$0xf] }
 0x2d9   :  { %5227 = vmatpush.bf16.msra.mxu0 %v10695_v39  ;;  %v12703_v55 = vld [vmem:[#allocation12 + $0x36c] sm:$0xf] }
 0x2da   :  { %5254 = vmatpush.bf16.msra.mxu1 %v10855_v23  ;;  %4663 = vmatpush.bf16.msra.mxu3 %v10643_v45  ;;  %v10624_v23 = vld [vmem:[#allocation12 + $0x3b8] sm:$0xf0]  ;;  %v10467_v45 = vor.u32 %v12671_v20, %v10464_v17  ;;  %v10782_v17 = vld [vmem:[#allocation12 + $0x4a8] sm:$0xf] }
 0x2db   :  { %v10627_v52 = vor.u32 %v12711_v12, %v10624_v23  ;;  %4635 = vmatpush.bf16.msra.mxu2 %v10499_v13  ;;  %v10576_v20 = vld [vmem:[#allocation12 + $0x358] sm:$0xf0] }
 0x2de   :  { %5255 = vmatpush.bf16.msra.mxu1 %v10839_v51  ;;  %v15168_v15 = vpop.f32.mrf.mxu2  ;;  %v15170_v31 = vpop.f32.mrf.mxu3  ;;  %4664 = vmatpush.bf16.msra.mxu3 %v10627_v52  ;;  %v10608_v51 = vld [vmem:[#allocation12 + $0x398] sm:$0xf0] }
 0x2df   :  { %v10611_v7 = vor.u32 %v12707_v56, %v10608_v51  ;;  %v12757_v56 = vld [vmem:[#allocation12 + $0x4d4] sm:$0xf0]  ;;  %v12725_v51 = vld [vmem:[#allocation3 + $0x1c] sm:$0xf0] }
 0x2e2   :  { %5256 = vmatpush.bf16.msra.mxu1 %v10823_v36  ;;  %4665 = vmatpush.bf16.msra.mxu3 %v10611_v7  ;;  %v12789_v7 = vld [vmem:[#allocation12 + $0x5d4] sm:$0xf0] }
 0x2e3   :  { %3954 = vmatmul.bf16.gmra.mxu2 %v15040_v10  ;;  %3983 = vmatmul.bf16.gmra.mxu3 %v15042_v9  ;;  %v15164_v10 = vpop.f32.mrf.mxu0  ;;  %v15166_v9 = vpop.f32.mrf.mxu1 }
 0x2e4   :  { %4593 = vmatmul.bf16.gmra.mxu0 %v15112_v18  ;;  %4622 = vmatmul.bf16.gmra.mxu1 %v15114_v34  ;;  %16147 = vst [vmem:[#allocation43_spill] sm:$0xff] %v15164_v10 }
 0x2e5   :  { %16148 = vst [vmem:[#allocation44_spill] sm:$0xff] %v15166_v9  ;;  %v10888_v9 = vld [vmem:[#allocation12 + $0x590] sm:$0xf0] }
 0x2f1   :  { %v3902_v11 = vpop.f32.mrf.mxu0  ;;  %v3931_v62 = vpop.f32.mrf.mxu1 }
 0x2f2   :  { %v15172_v28 = vadd.f32 %v3931_v62, %v3902_v11  ;;  %v10592_v11 = vld [vmem:[#allocation12 + $0x378] sm:$0xf0]  ;;  %v10814_v62 = vld [vmem:[#allocation12 + $0x4e8] sm:$0xf] }
 0x2f3   :  { %3959 = vmatmul.bf16.gmra.mxu2 %v15074_v32  ;;  %3988 = vmatmul.bf16.gmra.mxu3 %v15076_v35  ;;  %v12675_v35 = vld [vmem:[#allocation12 + $0x28c] sm:$0xf]  ;;  %v10595_v13 = vor.u32 %v12703_v55, %v10592_v11  ;;  %v10815_v23 = vor.u32 %v12761_v2, %v10814_v62  ;;  %v12753_v11 = vld [vmem:[#allocation12 + $0x4b4] sm:$0xf0]  ;;  %v10910_v62 = vld [vmem:[#allocation12 + $0x5a8] sm:$0xf] }
 0x2f4   :  { %4598 = vmatmul.bf16.gmra.mxu0 %v15130_v59  ;;  %4627 = vmatmul.bf16.gmra.mxu1 %v15132_v14  ;;  %v10483_v1 = vor.u32 %v12675_v35, %v10480_v29  ;;  %v10798_v29 = vld [vmem:[#allocation12 + $0x4c8] sm:$0xf]  ;;  %v12785_v2 = vld [vmem:[#allocation12 + $0x5b4] sm:$0xf0] }
 0x2f5   :  { %4666 = vmatpush.bf16.msra.mxu3 %v10595_v13  ;;  %5336 = vmatpush.bf16.msrb.mxu0 %v10815_v23  ;;  %v10670_v13 = vld [vmem:[#allocation3 + $0x18] sm:$0xf]  ;;  %v12724_v23 = vld [vmem:[#allocation3 + $0x1c] sm:$0xf] }
 0x2f6   :  { %v3786_v5 = vpop.f32.mrf.mxu2  ;;  %v3815_v58 = vpop.f32.mrf.mxu3  ;;  %4636 = vmatpush.bf16.msra.mxu2 %v10483_v1  ;;  %v10926_v1 = vld [vmem:[#allocation12 + $0x5c8] sm:$0xf] }
 0x2f7   :  { %v15178_v22 = vadd.f32 %v3815_v58, %v3786_v5  ;;  %v10942_v5 = vld [vmem:[#allocation12 + $0x5e8] sm:$0xf]  ;;  %v12793_v58 = vld [vmem:[#allocation12 + $0x5f4] sm:$0xf0]  ;;  %v10927_v46 = vor.u32 %v12789_v7, %v10926_v1 }
 0x2f8   :  { %v12749_v1 = vld [vmem:[#allocation12 + $0x494] sm:$0xf0] }
 0x2f9   :  { %v3904_v60 = vpop.f32.mrf.mxu0  ;;  %v3933_v32 = vpop.f32.mrf.mxu1  ;;  %v12781_v7 = vld [vmem:[#allocation12 + $0x594] sm:$0xf0] }
 0x2fa   :  { %v15180_v33 = vadd.f32 %v3933_v32, %v3904_v60  ;;  %4637 = vmatpush.bf16.msra.mxu2 %v10467_v45 }
 0x2fe   :  { %v3788_v42 = vpop.f32.mrf.mxu2  ;;  %v3817_v30 = vpop.f32.mrf.mxu3  ;;  %4638 = vmatpush.bf16.msra.mxu2 %v10451_v21  ;;  %v12695_v21 = vld [vmem:[#allocation12 + $0x32c] sm:$0xf] }
 0x2ff   :  { %v15182_v39 = vadd.f32 %v3817_v30, %v3788_v42  ;;  %v10672_v42 = vld [vmem:[#allocation3 + $0x20] sm:$0xf0]  ;;  %v10799_v30 = vor.u32 %v12757_v56, %v10798_v29  ;;  %v10766_v56 = vld [vmem:[#allocation12 + $0x488] sm:$0xf] }
 0x301   :  { %v4468_v6 = vpop.f32.mrf.mxu0  ;;  %v4497_v36 = vpop.f32.mrf.mxu1  ;;  %5337 = vmatpush.bf16.msrb.mxu0 %v10799_v30  ;;  %v10894_v30 = vld [vmem:[#allocation12 + $0x588] sm:$0xf] }
 0x302   :  { %v4498_v49 = vadd.f32 %v4497_v36, %v4468_v6 }
 0x303   :  { %4525 = vmatmul.bf16.vlgmr.msrb.gmra.mxu2 %v15092_v4  ;;  %4554 = vmatmul.bf16.vlgmr.msrb.gmra.mxu3 %v15094_v43 }
 0x304   :  { %v15191_v27 = vadd.f32 %v4498_v49, %v15110_v54  ;;  %5228 = vmatmul.bf16.vlgmr.msra.gmra.mxu0 %v15184_v48  ;;  %5257 = vmatmul.bf16.vlgmr.msra.gmra.mxu1 %v15186_v16  ;;  %v10943_v54 = vor.u32 %v12793_v58, %v10942_v5  ;;  %v12699_v49 = vld [vmem:[#allocation12 + $0x34c] sm:$0xf]  ;;  %v10783_v5 = vor.u32 %v12753_v11, %v10782_v17  ;;  %v10878_v11 = vld [vmem:[#allocation12 + $0x568] sm:$0xf] }
 0x305   :  { %v10579_v45 = vor.u32 %v12699_v49, %v10576_v20  ;;  %v10911_v58 = vor.u32 %v12785_v2, %v10910_v62  ;;  %v10750_v49 = vld [vmem:[#allocation12 + $0x468] sm:$0xf]  ;;  %v12777_v62 = vld [vmem:[#allocation12 + $0x574] sm:$0xf0] }
 0x306   :  { %v3829_v3 = vpop.f32.mrf.mxu2  ;;  %v3858_v12 = vpop.f32.mrf.mxu3  ;;  %5365 = vmatpush.bf16.msrb.mxu1 %v10943_v54  ;;  %5338 = vmatpush.bf16.msrb.mxu0 %v10783_v5  ;;  %v10734_v5 = vld [vmem:[#allocation12 + $0x448] sm:$0xf] }
 0x307   :  { %v15195_v52 = vadd.f32 %v3858_v12, %v3829_v3  ;;  %4667 = vmatpush.bf16.msra.mxu3 %v10579_v45  ;;  %v12745_v45 = vld [vmem:[#allocation12 + $0x474] sm:$0xf0] }
 0x309   :  { %v4470_v60 = vpop.f32.mrf.mxu0  ;;  %v4499_v32 = vpop.f32.mrf.mxu1 }
 0x30a   :  { %v15197_v35 = vadd.f32 %v4499_v32, %v4470_v60  ;;  %5366 = vmatpush.bf16.msrb.mxu1 %v10927_v46  ;;  %v15201_v60 = vor.u32 %v12725_v51, %v10670_v13  ;;  %v15203_v32 = vor.u32 %v12724_v23, %v10672_v42  ;;  %v10767_v51 = vor.u32 %v12749_v1, %v10766_v56  ;;  %v12663_v42 = vld [vmem:[#allocation12 + $0x22c] sm:$0xf]  ;;  %v10680_v1 = vld [vmem:[#allocation3 + $0x30] sm:$0xf0] }
 0x30b   :  { %v10435_v46 = vor.u32 %v12663_v42, %v10432_v61  ;;  %v10879_v13 = vor.u32 %v12777_v62, %v10878_v11  ;;  %v12727_v56 = vld [vmem:[#allocation3 + $0x2c] sm:$0xf0]  ;;  %v10416_v61 = vld [vmem:[#allocation12 + $0x218] sm:$0xf0]  ;;  %v10846_v11 = vld [vmem:[#allocation12 + $0x528] sm:$0xf] }
 0x30c   :  { %5339 = vmatpush.bf16.msrb.mxu0 %v10767_v51  ;;  %v12659_v42 = vld [vmem:[#allocation12 + $0x20c] sm:$0xf]  ;;  %v12769_v62 = vld [vmem:[#allocation12 + $0x534] sm:$0xf0] }
 0x30d   :  { %4639 = vmatpush.bf16.msra.mxu2 %v10435_v46  ;;  %v12691_v46 = vld [vmem:[#allocation12 + $0x30c] sm:$0xf] }
 0x30e   :  { %v3831_v6 = vpop.f32.mrf.mxu2  ;;  %v3860_v36 = vpop.f32.mrf.mxu3  ;;  %5367 = vmatpush.bf16.msrb.mxu1 %v10911_v58  ;;  %v12741_v58 = vld [vmem:[#allocation12 + $0x454] sm:$0xf0] }
 0x30f   :  { %v15199_v55 = vadd.f32 %v3860_v36, %v3831_v6  ;;  %v10895_v36 = vor.u32 %v12781_v7, %v10894_v30  ;;  %v10735_v30 = vor.u32 %v12741_v58, %v10734_v5  ;;  %v12773_v7 = vld [vmem:[#allocation12 + $0x554] sm:$0xf0]  ;;  %v10847_v58 = vor.u32 %v12769_v62, %v10846_v11 }
 0x311   :  { %v4473_v3 = vpop.f32.mrf.mxu0  ;;  %v4502_v12 = vpop.f32.mrf.mxu1 }
 0x312   :  { %v4503_v54 = vadd.f32 %v4502_v12, %v4473_v3  ;;  %5368 = vmatpush.bf16.msrb.mxu1 %v10895_v36  ;;  %v10751_v12 = vor.u32 %v12745_v45, %v10750_v49  ;;  %v10419_v36 = vor.u32 %v12659_v42, %v10416_v61  ;;  %v12737_v45 = vld [vmem:[#allocation12 + $0x434] sm:$0xf0] }
 0x313   :  { %4530 = vmatmul.bf16.gmra.mxu2 %v15102_v24  ;;  %4559 = vmatmul.bf16.gmra.mxu3 %v15104_v41 }
 0x314   :  { %v15208_v29 = vadd.f32 %v4503_v54, %v15138_v63  ;;  %5233 = vmatmul.bf16.gmra.mxu0 %v15201_v60  ;;  %5262 = vmatmul.bf16.gmra.mxu1 %v15203_v32  ;;  %v10560_v63 = vld [vmem:[#allocation12 + $0x338] sm:$0xf0]  ;;  %v10862_v54 = vld [vmem:[#allocation12 + $0x548] sm:$0xf] }
 0x315   :  { %v10563_v17 = vor.u32 %v12695_v21, %v10560_v63  ;;  %5340 = vmatpush.bf16.msrb.mxu0 %v10751_v12  ;;  %v10863_v51 = vor.u32 %v12773_v7, %v10862_v54  ;;  %v10544_v21 = vld [vmem:[#allocation12 + $0x318] sm:$0xf0]  ;;  %v10718_v63 = vld [vmem:[#allocation12 + $0x428] sm:$0xf]  ;;  %4640 = vmatpush.bf16.msra.mxu2 %v10419_v36  ;;  %v10808_v36 = vld [vmem:[#allocation12 + $0x4f0] sm:$0xf0] }
 0x316   :  { %v3834_v47 = vpop.f32.mrf.mxu2  ;;  %v3863_v6 = vpop.f32.mrf.mxu3  ;;  %5369 = vmatpush.bf16.msrb.mxu1 %v10879_v13  ;;  %v10678_v12 = vld [vmem:[#allocation3 + $0x28] sm:$0xf]  ;;  %v12726_v13 = vld [vmem:[#allocation3 + $0x2c] sm:$0xf]  ;;  %v10719_v5 = vor.u32 %v12737_v45, %v10718_v63 }
 0x317   :  { %v15212_v20 = vadd.f32 %v3863_v6, %v3834_v47  ;;  %4668 = vmatpush.bf16.msra.mxu3 %v10563_v17  ;;  %v10547_v17 = vor.u32 %v12691_v46, %v10544_v21  ;;  %v15218_v7 = vor.u32 %v12727_v56, %v10678_v12  ;;  %v15220_v42 = vor.u32 %v12726_v13, %v10680_v1  ;;  %v12765_v1 = vld [vmem:[#allocation12 + $0x514] sm:$0xf0]  ;;  %v12790_v45 = vld [vmem:[#allocation12 + $0x5e4] sm:$0xf] }
 0x318   :  { %v12754_v13 = vld [vmem:[#allocation12 + $0x4c4] sm:$0xf] }
 0x319   :  { %v4475_v2 = vpop.f32.mrf.mxu0  ;;  %v4504_v3 = vpop.f32.mrf.mxu1  ;;  %5341 = vmatpush.bf16.msrb.mxu0 %v10735_v30  ;;  %v10702_v30 = vld [vmem:[#allocation12 + $0x408] sm:$0xf] }
 0x31a   :  { %v15214_v23 = vadd.f32 %v4504_v3, %v4475_v2  ;;  %5370 = vmatpush.bf16.msrb.mxu1 %v10863_v51  ;;  %v12758_v51 = vld [vmem:[#allocation12 + $0x4e4] sm:$0xf] }
 0x31b   :  { %4669 = vmatpush.bf16.msra.mxu3 %v10547_v17  ;;  %v10811_v17 = vor.u32 %v12758_v51, %v10808_v36  ;;  %v12729_v36 = vld [vmem:[#allocation3 + $0x3c] sm:$0xf0] }
 0x31d   :  { %5342 = vmatpush.bf16.msrb.mxu0 %v10719_v5  ;;  %5278 = vmatpush.bf16.msrb.mxu2 %v10811_v17  ;;  %v10792_v5 = vld [vmem:[#allocation12 + $0x4d0] sm:$0xf0]  ;;  %v12728_v17 = vld [vmem:[#allocation3 + $0x3c] sm:$0xf] }
 0x31e   :  { %v3836_v47 = vpop.f32.mrf.mxu2  ;;  %v3865_v6 = vpop.f32.mrf.mxu3  ;;  %5371 = vmatpush.bf16.msrb.mxu1 %v10847_v58  ;;  %v12786_v58 = vld [vmem:[#allocation12 + $0x5c4] sm:$0xf] }
 0x31f   :  { %v15216_v49 = vadd.f32 %v3865_v6, %v3836_v47  ;;  %v12733_v47 = vld [vmem:[#allocation12 + $0x414] sm:$0xf0]  ;;  %v10830_v6 = vld [vmem:[#allocation12 + $0x508] sm:$0xf] }
 0x320   :  { %v10703_v56 = vor.u32 %v12733_v47, %v10702_v30  ;;  %v10831_v63 = vor.u32 %v12765_v1, %v10830_v6  ;;  %v10920_v30 = vld [vmem:[#allocation12 + $0x5d0] sm:$0xf0] }
 0x321   :  { %v4478_v2 = vpop.f32.mrf.mxu0  ;;  %v4507_v3 = vpop.f32.mrf.mxu1  ;;  %v10923_v1 = vor.u32 %v12786_v58, %v10920_v30 }
 0x322   :  { %v4508_v54 = vadd.f32 %v4507_v3, %v4478_v2  ;;  %5343 = vmatpush.bf16.msrb.mxu0 %v10703_v56  ;;  %5372 = vmatpush.bf16.msrb.mxu1 %v10831_v63  ;;  %v10686_v63 = vld [vmem:[#allocation3 + $0x38] sm:$0xf] }
 0x323   :  { %4535 = vmatmul.bf16.gmra.mxu2 %v15112_v18  ;;  %4564 = vmatmul.bf16.gmra.mxu3 %v15114_v34 }
 0x324   :  { %v15225_v61 = vadd.f32 %v4508_v54, %v15158_v25  ;;  %5238 = vmatmul.bf16.gmra.mxu0 %v15218_v7  ;;  %5267 = vmatmul.bf16.gmra.mxu1 %v15220_v42  ;;  %v10936_v25 = vld [vmem:[#allocation12 + $0x5f0] sm:$0xf0]  ;;  %v10795_v54 = vor.u32 %v12754_v13, %v10792_v5  ;;  %v12782_v5 = vld [vmem:[#allocation12 + $0x5a4] sm:$0xf] }
 0x325   :  { %v10939_v62 = vor.u32 %v12790_v45, %v10936_v25  ;;  %v15235_v25 = vor.u32 %v12729_v36, %v10686_v63  ;;  %v10776_v13 = vld [vmem:[#allocation12 + $0x4b0] sm:$0xf0] }
 0x326   :  { %v3839_v46 = vpop.f32.mrf.mxu2  ;;  %v3868_v21 = vpop.f32.mrf.mxu3  ;;  %5279 = vmatpush.bf16.msrb.mxu2 %v10795_v54  ;;  %v10904_v54 = vld [vmem:[#allocation12 + $0x5b0] sm:$0xf0] }
 0x327   :  { %v15229_v11 = vadd.f32 %v3868_v21, %v3839_v46  ;;  %5307 = vmatpush.bf16.msrb.mxu3 %v10939_v62  ;;  %v10688_v46 = vld [vmem:[#allocation3 + $0x40] sm:$0xf0]  ;;  %v10760_v63 = vld [vmem:[#allocation12 + $0x490] sm:$0xf0] }
 0x328   :  { %v15237_v62 = vor.u32 %v12728_v17, %v10688_v46  ;;  %v12778_v17 = vld [vmem:[#allocation12 + $0x584] sm:$0xf] }
 0x329   :  { %v4480_v2 = vpop.f32.mrf.mxu0  ;;  %v4509_v3 = vpop.f32.mrf.mxu1  ;;  %v10891_v10 = vor.u32 %v12778_v17, %v10888_v9  ;;  %v10744_v9 = vld [vmem:[#allocation12 + $0x470] sm:$0xf0]  ;;  %v11222_v17 = vld [vmem:[#allocation12 + $0x7e0] sm:$0xf] }
 0x32a   :  { %v15231_v12 = vadd.f32 %v4509_v3, %v4480_v2  ;;  %v12750_v3 = vld [vmem:[#allocation12 + $0x4a4] sm:$0xf] }
 0x32b   :  { %5308 = vmatpush.bf16.msrb.mxu3 %v10923_v1  ;;  %v10779_v58 = vor.u32 %v12750_v3, %v10776_v13 }
 0x32d   :  { %5280 = vmatpush.bf16.msrb.mxu2 %v10779_v58 }
 0x32e   :  { %v3841_v47 = vpop.f32.mrf.mxu2  ;;  %v3870_v6 = vpop.f32.mrf.mxu3 }
 0x32f   :  { %v15233_v51 = vadd.f32 %v3870_v6, %v3841_v47  ;;  %v10907_v6 = vor.u32 %v12782_v5, %v10904_v54 }
 0x331   :  { %v4483_v21 = vpop.f32.mrf.mxu0  ;;  %v4512_v56 = vpop.f32.mrf.mxu1  ;;  %5309 = vmatpush.bf16.msrb.mxu3 %v10907_v6 }
 0x332   :  { %v4513_v45 = vadd.f32 %v4512_v56, %v4483_v21  ;;  %v12746_v56 = vld [vmem:[#allocation12 + $0x484] sm:$0xf] }
 0x333   :  { %4540 = vmatmul.bf16.gmra.mxu2 %v15130_v59  ;;  %4569 = vmatmul.bf16.gmra.mxu3 %v15132_v14 }
 0x334   :  { %v15242_v2 = vadd.f32 %v4513_v45, %v15178_v22  ;;  %5243 = vmatmul.bf16.gmra.mxu0 %v15235_v25  ;;  %5272 = vmatmul.bf16.gmra.mxu1 %v15237_v62  ;;  %v10763_v45 = vor.u32 %v12746_v56, %v10760_v63 }
 0x335   :  { %5310 = vmatpush.bf16.msrb.mxu3 %v10891_v10  ;;  %v11094_v10 = vld [vmem:[#allocation12 + $0x6e0] sm:$0xf] }
 0x336   :  { %v3844_v30 = vpop.f32.mrf.mxu2  ;;  %v3873_v47 = vpop.f32.mrf.mxu3  ;;  %5281 = vmatpush.bf16.msrb.mxu2 %v10763_v45 }
 0x337   :  { %v15246_v1 = vadd.f32 %v3873_v47, %v3844_v30  ;;  %v12742_v30 = vld [vmem:[#allocation12 + $0x464] sm:$0xf] }
 0x338   :  { %v12774_v47 = vld [vmem:[#allocation12 + $0x564] sm:$0xf]  ;;  %v10747_v6 = vor.u32 %v12742_v30, %v10744_v9  ;;  %v11206_v30 = vld [vmem:[#allocation12 + $0x7c0] sm:$0xf] }
 0x339   :  { %v4485_v36 = vpop.f32.mrf.mxu0  ;;  %v4514_v46 = vpop.f32.mrf.mxu1 }
 0x33a   :  { %v4515_v22 = vadd.f32 %v4514_v46, %v4485_v36  ;;  %v10872_v36 = vld [vmem:[#allocation12 + $0x570] sm:$0xf0]  ;;  %v12832_v46 = vld [vmem:[#allocation12 + $0x6ec] sm:$0xf0]  ;;  %5282 = vmatpush.bf16.msrb.mxu2 %v10747_v6  ;;  %v12770_v6 = vld [vmem:[#allocation12 + $0x544] sm:$0xf] }
 0x33b   :  { %v10875_v63 = vor.u32 %v12774_v47, %v10872_v36  ;;  %v12738_v47 = vld [vmem:[#allocation12 + $0x444] sm:$0xf]  ;;  %v10728_v36 = vld [vmem:[#allocation12 + $0x450] sm:$0xf0] }
 0x33c   :  { %v15249_v21 = vadd.f32 %v4515_v22, %v15182_v39 }
 0x33d   :  { %5311 = vmatpush.bf16.msrb.mxu3 %v10875_v63  ;;  %v11062_v63 = vld [vmem:[#allocation12 + $0x6a0] sm:$0xf] }
 0x33e   :  { %v3846_v3 = vpop.f32.mrf.mxu2  ;;  %v3875_v13 = vpop.f32.mrf.mxu3 }
 0x33f   :  { %v15251_v57 = vadd.f32 %v3875_v13, %v3846_v3 }
 0x341   :  { %v4584_v5 = vpop.f32.mrf.mxu0  ;;  %v4613_v58 = vpop.f32.mrf.mxu1 }
 0x342   :  { %v4614_v54 = vadd.f32 %v4613_v58, %v4584_v5  ;;  %v11078_v58 = vld [vmem:[#allocation12 + $0x6c0] sm:$0xf] }
 0x343   :  { %4641 = vmatmul.bf16.vlgmr.msra.gmra.mxu2 %v15092_v4  ;;  %4670 = vmatmul.bf16.vlgmr.msra.gmra.mxu3 %v15094_v43  ;;  %v11095_v4 = vor.u32 %v12832_v46, %v11094_v10  ;;  %v12864_v43 = vld [vmem:[#allocation12 + $0x7ec] sm:$0xf0] }
 0x344   :  { %v15256_v39 = vadd.f32 %v4614_v54, %v15100_v0  ;;  %5344 = vmatmul.bf16.vlgmr.msrb.gmra.mxu0 %v15184_v48  ;;  %5373 = vmatmul.bf16.vlgmr.msrb.gmra.mxu1 %v15186_v16  ;;  %v11223_v0 = vor.u32 %v12864_v43, %v11222_v17  ;;  %v12828_v54 = vld [vmem:[#allocation12 + $0x6cc] sm:$0xf0]  ;;  %v10856_v17 = vld [vmem:[#allocation12 + $0x550] sm:$0xf0] }
 0x345   :  { %5981 = vmatpush.bf16.msra.mxu0 %v11095_v4  ;;  %v11079_v9 = vor.u32 %v12828_v54, %v11078_v58  ;;  %v10859_v43 = vor.u32 %v12770_v6, %v10856_v17  ;;  %v12766_v17 = vld [vmem:[#allocation12 + $0x524] sm:$0xf] }
 0x346   :  { %v3945_v22 = vpop.f32.mrf.mxu2  ;;  %v3974_v56 = vpop.f32.mrf.mxu3  ;;  %6010 = vmatpush.bf16.msra.mxu1 %v11223_v0  ;;  %v12824_v0 = vld [vmem:[#allocation12 + $0x6ac] sm:$0xf0] }
 0x347   :  { %v15260_v45 = vadd.f32 %v3974_v56, %v3945_v22  ;;  %v11207_v22 = vor.u32 %v12860_v37, %v11206_v30  ;;  %v10731_v56 = vor.u32 %v12738_v47, %v10728_v36  ;;  %5312 = vmatpush.bf16.msrb.mxu3 %v10859_v43  ;;  %v11046_v30 = vld [vmem:[#allocation12 + $0x680] sm:$0xf] }
 0x348   :  { %v11174_v47 = vld [vmem:[#allocation12 + $0x780] sm:$0xf] }
 0x349   :  { %16149 = vst [vmem:[#allocation45_spill] sm:$0xff] %v15260_v45  ;;  %v4586_v3 = vpop.f32.mrf.mxu0  ;;  %v4615_v13 = vpop.f32.mrf.mxu1  ;;  %5982 = vmatpush.bf16.msra.mxu0 %v11079_v9  ;;  %5283 = vmatpush.bf16.msrb.mxu2 %v10731_v56  ;;  %v12820_v9 = vld [vmem:[#allocation12 + $0x68c] sm:$0xf0] }
 0x34a   :  { %v15262_v5 = vadd.f32 %v4615_v13, %v4586_v3  ;;  %v11190_v3 = vld [vmem:[#allocation12 + $0x7a0] sm:$0xf]  ;;  %v12856_v13 = vld [vmem:[#allocation12 + $0x7ac] sm:$0xf0]  ;;  %6011 = vmatpush.bf16.msra.mxu1 %v11207_v22  ;;  %v11047_v36 = vor.u32 %v12820_v9, %v11046_v30  ;;  %v10712_v22 = vld [vmem:[#allocation12 + $0x430] sm:$0xf0] }
 0x34b   :  { %v11191_v45 = vor.u32 %v12856_v13, %v11190_v3  ;;  %v11158_v3 = vld [vmem:[#allocation12 + $0x760] sm:$0xf]  ;;  %v12848_v13 = vld [vmem:[#allocation12 + $0x76c] sm:$0xf0] }
 0x34c   :  { %16150 = vst [vmem:[#allocation32_spill] sm:$0xff] %v15262_v5  ;;  %v11063_v5 = vor.u32 %v12824_v0, %v11062_v63  ;;  %v12816_v0 = vld [vmem:[#allocation12 + $0x66c] sm:$0xf0]  ;;  %v11014_v9 = vld [vmem:[#allocation12 + $0x640] sm:$0xf] }
 0x34e   :  { %v3947_v10 = vpop.f32.mrf.mxu2  ;;  %v3976_v46 = vpop.f32.mrf.mxu3  ;;  %5983 = vmatpush.bf16.msra.mxu0 %v11063_v5  ;;  %6012 = vmatpush.bf16.msra.mxu1 %v11191_v45 }
 0x34f   :  { %v15264_v4 = vadd.f32 %v3976_v46, %v3947_v10  ;;  %v12852_v10 = vld [vmem:[#allocation12 + $0x78c] sm:$0xf0]  ;;  %v12734_v46 = vld [vmem:[#allocation12 + $0x424] sm:$0xf] }
 0x350   :  { %v11175_v6 = vor.u32 %v12852_v10, %v11174_v47  ;;  %v12812_v47 = vld [vmem:[#allocation12 + $0x64c] sm:$0xf0]  ;;  %v11142_v10 = vld [vmem:[#allocation12 + $0x740] sm:$0xf] }
 0x351   :  { %v4589_v58 = vpop.f32.mrf.mxu0  ;;  %v4618_v54 = vpop.f32.mrf.mxu1 }
 0x352   :  { %v4619_v53 = vadd.f32 %v4618_v54, %v4589_v58  ;;  %5984 = vmatpush.bf16.msra.mxu0 %v11047_v36  ;;  %6013 = vmatpush.bf16.msra.mxu1 %v11175_v6  ;;  %v11159_v54 = vor.u32 %v12848_v13, %v11158_v3  ;;  %v12762_v36 = vld [vmem:[#allocation12 + $0x504] sm:$0xf]  ;;  %v10824_v6 = vld [vmem:[#allocation12 + $0x510] sm:$0xf0]  ;;  %v11126_v13 = vld [vmem:[#allocation12 + $0x720] sm:$0xf] }
 0x353   :  { %4646 = vmatmul.bf16.gmra.mxu2 %v15102_v24  ;;  %4675 = vmatmul.bf16.gmra.mxu3 %v15104_v41  ;;  %v10715_v41 = vor.u32 %v12734_v46, %v10712_v22  ;;  %v11015_v46 = vor.u32 %v12812_v47, %v11014_v9  ;;  %v12844_v22 = vld [vmem:[#allocation12 + $0x74c] sm:$0xf0]  ;;  %v10827_v3 = vor.u32 %v12762_v36, %v10824_v6  ;;  %v12791_v6 = vld [vmem:[#allocation12 + $0x5ec] sm:$0xf] }
 0x354   :  { %v15269_v37 = vadd.f32 %v4619_v53, %v15128_v50  ;;  %5349 = vmatmul.bf16.gmra.mxu0 %v15201_v60  ;;  %5378 = vmatmul.bf16.gmra.mxu1 %v15203_v32  ;;  %v10840_v53 = vld [vmem:[#allocation12 + $0x530] sm:$0xf0]  ;;  %v11030_v50 = vld [vmem:[#allocation12 + $0x660] sm:$0xf] }
 0x355   :  { %v10843_v43 = vor.u32 %v12766_v17, %v10840_v53  ;;  %5284 = vmatpush.bf16.msrb.mxu2 %v10715_v41  ;;  %v11031_v58 = vor.u32 %v12816_v0, %v11030_v50  ;;  %v11143_v53 = vor.u32 %v12844_v22, %v11142_v10  ;;  %v10998_v50 = vld [vmem:[#allocation12 + $0x620] sm:$0xf]  ;;  %v12804_v22 = vld [vmem:[#allocation12 + $0x60c] sm:$0xf0] }
 0x356   :  { %v3950_v56 = vpop.f32.mrf.mxu2  ;;  %v3979_v24 = vpop.f32.mrf.mxu3  ;;  %6014 = vmatpush.bf16.msra.mxu1 %v11159_v54 }
 0x357   :  { %v15273_v63 = vadd.f32 %v3979_v24, %v3950_v56  ;;  %5313 = vmatpush.bf16.msrb.mxu3 %v10843_v43  ;;  %5985 = vmatpush.bf16.msra.mxu0 %v11031_v58  ;;  %v12730_v56 = vld [vmem:[#allocation12 + $0x404] sm:$0xf]  ;;  %v10696_v24 = vld [vmem:[#allocation12 + $0x410] sm:$0xf0]  ;;  %v12808_v43 = vld [vmem:[#allocation12 + $0x62c] sm:$0xf0] }
 0x358   :  { %v10999_v54 = vor.u32 %v12808_v43, %v10998_v50 }
 0x359   :  { %16151 = vst [vmem:[#allocation34_spill] sm:$0xff] %v15273_v63  ;;  %v4591_v5 = vpop.f32.mrf.mxu0  ;;  %v4620_v45 = vpop.f32.mrf.mxu1  ;;  %v10699_v63 = vor.u32 %v12730_v56, %v10696_v24  ;;  %v11110_v56 = vld [vmem:[#allocation12 + $0x700] sm:$0xf]  ;;  %v12836_v24 = vld [vmem:[#allocation12 + $0x70c] sm:$0xf0] }
 0x35a   :  { %v15275_v30 = vadd.f32 %v4620_v45, %v4591_v5  ;;  %v12840_v5 = vld [vmem:[#allocation12 + $0x72c] sm:$0xf0]  ;;  %6015 = vmatpush.bf16.msra.mxu1 %v11143_v53  ;;  %v11111_v36 = vor.u32 %v12836_v24, %v11110_v56 }
 0x35b   :  { %5285 = vmatpush.bf16.msrb.mxu2 %v10699_v63  ;;  %5986 = vmatpush.bf16.msra.mxu0 %v11015_v46  ;;  %v11127_v9 = vor.u32 %v12840_v5, %v11126_v13  ;;  %v10982_v63 = vld [vmem:[#allocation12 + $0x600] sm:$0xf] }
 0x35c   :  { %5314 = vmatpush.bf16.msrb.mxu3 %v10827_v3  ;;  %v10983_v46 = vor.u32 %v12804_v22, %v10982_v63 }
 0x35e   :  { %v3952_v17 = vpop.f32.mrf.mxu2  ;;  %v3981_v41 = vpop.f32.mrf.mxu3  ;;  %6016 = vmatpush.bf16.msra.mxu1 %v11127_v9 }
 0x35f   :  { %v15277_v0 = vadd.f32 %v3981_v41, %v3952_v17  ;;  %5987 = vmatpush.bf16.msra.mxu0 %v10999_v54  ;;  %v12759_v17 = vld [vmem:[#allocation12 + $0x4ec] sm:$0xf]  ;;  %v10816_v41 = vld [vmem:[#allocation12 + $0x4f8] sm:$0xf0] }
 0x360   :  { %v12787_v54 = vld [vmem:[#allocation12 + $0x5cc] sm:$0xf] }
 0x361   :  { %v4594_v45 = vpop.f32.mrf.mxu0  ;;  %v4623_v58 = vpop.f32.mrf.mxu1 }
 0x362   :  { %v4624_v47 = vadd.f32 %v4623_v58, %v4594_v45  ;;  %6017 = vmatpush.bf16.msra.mxu1 %v11111_v36  ;;  %v12755_v45 = vld [vmem:[#allocation12 + $0x4cc] sm:$0xf]  ;;  %v10800_v58 = vld [vmem:[#allocation12 + $0x4d8] sm:$0xf0] }
 0x363   :  { %4651 = vmatmul.bf16.gmra.mxu2 %v15112_v18  ;;  %4680 = vmatmul.bf16.gmra.mxu3 %v15114_v34  ;;  %v10819_v34 = vor.u32 %v12759_v17, %v10816_v41  ;;  %v10803_v9 = vor.u32 %v12755_v45, %v10800_v58  ;;  %v10784_v36 = vld [vmem:[#allocation12 + $0x4b8] sm:$0xf0] }
 0x364   :  { %v15282_v10 = vadd.f32 %v4624_v47, %v15152_v26  ;;  %5354 = vmatmul.bf16.gmra.mxu0 %v15218_v7  ;;  %5383 = vmatmul.bf16.gmra.mxu1 %v15220_v42  ;;  %v10944_v26 = vld [vmem:[#allocation12 + $0x5f8] sm:$0xf0] }
 0x365   :  { %v10947_v3 = vor.u32 %v12791_v6, %v10944_v26  ;;  %5394 = vmatpush.bf16.msra.mxu2 %v10819_v34  ;;  %5988 = vmatpush.bf16.msra.mxu0 %v10983_v46  ;;  %v10928_v47 = vld [vmem:[#allocation12 + $0x5d8] sm:$0xf0]  ;;  %v12783_v34 = vld [vmem:[#allocation12 + $0x5ac] sm:$0xf] }
 0x366   :  { %v3955_v53 = vpop.f32.mrf.mxu2  ;;  %v3984_v18 = vpop.f32.mrf.mxu3  ;;  %v10931_v56 = vor.u32 %v12787_v54, %v10928_v47  ;;  %v10912_v26 = vld [vmem:[#allocation12 + $0x5b8] sm:$0xf0]  ;;  %v12747_v54 = vld [vmem:[#allocation12 + $0x48c] sm:$0xf] }
 0x367   :  { %v15286_v50 = vadd.f32 %v3984_v18, %v3955_v53  ;;  %5423 = vmatpush.bf16.msra.mxu3 %v10947_v3  ;;  %v12751_v18 = vld [vmem:[#allocation12 + $0x4ac] sm:$0xf] }
 0x368   :  { %v10787_v6 = vor.u32 %v12751_v18, %v10784_v36  ;;  %v12779_v47 = vld [vmem:[#allocation12 + $0x58c] sm:$0xf]  ;;  %v12795_v18 = vld [vmem:[#allocation3 + $0x5c] sm:$0xf0]  ;;  %v10952_v36 = vld [vmem:[#allocation3 + $0x60] sm:$0xf0] }
 0x369   :  { %v4596_v43 = vpop.f32.mrf.mxu0  ;;  %v4625_v13 = vpop.f32.mrf.mxu1  ;;  %5395 = vmatpush.bf16.msra.mxu2 %v10803_v9  ;;  %v10768_v9 = vld [vmem:[#allocation12 + $0x498] sm:$0xf0] }
 0x36a   :  { %v15288_v5 = vadd.f32 %v4625_v13, %v4596_v43  ;;  %v10915_v13 = vor.u32 %v12783_v34, %v10912_v26  ;;  %v10950_v26 = vld [vmem:[#allocation3 + $0x58] sm:$0xf] }
 0x36b   :  { %5424 = vmatpush.bf16.msra.mxu3 %v10931_v56 }
 0x36d   :  { %5396 = vmatpush.bf16.msra.mxu2 %v10787_v6 }
 0x36e   :  { %v3957_v63 = vpop.f32.mrf.mxu2  ;;  %v3986_v22 = vpop.f32.mrf.mxu3 }
 0x36f   :  { %v15290_v24 = vadd.f32 %v3986_v22, %v3957_v63  ;;  %5425 = vmatpush.bf16.msra.mxu3 %v10915_v13  ;;  %v10771_v63 = vor.u32 %v12747_v54, %v10768_v9  ;;  %v10896_v22 = vld [vmem:[#allocation12 + $0x598] sm:$0xf0]  ;;  %v12775_v54 = vld [vmem:[#allocation12 + $0x56c] sm:$0xf] }
 0x371   :  { %v4599_v17 = vpop.f32.mrf.mxu0  ;;  %v4628_v41 = vpop.f32.mrf.mxu1  ;;  %5397 = vmatpush.bf16.msra.mxu2 %v10771_v63  ;;  %v11102_v63 = vld [vmem:[#allocation12 + $0x6e8] sm:$0xf] }
 0x372   :  { %v4629_v53 = vadd.f32 %v4628_v41, %v4599_v17  ;;  %v10899_v41 = vor.u32 %v12779_v47, %v10896_v22  ;;  %v10880_v47 = vld [vmem:[#allocation12 + $0x578] sm:$0xf0]  ;;  %v12833_v22 = vld [vmem:[#allocation12 + $0x6f4] sm:$0xf0] }
 0x373   :  { %4656 = vmatmul.bf16.gmra.mxu2 %v15130_v59  ;;  %4685 = vmatmul.bf16.gmra.mxu3 %v15132_v14 }
 0x374   :  { %v15295_v46 = vadd.f32 %v4629_v53, %v15172_v28  ;;  %5359 = vmatmul.bf16.gmra.mxu0 %v15235_v25  ;;  %5388 = vmatmul.bf16.gmra.mxu1 %v15237_v62 }
 0x375   :  { %5426 = vmatpush.bf16.msra.mxu3 %v10899_v41  ;;  %v10883_v41 = vor.u32 %v12775_v54, %v10880_v47 }
 0x376   :  { %v3960_v3 = vpop.f32.mrf.mxu2  ;;  %v3989_v43 = vpop.f32.mrf.mxu3 }
 0x377   :  { %v15299_v45 = vadd.f32 %v3989_v43, %v3960_v3  ;;  %v12794_v3 = vld [vmem:[#allocation3 + $0x5c] sm:$0xf]  ;;  %v15306_v43 = vor.u32 %v12795_v18, %v10950_v26  ;;  %v11103_v18 = vor.u32 %v12833_v22, %v11102_v63  ;;  %v3803_v26 = vadd.f32 %v15126_v38, %v15124_v8  ;;  %v11086_v63 = vld [vmem:[#allocation12 + $0x6c8] sm:$0xf]  ;;  %v12739_v38 = vld [vmem:[#allocation12 + $0x44c] sm:$0xf] }
 0x378   :  { %v15308_v13 = vor.u32 %v12794_v3, %v10952_v36  ;;  %v11230_v36 = vld [vmem:[#allocation12 + $0x7e8] sm:$0xf]  ;;  %v12829_v22 = vld [vmem:[#allocation12 + $0x6d4] sm:$0xf0] }
 0x379   :  { %v4601_v59 = vpop.f32.mrf.mxu0  ;;  %v4630_v14 = vpop.f32.mrf.mxu1  ;;  %5427 = vmatpush.bf16.msra.mxu3 %v10883_v41  ;;  %6097 = vmatpush.bf16.msrb.mxu0 %v11103_v18  ;;  %v12861_v8 = vld [vmem:[#allocation12 + $0x7d4] sm:$0xf0]  ;;  %v10736_v41 = vld [vmem:[#allocation12 + $0x458] sm:$0xf0] }
 0x37a   :  { %v4631_v28 = vadd.f32 %v4630_v14, %v4601_v59  ;;  %v12743_v14 = vld [vmem:[#allocation12 + $0x46c] sm:$0xf] }
 0x37c   :  { %v15302_v58 = vadd.f32 %v4631_v28, %v15180_v33  ;;  %v10752_v28 = vld [vmem:[#allocation12 + $0x478] sm:$0xf0] }
 0x37d   :  { %v10755_v9 = vor.u32 %v12743_v14, %v10752_v28  ;;  %v4727_v28 = vadd.f32 %v15197_v35, %v3803_v26 }
 0x37e   :  { %v3962_v56 = vpop.f32.mrf.mxu2  ;;  %v3991_v17 = vpop.f32.mrf.mxu3 }
 0x37f   :  { %v15304_v53 = vadd.f32 %v3991_v17, %v3962_v56  ;;  %5398 = vmatpush.bf16.msra.mxu2 %v10755_v9  ;;  %v11214_v9 = vld [vmem:[#allocation12 + $0x7c8] sm:$0xf] }
 0x381   :  { %16152 = vst [vmem:[#allocation33_spill] sm:$0xff] %v15304_v53  ;;  %v5229_v34 = vpop.f32.mrf.mxu0  ;;  %v5258_v6 = vpop.f32.mrf.mxu1  ;;  %v12796_v53 = vld [vmem:[#allocation3 + $0x6c] sm:$0xf] }
 0x382   :  { %v5259_v33 = vadd.f32 %v5258_v6, %v5229_v34  ;;  %v12865_v34 = vld [vmem:[#allocation12 + $0x7f4] sm:$0xf0] }
 0x383   :  { %5286 = vmatmul.bf16.vlgmr.msrb.gmra.mxu2 %v15184_v48  ;;  %5315 = vmatmul.bf16.vlgmr.msrb.gmra.mxu3 %v15186_v16 }
 0x384   :  { %v15313_v59 = vadd.f32 %v5259_v33, %v15191_v27  ;;  %5989 = vmatmul.bf16.vlgmr.msra.gmra.mxu0 %v15306_v43  ;;  %6018 = vmatmul.bf16.vlgmr.msra.gmra.mxu1 %v15308_v13  ;;  %v11231_v27 = vor.u32 %v12865_v34, %v11230_v36  ;;  %v11087_v36 = vor.u32 %v12829_v22, %v11086_v63 }
 0x385   :  { %v11215_v34 = vor.u32 %v12861_v8, %v11214_v9 }
 0x386   :  { %16153 = vst [vmem:[#allocation35_spill] sm:$0xff] %v15313_v59  ;;  %v4526_v56 = vpop.f32.mrf.mxu2  ;;  %v4555_v17 = vpop.f32.mrf.mxu3  ;;  %6126 = vmatpush.bf16.msrb.mxu1 %v11231_v27  ;;  %v10864_v27 = vld [vmem:[#allocation12 + $0x558] sm:$0xf0]  ;;  %v11070_v59 = vld [vmem:[#allocation12 + $0x6a8] sm:$0xf]  ;;  %6098 = vmatpush.bf16.msrb.mxu0 %v11087_v36 }
 0x387   :  { %v4556_v6 = vadd.f32 %v4555_v17, %v4526_v56  ;;  %v12797_v56 = vld [vmem:[#allocation3 + $0x6c] sm:$0xf0]  ;;  %v10960_v17 = vld [vmem:[#allocation3 + $0x70] sm:$0xf0] }
 0x388   :  { %v15330_v36 = vor.u32 %v12796_v53, %v10960_v17  ;;  %v12735_v53 = vld [vmem:[#allocation12 + $0x42c] sm:$0xf]  ;;  %v10720_v17 = vld [vmem:[#allocation12 + $0x438] sm:$0xf0] }
 0x389   :  { %v15320_v3 = vadd.f32 %v4556_v6, %v15195_v52  ;;  %v5231_v33 = vpop.f32.mrf.mxu0  ;;  %v5260_v14 = vpop.f32.mrf.mxu1  ;;  %v10739_v6 = vor.u32 %v12739_v38, %v10736_v41 }
 0x38a   :  { %v5261_v54 = vadd.f32 %v5260_v14, %v5231_v33  ;;  %v12825_v33 = vld [vmem:[#allocation12 + $0x6b4] sm:$0xf0]  ;;  %v11198_v14 = vld [vmem:[#allocation12 + $0x7a8] sm:$0xf]  ;;  %6127 = vmatpush.bf16.msrb.mxu1 %v11215_v34 }
 0x38b   :  { %16154 = vst [vmem:[#allocation48_spill] sm:$0xff] %v15320_v3  ;;  %v12771_v3 = vld [vmem:[#allocation12 + $0x54c] sm:$0xf]  ;;  %5399 = vmatpush.bf16.msra.mxu2 %v10739_v6  ;;  %v11071_v9 = vor.u32 %v12825_v33, %v11070_v59  ;;  %v11182_v59 = vld [vmem:[#allocation12 + $0x788] sm:$0xf] }
 0x38c   :  { %v15323_v47 = vadd.f32 %v5261_v54, %v4727_v28  ;;  %v10867_v26 = vor.u32 %v12771_v3, %v10864_v27  ;;  %v12857_v28 = vld [vmem:[#allocation12 + $0x7b4] sm:$0xf0]  ;;  %v10723_v27 = vor.u32 %v12735_v53, %v10720_v17 }
 0x38d   :  { %v11199_v8 = vor.u32 %v12857_v28, %v11198_v14  ;;  %6099 = vmatpush.bf16.msrb.mxu0 %v11071_v9  ;;  %v12817_v28 = vld [vmem:[#allocation12 + $0x674] sm:$0xf0]  ;;  %v3808_v9 = vadd.f32 %v15150_v19, %v15148_v44  ;;  %v12799_v44 = vld [vmem:[#allocation3 + $0x7c] sm:$0xf0]  ;;  %v10968_v19 = vld [vmem:[#allocation3 + $0x80] sm:$0xf0] }
 0x38e   :  { %16155 = vst [vmem:[#allocation49_spill] sm:$0xff] %v15323_v47  ;;  %v4528_v18 = vpop.f32.mrf.mxu2  ;;  %v4557_v52 = vpop.f32.mrf.mxu3  ;;  %v10958_v47 = vld [vmem:[#allocation3 + $0x68] sm:$0xf]  ;;  %5428 = vmatpush.bf16.msra.mxu3 %v10867_v26 }
 0x38f   :  { %v4558_v35 = vadd.f32 %v4557_v52, %v4528_v18  ;;  %v15328_v41 = vor.u32 %v12797_v56, %v10958_v47  ;;  %v12821_v18 = vld [vmem:[#allocation12 + $0x694] sm:$0xf0]  ;;  %6128 = vmatpush.bf16.msrb.mxu1 %v11199_v8  ;;  %v11038_v26 = vld [vmem:[#allocation12 + $0x668] sm:$0xf]  ;;  %5400 = vmatpush.bf16.msra.mxu2 %v10723_v27 }
 0x390   :  { %v12853_v56 = vld [vmem:[#allocation12 + $0x794] sm:$0xf0] }
 0x391   :  { %v15326_v54 = vadd.f32 %v4558_v35, %v15199_v55  ;;  %v5234_v63 = vpop.f32.mrf.mxu0  ;;  %v5263_v22 = vpop.f32.mrf.mxu1  ;;  %v11054_v55 = vld [vmem:[#allocation12 + $0x688] sm:$0xf]  ;;  %v11183_v6 = vor.u32 %v12853_v56, %v11182_v59  ;;  %v12767_v35 = vld [vmem:[#allocation12 + $0x52c] sm:$0xf]  ;;  %v4735_v56 = vadd.f32 %v15214_v23, %v3808_v9  ;;  %v12845_v27 = vld [vmem:[#allocation12 + $0x754] sm:$0xf0] }
 0x392   :  { %v5264_v38 = vadd.f32 %v5263_v22, %v5234_v63  ;;  %v11055_v47 = vor.u32 %v12821_v18, %v11054_v55  ;;  %v11166_v63 = vld [vmem:[#allocation12 + $0x768] sm:$0xf]  ;;  %v12849_v22 = vld [vmem:[#allocation12 + $0x774] sm:$0xf0]  ;;  %v11039_v18 = vor.u32 %v12817_v28, %v11038_v26  ;;  %v12763_v23 = vld [vmem:[#allocation12 + $0x50c] sm:$0xf] }
 0x393   :  { %5291 = vmatmul.bf16.gmra.mxu2 %v15201_v60  ;;  %5320 = vmatmul.bf16.gmra.mxu3 %v15203_v32  ;;  %v11167_v59 = vor.u32 %v12849_v22, %v11166_v63  ;;  %v10832_v63 = vld [vmem:[#allocation12 + $0x518] sm:$0xf0] }
 0x394   :  { %v15335_v3 = vadd.f32 %v5264_v38, %v15208_v29  ;;  %5994 = vmatmul.bf16.gmra.mxu0 %v15328_v41  ;;  %6023 = vmatmul.bf16.gmra.mxu1 %v15330_v36  ;;  %v10848_v29 = vld [vmem:[#allocation12 + $0x538] sm:$0xf0]  ;;  %v10835_v9 = vor.u32 %v12763_v23, %v10832_v63  ;;  %v11096_v23 = vld [vmem:[#allocation12 + $0x6f0] sm:$0xf0] }
 0x395   :  { %v10851_v14 = vor.u32 %v12767_v35, %v10848_v29  ;;  %6100 = vmatpush.bf16.msrb.mxu0 %v11055_v47  ;;  %6129 = vmatpush.bf16.msrb.mxu1 %v11183_v6  ;;  %v11150_v35 = vld [vmem:[#allocation12 + $0x748] sm:$0xf]  ;;  %v12731_v29 = vld [vmem:[#allocation12 + $0x40c] sm:$0xf]  ;;  %v10704_v47 = vld [vmem:[#allocation12 + $0x418] sm:$0xf0] }
 0x396   :  { %v4531_v52 = vpop.f32.mrf.mxu2  ;;  %v4560_v34 = vpop.f32.mrf.mxu3  ;;  %v10707_v28 = vor.u32 %v12731_v29, %v10704_v47 }
 0x397   :  { %v4561_v33 = vadd.f32 %v4560_v34, %v4531_v52  ;;  %5429 = vmatpush.bf16.msra.mxu3 %v10851_v14  ;;  %v11022_v52 = vld [vmem:[#allocation12 + $0x648] sm:$0xf]  ;;  %v12813_v34 = vld [vmem:[#allocation12 + $0x654] sm:$0xf0] }
 0x398   :  { %v11006_v14 = vld [vmem:[#allocation12 + $0x628] sm:$0xf]  ;;  %5401 = vmatpush.bf16.msra.mxu2 %v10707_v28  ;;  %v12830_v28 = vld [vmem:[#allocation12 + $0x6e4] sm:$0xf] }
 0x399   :  { %v15342_v8 = vadd.f32 %v4561_v33, %v15212_v20  ;;  %v5236_v38 = vpop.f32.mrf.mxu0  ;;  %v5265_v55 = vpop.f32.mrf.mxu1  ;;  %6101 = vmatpush.bf16.msrb.mxu0 %v11039_v18  ;;  %6130 = vmatpush.bf16.msrb.mxu1 %v11167_v59  ;;  %v11023_v20 = vor.u32 %v12813_v34, %v11022_v52  ;;  %v11151_v33 = vor.u32 %v12845_v27, %v11150_v35  ;;  %v10966_v52 = vld [vmem:[#allocation3 + $0x78] sm:$0xf]  ;;  %v12798_v34 = vld [vmem:[#allocation3 + $0x7c] sm:$0xf] }
 0x39a   :  { %v5266_v53 = vadd.f32 %v5265_v55, %v5236_v38  ;;  %v12809_v38 = vld [vmem:[#allocation12 + $0x634] sm:$0xf0]  ;;  %v11134_v55 = vld [vmem:[#allocation12 + $0x728] sm:$0xf]  ;;  %v15350_v47 = vor.u32 %v12799_v44, %v10966_v52 }
 0x39b   :  { %v11007_v35 = vor.u32 %v12809_v38, %v11006_v14  ;;  %5430 = vmatpush.bf16.msra.mxu3 %v10835_v9  ;;  %v11099_v9 = vor.u32 %v12830_v28, %v11096_v23  ;;  %v12862_v38 = vld [vmem:[#allocation12 + $0x7e4] sm:$0xf]  ;;  %v11208_v28 = vld [vmem:[#allocation12 + $0x7d0] sm:$0xf0] }
 0x39c   :  { %v15345_v17 = vadd.f32 %v5266_v53, %v4735_v56  ;;  %v12841_v56 = vld [vmem:[#allocation12 + $0x734] sm:$0xf0] }
 0x39d   :  { %6102 = vmatpush.bf16.msrb.mxu0 %v11023_v20  ;;  %6131 = vmatpush.bf16.msrb.mxu1 %v11151_v33  ;;  %v11135_v27 = vor.u32 %v12841_v56, %v11134_v55  ;;  %v10990_v20 = vld [vmem:[#allocation12 + $0x608] sm:$0xf] }
 0x39e   :  { %v4533_v6 = vpop.f32.mrf.mxu2  ;;  %v4562_v26 = vpop.f32.mrf.mxu3  ;;  %v11118_v33 = vld [vmem:[#allocation12 + $0x708] sm:$0xf]  ;;  %6039 = vmatpush.bf16.msrb.mxu2 %v11099_v9 }
 0x39f   :  { %v4563_v22 = vadd.f32 %v4562_v26, %v4533_v6  ;;  %v15352_v6 = vor.u32 %v12798_v34, %v10968_v19  ;;  %v12805_v26 = vld [vmem:[#allocation12 + $0x614] sm:$0xf0]  ;;  %v10974_v9 = vld [vmem:[#allocation3 + $0x88] sm:$0xf] }
 0x3a0   :  { %v10991_v44 = vor.u32 %v12805_v26, %v10990_v20  ;;  %v12837_v19 = vld [vmem:[#allocation12 + $0x714] sm:$0xf0]  ;;  %v12826_v20 = vld [vmem:[#allocation12 + $0x6c4] sm:$0xf]  ;;  %v11080_v26 = vld [vmem:[#allocation12 + $0x6d0] sm:$0xf0] }
 0x3a1   :  { %v15348_v18 = vadd.f32 %v4563_v22, %v15216_v49  ;;  %v5239_v59 = vpop.f32.mrf.mxu0  ;;  %v5268_v53 = vpop.f32.mrf.mxu1  ;;  %6103 = vmatpush.bf16.msrb.mxu0 %v11007_v35  ;;  %6132 = vmatpush.bf16.msrb.mxu1 %v11135_v27  ;;  %v11119_v22 = vor.u32 %v12837_v19, %v11118_v33  ;;  %v12858_v33 = vld [vmem:[#allocation12 + $0x7c4] sm:$0xf]  ;;  %v11083_v19 = vor.u32 %v12826_v20, %v11080_v26 }
 0x3a2   :  { %v5269_v29 = vadd.f32 %v5268_v53, %v5239_v59  ;;  %v3813_v59 = vadd.f32 %v15170_v31, %v15168_v15  ;;  %v11211_v23 = vor.u32 %v12858_v33, %v11208_v28 }
 0x3a3   :  { %5296 = vmatmul.bf16.gmra.mxu2 %v15218_v7  ;;  %5325 = vmatmul.bf16.gmra.mxu3 %v15220_v42 }
 0x3a4   :  { %v15357_v49 = vadd.f32 %v5269_v29, %v15225_v61  ;;  %5999 = vmatmul.bf16.gmra.mxu0 %v15350_v47  ;;  %6028 = vmatmul.bf16.gmra.mxu1 %v15352_v6  ;;  %v11224_v61 = vld [vmem:[#allocation12 + $0x7f0] sm:$0xf0]  ;;  %v4743_v35 = vadd.f32 %v15231_v12, %v3813_v59 }
 0x3a5   :  { %v11227_v56 = vor.u32 %v12862_v38, %v11224_v61  ;;  %6104 = vmatpush.bf16.msrb.mxu0 %v10991_v44  ;;  %6133 = vmatpush.bf16.msrb.mxu1 %v11119_v22  ;;  %v12800_v38 = vld [vmem:[#allocation3 + $0x8c] sm:$0xf] }
 0x3a6   :  { %v4536_v63 = vpop.f32.mrf.mxu2  ;;  %v4565_v14 = vpop.f32.mrf.mxu3  ;;  %6040 = vmatpush.bf16.msrb.mxu2 %v11083_v19 }
 0x3a7   :  { %v4566_v55 = vadd.f32 %v4565_v14, %v4536_v63  ;;  %6068 = vmatpush.bf16.msrb.mxu3 %v11227_v56  ;;  %v12801_v63 = vld [vmem:[#allocation3 + $0x8c] sm:$0xf0]  ;;  %v10976_v14 = vld [vmem:[#allocation3 + $0x90] sm:$0xf0] }
 0x3a8   :  { %v15374_v56 = vor.u32 %v12800_v38, %v10976_v14  ;;  %v12850_v14 = vld [vmem:[#allocation12 + $0x784] sm:$0xf] }
 0x3a9   :  { %v15364_v53 = vadd.f32 %v4566_v55, %v15229_v11  ;;  %v5241_v52 = vpop.f32.mrf.mxu0  ;;  %v5270_v34 = vpop.f32.mrf.mxu1  ;;  %v15372_v55 = vor.u32 %v12801_v63, %v10974_v9  ;;  %v11048_v63 = vld [vmem:[#allocation12 + $0x690] sm:$0xf0] }
 0x3aa   :  { %v5271_v27 = vadd.f32 %v5270_v34, %v5241_v52  ;;  %v11064_v52 = vld [vmem:[#allocation12 + $0x6b0] sm:$0xf0]  ;;  %v12854_v34 = vld [vmem:[#allocation12 + $0x7a4] sm:$0xf] }
 0x3ab   :  { %6069 = vmatpush.bf16.msrb.mxu3 %v11211_v23 }
 0x3ac   :  { %v15367_v29 = vadd.f32 %v5271_v27, %v4743_v35  ;;  %v11192_v27 = vld [vmem:[#allocation12 + $0x7b0] sm:$0xf0] }
 0x3ad   :  { %v11195_v33 = vor.u32 %v12854_v34, %v11192_v27  ;;  %v12814_v27 = vld [vmem:[#allocation12 + $0x664] sm:$0xf] }
 0x3ae   :  { %v4538_v15 = vpop.f32.mrf.mxu2  ;;  %v4567_v31 = vpop.f32.mrf.mxu3 }
 0x3af   :  { %v4568_v11 = vadd.f32 %v4567_v31, %v4538_v15  ;;  %6070 = vmatpush.bf16.msrb.mxu3 %v11195_v33 }
 0x3b1   :  { %v15370_v44 = vadd.f32 %v4568_v11, %v15233_v51  ;;  %v5244_v12 = vpop.f32.mrf.mxu0  ;;  %v5273_v22 = vpop.f32.mrf.mxu1  ;;  %v12822_v51 = vld [vmem:[#allocation12 + $0x6a4] sm:$0xf] }
 0x3b2   :  { %v5274_v61 = vadd.f32 %v5273_v22, %v5244_v12  ;;  %v11067_v35 = vor.u32 %v12822_v51, %v11064_v52  ;;  %v12818_v11 = vld [vmem:[#allocation12 + $0x684] sm:$0xf]  ;;  %v11176_v22 = vld [vmem:[#allocation12 + $0x790] sm:$0xf0] }
 0x3b3   :  { %5301 = vmatmul.bf16.gmra.mxu2 %v15235_v25  ;;  %5330 = vmatmul.bf16.gmra.mxu3 %v15237_v62  ;;  %v11051_v12 = vor.u32 %v12818_v11, %v11048_v63  ;;  %v11510_v63 = vld [vmem:[#allocation12 + $0x9e0] sm:$0xf] }
 0x3b4   :  { %v15379_v59 = vadd.f32 %v5274_v61, %v15242_v2  ;;  %6004 = vmatmul.bf16.gmra.mxu0 %v15372_v55  ;;  %6033 = vmatmul.bf16.gmra.mxu1 %v15374_v56  ;;  %v11179_v61 = vor.u32 %v12850_v14, %v11176_v22 }
 0x3b5   :  { %6041 = vmatpush.bf16.msrb.mxu2 %v11067_v35 }
 0x3b6   :  { %v4541_v20 = vpop.f32.mrf.mxu2  ;;  %v4570_v26 = vpop.f32.mrf.mxu3  ;;  %6071 = vmatpush.bf16.msrb.mxu3 %v11179_v61 }
 0x3b7   :  { %v4571_v19 = vadd.f32 %v4570_v26, %v4541_v20  ;;  %v11032_v20 = vld [vmem:[#allocation12 + $0x670] sm:$0xf0]  ;;  %v12846_v26 = vld [vmem:[#allocation12 + $0x764] sm:$0xf] }
 0x3b8   :  { %v11035_v33 = vor.u32 %v12814_v27, %v11032_v20  ;;  %v11366_v20 = vld [vmem:[#allocation12 + $0x8c0] sm:$0xf] }
 0x3b9   :  { %v15384_v28 = vadd.f32 %v4571_v19, %v15246_v1  ;;  %v5246_v2 = vpop.f32.mrf.mxu0  ;;  %v5275_v15 = vpop.f32.mrf.mxu1  ;;  %6042 = vmatpush.bf16.msrb.mxu2 %v11051_v12  ;;  %v11382_v19 = vld [vmem:[#allocation12 + $0x8e0] sm:$0xf] }
 0x3ba   :  { %v5276_v31 = vadd.f32 %v5275_v15, %v5246_v2  ;;  %v12904_v2 = vld [vmem:[#allocation12 + $0x8ec] sm:$0xf0]  ;;  %v16156_v12 = vld [vmem:[#allocation30_spill] sm:$0xff] }
 0x3bb   :  { %v3919_v22 = vadd.f32 %v16156_v12, %v15120_v40  ;;  %v11016_v40 = vld [vmem:[#allocation12 + $0x650] sm:$0xf0] }
 0x3bc   :  { %v15387_v23 = vadd.f32 %v5276_v31, %v15249_v21 }
 0x3bd   :  { %6043 = vmatpush.bf16.msrb.mxu2 %v11035_v33  ;;  %v11494_v33 = vld [vmem:[#allocation12 + $0x9c0] sm:$0xf] }
 0x3be   :  { %v4543_v9 = vpop.f32.mrf.mxu2  ;;  %v4572_v38 = vpop.f32.mrf.mxu3 }
 0x3bf   :  { %v4573_v51 = vadd.f32 %v4572_v38, %v4543_v9  ;;  %v16157_v9 = vld [vmem:[#allocation45_spill] sm:$0xff] }
 0x3c1   :  { %v15390_v1 = vadd.f32 %v4573_v51, %v15251_v57  ;;  %v5345_v52 = vpop.f32.mrf.mxu0  ;;  %v5374_v34 = vpop.f32.mrf.mxu1  ;;  %v11160_v57 = vld [vmem:[#allocation12 + $0x770] sm:$0xf0] }
 0x3c2   :  { %v5375_v35 = vadd.f32 %v5374_v34, %v5345_v52  ;;  %v11163_v11 = vor.u32 %v12846_v26, %v11160_v57  ;;  %v16158_v52 = vld [vmem:[#allocation32_spill] sm:$0xff] }
 0x3c3   :  { %5402 = vmatmul.bf16.vlgmr.msra.gmra.mxu2 %v15184_v48  ;;  %5431 = vmatmul.bf16.vlgmr.msra.gmra.mxu3 %v15186_v16  ;;  %v11383_v48 = vor.u32 %v12904_v2, %v11382_v19  ;;  %v12936_v16 = vld [vmem:[#allocation12 + $0x9ec] sm:$0xf0]  ;;  %v4729_v34 = vadd.f32 %v16158_v52, %v3919_v22  ;;  %v12810_v2 = vld [vmem:[#allocation12 + $0x644] sm:$0xf] }
 0x3c4   :  { %v15395_v21 = vadd.f32 %v5375_v35, %v15256_v39  ;;  %6105 = vmatmul.bf16.vlgmr.msrb.gmra.mxu0 %v15306_v43  ;;  %6134 = vmatmul.bf16.vlgmr.msrb.gmra.mxu1 %v15308_v13  ;;  %v11511_v39 = vor.u32 %v12936_v16, %v11510_v63  ;;  %v12900_v26 = vld [vmem:[#allocation12 + $0x8cc] sm:$0xf0]  ;;  %v12842_v63 = vld [vmem:[#allocation12 + $0x744] sm:$0xf]  ;;  %v11144_v16 = vld [vmem:[#allocation12 + $0x750] sm:$0xf0] }
 0x3c5   :  { %6072 = vmatpush.bf16.msrb.mxu3 %v11163_v11  ;;  %6742 = vmatpush.bf16.msra.mxu0 %v11383_v48  ;;  %v11367_v57 = vor.u32 %v12900_v26, %v11366_v20  ;;  %v12932_v19 = vld [vmem:[#allocation12 + $0x9cc] sm:$0xf0]  ;;  %v11019_v48 = vor.u32 %v12810_v2, %v11016_v40  ;;  %v11147_v12 = vor.u32 %v12842_v63, %v11144_v16  ;;  %v12838_v63 = vld [vmem:[#allocation12 + $0x724] sm:$0xf]  ;;  %v11318_v16 = vld [vmem:[#allocation12 + $0x860] sm:$0xf] }
 0x3c6   :  { %v4642_v15 = vpop.f32.mrf.mxu2  ;;  %v4671_v31 = vpop.f32.mrf.mxu3  ;;  %6771 = vmatpush.bf16.msra.mxu1 %v11511_v39  ;;  %v11495_v11 = vor.u32 %v12932_v19, %v11494_v33  ;;  %v12896_v22 = vld [vmem:[#allocation12 + $0x8ac] sm:$0xf0]  ;;  %v11462_v19 = vld [vmem:[#allocation12 + $0x980] sm:$0xf] }
 0x3c7   :  { %v4672_v14 = vadd.f32 %v4671_v31, %v4642_v15  ;;  %6044 = vmatpush.bf16.msrb.mxu2 %v11019_v48  ;;  %v12924_v40 = vld [vmem:[#allocation12 + $0x98c] sm:$0xf0] }
 0x3c8   :  { %v11463_v48 = vor.u32 %v12924_v40, %v11462_v19 }
 0x3c9   :  { %v15402_v38 = vadd.f32 %v4672_v14, %v16157_v9  ;;  %v5347_v61 = vpop.f32.mrf.mxu0  ;;  %v5376_v51 = vpop.f32.mrf.mxu1  ;;  %v11350_v14 = vld [vmem:[#allocation12 + $0x8a0] sm:$0xf]  ;;  %6743 = vmatpush.bf16.msra.mxu0 %v11367_v57  ;;  %6073 = vmatpush.bf16.msrb.mxu3 %v11147_v12  ;;  %v12888_v12 = vld [vmem:[#allocation12 + $0x86c] sm:$0xf0] }
 0x3ca   :  { %v5377_v35 = vadd.f32 %v5376_v51, %v5347_v61  ;;  %v11478_v9 = vld [vmem:[#allocation12 + $0x9a0] sm:$0xf]  ;;  %v12928_v61 = vld [vmem:[#allocation12 + $0x9ac] sm:$0xf0]  ;;  %6772 = vmatpush.bf16.msra.mxu1 %v11495_v11 }
 0x3cb   :  { %v11479_v20 = vor.u32 %v12928_v61, %v11478_v9  ;;  %v11334_v57 = vld [vmem:[#allocation12 + $0x880] sm:$0xf]  ;;  %v12920_v9 = vld [vmem:[#allocation12 + $0x96c] sm:$0xf0]  ;;  %v16159_v61 = vld [vmem:[#allocation31_spill] sm:$0xff] }
 0x3cc   :  { %v15405_v27 = vadd.f32 %v5377_v35, %v4729_v34  ;;  %v11351_v35 = vor.u32 %v12896_v22, %v11350_v14  ;;  %v11446_v22 = vld [vmem:[#allocation12 + $0x960] sm:$0xf] }
 0x3cd   :  { %v11447_v19 = vor.u32 %v12920_v9, %v11446_v22  ;;  %v11112_v22 = vld [vmem:[#allocation12 + $0x710] sm:$0xf0] }
 0x3ce   :  { %v4644_v15 = vpop.f32.mrf.mxu2  ;;  %v4673_v31 = vpop.f32.mrf.mxu3  ;;  %6744 = vmatpush.bf16.msra.mxu0 %v11351_v35  ;;  %6773 = vmatpush.bf16.msra.mxu1 %v11479_v20  ;;  %v16161_v35 = vld [vmem:[#allocation34_spill] sm:$0xff] }
 0x3cf   :  { %v4674_v39 = vadd.f32 %v4673_v31, %v4644_v15  ;;  %v12806_v15 = vld [vmem:[#allocation12 + $0x624] sm:$0xf]  ;;  %v11000_v31 = vld [vmem:[#allocation12 + $0x630] sm:$0xf0] }
 0x3d1   :  { %v15408_v51 = vadd.f32 %v4674_v39, %v15264_v4  ;;  %v5350_v52 = vpop.f32.mrf.mxu0  ;;  %v5379_v34 = vpop.f32.mrf.mxu1  ;;  %v12892_v4 = vld [vmem:[#allocation12 + $0x88c] sm:$0xf0] }
 0x3d2   :  { %v5380_v26 = vadd.f32 %v5379_v34, %v5350_v52  ;;  %v11335_v2 = vor.u32 %v12892_v4, %v11334_v57  ;;  %v16160_v52 = vld [vmem:[#allocation42_spill] sm:$0xff]  ;;  %6774 = vmatpush.bf16.msra.mxu1 %v11463_v48  ;;  %v11319_v4 = vor.u32 %v12888_v12, %v11318_v16  ;;  %v12834_v12 = vld [vmem:[#allocation12 + $0x704] sm:$0xf] }
 0x3d3   :  { %5407 = vmatmul.bf16.gmra.mxu2 %v15201_v60  ;;  %5436 = vmatmul.bf16.gmra.mxu3 %v15203_v32  ;;  %v11003_v32 = vor.u32 %v12806_v15, %v11000_v31  ;;  %v3924_v34 = vadd.f32 %v16160_v52, %v16159_v61  ;;  %v10984_v61 = vld [vmem:[#allocation12 + $0x610] sm:$0xf0] }
 0x3d4   :  { %v15413_v33 = vadd.f32 %v5380_v26, %v15269_v37  ;;  %6110 = vmatmul.bf16.gmra.mxu0 %v15328_v41  ;;  %6139 = vmatmul.bf16.gmra.mxu1 %v15330_v36  ;;  %v11128_v37 = vld [vmem:[#allocation12 + $0x730] sm:$0xf0] }
 0x3d5   :  { %v11131_v39 = vor.u32 %v12838_v63, %v11128_v37  ;;  %6045 = vmatpush.bf16.msrb.mxu2 %v11003_v32  ;;  %6745 = vmatpush.bf16.msra.mxu0 %v11335_v2  ;;  %v4737_v40 = vadd.f32 %v15275_v30, %v3924_v34  ;;  %v11430_v63 = vld [vmem:[#allocation12 + $0x940] sm:$0xf]  ;;  %v12916_v37 = vld [vmem:[#allocation12 + $0x94c] sm:$0xf0] }
 0x3d6   :  { %v4647_v11 = vpop.f32.mrf.mxu2  ;;  %v4676_v60 = vpop.f32.mrf.mxu3  ;;  %6775 = vmatpush.bf16.msra.mxu1 %v11447_v19  ;;  %v11431_v48 = vor.u32 %v12916_v37, %v11430_v63  ;;  %v11286_v30 = vld [vmem:[#allocation12 + $0x820] sm:$0xf]  ;;  %v12880_v34 = vld [vmem:[#allocation12 + $0x82c] sm:$0xf0] }
 0x3d7   :  { %v4677_v14 = vadd.f32 %v4676_v60, %v4647_v11  ;;  %6074 = vmatpush.bf16.msrb.mxu3 %v11131_v39  ;;  %v11302_v11 = vld [vmem:[#allocation12 + $0x840] sm:$0xf]  ;;  %v12884_v60 = vld [vmem:[#allocation12 + $0x84c] sm:$0xf0]  ;;  %v11115_v39 = vor.u32 %v12834_v12, %v11112_v22 }
 0x3d8   :  { %v11303_v32 = vor.u32 %v12884_v60, %v11302_v11  ;;  %v12876_v63 = vld [vmem:[#allocation12 + $0x80c] sm:$0xf0]  ;;  %v11398_v37 = vld [vmem:[#allocation12 + $0x900] sm:$0xf] }
 0x3d9   :  { %v15420_v20 = vadd.f32 %v4677_v14, %v16161_v35  ;;  %v5352_v26 = vpop.f32.mrf.mxu0  ;;  %v5381_v57 = vpop.f32.mrf.mxu1  ;;  %6746 = vmatpush.bf16.msra.mxu0 %v11319_v4  ;;  %v12802_v14 = vld [vmem:[#allocation12 + $0x604] sm:$0xf]  ;;  %v11414_v35 = vld [vmem:[#allocation12 + $0x920] sm:$0xf] }
 0x3da   :  { %v5382_v15 = vadd.f32 %v5381_v57, %v5352_v26  ;;  %v10987_v16 = vor.u32 %v12802_v14, %v10984_v61  ;;  %v12912_v26 = vld [vmem:[#allocation12 + $0x92c] sm:$0xf0]  ;;  %6776 = vmatpush.bf16.msra.mxu1 %v11431_v48  ;;  %v12831_v61 = vld [vmem:[#allocation12 + $0x6ec] sm:$0xf] }
 0x3db   :  { %6075 = vmatpush.bf16.msrb.mxu3 %v11115_v39  ;;  %v12908_v14 = vld [vmem:[#allocation12 + $0x90c] sm:$0xf0] }
 0x3dc   :  { %v15423_v31 = vadd.f32 %v5382_v15, %v4737_v40  ;;  %6046 = vmatpush.bf16.msrb.mxu2 %v10987_v16  ;;  %v11287_v40 = vor.u32 %v12880_v34, %v11286_v30  ;;  %v11415_v15 = vor.u32 %v12912_v26, %v11414_v35  ;;  %v11399_v48 = vor.u32 %v12908_v14, %v11398_v37  ;;  %v12863_v16 = vld [vmem:[#allocation12 + $0x7ec] sm:$0xf]  ;;  %v16162_v30 = vld [vmem:[#allocation43_spill] sm:$0xff]  ;;  %v11216_v37 = vld [vmem:[#allocation12 + $0x7d8] sm:$0xf0] }
 0x3dd   :  { %6747 = vmatpush.bf16.msra.mxu0 %v11303_v32 }
 0x3de   :  { %v4649_v52 = vpop.f32.mrf.mxu2  ;;  %v4678_v2 = vpop.f32.mrf.mxu3  ;;  %6777 = vmatpush.bf16.msra.mxu1 %v11415_v15  ;;  %v12827_v15 = vld [vmem:[#allocation12 + $0x6cc] sm:$0xf] }
 0x3df   :  { %v4679_v9 = vadd.f32 %v4678_v2, %v4649_v52  ;;  %v11104_v52 = vld [vmem:[#allocation12 + $0x6f8] sm:$0xf0] }
 0x3e1   :  { %v15426_v57 = vadd.f32 %v4679_v9, %v15277_v0  ;;  %v5355_v4 = vpop.f32.mrf.mxu0  ;;  %v5384_v19 = vpop.f32.mrf.mxu1  ;;  %v11270_v0 = vld [vmem:[#allocation12 + $0x800] sm:$0xf]  ;;  %6748 = vmatpush.bf16.msra.mxu0 %v11287_v40  ;;  %v16163_v9 = vld [vmem:[#allocation44_spill] sm:$0xff] }
 0x3e2   :  { %v5385_v11 = vadd.f32 %v5384_v19, %v5355_v4  ;;  %v11271_v32 = vor.u32 %v12876_v63, %v11270_v0  ;;  %v3929_v39 = vadd.f32 %v16163_v9, %v16162_v30  ;;  %6778 = vmatpush.bf16.msra.mxu1 %v11399_v48  ;;  %v12859_v0 = vld [vmem:[#allocation12 + $0x7cc] sm:$0xf] }
 0x3e3   :  { %5412 = vmatmul.bf16.gmra.mxu2 %v15218_v7  ;;  %5441 = vmatmul.bf16.gmra.mxu3 %v15220_v42  ;;  %v11107_v42 = vor.u32 %v12831_v61, %v11104_v52  ;;  %v11219_v52 = vor.u32 %v12859_v0, %v11216_v37  ;;  %v11184_v0 = vld [vmem:[#allocation12 + $0x798] sm:$0xf0] }
 0x3e4   :  { %v15431_v60 = vadd.f32 %v5385_v11, %v15282_v10  ;;  %6115 = vmatmul.bf16.gmra.mxu0 %v15350_v47  ;;  %6144 = vmatmul.bf16.gmra.mxu1 %v15352_v6  ;;  %v11232_v10 = vld [vmem:[#allocation12 + $0x7f8] sm:$0xf0]  ;;  %v4745_v4 = vadd.f32 %v15288_v5, %v3929_v39 }
 0x3e5   :  { %v11235_v22 = vor.u32 %v12863_v16, %v11232_v10  ;;  %6155 = vmatpush.bf16.msra.mxu2 %v11107_v42  ;;  %6749 = vmatpush.bf16.msra.mxu0 %v11271_v32  ;;  %v11088_v11 = vld [vmem:[#allocation12 + $0x6d8] sm:$0xf0]  ;;  %v12823_v42 = vld [vmem:[#allocation12 + $0x6ac] sm:$0xf] }
 0x3e6   :  { %v4652_v2 = vpop.f32.mrf.mxu2  ;;  %v4681_v7 = vpop.f32.mrf.mxu3  ;;  %v11091_v63 = vor.u32 %v12827_v15, %v11088_v11  ;;  %v11072_v16 = vld [vmem:[#allocation12 + $0x6b8] sm:$0xf0]  ;;  %v12855_v10 = vld [vmem:[#allocation12 + $0x7ac] sm:$0xf] }
 0x3e7   :  { %v4682_v12 = vadd.f32 %v4681_v7, %v4652_v2  ;;  %6184 = vmatpush.bf16.msra.mxu3 %v11235_v22  ;;  %v12851_v15 = vld [vmem:[#allocation12 + $0x78c] sm:$0xf] }
 0x3e9   :  { %v15438_v34 = vadd.f32 %v4682_v12, %v15286_v50  ;;  %v5357_v35 = vpop.f32.mrf.mxu0  ;;  %v5386_v26 = vpop.f32.mrf.mxu1  ;;  %6156 = vmatpush.bf16.msra.mxu2 %v11091_v63  ;;  %v11075_v12 = vor.u32 %v12823_v42, %v11072_v16  ;;  %v12866_v42 = vld [vmem:[#allocation3 + $0x14] sm:$0xf] }
 0x3ea   :  { %v5387_v19 = vadd.f32 %v5386_v26, %v5357_v35 }
 0x3eb   :  { %6185 = vmatpush.bf16.msra.mxu3 %v11219_v52  ;;  %v12867_v52 = vld [vmem:[#allocation3 + $0x14] sm:$0xf0] }
 0x3ec   :  { %v15441_v40 = vadd.f32 %v5387_v19, %v4745_v4  ;;  %v12819_v4 = vld [vmem:[#allocation12 + $0x68c] sm:$0xf]  ;;  %v11056_v19 = vld [vmem:[#allocation12 + $0x698] sm:$0xf0] }
 0x3ed   :  { %6157 = vmatpush.bf16.msra.mxu2 %v11075_v12  ;;  %v11059_v11 = vor.u32 %v12819_v4, %v11056_v19  ;;  %v12905_v4 = vld [vmem:[#allocation12 + $0x8f4] sm:$0xf0] }
 0x3ee   :  { %v4654_v14 = vpop.f32.mrf.mxu2  ;;  %v4683_v61 = vpop.f32.mrf.mxu3 }
 0x3ef   :  { %v4684_v50 = vadd.f32 %v4683_v61, %v4654_v14  ;;  %v11187_v14 = vor.u32 %v12851_v15, %v11184_v0 }
 0x3f1   :  { %v15444_v32 = vadd.f32 %v4684_v50, %v15290_v24  ;;  %v5360_v2 = vpop.f32.mrf.mxu0  ;;  %v5389_v5 = vpop.f32.mrf.mxu1  ;;  %v11200_v24 = vld [vmem:[#allocation12 + $0x7b8] sm:$0xf0]  ;;  %6158 = vmatpush.bf16.msra.mxu2 %v11059_v11 }
 0x3f2   :  { %v5390_v7 = vadd.f32 %v5389_v5, %v5360_v2  ;;  %v11203_v9 = vor.u32 %v12855_v10, %v11200_v24  ;;  %v11240_v50 = vld [vmem:[#allocation3 + $0x18] sm:$0xf0]  ;;  %v16165_v24 = vld [vmem:[#allocation35_spill] sm:$0xff] }
 0x3f3   :  { %5417 = vmatmul.bf16.gmra.mxu2 %v15235_v25  ;;  %5446 = vmatmul.bf16.gmra.mxu3 %v15237_v62  ;;  %v15464_v12 = vor.u32 %v12866_v42, %v11240_v50 }
 0x3f4   :  { %v15449_v48 = vadd.f32 %v5390_v7, %v15295_v46  ;;  %6120 = vmatmul.bf16.gmra.mxu0 %v15372_v55  ;;  %6149 = vmatmul.bf16.gmra.mxu1 %v15374_v56 }
 0x3f5   :  { %6186 = vmatpush.bf16.msra.mxu3 %v11203_v9  ;;  %v11040_v9 = vld [vmem:[#allocation12 + $0x678] sm:$0xf0] }
 0x3f6   :  { %v4657_v22 = vpop.f32.mrf.mxu2  ;;  %v4686_v30 = vpop.f32.mrf.mxu3 }
 0x3f7   :  { %v4687_v39 = vadd.f32 %v4686_v30, %v4657_v22  ;;  %v12815_v30 = vld [vmem:[#allocation12 + $0x66c] sm:$0xf] }
 0x3f9   :  { %v15454_v25 = vadd.f32 %v4687_v39, %v15299_v45  ;;  %v5362_v62 = vpop.f32.mrf.mxu0  ;;  %v5391_v46 = vpop.f32.mrf.mxu1  ;;  %6187 = vmatpush.bf16.msra.mxu3 %v11187_v14  ;;  %v16164_v45 = vld [vmem:[#allocation33_spill] sm:$0xff]  ;;  %v12847_v39 = vld [vmem:[#allocation12 + $0x76c] sm:$0xf] }
 0x3fa   :  { %v5392_v35 = vadd.f32 %v5391_v46, %v5362_v62  ;;  %v11043_v62 = vor.u32 %v12815_v30, %v11040_v9  ;;  %v11168_v46 = vld [vmem:[#allocation12 + $0x778] sm:$0xf0]  ;;  %v11502_v30 = vld [vmem:[#allocation12 + $0x9c8] sm:$0xf] }
 0x3fb   :  { %v11171_v11 = vor.u32 %v12847_v39, %v11168_v46  ;;  %v12869_v9 = vld [vmem:[#allocation3 + $0x24] sm:$0xf0]  ;;  %v11248_v39 = vld [vmem:[#allocation3 + $0x28] sm:$0xf0] }
 0x3fc   :  { %v15457_v26 = vadd.f32 %v5392_v35, %v15302_v58  ;;  %v11238_v58 = vld [vmem:[#allocation3 + $0x10] sm:$0xf]  ;;  %v11390_v35 = vld [vmem:[#allocation12 + $0x8e8] sm:$0xf]  ;;  %6159 = vmatpush.bf16.msra.mxu2 %v11043_v62  ;;  %v12933_v62 = vld [vmem:[#allocation12 + $0x9d4] sm:$0xf0] }
 0x3fd   :  { %v15462_v10 = vor.u32 %v12867_v52, %v11238_v58  ;;  %v11391_v0 = vor.u32 %v12905_v4, %v11390_v35  ;;  %6188 = vmatpush.bf16.msra.mxu3 %v11171_v11  ;;  %v16167_v52 = vld [vmem:[#allocation48_spill] sm:$0xff]  ;;  %v16168_v58 = vld [vmem:[#allocation49_spill] sm:$0xff]  ;;  %v11024_v4 = vld [vmem:[#allocation12 + $0x658] sm:$0xf0]  ;;  %v11503_v11 = vor.u32 %v12933_v62, %v11502_v30 }
 0x3fe   :  { %v4659_v63 = vpop.f32.mrf.mxu2  ;;  %v4688_v37 = vpop.f32.mrf.mxu3  ;;  %v12811_v35 = vld [vmem:[#allocation12 + $0x64c] sm:$0xf] }
 0x3ff   :  { %v4689_v61 = vadd.f32 %v4688_v37, %v4659_v63  ;;  %v11518_v63 = vld [vmem:[#allocation12 + $0x9e8] sm:$0xf]  ;;  %v12937_v37 = vld [vmem:[#allocation12 + $0x9f4] sm:$0xf0]  ;;  %6858 = vmatpush.bf16.msrb.mxu0 %v11391_v0  ;;  %v11027_v0 = vor.u32 %v12811_v35, %v11024_v4 }
 0x401   :  { %v15460_v2 = vadd.f32 %v4689_v61, %v16164_v45  ;;  %v5990_v5 = vpop.f32.mrf.mxu0  ;;  %v6019_v7 = vpop.f32.mrf.mxu1  ;;  %v11519_v61 = vor.u32 %v12937_v37, %v11518_v63  ;;  %v12843_v63 = vld [vmem:[#allocation12 + $0x74c] sm:$0xf]  ;;  %v11152_v37 = vld [vmem:[#allocation12 + $0x758] sm:$0xf0]  ;;  %6160 = vmatpush.bf16.msra.mxu2 %v11027_v0 }
 0x402   :  { %v6020_v16 = vadd.f32 %v6019_v7, %v5990_v5 }
 0x403   :  { %6047 = vmatmul.bf16.vlgmr.msrb.gmra.mxu2 %v15306_v43  ;;  %6076 = vmatmul.bf16.vlgmr.msrb.gmra.mxu3 %v15308_v13 }
 0x404   :  { %v15469_v22 = vadd.f32 %v6020_v16, %v16165_v24  ;;  %6750 = vmatmul.bf16.vlgmr.msra.gmra.mxu0 %v15462_v10  ;;  %6779 = vmatmul.bf16.vlgmr.msra.gmra.mxu1 %v15464_v12  ;;  %v11374_v16 = vld [vmem:[#allocation12 + $0x8c8] sm:$0xf]  ;;  %v12901_v24 = vld [vmem:[#allocation12 + $0x8d4] sm:$0xf0] }
 0x405   :  { %6887 = vmatpush.bf16.msrb.mxu1 %v11519_v61  ;;  %v11375_v46 = vor.u32 %v12901_v24, %v11374_v16 }
 0x406   :  { %16166 = vst [vmem:[#allocation50_spill] sm:$0xff] %v15469_v22  ;;  %v5287_v19 = vpop.f32.mrf.mxu2  ;;  %v5316_v15 = vpop.f32.mrf.mxu3  ;;  %v12868_v22 = vld [vmem:[#allocation3 + $0x24] sm:$0xf] }
 0x407   :  { %v5317_v14 = vadd.f32 %v5316_v15, %v5287_v19  ;;  %6859 = vmatpush.bf16.msrb.mxu0 %v11375_v46  ;;  %v15484_v46 = vor.u32 %v12868_v22, %v11248_v39  ;;  %v12807_v22 = vld [vmem:[#allocation12 + $0x62c] sm:$0xf]  ;;  %v11008_v39 = vld [vmem:[#allocation12 + $0x638] sm:$0xf0] }
 0x409   :  { %v15474_v50 = vadd.f32 %v5317_v14, %v16167_v52  ;;  %v5992_v45 = vpop.f32.mrf.mxu0  ;;  %v6021_v5 = vpop.f32.mrf.mxu1  ;;  %v11358_v14 = vld [vmem:[#allocation12 + $0x8a8] sm:$0xf]  ;;  %v11155_v52 = vor.u32 %v12843_v63, %v11152_v37  ;;  %6888 = vmatpush.bf16.msrb.mxu1 %v11503_v11 }
 0x40a   :  { %v6022_v7 = vadd.f32 %v6021_v5, %v5992_v45  ;;  %v12897_v45 = vld [vmem:[#allocation12 + $0x8b4] sm:$0xf0]  ;;  %v11486_v5 = vld [vmem:[#allocation12 + $0x9a8] sm:$0xf] }
 0x40b   :  { %6189 = vmatpush.bf16.msra.mxu3 %v11155_v52  ;;  %v11359_v30 = vor.u32 %v12897_v45, %v11358_v14  ;;  %v11470_v11 = vld [vmem:[#allocation12 + $0x988] sm:$0xf]  ;;  %v11011_v14 = vor.u32 %v12807_v22, %v11008_v39  ;;  %v12885_v39 = vld [vmem:[#allocation12 + $0x854] sm:$0xf0] }
 0x40c   :  { %v15477_v42 = vadd.f32 %v6022_v7, %v16168_v58  ;;  %v12929_v7 = vld [vmem:[#allocation12 + $0x9b4] sm:$0xf0]  ;;  %v11326_v52 = vld [vmem:[#allocation12 + $0x868] sm:$0xf] }
 0x40d   :  { %v11487_v62 = vor.u32 %v12929_v7, %v11486_v5  ;;  %6860 = vmatpush.bf16.msrb.mxu0 %v11359_v30  ;;  %v12889_v7 = vld [vmem:[#allocation12 + $0x874] sm:$0xf0]  ;;  %6161 = vmatpush.bf16.msra.mxu2 %v11011_v14  ;;  %v11310_v22 = vld [vmem:[#allocation12 + $0x848] sm:$0xf] }
 0x40e   :  { %16169 = vst [vmem:[#allocation51_spill] sm:$0xff] %v15477_v42  ;;  %v5289_v19 = vpop.f32.mrf.mxu2  ;;  %v5318_v15 = vpop.f32.mrf.mxu3  ;;  %v11246_v42 = vld [vmem:[#allocation3 + $0x20] sm:$0xf]  ;;  %v12917_v14 = vld [vmem:[#allocation12 + $0x954] sm:$0xf0] }
 0x40f   :  { %v5319_v61 = vadd.f32 %v5318_v15, %v5289_v19  ;;  %v15482_v4 = vor.u32 %v12869_v9, %v11246_v42  ;;  %v12893_v15 = vld [vmem:[#allocation12 + $0x894] sm:$0xf0]  ;;  %6889 = vmatpush.bf16.msrb.mxu1 %v11487_v62 }
 0x410   :  { %v12925_v9 = vld [vmem:[#allocation12 + $0x994] sm:$0xf0] }
 0x411   :  { %v15480_v58 = vadd.f32 %v5319_v61, %v15326_v54  ;;  %v5995_v16 = vpop.f32.mrf.mxu0  ;;  %v6024_v24 = vpop.f32.mrf.mxu1  ;;  %v11342_v54 = vld [vmem:[#allocation12 + $0x888] sm:$0xf]  ;;  %v11471_v37 = vor.u32 %v12925_v9, %v11470_v11  ;;  %v12839_v61 = vld [vmem:[#allocation12 + $0x72c] sm:$0xf] }
 0x412   :  { %v6025_v35 = vadd.f32 %v6024_v24, %v5995_v16  ;;  %v11343_v42 = vor.u32 %v12893_v15, %v11342_v54  ;;  %v11454_v16 = vld [vmem:[#allocation12 + $0x968] sm:$0xf]  ;;  %v12921_v24 = vld [vmem:[#allocation12 + $0x974] sm:$0xf0]  ;;  %v11327_v54 = vor.u32 %v12889_v7, %v11326_v52 }
 0x413   :  { %6052 = vmatmul.bf16.gmra.mxu2 %v15328_v41  ;;  %6081 = vmatmul.bf16.gmra.mxu3 %v15330_v36  ;;  %v11455_v15 = vor.u32 %v12921_v24, %v11454_v16  ;;  %v12835_v16 = vld [vmem:[#allocation12 + $0x70c] sm:$0xf]  ;;  %v11294_v24 = vld [vmem:[#allocation12 + $0x828] sm:$0xf] }
 0x414   :  { %v15489_v19 = vadd.f32 %v6025_v35, %v15335_v3  ;;  %6755 = vmatmul.bf16.gmra.mxu0 %v15482_v4  ;;  %6784 = vmatmul.bf16.gmra.mxu1 %v15484_v46  ;;  %v11136_v3 = vld [vmem:[#allocation12 + $0x738] sm:$0xf0] }
 0x415   :  { %v11139_v5 = vor.u32 %v12839_v61, %v11136_v3  ;;  %6861 = vmatpush.bf16.msrb.mxu0 %v11343_v42  ;;  %6890 = vmatpush.bf16.msrb.mxu1 %v11471_v37  ;;  %v11256_v61 = vld [vmem:[#allocation3 + $0x38] sm:$0xf0]  ;;  %v12803_v3 = vld [vmem:[#allocation12 + $0x60c] sm:$0xf] }
 0x416   :  { %16170 = vst [vmem:[#allocation36_spill] sm:$0xff] %v15489_v19  ;;  %v5292_v0 = vpop.f32.mrf.mxu2  ;;  %v5321_v63 = vpop.f32.mrf.mxu3  ;;  %v12870_v19 = vld [vmem:[#allocation3 + $0x34] sm:$0xf] }
 0x417   :  { %v5322_v45 = vadd.f32 %v5321_v63, %v5292_v0  ;;  %6190 = vmatpush.bf16.msra.mxu3 %v11139_v5  ;;  %v11438_v0 = vld [vmem:[#allocation12 + $0x948] sm:$0xf]  ;;  %v12871_v63 = vld [vmem:[#allocation3 + $0x34] sm:$0xf0]  ;;  %v11120_v5 = vld [vmem:[#allocation12 + $0x718] sm:$0xf0] }
 0x418   :  { %v11439_v52 = vor.u32 %v12917_v14, %v11438_v0 }
 0x419   :  { %v15494_v30 = vadd.f32 %v5322_v45, %v15342_v8  ;;  %v5997_v62 = vpop.f32.mrf.mxu0  ;;  %v6026_v35 = vpop.f32.mrf.mxu1  ;;  %6862 = vmatpush.bf16.msrb.mxu0 %v11327_v54  ;;  %6891 = vmatpush.bf16.msrb.mxu1 %v11455_v15  ;;  %v11311_v8 = vor.u32 %v12885_v39, %v11310_v22  ;;  %v10992_v45 = vld [vmem:[#allocation12 + $0x618] sm:$0xf0]  ;;  %v11254_v39 = vld [vmem:[#allocation3 + $0x30] sm:$0xf] }
 0x41a   :  { %v6027_v11 = vadd.f32 %v6026_v35, %v5997_v62  ;;  %v10995_v7 = vor.u32 %v12803_v3, %v10992_v45  ;;  %v11123_v62 = vor.u32 %v12835_v16, %v11120_v5  ;;  %v12881_v35 = vld [vmem:[#allocation12 + $0x834] sm:$0xf0]  ;;  %v15502_v45 = vor.u32 %v12871_v63, %v11254_v39 }
 0x41b   :  { %v11295_v0 = vor.u32 %v12881_v35, %v11294_v24 }
 0x41c   :  { %v15497_v9 = vadd.f32 %v6027_v11, %v15345_v17  ;;  %v11422_v11 = vld [vmem:[#allocation12 + $0x928] sm:$0xf]  ;;  %6162 = vmatpush.bf16.msra.mxu2 %v10995_v7  ;;  %6191 = vmatpush.bf16.msra.mxu3 %v11123_v62 }
 0x41d   :  { %6863 = vmatpush.bf16.msrb.mxu0 %v11311_v8  ;;  %6892 = vmatpush.bf16.msrb.mxu1 %v11439_v52  ;;  %v11278_v8 = vld [vmem:[#allocation12 + $0x808] sm:$0xf]  ;;  %v11384_v52 = vld [vmem:[#allocation12 + $0x8f0] sm:$0xf0] }
 0x41e   :  { %16171 = vst [vmem:[#allocation38_spill] sm:$0xff] %v15497_v9  ;;  %v5294_v42 = vpop.f32.mrf.mxu2  ;;  %v5323_v37 = vpop.f32.mrf.mxu3  ;;  %v12913_v9 = vld [vmem:[#allocation12 + $0x934] sm:$0xf0] }
 0x41f   :  { %v5324_v17 = vadd.f32 %v5323_v37, %v5294_v42  ;;  %v11423_v14 = vor.u32 %v12913_v9, %v11422_v11  ;;  %v15504_v42 = vor.u32 %v12870_v19, %v11256_v61  ;;  %v12877_v37 = vld [vmem:[#allocation12 + $0x814] sm:$0xf0]  ;;  %v11406_v9 = vld [vmem:[#allocation12 + $0x908] sm:$0xf]  ;;  %v12902_v61 = vld [vmem:[#allocation12 + $0x8e4] sm:$0xf] }
 0x420   :  { %v11279_v63 = vor.u32 %v12877_v37, %v11278_v8  ;;  %v12909_v19 = vld [vmem:[#allocation12 + $0x914] sm:$0xf0]  ;;  %v11387_v24 = vor.u32 %v12902_v61, %v11384_v52  ;;  %v12930_v8 = vld [vmem:[#allocation12 + $0x9c4] sm:$0xf] }
 0x421   :  { %v15500_v54 = vadd.f32 %v5324_v17, %v15348_v18  ;;  %v6000_v15 = vpop.f32.mrf.mxu0  ;;  %v6029_v22 = vpop.f32.mrf.mxu1  ;;  %6864 = vmatpush.bf16.msrb.mxu0 %v11295_v0  ;;  %6893 = vmatpush.bf16.msrb.mxu1 %v11423_v14  ;;  %v11407_v5 = vor.u32 %v12909_v19, %v11406_v9  ;;  %v12934_v17 = vld [vmem:[#allocation12 + $0x9e4] sm:$0xf]  ;;  %v11496_v9 = vld [vmem:[#allocation12 + $0x9d0] sm:$0xf0] }
 0x422   :  { %v6030_v3 = vadd.f32 %v6029_v22, %v6000_v15  ;;  %6800 = vmatpush.bf16.msrb.mxu2 %v11387_v24  ;;  %v12898_v14 = vld [vmem:[#allocation12 + $0x8c4] sm:$0xf] }
 0x423   :  { %6057 = vmatmul.bf16.gmra.mxu2 %v15350_v47  ;;  %6086 = vmatmul.bf16.gmra.mxu3 %v15352_v6  ;;  %v12873_v52 = vld [vmem:[#allocation3 + $0x44] sm:$0xf0]  ;;  %v12872_v24 = vld [vmem:[#allocation3 + $0x44] sm:$0xf] }
 0x424   :  { %v15509_v18 = vadd.f32 %v6030_v3, %v15357_v49  ;;  %6760 = vmatmul.bf16.gmra.mxu0 %v15502_v45  ;;  %6789 = vmatmul.bf16.gmra.mxu1 %v15504_v42  ;;  %v11512_v49 = vld [vmem:[#allocation12 + $0x9f0] sm:$0xf0] }
 0x425   :  { %v11515_v35 = vor.u32 %v12934_v17, %v11512_v49  ;;  %6865 = vmatpush.bf16.msrb.mxu0 %v11279_v63  ;;  %6894 = vmatpush.bf16.msrb.mxu1 %v11407_v5  ;;  %v11368_v3 = vld [vmem:[#allocation12 + $0x8d0] sm:$0xf0]  ;;  %v11264_v17 = vld [vmem:[#allocation3 + $0x48] sm:$0xf0] }
 0x426   :  { %v5297_v7 = vpop.f32.mrf.mxu2  ;;  %v5326_v16 = vpop.f32.mrf.mxu3  ;;  %v11371_v37 = vor.u32 %v12898_v14, %v11368_v3  ;;  %v11480_v3 = vld [vmem:[#allocation12 + $0x9b0] sm:$0xf0] }
 0x427   :  { %v5327_v62 = vadd.f32 %v5326_v16, %v5297_v7  ;;  %6829 = vmatpush.bf16.msrb.mxu3 %v11515_v35  ;;  %v11499_v7 = vor.u32 %v12930_v8, %v11496_v9  ;;  %v11262_v16 = vld [vmem:[#allocation3 + $0x40] sm:$0xf]  ;;  %v15524_v35 = vor.u32 %v12872_v24, %v11264_v17  ;;  %v11336_v24 = vld [vmem:[#allocation12 + $0x890] sm:$0xf0]  ;;  %v12922_v17 = vld [vmem:[#allocation12 + $0x984] sm:$0xf] }
 0x428   :  { %6801 = vmatpush.bf16.msrb.mxu2 %v11371_v37 }
 0x429   :  { %v15514_v11 = vadd.f32 %v5327_v62, %v15364_v53  ;;  %v6002_v15 = vpop.f32.mrf.mxu0  ;;  %v6031_v22 = vpop.f32.mrf.mxu1  ;;  %v15522_v62 = vor.u32 %v12873_v52, %v11262_v16  ;;  %v12890_v16 = vld [vmem:[#allocation12 + $0x884] sm:$0xf] }
 0x42a   :  { %v6032_v39 = vadd.f32 %v6031_v22, %v6002_v15  ;;  %v11352_v22 = vld [vmem:[#allocation12 + $0x8b0] sm:$0xf0] }
 0x42b   :  { %6830 = vmatpush.bf16.msrb.mxu3 %v11499_v7 }
 0x42c   :  { %v15517_v0 = vadd.f32 %v6032_v39, %v15367_v29  ;;  %v12926_v39 = vld [vmem:[#allocation12 + $0x9a4] sm:$0xf] }
 0x42d   :  { %v11483_v9 = vor.u32 %v12926_v39, %v11480_v3 }
 0x42e   :  { %v5299_v19 = vpop.f32.mrf.mxu2  ;;  %v5328_v61 = vpop.f32.mrf.mxu3 }
 0x42f   :  { %v5329_v53 = vadd.f32 %v5328_v61, %v5299_v19  ;;  %6831 = vmatpush.bf16.msrb.mxu3 %v11483_v9  ;;  %v11320_v9 = vld [vmem:[#allocation12 + $0x870] sm:$0xf0] }
 0x431   :  { %v15520_v63 = vadd.f32 %v5329_v53, %v15370_v44  ;;  %v6005_v29 = vpop.f32.mrf.mxu0  ;;  %v6034_v5 = vpop.f32.mrf.mxu1  ;;  %v12894_v44 = vld [vmem:[#allocation12 + $0x8a4] sm:$0xf] }
 0x432   :  { %v6035_v49 = vadd.f32 %v6034_v5, %v6005_v29  ;;  %v11355_v14 = vor.u32 %v12894_v44, %v11352_v22  ;;  %v11339_v29 = vor.u32 %v12890_v16, %v11336_v24  ;;  %v11464_v5 = vld [vmem:[#allocation12 + $0x990] sm:$0xf0] }
 0x433   :  { %6062 = vmatmul.bf16.gmra.mxu2 %v15372_v55  ;;  %6091 = vmatmul.bf16.gmra.mxu3 %v15374_v56  ;;  %v11467_v22 = vor.u32 %v12922_v17, %v11464_v5  ;;  %v12882_v17 = vld [vmem:[#allocation12 + $0x844] sm:$0xf] }
 0x434   :  { %v15529_v15 = vadd.f32 %v6035_v49, %v15379_v59  ;;  %6765 = vmatmul.bf16.gmra.mxu0 %v15522_v62  ;;  %6794 = vmatmul.bf16.gmra.mxu1 %v15524_v35  ;;  %v12914_v5 = vld [vmem:[#allocation12 + $0x944] sm:$0xf] }
 0x435   :  { %6802 = vmatpush.bf16.msrb.mxu2 %v11355_v14  ;;  %6832 = vmatpush.bf16.msrb.mxu3 %v11467_v22 }
 0x436   :  { %16172 = vst [vmem:[#allocation37_spill] sm:$0xff] %v15529_v15  ;;  %v5302_v8 = vpop.f32.mrf.mxu2  ;;  %v5331_v37 = vpop.f32.mrf.mxu3 }
 0x437   :  { %v5332_v19 = vadd.f32 %v5331_v37, %v5302_v8  ;;  %v12886_v37 = vld [vmem:[#allocation12 + $0x864] sm:$0xf] }
 0x439   :  { %v15534_v61 = vadd.f32 %v5332_v19, %v15384_v28  ;;  %v6007_v59 = vpop.f32.mrf.mxu0  ;;  %v6036_v52 = vpop.f32.mrf.mxu1  ;;  %6803 = vmatpush.bf16.msrb.mxu2 %v11339_v29  ;;  %v12918_v19 = vld [vmem:[#allocation12 + $0x964] sm:$0xf]  ;;  %v11304_v29 = vld [vmem:[#allocation12 + $0x850] sm:$0xf0] }
 0x43a   :  { %v6037_v7 = vadd.f32 %v6036_v52, %v6007_v59  ;;  %v11323_v59 = vor.u32 %v12886_v37, %v11320_v9 }
 0x43c   :  { %v15537_v53 = vadd.f32 %v6037_v7, %v15387_v23 }
 0x43d   :  { %6804 = vmatpush.bf16.msrb.mxu2 %v11323_v59  ;;  %v12878_v59 = vld [vmem:[#allocation12 + $0x824] sm:$0xf] }
 0x43e   :  { %16173 = vst [vmem:[#allocation39_spill] sm:$0xff] %v15537_v53  ;;  %v5304_v49 = vpop.f32.mrf.mxu2  ;;  %v5333_v44 = vpop.f32.mrf.mxu3 }
 0x43f   :  { %v5334_v39 = vadd.f32 %v5333_v44, %v5304_v49  ;;  %v11307_v49 = vor.u32 %v12882_v17, %v11304_v29  ;;  %v11432_v44 = vld [vmem:[#allocation12 + $0x950] sm:$0xf0] }
 0x441   :  { %v15540_v28 = vadd.f32 %v5334_v39, %v15390_v1  ;;  %v6106_v14 = vpop.f32.mrf.mxu0  ;;  %v6135_v3 = vpop.f32.mrf.mxu1  ;;  %v11448_v1 = vld [vmem:[#allocation12 + $0x970] sm:$0xf0]  ;;  %6805 = vmatpush.bf16.msrb.mxu2 %v11307_v49 }
 0x442   :  { %v6136_v8 = vadd.f32 %v6135_v3, %v6106_v14  ;;  %v11451_v16 = vor.u32 %v12918_v19, %v11448_v1  ;;  %v11435_v14 = vor.u32 %v12914_v5, %v11432_v44  ;;  %v11288_v1 = vld [vmem:[#allocation12 + $0x830] sm:$0xf0]  ;;  %v12874_v5 = vld [vmem:[#allocation12 + $0x804] sm:$0xf] }
 0x443   :  { %6163 = vmatmul.bf16.vlgmr.msra.gmra.mxu2 %v15306_v43  ;;  %6192 = vmatmul.bf16.vlgmr.msra.gmra.mxu3 %v15308_v13  ;;  %v11272_v49 = vld [vmem:[#allocation12 + $0x810] sm:$0xf0]  ;;  %v12906_v44 = vld [vmem:[#allocation12 + $0x904] sm:$0xf] }
 0x444   :  { %v15545_v23 = vadd.f32 %v6136_v8, %v15395_v21  ;;  %6866 = vmatmul.bf16.vlgmr.msrb.gmra.mxu0 %v15462_v10  ;;  %6895 = vmatmul.bf16.vlgmr.msrb.gmra.mxu1 %v15464_v12 }
 0x445   :  { %6833 = vmatpush.bf16.msrb.mxu3 %v11451_v16 }
 0x446   :  { %v5403_v52 = vpop.f32.mrf.mxu2  ;;  %v5432_v7 = vpop.f32.mrf.mxu3 }
 0x447   :  { %v5433_v24 = vadd.f32 %v5432_v7, %v5403_v52  ;;  %v12910_v52 = vld [vmem:[#allocation12 + $0x924] sm:$0xf]  ;;  %v11291_v7 = vor.u32 %v12878_v59, %v11288_v1 }
 0x449   :  { %v15550_v43 = vadd.f32 %v5433_v24, %v15402_v38  ;;  %v15552_v13 = vpop.f32.mrf.mxu0  ;;  %v15554_v21 = vpop.f32.mrf.mxu1  ;;  %6834 = vmatpush.bf16.msrb.mxu3 %v11435_v14  ;;  %6806 = vmatpush.bf16.msrb.mxu2 %v11291_v7 }
 0x44e   :  { %v5405_v22 = vpop.f32.mrf.mxu2  ;;  %v5434_v39 = vpop.f32.mrf.mxu3 }
 0x44f   :  { %v5435_v3 = vadd.f32 %v5434_v39, %v5405_v22  ;;  %v11275_v22 = vor.u32 %v12874_v5, %v11272_v49  ;;  %v11400_v39 = vld [vmem:[#allocation12 + $0x910] sm:$0xf0] }
 0x451   :  { %v15557_v8 = vadd.f32 %v5435_v3, %v15408_v51  ;;  %v6111_v38 = vpop.f32.mrf.mxu0  ;;  %v6140_v37 = vpop.f32.mrf.mxu1  ;;  %v11416_v51 = vld [vmem:[#allocation12 + $0x930] sm:$0xf0]  ;;  %6807 = vmatpush.bf16.msrb.mxu2 %v11275_v22 }
 0x452   :  { %v6141_v9 = vadd.f32 %v6140_v37, %v6111_v38  ;;  %v11419_v17 = vor.u32 %v12910_v52, %v11416_v51  ;;  %v11403_v38 = vor.u32 %v12906_v44, %v11400_v39 }
 0x453   :  { %16174 = vst [vmem:[#allocation52_spill] sm:$0xff] %v15557_v8  ;;  %6168 = vmatmul.bf16.gmra.mxu2 %v15328_v41  ;;  %6197 = vmatmul.bf16.gmra.mxu3 %v15330_v36  ;;  %v12907_v8 = vld [vmem:[#allocation12 + $0x90c] sm:$0xf] }
 0x454   :  { %v15562_v19 = vadd.f32 %v6141_v9, %v15413_v33  ;;  %6871 = vmatmul.bf16.gmra.mxu0 %v15482_v4  ;;  %6900 = vmatmul.bf16.gmra.mxu1 %v15484_v46 }
 0x455   :  { %6835 = vmatpush.bf16.msrb.mxu3 %v11419_v17  ;;  %v12935_v17 = vld [vmem:[#allocation12 + $0x9ec] sm:$0xf] }
 0x456   :  { %v5408_v16 = vpop.f32.mrf.mxu2  ;;  %v5437_v24 = vpop.f32.mrf.mxu3 }
 0x457   :  { %v5438_v29 = vadd.f32 %v5437_v24, %v5408_v16  ;;  %v12903_v24 = vld [vmem:[#allocation12 + $0x8ec] sm:$0xf] }
 0x459   :  { %v15567_v41 = vadd.f32 %v5438_v29, %v15420_v20  ;;  %v15569_v36 = vpop.f32.mrf.mxu0  ;;  %v15571_v33 = vpop.f32.mrf.mxu1  ;;  %6836 = vmatpush.bf16.msrb.mxu3 %v11403_v38  ;;  %v12931_v38 = vld [vmem:[#allocation12 + $0x9cc] sm:$0xf] }
 0x45e   :  { %v5410_v14 = vpop.f32.mrf.mxu2  ;;  %v5439_v3 = vpop.f32.mrf.mxu3 }
 0x45f   :  { %v5440_v37 = vadd.f32 %v5439_v3, %v5410_v14  ;;  %v12899_v14 = vld [vmem:[#allocation12 + $0x8cc] sm:$0xf]  ;;  %v11376_v3 = vld [vmem:[#allocation12 + $0x8d8] sm:$0xf0] }
 0x461   :  { %v15574_v9 = vadd.f32 %v5440_v37, %v15426_v57  ;;  %v6116_v20 = vpop.f32.mrf.mxu0  ;;  %v6145_v59 = vpop.f32.mrf.mxu1  ;;  %v11392_v57 = vld [vmem:[#allocation12 + $0x8f8] sm:$0xf0] }
 0x462   :  { %v6146_v1 = vadd.f32 %v6145_v59, %v6116_v20  ;;  %v11379_v59 = vor.u32 %v12899_v14, %v11376_v3 }
 0x463   :  { %16175 = vst [vmem:[#allocation53_spill] sm:$0xff] %v15574_v9  ;;  %6173 = vmatmul.bf16.gmra.mxu2 %v15350_v47  ;;  %6202 = vmatmul.bf16.gmra.mxu3 %v15352_v6  ;;  %v11395_v6 = vor.u32 %v12903_v24, %v11392_v57 }
 0x464   :  { %v15579_v52 = vadd.f32 %v6146_v1, %v15431_v60  ;;  %6876 = vmatmul.bf16.gmra.mxu0 %v15502_v45  ;;  %6905 = vmatmul.bf16.gmra.mxu1 %v15504_v42  ;;  %v11520_v60 = vld [vmem:[#allocation12 + $0x9f8] sm:$0xf0] }
 0x465   :  { %v11523_v49 = vor.u32 %v12935_v17, %v11520_v60  ;;  %6916 = vmatpush.bf16.msra.mxu2 %v11395_v6  ;;  %v11504_v1 = vld [vmem:[#allocation12 + $0x9d8] sm:$0xf0]  ;;  %v12895_v17 = vld [vmem:[#allocation12 + $0x8ac] sm:$0xf] }
 0x466   :  { %v5413_v7 = vpop.f32.mrf.mxu2  ;;  %v5442_v51 = vpop.f32.mrf.mxu3  ;;  %v11360_v6 = vld [vmem:[#allocation12 + $0x8b8] sm:$0xf0]  ;;  %v12927_v60 = vld [vmem:[#allocation12 + $0x9ac] sm:$0xf] }
 0x467   :  { %v5443_v16 = vadd.f32 %v5442_v51, %v5413_v7  ;;  %6945 = vmatpush.bf16.msra.mxu3 %v11523_v49  ;;  %v11507_v51 = vor.u32 %v12931_v38, %v11504_v1  ;;  %v12891_v38 = vld [vmem:[#allocation12 + $0x88c] sm:$0xf] }
 0x469   :  { %v15584_v29 = vadd.f32 %v5443_v16, %v15438_v34  ;;  %v15586_v5 = vpop.f32.mrf.mxu0  ;;  %v15588_v47 = vpop.f32.mrf.mxu1  ;;  %6917 = vmatpush.bf16.msra.mxu2 %v11379_v59 }
 0x46b   :  { %6946 = vmatpush.bf16.msra.mxu3 %v11507_v51  ;;  %v11472_v51 = vld [vmem:[#allocation12 + $0x998] sm:$0xf0] }
 0x46e   :  { %v5415_v44 = vpop.f32.mrf.mxu2  ;;  %v5444_v22 = vpop.f32.mrf.mxu3 }
 0x46f   :  { %v5445_v39 = vadd.f32 %v5444_v22, %v5415_v44  ;;  %v11488_v44 = vld [vmem:[#allocation12 + $0x9b8] sm:$0xf0] }
 0x470   :  { %v11491_v22 = vor.u32 %v12927_v60, %v11488_v44  ;;  %v11328_v60 = vld [vmem:[#allocation12 + $0x878] sm:$0xf0] }
 0x471   :  { %v15591_v37 = vadd.f32 %v5445_v39, %v15444_v32  ;;  %v6121_v34 = vpop.f32.mrf.mxu0  ;;  %v6150_v20 = vpop.f32.mrf.mxu1 }
 0x472   :  { %v6151_v7 = vadd.f32 %v6150_v20, %v6121_v34  ;;  %6947 = vmatpush.bf16.msra.mxu3 %v11491_v22  ;;  %v11344_v34 = vld [vmem:[#allocation12 + $0x898] sm:$0xf0]  ;;  %v12923_v20 = vld [vmem:[#allocation12 + $0x98c] sm:$0xf] }
 0x473   :  { %16176 = vst [vmem:[#allocation54_spill] sm:$0xff] %v15591_v37  ;;  %6178 = vmatmul.bf16.gmra.mxu2 %v15372_v55  ;;  %6207 = vmatmul.bf16.gmra.mxu3 %v15374_v56  ;;  %v12875_v37 = vld [vmem:[#allocation12 + $0x80c] sm:$0xf] }
 0x474   :  { %v15596_v16 = vadd.f32 %v6151_v7, %v15449_v48  ;;  %6881 = vmatmul.bf16.gmra.mxu0 %v15522_v62  ;;  %6910 = vmatmul.bf16.gmra.mxu1 %v15524_v35  ;;  %v11363_v48 = vor.u32 %v12895_v17, %v11360_v6  ;;  %v11347_v7 = vor.u32 %v12891_v38, %v11344_v34  ;;  %v12887_v6 = vld [vmem:[#allocation12 + $0x86c] sm:$0xf] }
 0x475   :  { %v11331_v22 = vor.u32 %v12887_v6, %v11328_v60  ;;  %v11440_v6 = vld [vmem:[#allocation12 + $0x958] sm:$0xf0] }
 0x476   :  { %v5418_v32 = vpop.f32.mrf.mxu2  ;;  %v5447_v24 = vpop.f32.mrf.mxu3  ;;  %6918 = vmatpush.bf16.msra.mxu2 %v11363_v48 }
 0x477   :  { %v5448_v57 = vadd.f32 %v5447_v24, %v5418_v32  ;;  %v11475_v32 = vor.u32 %v12923_v20, %v11472_v51  ;;  %v11312_v51 = vld [vmem:[#allocation12 + $0x858] sm:$0xf0] }
 0x479   :  { %v15601_v49 = vadd.f32 %v5448_v57, %v15454_v25  ;;  %v15603_v55 = vpop.f32.mrf.mxu0  ;;  %v15605_v56 = vpop.f32.mrf.mxu1  ;;  %6948 = vmatpush.bf16.msra.mxu3 %v11475_v32 }
 0x47a   :  { %6919 = vmatpush.bf16.msra.mxu2 %v11347_v7  ;;  %v12883_v7 = vld [vmem:[#allocation12 + $0x84c] sm:$0xf] }
 0x47e   :  { %v5420_v39 = vpop.f32.mrf.mxu2  ;;  %v5449_v14 = vpop.f32.mrf.mxu3  ;;  %6920 = vmatpush.bf16.msra.mxu2 %v11331_v22 }
 0x47f   :  { %v5450_v3 = vadd.f32 %v5449_v14, %v5420_v39  ;;  %v12919_v39 = vld [vmem:[#allocation12 + $0x96c] sm:$0xf]  ;;  %v11456_v14 = vld [vmem:[#allocation12 + $0x978] sm:$0xf0] }
 0x481   :  { %v15608_v59 = vadd.f32 %v5450_v3, %v15460_v2  ;;  %v15610_v25 = vpop.f32.mrf.mxu0  ;;  %v15612_v1 = vpop.f32.mrf.mxu1  ;;  %v11459_v3 = vor.u32 %v12919_v39, %v11456_v14 }
 0x483   :  { %16177 = vst [vmem:[#allocation55_spill] sm:$0xff] %v15608_v59  ;;  %6808 = vmatmul.bf16.vlgmr.msrb.gmra.mxu2 %v15462_v10  ;;  %6837 = vmatmul.bf16.vlgmr.msrb.gmra.mxu3 %v15464_v12 }
 0x484   :  { %6949 = vmatpush.bf16.msra.mxu3 %v11459_v3  ;;  %v12879_v3 = vld [vmem:[#allocation12 + $0x82c] sm:$0xf] }
 0x486   :  { %v6048_v24 = vpop.f32.mrf.mxu2  ;;  %v6077_v57 = vpop.f32.mrf.mxu3 }
 0x487   :  { %v6078_v17 = vadd.f32 %v6077_v57, %v6048_v24  ;;  %v11315_v57 = vor.u32 %v12883_v7, %v11312_v51  ;;  %v12911_v51 = vld [vmem:[#allocation12 + $0x92c] sm:$0xf] }
 0x489   :  { %v15617_v2 = vadd.f32 %v6078_v17, %v15474_v50  ;;  %v15619_v48 = vpop.f32.mrf.mxu0  ;;  %v15621_v44 = vpop.f32.mrf.mxu1  ;;  %v12915_v17 = vld [vmem:[#allocation12 + $0x94c] sm:$0xf]  ;;  %6921 = vmatpush.bf16.msra.mxu2 %v11315_v57 }
 0x48a   :  { %v11443_v60 = vor.u32 %v12915_v17, %v11440_v6  ;;  %v11424_v17 = vld [vmem:[#allocation12 + $0x938] sm:$0xf0] }
 0x48b   :  { %v11427_v6 = vor.u32 %v12911_v51, %v11424_v17 }
 0x48c   :  { %6950 = vmatpush.bf16.msra.mxu3 %v11443_v60 }
 0x48e   :  { %v6050_v38 = vpop.f32.mrf.mxu2  ;;  %v6079_v34 = vpop.f32.mrf.mxu3 }
 0x48f   :  { %v6080_v20 = vadd.f32 %v6079_v34, %v6050_v38 }
 0x490   :  { %6951 = vmatpush.bf16.msra.mxu3 %v11427_v6 }
 0x491   :  { %v15624_v32 = vadd.f32 %v6080_v20, %v15480_v58  ;;  %v15626_v50 = vpop.f32.mrf.mxu0  ;;  %v15628_v24 = vpop.f32.mrf.mxu1  ;;  %v11296_v58 = vld [vmem:[#allocation12 + $0x838] sm:$0xf0] }
 0x492   :  { %v11299_v7 = vor.u32 %v12879_v3, %v11296_v58  ;;  %v11408_v3 = vld [vmem:[#allocation12 + $0x918] sm:$0xf0] }
 0x493   :  { %6813 = vmatmul.bf16.gmra.mxu2 %v15482_v4  ;;  %6842 = vmatmul.bf16.gmra.mxu3 %v15484_v46  ;;  %v11411_v58 = vor.u32 %v12907_v8, %v11408_v3 }
 0x494   :  { %6922 = vmatpush.bf16.msra.mxu2 %v11299_v7 }
 0x495   :  { %6952 = vmatpush.bf16.msra.mxu3 %v11411_v58 }
 0x496   :  { %v6053_v22 = vpop.f32.mrf.mxu2  ;;  %v6082_v39 = vpop.f32.mrf.mxu3 }
 0x497   :  { %v6083_v14 = vadd.f32 %v6082_v39, %v6053_v22  ;;  %v11280_v22 = vld [vmem:[#allocation12 + $0x818] sm:$0xf0] }
 0x498   :  { %v11283_v9 = vor.u32 %v12875_v37, %v11280_v22 }
 0x499   :  { %v15633_v38 = vadd.f32 %v6083_v14, %v15494_v30  ;;  %v15635_v34 = vpop.f32.mrf.mxu0  ;;  %v15637_v20 = vpop.f32.mrf.mxu1 }
 0x49a   :  { %6923 = vmatpush.bf16.msra.mxu2 %v11283_v9 }
 0x49e   :  { %v6055_v57 = vpop.f32.mrf.mxu2  ;;  %v6084_v60 = vpop.f32.mrf.mxu3 }
 0x49f   :  { %v6085_v59 = vadd.f32 %v6084_v60, %v6055_v57 }
 0x4a1   :  { %v15640_v39 = vadd.f32 %v6085_v59, %v15500_v54  ;;  %v15642_v30 = vpop.f32.mrf.mxu0  ;;  %v15644_v14 = vpop.f32.mrf.mxu1 }
 0x4a3   :  { %6818 = vmatmul.bf16.gmra.mxu2 %v15502_v45  ;;  %6847 = vmatmul.bf16.gmra.mxu3 %v15504_v42 }
 0x4a6   :  { %v6058_v7 = vpop.f32.mrf.mxu2  ;;  %v6087_v51 = vpop.f32.mrf.mxu3 }
 0x4a7   :  { %v6088_v17 = vadd.f32 %v6087_v51, %v6058_v7 }
 0x4a9   :  { %v15649_v54 = vadd.f32 %v6088_v17, %v15514_v11  ;;  %v15651_v59 = vpop.f32.mrf.mxu0  ;;  %v15653_v6 = vpop.f32.mrf.mxu1 }
 0x4ae   :  { %v6060_v37 = vpop.f32.mrf.mxu2  ;;  %v6089_v57 = vpop.f32.mrf.mxu3 }
 0x4af   :  { %v6090_v60 = vadd.f32 %v6089_v57, %v6060_v37 }
 0x4b1   :  { %v15656_v8 = vadd.f32 %v6090_v60, %v15520_v63  ;;  %v15658_v22 = vpop.f32.mrf.mxu0  ;;  %v15660_v9 = vpop.f32.mrf.mxu1  ;;  %v15671_v60 = vld [vmem:[#allocation13] sm:$0xf] }
 0x4b2   :  { %16179 = vst [vmem:[#allocation46_spill] sm:$0xff] %v15660_v9 }
 0x4b3   :  { %16178 = vst [vmem:[#allocation40_spill] sm:$0xff] %v15656_v8  ;;  %6823 = vmatmul.bf16.gmra.mxu2 %v15522_v62  ;;  %6852 = vmatmul.bf16.gmra.mxu3 %v15524_v35 }
 0x4b6   :  { %v6063_v11 = vpop.f32.mrf.mxu2  ;;  %v6092_v3 = vpop.f32.mrf.mxu3 }
 0x4b7   :  { %v6093_v58 = vadd.f32 %v6092_v3, %v6063_v11  ;;  %v15677_v11 = vperm.slane %v15671_v60, 2  ;;  %v6138_v3 = vadd.f32 %v15554_v21, %v15552_v13 }
 0x4b9   :  { %v15665_v7 = vadd.f32 %v6093_v58, %v15534_v61  ;;  %v15667_v51 = vpop.f32.mrf.mxu0  ;;  %v15669_v17 = vpop.f32.mrf.mxu1 }
 0x4be   :  { %v6065_v63 = vpop.f32.mrf.mxu2  ;;  %v6094_v37 = vpop.f32.mrf.mxu3 }
 0x4bf   :  { %v6095_v57 = vadd.f32 %v6094_v37, %v6065_v63 }
 0x4c1   :  { %v15674_v53 = vadd.f32 %v6095_v57, %v15540_v28  ;;  %v6867_v15 = vpop.f32.mrf.mxu0  ;;  %v6896_v8 = vpop.f32.mrf.mxu1 }
 0x4c2   :  { %v6897_v9 = vadd.f32 %v6896_v8, %v6867_v15 }
 0x4c3   :  { %16180 = vst [vmem:[#allocation41_spill] sm:$0xff] %v15674_v53  ;;  %6924 = vmatmul.bf16.vlgmr.msra.gmra.mxu2 %v15462_v10  ;;  %6953 = vmatmul.bf16.vlgmr.msra.gmra.mxu3 %v15464_v12  ;;  %v6251_v10 = vadd.f32 %v6138_v3, %v15405_v27  ;;  %v6143_v27 = vadd.f32 %v15571_v33, %v15569_v36  ;;  %v12953_v33 = vld [vmem:[#allocation15 + $0x38] sm:$0xff] }
 0x4c4   :  { %v7008_v61 = vadd.f32 %v6897_v9, %v15545_v23  ;;  %7512 = vmatpush.bf16.msra.mxu0 %v12953_v33 }
 0x4c6   :  { %v15685_v58 = vadd.f32 %v15677_v11, %v7008_v61  ;;  %v6164_v28 = vpop.f32.mrf.mxu2  ;;  %v6193_v63 = vpop.f32.mrf.mxu3 }
 0x4c7   :  { %v6194_v37 = vadd.f32 %v6193_v63, %v6164_v28 }
 0x4c8   :  { %16181 = vst [vmem:[#allocation47_spill] sm:$0xff] %v15685_v58 }
 0x4c9   :  { %v15688_v15 = vadd.f32 %v6194_v37, %v15550_v43  ;;  %v6869_v8 = vpop.f32.mrf.mxu0  ;;  %v6898_v57 = vpop.f32.mrf.mxu1 }
 0x4ca   :  { %v6899_v53 = vadd.f32 %v6898_v57, %v6869_v8 }
 0x4cc   :  { %v7012_v12 = vadd.f32 %v6899_v53, %v6251_v10 }
 0x4ce   :  { %v15692_v23 = vadd.f32 %v15677_v11, %v7012_v12  ;;  %v15694_v9 = vpop.f32.mrf.mxu2  ;;  %v15696_v13 = vpop.f32.mrf.mxu3  ;;  %v12961_v12 = vld [vmem:[#allocation15 + $0x78] sm:$0xff] }
 0x4cf   :  { %7531 = vmatpush.bf16.msra.mxu1 %v12961_v12 }
 0x4d1   :  { %v6872_v21 = vpop.f32.mrf.mxu0  ;;  %v6901_v61 = vpop.f32.mrf.mxu1 }
 0x4d2   :  { %v6902_v58 = vadd.f32 %v6901_v61, %v6872_v21 }
 0x4d3   :  { %6929 = vmatmul.bf16.gmra.mxu2 %v15482_v4  ;;  %6958 = vmatmul.bf16.gmra.mxu3 %v15484_v46  ;;  %v6259_v4 = vadd.f32 %v6143_v27, %v15423_v31  ;;  %v6148_v27 = vadd.f32 %v15588_v47, %v15586_v5 }
 0x4d4   :  { %v7016_v43 = vadd.f32 %v6902_v58, %v15562_v19 }
 0x4d6   :  { %v15704_v53 = vadd.f32 %v15677_v11, %v7016_v43  ;;  %v6169_v3 = vpop.f32.mrf.mxu2  ;;  %v6198_v28 = vpop.f32.mrf.mxu3 }
 0x4d7   :  { %v6199_v63 = vadd.f32 %v6198_v28, %v6169_v3  ;;  %v12960_v3 = vld [vmem:[#allocation15 + $0x70] sm:$0xff] }
 0x4d8   :  { %7532 = vmatpush.bf16.msra.mxu1 %v12960_v3 }
 0x4d9   :  { %v15707_v37 = vadd.f32 %v6199_v63, %v15567_v41  ;;  %v6874_v8 = vpop.f32.mrf.mxu0  ;;  %v6903_v57 = vpop.f32.mrf.mxu1  ;;  %v12952_v41 = vld [vmem:[#allocation15 + $0x30] sm:$0xff] }
 0x4da   :  { %v6904_v10 = vadd.f32 %v6903_v57, %v6874_v8  ;;  %7513 = vmatpush.bf16.msra.mxu0 %v12952_v41  ;;  %v12951_v57 = vld [vmem:[#allocation15 + $0x28] sm:$0xff]  ;;  %v12950_v41 = vld [vmem:[#allocation15 + $0x20] sm:$0xff] }
 0x4dc   :  { %v7020_v46 = vadd.f32 %v6904_v10, %v6259_v4  ;;  %v12959_v4 = vld [vmem:[#allocation15 + $0x68] sm:$0xff] }
 0x4dd   :  { %7533 = vmatpush.bf16.msra.mxu1 %v12959_v4 }
 0x4de   :  { %v15711_v19 = vadd.f32 %v15677_v11, %v7020_v46  ;;  %v15713_v58 = vpop.f32.mrf.mxu2  ;;  %v15715_v36 = vpop.f32.mrf.mxu3  ;;  %7514 = vmatpush.bf16.msra.mxu0 %v12951_v57 }
 0x4e1   :  { %v6877_v21 = vpop.f32.mrf.mxu0  ;;  %v6906_v61 = vpop.f32.mrf.mxu1 }
 0x4e2   :  { %v6907_v43 = vadd.f32 %v6906_v61, %v6877_v21  ;;  %7515 = vmatpush.bf16.msra.mxu0 %v12950_v41 }
 0x4e3   :  { %6934 = vmatmul.bf16.gmra.mxu2 %v15502_v45  ;;  %6963 = vmatmul.bf16.gmra.mxu3 %v15504_v42 }
 0x4e4   :  { %v7024_v31 = vadd.f32 %v6907_v43, %v15579_v52  ;;  %v6267_v52 = vadd.f32 %v6148_v27, %v15441_v40  ;;  %v12957_v27 = vld [vmem:[#allocation15 + $0x58] sm:$0xff] }
 0x4e6   :  { %v15723_v28 = vadd.f32 %v15677_v11, %v7024_v31  ;;  %v6174_v63 = vpop.f32.mrf.mxu2  ;;  %v6203_v8 = vpop.f32.mrf.mxu3  ;;  %v12949_v31 = vld [vmem:[#allocation15 + $0x18] sm:$0xff] }
 0x4e7   :  { %v6204_v10 = vadd.f32 %v6203_v8, %v6174_v63  ;;  %v6153_v63 = vadd.f32 %v15605_v56, %v15603_v55  ;;  %7516 = vmatpush.bf16.msra.mxu0 %v12949_v31  ;;  %v12947_v55 = vld [vmem:[#allocation15 + $0x8] sm:$0xff]  ;;  %v15759_v31 = vperm.slane %v15671_v60, 0 }
 0x4e8   :  { %v12955_v56 = vld [vmem:[#allocation15 + $0x48] sm:$0xff] }
 0x4e9   :  { %v15726_v46 = vadd.f32 %v6204_v10, %v15584_v29  ;;  %v6879_v45 = vpop.f32.mrf.mxu0  ;;  %v6908_v42 = vpop.f32.mrf.mxu1  ;;  %v12958_v29 = vld [vmem:[#allocation15 + $0x60] sm:$0xff] }
 0x4ea   :  { %v6909_v33 = vadd.f32 %v6908_v42, %v6879_v45  ;;  %7534 = vmatpush.bf16.msra.mxu1 %v12958_v29  ;;  %v12948_v45 = vld [vmem:[#allocation15 + $0x10] sm:$0xff]  ;;  %v12946_v29 = vld [vmem:[#allocation15] sm:$0xff] }
 0x4eb   :  { %v12956_v42 = vld [vmem:[#allocation15 + $0x50] sm:$0xff]  ;;  %7517 = vmatpush.bf16.msra.mxu0 %v12948_v45 }
 0x4ec   :  { %v7028_v5 = vadd.f32 %v6909_v33, %v6267_v52  ;;  %v6275_v52 = vadd.f32 %v6153_v63, %v15457_v26  ;;  %v12954_v26 = vld [vmem:[#allocation15 + $0x40] sm:$0xff] }
 0x4ee   :  { %v15730_v47 = vadd.f32 %v15677_v11, %v7028_v5  ;;  %v15732_v12 = vpop.f32.mrf.mxu2  ;;  %v15734_v21 = vpop.f32.mrf.mxu3  ;;  %7535 = vmatpush.bf16.msra.mxu1 %v12957_v27 }
 0x4ef   :  { %7518 = vmatpush.bf16.msra.mxu0 %v12947_v55 }
 0x4f1   :  { %v6882_v61 = vpop.f32.mrf.mxu0  ;;  %v6911_v43 = vpop.f32.mrf.mxu1 }
 0x4f2   :  { %v6912_v3 = vadd.f32 %v6911_v43, %v6882_v61  ;;  %7536 = vmatpush.bf16.msra.mxu1 %v12956_v42 }
 0x4f3   :  { %6939 = vmatmul.bf16.gmra.mxu2 %v15522_v62  ;;  %6968 = vmatmul.bf16.gmra.mxu3 %v15524_v35 }
 0x4f4   :  { %v7032_v40 = vadd.f32 %v6912_v3, %v15596_v16  ;;  %7519 = vmatpush.bf16.msra.mxu0 %v12946_v29  ;;  %v16182_v3 = vld [vmem:[#allocation50_spill] sm:$0xff] }
 0x4f5   :  { %v13001_v29 = vld [vmem:[#allocation15 + $0x178] sm:$0xff] }
 0x4f6   :  { %v15742_v8 = vadd.f32 %v15677_v11, %v7032_v40  ;;  %v6179_v57 = vpop.f32.mrf.mxu2  ;;  %v6208_v4 = vpop.f32.mrf.mxu3  ;;  %7537 = vmatpush.bf16.msra.mxu1 %v12955_v56  ;;  %v6786_v56 = vadd.f32 %v15628_v24, %v15626_v50 }
 0x4f7   :  { %v6209_v10 = vadd.f32 %v6208_v4, %v6179_v57  ;;  %v15762_v57 = vperm.slane %v15671_v60, 1 }
 0x4f9   :  { %v15745_v62 = vadd.f32 %v6209_v10, %v15601_v49  ;;  %v6884_v35 = vpop.f32.mrf.mxu0  ;;  %v6913_v16 = vpop.f32.mrf.mxu1  ;;  %v6781_v49 = vadd.f32 %v15612_v1, %v15610_v25  ;;  %v6783_v25 = vadd.f32 %v15621_v44, %v15619_v48  ;;  %v12969_v44 = vld [vmem:[#allocation15 + $0xb8] sm:$0xff] }
 0x4fa   :  { %v6914_v33 = vadd.f32 %v6913_v16, %v6884_v35  ;;  %7538 = vmatpush.bf16.msra.mxu1 %v12954_v26  ;;  %v16183_v16 = vld [vmem:[#allocation51_spill] sm:$0xff]  ;;  %v12977_v26 = vld [vmem:[#allocation15 + $0xf8] sm:$0xff]  ;;  %7550 = vmatpush.bf16.msrb.mxu2 %v12969_v44  ;;  %v12991_v44 = vld [vmem:[#allocation15 + $0x128] sm:$0xff] }
 0x4fb   :  { %v7006_v40 = vadd.f32 %v6781_v49, %v16182_v3  ;;  %v7010_v45 = vadd.f32 %v6783_v25, %v16183_v16  ;;  %7569 = vmatpush.bf16.msrb.mxu3 %v12977_v26  ;;  %v12938_v25 = vld [vmem:[#allocation4 + $0x4] sm:$0xf] }
 0x4fc   :  { %v7036_v5 = vadd.f32 %v6914_v33, %v6275_v52  ;;  %v16185_v26 = vld [vmem:[#allocation38_spill] sm:$0xff] }
 0x4fd   :  { %v7084_v4 = vadd.f32 %v15759_v31, %v7006_v40  ;;  %v7100_v49 = vadd.f32 %v15759_v31, %v7010_v45  ;;  %v16184_v40 = vld [vmem:[#allocation36_spill] sm:$0xff]  ;;  %v6788_v45 = vadd.f32 %v15637_v20, %v15635_v34 }
 0x4fe   :  { %v15749_v61 = vadd.f32 %v15677_v11, %v7036_v5  ;;  %v15751_v43 = vpop.f32.mrf.mxu2  ;;  %v15753_v41 = vpop.f32.mrf.mxu3  ;;  %7916 = vmatpush.bf16.msrb.mxu1 %v13001_v29 }
 0x4ff   :  { %v7088_v35 = vmax.f32 %v7084_v4, 0.0  ;;  %v11526_v4 = vld [vmem:[#allocation4] sm:$0xf]  ;;  %v7018_v34 = vadd.f32 %v6788_v45, %v16185_v26 }
 0x506   :  { %v6809_v11 = vpop.f32.mrf.mxu2  ;;  %v6838_v27 = vpop.f32.mrf.mxu3 }
 0x507   :  { %v6839_v63 = vadd.f32 %v6838_v27, %v6809_v11  ;;  %v7014_v11 = vadd.f32 %v6786_v56, %v16184_v40  ;;  %v7104_v27 = vmax.f32 %v7100_v49, 0.0  ;;  %v12968_v56 = vld [vmem:[#allocation15 + $0xb0] sm:$0xff] }
 0x508   :  { %v12976_v49 = vld [vmem:[#allocation15 + $0xf0] sm:$0xff]  ;;  %7551 = vmatpush.bf16.msrb.mxu2 %v12968_v56 }
 0x509   :  { %v7007_v1 = vadd.f32 %v6839_v63, %v15617_v2  ;;  %v12993_v2 = vld [vmem:[#allocation15 + $0x138] sm:$0xff]  ;;  %7570 = vmatpush.bf16.msrb.mxu3 %v12976_v49  ;;  %v12988_v56 = vld [vmem:[#allocation15 + $0x110] sm:$0xff] }
 0x50a   :  { %7897 = vmatpush.bf16.msrb.mxu0 %v12993_v2  ;;  %v12999_v2 = vld [vmem:[#allocation15 + $0x168] sm:$0xff]  ;;  %v12996_v49 = vld [vmem:[#allocation15 + $0x150] sm:$0xff] }
 0x50b   :  { %v7085_v10 = vadd.f32 %v15762_v57, %v7007_v1 }
 0x50d   :  { %v7089_v42 = vmax.f32 %v7085_v10, 0.0  ;;  %v7116_v10 = vadd.f32 %v15759_v31, %v7014_v11 }
 0x50e   :  { %v6811_v52 = vpop.f32.mrf.mxu2  ;;  %v6840_v33 = vpop.f32.mrf.mxu3 }
 0x50f   :  { %v7092_v5 = vpack.c.bf16 %v7089_v42, %v7088_v35  ;;  %v6841_v55 = vadd.f32 %v6840_v33, %v6811_v52  ;;  %v7120_v29 = vmax.f32 %v7116_v10, 0.0  ;;  %v12989_v10 = vld [vmem:[#allocation15 + $0x118] sm:$0xff] }
 0x511   :  { %7094 = vst [vmem:[#allocation4 + $0x10] sm:$0xff] %v7092_v5  ;;  %v7011_v48 = vadd.f32 %v6841_v55, %v15624_v32  ;;  %v12992_v5 = vld [vmem:[#allocation15 + $0x130] sm:$0xff] }
 0x512   :  { %v13000_v55 = vld [vmem:[#allocation15 + $0x170] sm:$0xff]  ;;  %7898 = vmatpush.bf16.msrb.mxu0 %v12992_v5  ;;  %v6793_v5 = vadd.f32 %v15653_v6, %v15651_v59 }
 0x513   :  { %v7101_v3 = vadd.f32 %v15762_v57, %v7011_v48  ;;  %7917 = vmatpush.bf16.msrb.mxu1 %v13000_v55 }
 0x515   :  { %v7105_v63 = vmax.f32 %v7101_v3, 0.0 }
 0x516   :  { %v6814_v50 = vpop.f32.mrf.mxu2  ;;  %v6843_v24 = vpop.f32.mrf.mxu3  ;;  %7899 = vmatpush.bf16.msrb.mxu0 %v12991_v44 }
 0x517   :  { %v7108_v1 = vpack.c.bf16 %v7105_v63, %v7104_v27  ;;  %v6844_v32 = vadd.f32 %v6843_v24, %v6814_v50  ;;  %7918 = vmatpush.bf16.msrb.mxu1 %v12999_v2  ;;  %v7132_v27 = vadd.f32 %v15759_v31, %v7018_v34  ;;  %v6791_v63 = vadd.f32 %v15644_v14, %v15642_v30  ;;  %v12990_v24 = vld [vmem:[#allocation15 + $0x120] sm:$0xff]  ;;  %v12987_v2 = vld [vmem:[#allocation15 + $0x108] sm:$0xff] }
 0x518   :  { %v12940_v35 = vld [vmem:[#allocation4 + $0xc] sm:$0xf0]  ;;  %v11528_v16 = vld [vmem:[#allocation4 + $0x10] sm:$0xf0]  ;;  %v7026_v34 = vadd.f32 %v6793_v5, %v15517_v0  ;;  %v12973_v0 = vld [vmem:[#allocation15 + $0xd8] sm:$0xff] }
 0x519   :  { %7110 = vst [vmem:[#allocation4 + $0x70] sm:$0xff] %v7108_v1  ;;  %v7015_v42 = vadd.f32 %v6844_v32, %v15633_v38  ;;  %v11527_v52 = vor.u32 %v12940_v35, %v11526_v4  ;;  %v11531_v33 = vor.u32 %v12938_v25, %v11528_v16  ;;  %v12998_v4 = vld [vmem:[#allocation15 + $0x160] sm:$0xff]  ;;  %v12967_v25 = vld [vmem:[#allocation15 + $0xa8] sm:$0xff]  ;;  %v12997_v35 = vld [vmem:[#allocation15 + $0x158] sm:$0xff]  ;;  %v7136_v16 = vmax.f32 %v7132_v27, 0.0 }
 0x51a   :  { %v12975_v1 = vld [vmem:[#allocation15 + $0xe8] sm:$0xff]  ;;  %7552 = vmatpush.bf16.msrb.mxu2 %v12967_v25  ;;  %7900 = vmatpush.bf16.msrb.mxu0 %v12990_v24  ;;  %v7022_v45 = vadd.f32 %v6791_v63, %v15509_v18  ;;  %v12974_v18 = vld [vmem:[#allocation15 + $0xe0] sm:$0xff]  ;;  %v13033_v25 = vld [vmem:[#allocation15 + $0x238] sm:$0xff] }
 0x51b   :  { %v7117_v48 = vadd.f32 %v15762_v57, %v7015_v42  ;;  %7520 = vmatmul.bf16.vlgmr.msra.gmra.mxu0 %v11527_v52  ;;  %7539 = vmatmul.bf16.vlgmr.msra.gmra.mxu1 %v11531_v33  ;;  %v16187_v27 = vld [vmem:[#allocation40_spill] sm:$0xff]  ;;  %v12994_v24 = vld [vmem:[#allocation15 + $0x140] sm:$0xff] }
 0x51c   :  { %7919 = vmatpush.bf16.msrb.mxu1 %v12998_v4  ;;  %7571 = vmatpush.bf16.msrb.mxu3 %v12975_v1  ;;  %v7148_v33 = vadd.f32 %v15759_v31, %v7022_v45  ;;  %v12965_v4 = vld [vmem:[#allocation15 + $0x98] sm:$0xff] }
 0x51d   :  { %v7121_v20 = vmax.f32 %v7117_v48, 0.0  ;;  %v12966_v48 = vld [vmem:[#allocation15 + $0xa0] sm:$0xff]  ;;  %v13041_v1 = vld [vmem:[#allocation15 + $0x278] sm:$0xff] }
 0x51e   :  { %v6816_v38 = vpop.f32.mrf.mxu2  ;;  %v6845_v3 = vpop.f32.mrf.mxu3  ;;  %7901 = vmatpush.bf16.msrb.mxu0 %v12989_v10  ;;  %7553 = vmatpush.bf16.msrb.mxu2 %v12966_v48  ;;  %v7152_v26 = vmax.f32 %v7148_v33, 0.0  ;;  %v16188_v10 = vld [vmem:[#allocation37_spill] sm:$0xff] }
 0x51f   :  { %v7124_v40 = vpack.c.bf16 %v7121_v20, %v7120_v29  ;;  %v6846_v11 = vadd.f32 %v6845_v3, %v6816_v38  ;;  %v12995_v29 = vld [vmem:[#allocation15 + $0x148] sm:$0xff]  ;;  %v16186_v3 = vld [vmem:[#allocation46_spill] sm:$0xff] }
 0x520   :  { %7920 = vmatpush.bf16.msrb.mxu1 %v12997_v35  ;;  %7572 = vmatpush.bf16.msrb.mxu3 %v12974_v18 }
 0x521   :  { %7126 = vst [vmem:[#allocation4 + $0x20] sm:$0xff] %v7124_v40  ;;  %v7019_v50 = vadd.f32 %v6846_v11, %v15640_v39  ;;  %v6796_v40 = vadd.f32 %v16186_v3, %v15658_v22  ;;  %v7164_v11 = vadd.f32 %v15759_v31, %v7026_v34 }
 0x522   :  { %7902 = vmatpush.bf16.msrb.mxu0 %v12988_v56  ;;  %7554 = vmatpush.bf16.msrb.mxu2 %v12965_v4  ;;  %v6798_v56 = vadd.f32 %v15669_v17, %v15667_v51  ;;  %v12962_v4 = vld [vmem:[#allocation15 + $0x80] sm:$0xff] }
 0x523   :  { %v7133_v32 = vadd.f32 %v15762_v57, %v7019_v50  ;;  %v12986_v50 = vld [vmem:[#allocation15 + $0x100] sm:$0xff]  ;;  %v7030_v35 = vadd.f32 %v6796_v40, %v16188_v10  ;;  %v7168_v22 = vmax.f32 %v7164_v11, 0.0 }
 0x524   :  { %7921 = vmatpush.bf16.msrb.mxu1 %v12996_v49  ;;  %7573 = vmatpush.bf16.msrb.mxu3 %v12973_v0  ;;  %v12970_v0 = vld [vmem:[#allocation15 + $0xc0] sm:$0xff] }
 0x525   :  { %v7137_v42 = vmax.f32 %v7133_v32, 0.0 }
 0x526   :  { %v6819_v30 = vpop.f32.mrf.mxu2  ;;  %v6848_v14 = vpop.f32.mrf.mxu3  ;;  %7903 = vmatpush.bf16.msrb.mxu0 %v12987_v2  ;;  %v12972_v2 = vld [vmem:[#allocation15 + $0xd0] sm:$0xff] }
 0x527   :  { %v7140_v52 = vpack.c.bf16 %v7137_v42, %v7136_v16  ;;  %v6849_v39 = vadd.f32 %v6848_v14, %v6819_v30 }
 0x528   :  { %7922 = vmatpush.bf16.msrb.mxu1 %v12995_v29  ;;  %v12942_v5 = vld [vmem:[#allocation4 + $0x24] sm:$0xf]  ;;  %v13032_v29 = vld [vmem:[#allocation15 + $0x230] sm:$0xff]  ;;  %7574 = vmatpush.bf16.msrb.mxu3 %v12972_v2 }
 0x529   :  { %7142 = vst [vmem:[#allocation4 + $0x80] sm:$0xff] %v7140_v52  ;;  %v7023_v55 = vadd.f32 %v6849_v39, %v15649_v54  ;;  %v11542_v52 = vld [vmem:[#allocation4 + $0x20] sm:$0xf]  ;;  %v7180_v39 = vadd.f32 %v15759_v31, %v7030_v35  ;;  %v16191_v2 = vld [vmem:[#allocation47_spill] sm:$0xff] }
 0x52a   :  { %7904 = vmatpush.bf16.msrb.mxu0 %v12986_v50  ;;  %v16190_v50 = vld [vmem:[#allocation41_spill] sm:$0xff] }
 0x52b   :  { %v7149_v44 = vadd.f32 %v15762_v57, %v7023_v55 }
 0x52c   :  { %7923 = vmatpush.bf16.msrb.mxu1 %v12994_v24 }
 0x52d   :  { %v7153_v20 = vmax.f32 %v7149_v44, 0.0  ;;  %v12964_v44 = vld [vmem:[#allocation15 + $0x90] sm:$0xff] }
 0x52e   :  { %v6821_v59 = vpop.f32.mrf.mxu2  ;;  %v6850_v6 = vpop.f32.mrf.mxu3  ;;  %8290 = vmatpush.bf16.msra.mxu0 %v13033_v25  ;;  %7555 = vmatpush.bf16.msrb.mxu2 %v12964_v44  ;;  %v13030_v25 = vld [vmem:[#allocation15 + $0x220] sm:$0xff] }
 0x52f   :  { %v7156_v38 = vpack.c.bf16 %v7153_v20, %v7152_v26  ;;  %v6851_v54 = vadd.f32 %v6850_v6, %v6821_v59  ;;  %v13040_v26 = vld [vmem:[#allocation15 + $0x270] sm:$0xff]  ;;  %v12963_v20 = vld [vmem:[#allocation15 + $0x88] sm:$0xff]  ;;  %v7184_v6 = vmax.f32 %v7180_v39, 0.0 }
 0x530   :  { %8309 = vmatpush.bf16.msra.mxu1 %v13041_v1  ;;  %v12971_v59 = vld [vmem:[#allocation15 + $0xc8] sm:$0xff]  ;;  %v13038_v1 = vld [vmem:[#allocation15 + $0x260] sm:$0xff] }
 0x531   :  { %7158 = vst [vmem:[#allocation4 + $0x30] sm:$0xff] %v7156_v38  ;;  %v7027_v63 = vadd.f32 %v6851_v54, %v16187_v27  ;;  %v16189_v38 = vld [vmem:[#allocation39_spill] sm:$0xff]  ;;  %v13039_v54 = vld [vmem:[#allocation15 + $0x268] sm:$0xff]  ;;  %7575 = vmatpush.bf16.msrb.mxu3 %v12971_v59 }
 0x532   :  { %v7034_v51 = vadd.f32 %v6798_v56, %v16189_v38  ;;  %8291 = vmatpush.bf16.msra.mxu0 %v13032_v29  ;;  %7556 = vmatpush.bf16.msrb.mxu2 %v12963_v20  ;;  %v7090_v29 = vmax.f32 %v16191_v2, 0.0  ;;  %v16192_v59 = vld [vmem:[#allocation52_spill] sm:$0xff] }
 0x533   :  { %v7165_v32 = vadd.f32 %v15762_v57, %v7027_v63 }
 0x534   :  { %8310 = vmatpush.bf16.msra.mxu1 %v13040_v26  ;;  %v7196_v63 = vadd.f32 %v15759_v31, %v7034_v51  ;;  %v13037_v31 = vld [vmem:[#allocation15 + $0x258] sm:$0xff]  ;;  %v13027_v26 = vld [vmem:[#allocation15 + $0x208] sm:$0xff] }
 0x535   :  { %v7169_v16 = vmax.f32 %v7165_v32, 0.0  ;;  %7576 = vmatpush.bf16.msrb.mxu3 %v12970_v0  ;;  %v12939_v0 = vld [vmem:[#allocation4 + $0xc] sm:$0xf] }
 0x536   :  { %v6824_v45 = vpop.f32.mrf.mxu2  ;;  %v6853_v42 = vpop.f32.mrf.mxu3  ;;  %7557 = vmatpush.bf16.msrb.mxu2 %v12962_v4  ;;  %v7200_v10 = vmax.f32 %v7196_v63, 0.0  ;;  %v11534_v4 = vld [vmem:[#allocation4 + $0x8] sm:$0xf] }
 0x537   :  { %v7172_v30 = vpack.c.bf16 %v7169_v16, %v7168_v22  ;;  %v6854_v14 = vadd.f32 %v6853_v42, %v6824_v45  ;;  %v11686_v22 = vld [vmem:[#allocation4 + $0x60] sm:$0xf] }
 0x538   :  { %v12944_v33 = vld [vmem:[#allocation4 + $0x2c] sm:$0xf0]  ;;  %v11544_v55 = vld [vmem:[#allocation4 + $0x30] sm:$0xf0]  ;;  %8311 = vmatpush.bf16.msra.mxu1 %v13039_v54  ;;  %v13029_v16 = vld [vmem:[#allocation15 + $0x218] sm:$0xff] }
 0x539   :  { %7174 = vst [vmem:[#allocation4 + $0x90] sm:$0xff] %v7172_v30  ;;  %v7031_v49 = vadd.f32 %v6854_v14, %v15665_v7  ;;  %v11543_v48 = vor.u32 %v12944_v33, %v11542_v52  ;;  %v11547_v18 = vor.u32 %v12942_v5, %v11544_v55  ;;  %v13031_v7 = vld [vmem:[#allocation15 + $0x228] sm:$0xff]  ;;  %v12978_v14 = vld [vmem:[#allocation4 + $0x64] sm:$0xf]  ;;  %v15810_v5 = vperm.slane %v15671_v60, 3 }
 0x53a   :  { %8292 = vmatpush.bf16.msra.mxu0 %v13031_v7  ;;  %v12980_v30 = vld [vmem:[#allocation4 + $0x6c] sm:$0xf0]  ;;  %v11688_v52 = vld [vmem:[#allocation4 + $0x70] sm:$0xf0]  ;;  %v13009_v7 = vld [vmem:[#allocation15 + $0x1b8] sm:$0xff] }
 0x53b   :  { %v7181_v34 = vadd.f32 %v15762_v57, %v7031_v49  ;;  %7525 = vmatmul.bf16.gmra.mxu0 %v11543_v48  ;;  %7544 = vmatmul.bf16.gmra.mxu1 %v11547_v18  ;;  %v11687_v55 = vor.u32 %v12980_v30, %v11686_v22  ;;  %v11691_v56 = vor.u32 %v12978_v14, %v11688_v52  ;;  %v13028_v49 = vld [vmem:[#allocation15 + $0x210] sm:$0xff]  ;;  %v13017_v54 = vld [vmem:[#allocation15 + $0x1f8] sm:$0xff] }
 0x53c   :  { %8312 = vmatpush.bf16.msra.mxu1 %v13038_v1  ;;  %v13036_v48 = vld [vmem:[#allocation15 + $0x250] sm:$0xff]  ;;  %v6196_v18 = vadd.f32 %v15696_v13, %v15694_v9  ;;  %v13026_v9 = vld [vmem:[#allocation15 + $0x200] sm:$0xff]  ;;  %7935 = vmatpush.bf16.msra.mxu2 %v13009_v7 }
 0x53d   :  { %v7185_v17 = vmax.f32 %v7181_v34, 0.0  ;;  %v13034_v13 = vld [vmem:[#allocation15 + $0x240] sm:$0xff]  ;;  %7954 = vmatpush.bf16.msra.mxu3 %v13017_v54  ;;  %v13008_v30 = vld [vmem:[#allocation15 + $0x1b0] sm:$0xff] }
 0x53e   :  { %v6826_v3 = vpop.f32.mrf.mxu2  ;;  %v6855_v40 = vpop.f32.mrf.mxu3  ;;  %8293 = vmatpush.bf16.msra.mxu0 %v13030_v25  ;;  %v13016_v14 = vld [vmem:[#allocation15 + $0x1f0] sm:$0xff] }
 0x53f   :  { %v7188_v11 = vpack.c.bf16 %v7185_v17, %v7184_v6  ;;  %v6856_v27 = vadd.f32 %v6855_v40, %v6826_v3  ;;  %v6252_v6 = vadd.f32 %v6196_v18, %v16192_v59  ;;  %v13073_v3 = vld [vmem:[#allocation15 + $0x338] sm:$0xff]  ;;  %v13015_v18 = vld [vmem:[#allocation15 + $0x1e8] sm:$0xff]  ;;  %v13070_v59 = vld [vmem:[#allocation15 + $0x320] sm:$0xff] }
 0x540   :  { %8313 = vmatpush.bf16.msra.mxu1 %v13037_v31  ;;  %v13081_v40 = vld [vmem:[#allocation15 + $0x378] sm:$0xff]  ;;  %7936 = vmatpush.bf16.msra.mxu2 %v13008_v30 }
 0x541   :  { %7190 = vst [vmem:[#allocation4 + $0x40] sm:$0xff] %v7188_v11  ;;  %v7035_v24 = vadd.f32 %v6856_v27, %v16190_v50  ;;  %v7106_v27 = vmax.f32 %v15692_v23, 0.0  ;;  %7955 = vmatpush.bf16.msra.mxu3 %v13016_v14  ;;  %v13067_v14 = vld [vmem:[#allocation15 + $0x308] sm:$0xff] }
 0x542   :  { %8294 = vmatpush.bf16.msra.mxu0 %v13029_v16  ;;  %v11702_v16 = vld [vmem:[#allocation4 + $0x80] sm:$0xf] }
 0x543   :  { %v7197_v32 = vadd.f32 %v15762_v57, %v7035_v24 }
 0x544   :  { %8314 = vmatpush.bf16.msra.mxu1 %v13036_v48  ;;  %v13007_v48 = vld [vmem:[#allocation15 + $0x1a8] sm:$0xff] }
 0x545   :  { %v7201_v35 = vmax.f32 %v7197_v32, 0.0  ;;  %v12984_v32 = vld [vmem:[#allocation4 + $0x8c] sm:$0xf0]  ;;  %7937 = vmatpush.bf16.msra.mxu2 %v13007_v48  ;;  %7956 = vmatpush.bf16.msra.mxu3 %v13015_v18  ;;  %v13049_v48 = vld [vmem:[#allocation15 + $0x2b8] sm:$0xff] }
 0x546   :  { %v6925_v45 = vpop.f32.mrf.mxu2  ;;  %v6954_v42 = vpop.f32.mrf.mxu3  ;;  %8295 = vmatpush.bf16.msra.mxu0 %v13028_v49  ;;  %v11703_v52 = vor.u32 %v12984_v32, %v11702_v16  ;;  %v13057_v18 = vld [vmem:[#allocation15 + $0x2f8] sm:$0xff] }
 0x547   :  { %v7204_v39 = vpack.c.bf16 %v7201_v35, %v7200_v10  ;;  %v6955_v33 = vadd.f32 %v6954_v42, %v6925_v45  ;;  %v11704_v10 = vld [vmem:[#allocation4 + $0x90] sm:$0xf0]  ;;  %v12982_v42 = vld [vmem:[#allocation4 + $0x84] sm:$0xf] }
 0x549   :  { %7206 = vst [vmem:[#allocation4 + $0xa0] sm:$0xff] %v7204_v39  ;;  %v7009_v57 = vadd.f32 %v6955_v33, %v15688_v15  ;;  %v13035_v15 = vld [vmem:[#allocation15 + $0x248] sm:$0xff]  ;;  %v11707_v39 = vor.u32 %v12982_v42, %v11704_v10  ;;  %v13072_v33 = vld [vmem:[#allocation15 + $0x330] sm:$0xff] }
 0x54a   :  { %8296 = vmatpush.bf16.msra.mxu0 %v13027_v26  ;;  %8315 = vmatpush.bf16.msra.mxu1 %v13035_v15  ;;  %v13068_v10 = vld [vmem:[#allocation15 + $0x310] sm:$0xff] }
 0x54b   :  { %v7087_v44 = vadd.f32 %v15810_v5, %v7009_v57  ;;  %7905 = vmatmul.bf16.vlgmr.msrb.gmra.mxu0 %v11687_v55  ;;  %7924 = vmatmul.bf16.vlgmr.msrb.gmra.mxu1 %v11691_v56  ;;  %v13080_v57 = vld [vmem:[#allocation15 + $0x370] sm:$0xff]  ;;  %v6201_v55 = vadd.f32 %v15715_v36, %v15713_v58 }
 0x54c   :  { %v16193_v58 = vld [vmem:[#allocation53_spill] sm:$0xff] }
 0x54d   :  { %v7091_v60 = vmax.f32 %v7087_v44, 0.0  ;;  %v6260_v36 = vadd.f32 %v6201_v55, %v16193_v58  ;;  %v13010_v55 = vld [vmem:[#allocation15 + $0x1c0] sm:$0xff] }
 0x54e   :  { %v6927_v34 = vpop.f32.mrf.mxu2  ;;  %v6956_v20 = vpop.f32.mrf.mxu3  ;;  %8297 = vmatpush.bf16.msra.mxu0 %v13026_v9  ;;  %8316 = vmatpush.bf16.msra.mxu1 %v13034_v13  ;;  %v13005_v9 = vld [vmem:[#allocation15 + $0x198] sm:$0xff] }
 0x54f   :  { %v7093_v38 = vpack.c.bf16 %v7091_v60, %v7090_v29  ;;  %v6957_v51 = vadd.f32 %v6956_v20, %v6927_v34  ;;  %v13071_v29 = vld [vmem:[#allocation15 + $0x328] sm:$0xff]  ;;  %v13014_v20 = vld [vmem:[#allocation15 + $0x1e0] sm:$0xff]  ;;  %v13013_v13 = vld [vmem:[#allocation15 + $0x1d8] sm:$0xff] }
 0x550   :  { %v13079_v60 = vld [vmem:[#allocation15 + $0x368] sm:$0xff]  ;;  %7957 = vmatpush.bf16.msra.mxu3 %v13014_v20  ;;  %v13024_v20 = vld [vmem:[#allocation4 + $0x3c] sm:$0xf0] }
 0x551   :  { %7095 = vst [vmem:[#allocation4 + $0x18] sm:$0xff] %v7093_v38  ;;  %v7013_v17 = vadd.f32 %v6957_v51, %v6252_v6  ;;  %v13078_v6 = vld [vmem:[#allocation15 + $0x360] sm:$0xff]  ;;  %v7138_v51 = vmax.f32 %v15711_v19, 0.0  ;;  %v13018_v19 = vld [vmem:[#allocation4 + $0x14] sm:$0xf] }
 0x552   :  { %8683 = vmatpush.bf16.msrb.mxu0 %v13073_v3  ;;  %8702 = vmatpush.bf16.msrb.mxu1 %v13081_v40  ;;  %v13069_v3 = vld [vmem:[#allocation15 + $0x318] sm:$0xff] }
 0x553   :  { %v7103_v11 = vadd.f32 %v15810_v5, %v7013_v17  ;;  %v13077_v40 = vld [vmem:[#allocation15 + $0x358] sm:$0xff] }
 0x554   :  { %7958 = vmatpush.bf16.msra.mxu3 %v13013_v13  ;;  %v13022_v13 = vld [vmem:[#allocation4 + $0x34] sm:$0xf] }
 0x555   :  { %v7107_v63 = vmax.f32 %v7103_v11, 0.0 }
 0x556   :  { %v6930_v50 = vpop.f32.mrf.mxu2  ;;  %v6959_v24 = vpop.f32.mrf.mxu3  ;;  %8684 = vmatpush.bf16.msrb.mxu0 %v13072_v33  ;;  %8703 = vmatpush.bf16.msrb.mxu1 %v13080_v57 }
 0x557   :  { %v7109_v25 = vpack.c.bf16 %v7107_v63, %v7106_v27  ;;  %v6960_v1 = vadd.f32 %v6959_v24, %v6930_v50  ;;  %v13020_v63 = vld [vmem:[#allocation4 + $0x1c] sm:$0xf0]  ;;  %v11848_v50 = vld [vmem:[#allocation4 + $0x20] sm:$0xf0]  ;;  %v11846_v24 = vld [vmem:[#allocation4 + $0x10] sm:$0xf] }
 0x558   :  { %v12941_v35 = vld [vmem:[#allocation4 + $0x14] sm:$0xf0]  ;;  %v11536_v22 = vld [vmem:[#allocation4 + $0x18] sm:$0xf0]  ;;  %v11851_v32 = vor.u32 %v13018_v19, %v11848_v50  ;;  %v13055_v19 = vld [vmem:[#allocation15 + $0x2e8] sm:$0xff] }
 0x559   :  { %7111 = vst [vmem:[#allocation4 + $0x78] sm:$0xff] %v7109_v25  ;;  %v7017_v31 = vadd.f32 %v6960_v1, %v15707_v37  ;;  %v11535_v23 = vor.u32 %v12941_v35, %v11534_v4  ;;  %v11539_v45 = vor.u32 %v12939_v0, %v11536_v22  ;;  %v7122_v37 = vmax.f32 %v15704_v53, 0.0  ;;  %v13006_v53 = vld [vmem:[#allocation15 + $0x1a0] sm:$0xff]  ;;  %v13004_v0 = vld [vmem:[#allocation15 + $0x190] sm:$0xff] }
 0x55a   :  { %8685 = vmatpush.bf16.msrb.mxu0 %v13071_v29  ;;  %8704 = vmatpush.bf16.msrb.mxu1 %v13079_v60  ;;  %v13012_v25 = vld [vmem:[#allocation15 + $0x1d0] sm:$0xff]  ;;  %v11847_v1 = vor.u32 %v13020_v63, %v11846_v24  ;;  %v6206_v22 = vadd.f32 %v15734_v21, %v15732_v12  ;;  %v7170_v29 = vmax.f32 %v15730_v47, 0.0  ;;  %v6211_v63 = vadd.f32 %v15753_v41, %v15751_v43  ;;  %v16195_v43 = vld [vmem:[#allocation55_spill] sm:$0xff] }
 0x55b   :  { %v7119_v56 = vadd.f32 %v15810_v5, %v7017_v31  ;;  %7558 = vmatmul.bf16.vlgmr.msrb.gmra.mxu2 %v11535_v23  ;;  %7577 = vmatmul.bf16.vlgmr.msrb.gmra.mxu3 %v11539_v45  ;;  %v13076_v35 = vld [vmem:[#allocation15 + $0x350] sm:$0xff]  ;;  %v13003_v23 = vld [vmem:[#allocation15 + $0x188] sm:$0xff] }
 0x55c   :  { %7910 = vmatmul.bf16.gmra.mxu0 %v11703_v52  ;;  %7929 = vmatmul.bf16.gmra.mxu1 %v11707_v39  ;;  %v13011_v45 = vld [vmem:[#allocation15 + $0x1c8] sm:$0xff]  ;;  %v16194_v39 = vld [vmem:[#allocation54_spill] sm:$0xff]  ;;  %v6276_v41 = vadd.f32 %v6211_v63, %v16195_v43 }
 0x55d   :  { %v7123_v49 = vmax.f32 %v7119_v56, 0.0  ;;  %7938 = vmatpush.bf16.msra.mxu2 %v13006_v53  ;;  %7959 = vmatpush.bf16.msra.mxu3 %v13012_v25  ;;  %v13075_v52 = vld [vmem:[#allocation15 + $0x348] sm:$0xff]  ;;  %v6268_v33 = vadd.f32 %v6206_v22, %v16194_v39  ;;  %v13066_v56 = vld [vmem:[#allocation15 + $0x300] sm:$0xff]  ;;  %v13045_v39 = vld [vmem:[#allocation15 + $0x298] sm:$0xff] }
 0x55e   :  { %v6932_v44 = vpop.f32.mrf.mxu2  ;;  %v6961_v2 = vpop.f32.mrf.mxu3  ;;  %8686 = vmatpush.bf16.msrb.mxu0 %v13070_v59  ;;  %8705 = vmatpush.bf16.msrb.mxu1 %v13078_v6  ;;  %v11862_v53 = vld [vmem:[#allocation4 + $0x30] sm:$0xf]  ;;  %v11864_v59 = vld [vmem:[#allocation4 + $0x40] sm:$0xf0] }
 0x55f   :  { %v7125_v26 = vpack.c.bf16 %v7123_v49, %v7122_v37  ;;  %v6962_v15 = vadd.f32 %v6961_v2, %v6932_v44  ;;  %v13074_v37 = vld [vmem:[#allocation15 + $0x340] sm:$0xff]  ;;  %v13113_v44 = vld [vmem:[#allocation15 + $0x438] sm:$0xff] }
 0x560   :  { %v13121_v2 = vld [vmem:[#allocation15 + $0x478] sm:$0xff] }
 0x561   :  { %7127 = vst [vmem:[#allocation4 + $0x28] sm:$0xff] %v7125_v26  ;;  %v7021_v34 = vadd.f32 %v6962_v15, %v6260_v36  ;;  %7939 = vmatpush.bf16.msra.mxu2 %v13005_v9  ;;  %7960 = vmatpush.bf16.msra.mxu3 %v13011_v45  ;;  %v11694_v45 = vld [vmem:[#allocation4 + $0x68] sm:$0xf] }
 0x562   :  { %8687 = vmatpush.bf16.msrb.mxu0 %v13069_v3  ;;  %8706 = vmatpush.bf16.msrb.mxu1 %v13077_v40  ;;  %v11863_v3 = vor.u32 %v13024_v20, %v11862_v53  ;;  %v11867_v40 = vor.u32 %v13022_v13, %v11864_v59  ;;  %v13050_v53 = vld [vmem:[#allocation15 + $0x2c0] sm:$0xff] }
 0x563   :  { %v7135_v38 = vadd.f32 %v15810_v5, %v7021_v34  ;;  %v13106_v20 = vld [vmem:[#allocation15 + $0x400] sm:$0xff] }
 0x564   :  { %v13114_v59 = vld [vmem:[#allocation15 + $0x440] sm:$0xff] }
 0x565   :  { %v7139_v17 = vmax.f32 %v7135_v38, 0.0  ;;  %7940 = vmatpush.bf16.msra.mxu2 %v13004_v0  ;;  %7961 = vmatpush.bf16.msra.mxu3 %v13010_v55  ;;  %v13060_v55 = vld [vmem:[#allocation4 + $0x7c] sm:$0xf0] }
 0x566   :  { %v6935_v7 = vpop.f32.mrf.mxu2  ;;  %v6964_v54 = vpop.f32.mrf.mxu3  ;;  %8688 = vmatpush.bf16.msrb.mxu0 %v13068_v10  ;;  %8707 = vmatpush.bf16.msrb.mxu1 %v13076_v35 }
 0x567   :  { %v7141_v11 = vpack.c.bf16 %v7139_v17, %v7138_v51  ;;  %v6965_v27 = vadd.f32 %v6964_v54, %v6935_v7  ;;  %v13048_v7 = vld [vmem:[#allocation15 + $0x2b0] sm:$0xff] }
 0x568   :  { %v11550_v34 = vld [vmem:[#allocation4 + $0x28] sm:$0xf]  ;;  %v12943_v38 = vld [vmem:[#allocation4 + $0x2c] sm:$0xf]  ;;  %v13056_v54 = vld [vmem:[#allocation15 + $0x2f0] sm:$0xff] }
 0x569   :  { %7143 = vst [vmem:[#allocation4 + $0x88] sm:$0xff] %v7141_v11  ;;  %v7025_v4 = vadd.f32 %v6965_v27, %v15726_v46  ;;  %v7154_v46 = vmax.f32 %v15723_v28, 0.0  ;;  %7941 = vmatpush.bf16.msra.mxu2 %v13003_v23  ;;  %v13002_v28 = vld [vmem:[#allocation15 + $0x180] sm:$0xff]  ;;  %8347 = vmatpush.bf16.msrb.mxu3 %v13057_v18  ;;  %v13112_v11 = vld [vmem:[#allocation15 + $0x430] sm:$0xff] }
 0x56a   :  { %8689 = vmatpush.bf16.msrb.mxu0 %v13067_v14  ;;  %8708 = vmatpush.bf16.msrb.mxu1 %v13075_v52  ;;  %v13120_v27 = vld [vmem:[#allocation15 + $0x470] sm:$0xff] }
 0x56b   :  { %v7151_v16 = vadd.f32 %v15810_v5, %v7025_v4  ;;  %v13047_v4 = vld [vmem:[#allocation15 + $0x2a8] sm:$0xff]  ;;  %v12981_v52 = vld [vmem:[#allocation4 + $0x74] sm:$0xf0] }
 0x56c   :  { %8298 = vmatmul.bf16.vlgmr.msra.gmra.mxu0 %v11847_v1  ;;  %8317 = vmatmul.bf16.vlgmr.msra.gmra.mxu1 %v11851_v32  ;;  %v13111_v1 = vld [vmem:[#allocation15 + $0x428] sm:$0xff]  ;;  %v13052_v18 = vld [vmem:[#allocation15 + $0x2d0] sm:$0xff] }
 0x56d   :  { %v7155_v31 = vmax.f32 %v7151_v16, 0.0  ;;  %7942 = vmatpush.bf16.msra.mxu2 %v13002_v28  ;;  %8348 = vmatpush.bf16.msrb.mxu3 %v13056_v54  ;;  %v13119_v32 = vld [vmem:[#allocation15 + $0x468] sm:$0xff]  ;;  %v13054_v16 = vld [vmem:[#allocation15 + $0x2e0] sm:$0xff] }
 0x56e   :  { %v6937_v42 = vpop.f32.mrf.mxu2  ;;  %v6966_v30 = vpop.f32.mrf.mxu3  ;;  %8690 = vmatpush.bf16.msrb.mxu0 %v13066_v56  ;;  %8709 = vmatpush.bf16.msrb.mxu1 %v13074_v37  ;;  %v12008_v56 = vld [vmem:[#allocation4 + $0x80] sm:$0xf0]  ;;  %v12006_v37 = vld [vmem:[#allocation4 + $0x70] sm:$0xf] }
 0x56f   :  { %v7157_v12 = vpack.c.bf16 %v7155_v31, %v7154_v46  ;;  %v6967_v21 = vadd.f32 %v6966_v30, %v6937_v42  ;;  %v13110_v46 = vld [vmem:[#allocation15 + $0x420] sm:$0xff]  ;;  %v7202_v30 = vmax.f32 %v15749_v61, 0.0  ;;  %v13044_v61 = vld [vmem:[#allocation15 + $0x290] sm:$0xff] }
 0x570   :  { %v13118_v31 = vld [vmem:[#allocation15 + $0x460] sm:$0xff] }
 0x571   :  { %7159 = vst [vmem:[#allocation4 + $0x38] sm:$0xff] %v7157_v12  ;;  %v7029_v57 = vadd.f32 %v6967_v21, %v6268_v33  ;;  %8328 = vmatpush.bf16.msrb.mxu2 %v13049_v48  ;;  %8349 = vmatpush.bf16.msrb.mxu3 %v13055_v19  ;;  %v12979_v42 = vld [vmem:[#allocation4 + $0x6c] sm:$0xf]  ;;  %v13053_v33 = vld [vmem:[#allocation15 + $0x2d8] sm:$0xff]  ;;  %v13058_v48 = vld [vmem:[#allocation4 + $0x74] sm:$0xf] }
 0x572   :  { %9076 = vmatpush.bf16.msra.mxu0 %v13113_v44  ;;  %9095 = vmatpush.bf16.msra.mxu1 %v13121_v2  ;;  %v11696_v12 = vld [vmem:[#allocation4 + $0x78] sm:$0xf0]  ;;  %v12007_v44 = vor.u32 %v13060_v55, %v12006_v37  ;;  %v12011_v2 = vor.u32 %v13058_v48, %v12008_v56  ;;  %v11710_v54 = vld [vmem:[#allocation4 + $0x88] sm:$0xf]  ;;  %v13104_v48 = vld [vmem:[#allocation4 + $0x4c] sm:$0xf0] }
 0x573   :  { %v7167_v49 = vadd.f32 %v15810_v5, %v7029_v57  ;;  %v13109_v21 = vld [vmem:[#allocation15 + $0x418] sm:$0xff]  ;;  %v13082_v55 = vld [vmem:[#allocation15 + $0x380] sm:$0xff] }
 0x574   :  { %v13117_v57 = vld [vmem:[#allocation15 + $0x458] sm:$0xff]  ;;  %v13090_v56 = vld [vmem:[#allocation15 + $0x3c0] sm:$0xff] }
 0x575   :  { %v7171_v60 = vmax.f32 %v7167_v49, 0.0  ;;  %8329 = vmatpush.bf16.msrb.mxu2 %v13048_v7  ;;  %8350 = vmatpush.bf16.msrb.mxu3 %v13054_v16  ;;  %v11699_v49 = vor.u32 %v12979_v42, %v11696_v12  ;;  %v11856_v16 = vld [vmem:[#allocation4 + $0x28] sm:$0xf0]  ;;  %v12166_v42 = vld [vmem:[#allocation4 + $0x20] sm:$0xf] }
 0x576   :  { %v6940_v58 = vpop.f32.mrf.mxu2  ;;  %v6969_v36 = vpop.f32.mrf.mxu3  ;;  %9077 = vmatpush.bf16.msra.mxu0 %v13112_v11  ;;  %9096 = vmatpush.bf16.msra.mxu1 %v13120_v27  ;;  %v13129_v37 = vld [vmem:[#allocation15 + $0x4b8] sm:$0xff] }
 0x577   :  { %v7173_v26 = vpack.c.bf16 %v7171_v60, %v7170_v29  ;;  %v6970_v15 = vadd.f32 %v6969_v36, %v6940_v58  ;;  %v13108_v29 = vld [vmem:[#allocation15 + $0x410] sm:$0xff]  ;;  %v13043_v58 = vld [vmem:[#allocation15 + $0x288] sm:$0xff] }
 0x578   :  { %v12945_v6 = vld [vmem:[#allocation4 + $0x34] sm:$0xf0]  ;;  %v11552_v51 = vld [vmem:[#allocation4 + $0x38] sm:$0xf0]  ;;  %v13051_v36 = vld [vmem:[#allocation15 + $0x2c8] sm:$0xff] }
 0x579   :  { %7175 = vst [vmem:[#allocation4 + $0x98] sm:$0xff] %v7173_v26  ;;  %v7033_v47 = vadd.f32 %v6970_v15, %v15745_v62  ;;  %v11551_v17 = vor.u32 %v12945_v6, %v11550_v34  ;;  %v11555_v9 = vor.u32 %v12943_v38, %v11552_v51  ;;  %v7186_v62 = vmax.f32 %v15742_v8, 0.0  ;;  %8330 = vmatpush.bf16.msrb.mxu2 %v13047_v4  ;;  %v13046_v8 = vld [vmem:[#allocation15 + $0x2a0] sm:$0xff]  ;;  %v13116_v60 = vld [vmem:[#allocation15 + $0x450] sm:$0xff]  ;;  %v13107_v26 = vld [vmem:[#allocation15 + $0x408] sm:$0xff] }
 0x57a   :  { %9078 = vmatpush.bf16.msra.mxu0 %v13111_v1  ;;  %9097 = vmatpush.bf16.msra.mxu1 %v13119_v32  ;;  %v13115_v15 = vld [vmem:[#allocation15 + $0x448] sm:$0xff]  ;;  %v13042_v34 = vld [vmem:[#allocation15 + $0x280] sm:$0xff]  ;;  %v13089_v6 = vld [vmem:[#allocation15 + $0x3b8] sm:$0xff] }
 0x57b   :  { %v7183_v50 = vadd.f32 %v15810_v5, %v7033_v47  ;;  %7563 = vmatmul.bf16.gmra.mxu2 %v11551_v17  ;;  %7582 = vmatmul.bf16.gmra.mxu3 %v11555_v9  ;;  %v13097_v38 = vld [vmem:[#allocation15 + $0x3f8] sm:$0xff] }
 0x57c   :  { %8303 = vmatmul.bf16.gmra.mxu0 %v11863_v3  ;;  %8322 = vmatmul.bf16.gmra.mxu1 %v11867_v40  ;;  %v13064_v17 = vld [vmem:[#allocation4 + $0x9c] sm:$0xf0]  ;;  %v12024_v9 = vld [vmem:[#allocation4 + $0xa0] sm:$0xf0]  ;;  %v12983_v3 = vld [vmem:[#allocation4 + $0x8c] sm:$0xf] }
 0x57d   :  { %v7187_v24 = vmax.f32 %v7183_v50, 0.0  ;;  %8331 = vmatpush.bf16.msrb.mxu2 %v13046_v8  ;;  %8351 = vmatpush.bf16.msrb.mxu3 %v13053_v33  ;;  %v12022_v40 = vld [vmem:[#allocation4 + $0x90] sm:$0xf]  ;;  %v13062_v50 = vld [vmem:[#allocation4 + $0x94] sm:$0xf] }
 0x57e   :  { %v6942_v0 = vpop.f32.mrf.mxu2  ;;  %v6971_v25 = vpop.f32.mrf.mxu3  ;;  %9079 = vmatpush.bf16.msra.mxu0 %v13110_v46  ;;  %9098 = vmatpush.bf16.msra.mxu1 %v13118_v31  ;;  %v12023_v4 = vor.u32 %v13064_v17, %v12022_v40  ;;  %v12027_v19 = vor.u32 %v13062_v50, %v12024_v9  ;;  %v13021_v8 = vld [vmem:[#allocation4 + $0x24] sm:$0xf0]  ;;  %v13100_v46 = vld [vmem:[#allocation4 + $0x2c] sm:$0xf0]  ;;  %v12168_v31 = vld [vmem:[#allocation4 + $0x30] sm:$0xf0] }
 0x57f   :  { %v7189_v10 = vpack.c.bf16 %v7187_v24, %v7186_v62  ;;  %v6972_v35 = vadd.f32 %v6971_v25, %v6942_v0  ;;  %v13088_v62 = vld [vmem:[#allocation15 + $0x3b0] sm:$0xff]  ;;  %v13087_v0 = vld [vmem:[#allocation15 + $0x3a8] sm:$0xff]  ;;  %v12167_v12 = vor.u32 %v13100_v46, %v12166_v42  ;;  %v13134_v17 = vld [vmem:[#allocation15 + $0x4e0] sm:$0xff] }
 0x580   :  { %v12985_v51 = vld [vmem:[#allocation4 + $0x94] sm:$0xf0]  ;;  %v11712_v47 = vld [vmem:[#allocation4 + $0x98] sm:$0xf0]  ;;  %v13095_v25 = vld [vmem:[#allocation15 + $0x3e8] sm:$0xff] }
 0x581   :  { %7191 = vst [vmem:[#allocation4 + $0x48] sm:$0xff] %v7189_v10  ;;  %v7037_v22 = vadd.f32 %v6972_v35, %v6276_v41  ;;  %8332 = vmatpush.bf16.msrb.mxu2 %v13045_v39  ;;  %8352 = vmatpush.bf16.msrb.mxu3 %v13052_v18  ;;  %v11711_v27 = vor.u32 %v12985_v51, %v11710_v54  ;;  %v13096_v24 = vld [vmem:[#allocation15 + $0x3f0] sm:$0xff]  ;;  %v13086_v41 = vld [vmem:[#allocation15 + $0x3a0] sm:$0xff]  ;;  %v13085_v35 = vld [vmem:[#allocation15 + $0x398] sm:$0xff] }
 0x582   :  { %9080 = vmatpush.bf16.msra.mxu0 %v13109_v21  ;;  %9099 = vmatpush.bf16.msra.mxu1 %v13117_v57  ;;  %v11715_v63 = vor.u32 %v12983_v3, %v11712_v47  ;;  %v13094_v10 = vld [vmem:[#allocation15 + $0x3e0] sm:$0xff]  ;;  %v13084_v39 = vld [vmem:[#allocation15 + $0x390] sm:$0xff]  ;;  %v13083_v57 = vld [vmem:[#allocation15 + $0x388] sm:$0xff] }
 0x583   :  { %v7199_v23 = vadd.f32 %v15810_v5, %v7037_v22  ;;  %v11695_v5 = vor.u32 %v12981_v52, %v11694_v45  ;;  %v13093_v22 = vld [vmem:[#allocation15 + $0x3d8] sm:$0xff]  ;;  %v13092_v33 = vld [vmem:[#allocation15 + $0x3d0] sm:$0xff]  ;;  %v13135_v51 = vld [vmem:[#allocation15 + $0x4e8] sm:$0xff] }
 0x584   :  { %v13019_v45 = vld [vmem:[#allocation4 + $0x1c] sm:$0xf]  ;;  %v13098_v52 = vld [vmem:[#allocation4 + $0x24] sm:$0xf]  ;;  %v13061_v40 = vld [vmem:[#allocation4 + $0x84] sm:$0xf0] }
 0x585   :  { %v7203_v14 = vmax.f32 %v7199_v23, 0.0  ;;  %8333 = vmatpush.bf16.msrb.mxu2 %v13044_v61  ;;  %8353 = vmatpush.bf16.msrb.mxu3 %v13051_v36  ;;  %v11854_v23 = vld [vmem:[#allocation4 + $0x18] sm:$0xf]  ;;  %v12171_v21 = vor.u32 %v13098_v52, %v12168_v31  ;;  %v13126_v47 = vld [vmem:[#allocation15 + $0x4a0] sm:$0xff]  ;;  %v13125_v54 = vld [vmem:[#allocation15 + $0x498] sm:$0xff] }
 0x586   :  { %9081 = vmatpush.bf16.msra.mxu0 %v13108_v29  ;;  %9100 = vmatpush.bf16.msra.mxu1 %v13116_v60  ;;  %v13128_v18 = vld [vmem:[#allocation15 + $0x4b0] sm:$0xff]  ;;  %v13102_v29 = vld [vmem:[#allocation4 + $0x44] sm:$0xf] }
 0x587   :  { %v7205_v28 = vpack.c.bf16 %v7203_v14, %v7202_v30  ;;  %v11855_v30 = vor.u32 %v13021_v8, %v11854_v23  ;;  %v11859_v14 = vor.u32 %v13019_v45, %v11856_v16  ;;  %v12184_v60 = vld [vmem:[#allocation4 + $0x50] sm:$0xf0]  ;;  %v13133_v3 = vld [vmem:[#allocation15 + $0x4d8] sm:$0xff]  ;;  %v12030_v23 = vld [vmem:[#allocation4 + $0x98] sm:$0xf] }
 0x588   :  { %v11872_v61 = vld [vmem:[#allocation4 + $0x48] sm:$0xf0]  ;;  %v13132_v50 = vld [vmem:[#allocation15 + $0x4d0] sm:$0xff] }
 0x589   :  { %7207 = vst [vmem:[#allocation4 + $0xa8] sm:$0xff] %v7205_v28  ;;  %8334 = vmatpush.bf16.msrb.mxu2 %v13043_v58  ;;  %8354 = vmatpush.bf16.msrb.mxu3 %v13050_v53  ;;  %v13091_v28 = vld [vmem:[#allocation15 + $0x3c8] sm:$0xff]  ;;  %v13063_v45 = vld [vmem:[#allocation4 + $0x9c] sm:$0xf] }
 0x58a   :  { %9082 = vmatpush.bf16.msra.mxu0 %v13107_v26  ;;  %9101 = vmatpush.bf16.msra.mxu1 %v13115_v15  ;;  %v11870_v26 = vld [vmem:[#allocation4 + $0x38] sm:$0xf]  ;;  %v13023_v15 = vld [vmem:[#allocation4 + $0x3c] sm:$0xf] }
 0x58b   :  { %7943 = vmatmul.bf16.vlgmr.msra.gmra.mxu2 %v11695_v5  ;;  %7962 = vmatmul.bf16.vlgmr.msra.gmra.mxu3 %v11699_v49  ;;  %v13137_v5 = vld [vmem:[#allocation15 + $0x4f8] sm:$0xff]  ;;  %v13025_v49 = vld [vmem:[#allocation4 + $0x44] sm:$0xf0] }
 0x58c   :  { %8691 = vmatmul.bf16.vlgmr.msrb.gmra.mxu0 %v12007_v44  ;;  %8710 = vmatmul.bf16.vlgmr.msrb.gmra.mxu1 %v12011_v2  ;;  %v13136_v44 = vld [vmem:[#allocation15 + $0x4f0] sm:$0xff]  ;;  %v12182_v2 = vld [vmem:[#allocation4 + $0x40] sm:$0xf]  ;;  %v11871_v53 = vor.u32 %v13025_v49, %v11870_v26 }
 0x58d   :  { %8335 = vmatpush.bf16.msrb.mxu2 %v13042_v34  ;;  %8740 = vmatpush.bf16.msra.mxu3 %v13097_v38  ;;  %v13127_v38 = vld [vmem:[#allocation15 + $0x4a8] sm:$0xff]  ;;  %v12176_v49 = vld [vmem:[#allocation4 + $0x38] sm:$0xf0] }
 0x58e   :  { %9083 = vmatpush.bf16.msra.mxu0 %v13106_v20  ;;  %9102 = vmatpush.bf16.msra.mxu1 %v13114_v59  ;;  %v11875_v20 = vor.u32 %v13023_v15, %v11872_v61  ;;  %v12183_v59 = vor.u32 %v13104_v48, %v12182_v2  ;;  %v12192_v26 = vld [vmem:[#allocation4 + $0x58] sm:$0xf0] }
 0x590   :  { %v13065_v46 = vld [vmem:[#allocation4 + $0xa4] sm:$0xf0]  ;;  %v12032_v31 = vld [vmem:[#allocation4 + $0xa8] sm:$0xf0] }
 0x591   :  { %8721 = vmatpush.bf16.msra.mxu2 %v13089_v6  ;;  %8741 = vmatpush.bf16.msra.mxu3 %v13096_v24  ;;  %v12187_v6 = vor.u32 %v13102_v29, %v12184_v60  ;;  %v12035_v52 = vor.u32 %v13063_v45, %v12032_v31 }
 0x595   :  { %8722 = vmatpush.bf16.msra.mxu2 %v13088_v62  ;;  %8742 = vmatpush.bf16.msra.mxu3 %v13095_v25 }
 0x598   :  { %v7521_v13 = vpop.f32.mrf.mxu0  ;;  %v7540_v7 = vpop.f32.mrf.mxu1 }
 0x599   :  { %v15844_v11 = vadd.f32 %v7540_v7, %v7521_v13  ;;  %8723 = vmatpush.bf16.msra.mxu2 %v13087_v0  ;;  %8743 = vmatpush.bf16.msra.mxu3 %v13094_v10  ;;  %v13122_v10 = vld [vmem:[#allocation15 + $0x480] sm:$0xff] }
 0x59b   :  { %7948 = vmatmul.bf16.gmra.mxu2 %v11711_v27  ;;  %7967 = vmatmul.bf16.gmra.mxu3 %v11715_v63  ;;  %v12016_v27 = vld [vmem:[#allocation4 + $0x88] sm:$0xf0]  ;;  %v13124_v63 = vld [vmem:[#allocation15 + $0x490] sm:$0xff] }
 0x59c   :  { %8696 = vmatmul.bf16.gmra.mxu0 %v12023_v4  ;;  %8715 = vmatmul.bf16.gmra.mxu1 %v12027_v19  ;;  %v12014_v4 = vld [vmem:[#allocation4 + $0x78] sm:$0xf]  ;;  %v13059_v19 = vld [vmem:[#allocation4 + $0x7c] sm:$0xf] }
 0x59d   :  { %8724 = vmatpush.bf16.msra.mxu2 %v13086_v41  ;;  %8744 = vmatpush.bf16.msra.mxu3 %v13093_v22  ;;  %v12015_v25 = vor.u32 %v13061_v40, %v12014_v4  ;;  %v13131_v41 = vld [vmem:[#allocation15 + $0x4c8] sm:$0xff] }
 0x5a0   :  { %v7523_v1 = vpop.f32.mrf.mxu0  ;;  %v7542_v32 = vpop.f32.mrf.mxu1 }
 0x5a1   :  { %v15846_v43 = vadd.f32 %v7542_v32, %v7523_v1  ;;  %8725 = vmatpush.bf16.msra.mxu2 %v13085_v35  ;;  %8745 = vmatpush.bf16.msra.mxu3 %v13092_v33  ;;  %v12019_v1 = vor.u32 %v13059_v19, %v12016_v27  ;;  %v13123_v32 = vld [vmem:[#allocation15 + $0x488] sm:$0xff]  ;;  %v13130_v35 = vld [vmem:[#allocation15 + $0x4c0] sm:$0xff] }
 0x5a5   :  { %8726 = vmatpush.bf16.msra.mxu2 %v13084_v39  ;;  %8746 = vmatpush.bf16.msra.mxu3 %v13091_v28 }
 0x5a9   :  { %8727 = vmatpush.bf16.msra.mxu2 %v13083_v57  ;;  %8747 = vmatpush.bf16.msra.mxu3 %v13090_v56 }
 0x5ab   :  { %8336 = vmatmul.bf16.vlgmr.msrb.gmra.mxu2 %v11855_v30  ;;  %8355 = vmatmul.bf16.vlgmr.msrb.gmra.mxu3 %v11859_v14  ;;  %v12031_v14 = vor.u32 %v13065_v46, %v12030_v23 }
 0x5ac   :  { %9084 = vmatmul.bf16.vlgmr.msra.gmra.mxu0 %v12167_v12  ;;  %9103 = vmatmul.bf16.vlgmr.msra.gmra.mxu1 %v12171_v21 }
 0x5ad   :  { %8728 = vmatpush.bf16.msra.mxu2 %v13082_v55  ;;  %9133 = vmatpush.bf16.msrb.mxu3 %v13137_v5  ;;  %v13101_v5 = vld [vmem:[#allocation4 + $0x34] sm:$0xf0] }
 0x5b1   :  { %9114 = vmatpush.bf16.msrb.mxu2 %v13129_v37  ;;  %9134 = vmatpush.bf16.msrb.mxu3 %v13136_v44  ;;  %v13099_v44 = vld [vmem:[#allocation4 + $0x2c] sm:$0xf] }
 0x5b2   :  { %v12179_v60 = vor.u32 %v13099_v44, %v12176_v49  ;;  %v13161_v44 = vld [vmem:[%s16085_s7 + $0xb8] sm:$0xff] }
 0x5b5   :  { %9115 = vmatpush.bf16.msrb.mxu2 %v13128_v18  ;;  %9135 = vmatpush.bf16.msrb.mxu3 %v13135_v51  ;;  %v12174_v18 = vld [vmem:[#allocation4 + $0x28] sm:$0xf] }
 0x5b6   :  { %v12175_v29 = vor.u32 %v13101_v5, %v12174_v18  ;;  %v13143_v5 = vld [vmem:[%s16085_s7 + $0x28] sm:$0xff]  ;;  %v13142_v18 = vld [vmem:[%s16085_s7 + $0x20] sm:$0xff] }
 0x5b8   :  { %v7526_v58 = vpop.f32.mrf.mxu0  ;;  %v7545_v36 = vpop.f32.mrf.mxu1 }
 0x5b9   :  { %v15848_v34 = vadd.f32 %v7545_v36, %v7526_v58  ;;  %9116 = vmatpush.bf16.msrb.mxu2 %v13127_v38  ;;  %9136 = vmatpush.bf16.msrb.mxu3 %v13134_v17  ;;  %v13105_v58 = vld [vmem:[#allocation4 + $0x54] sm:$0xf0]  ;;  %v12190_v36 = vld [vmem:[#allocation4 + $0x48] sm:$0xf] }
 0x5ba   :  { %v12191_v15 = vor.u32 %v13105_v58, %v12190_v36 }
 0x5bb   :  { %8341 = vmatmul.bf16.gmra.mxu2 %v11871_v53  ;;  %8360 = vmatmul.bf16.gmra.mxu3 %v11875_v20 }
 0x5bc   :  { %9089 = vmatmul.bf16.gmra.mxu0 %v12183_v59  ;;  %9108 = vmatmul.bf16.gmra.mxu1 %v12187_v6 }
 0x5bd   :  { %9117 = vmatpush.bf16.msrb.mxu2 %v13126_v47  ;;  %9137 = vmatpush.bf16.msrb.mxu3 %v13133_v3 }
 0x5c0   :  { %v7528_v9 = vpop.f32.mrf.mxu0  ;;  %v7547_v13 = vpop.f32.mrf.mxu1 }
 0x5c1   :  { %v15850_v7 = vadd.f32 %v7547_v13, %v7528_v9  ;;  %9118 = vmatpush.bf16.msrb.mxu2 %v13125_v54  ;;  %9138 = vmatpush.bf16.msrb.mxu3 %v13132_v50 }
 0x5c5   :  { %9119 = vmatpush.bf16.msrb.mxu2 %v13124_v63  ;;  %9139 = vmatpush.bf16.msrb.mxu3 %v13131_v41 }
 0x5c8   :  { %v7906_v62 = vpop.f32.mrf.mxu0  ;;  %v7925_v24 = vpop.f32.mrf.mxu1 }
 0x5c9   :  { %v15852_v0 = vadd.f32 %v7925_v24, %v7906_v62  ;;  %9120 = vmatpush.bf16.msrb.mxu2 %v13123_v32  ;;  %9140 = vmatpush.bf16.msrb.mxu3 %v13130_v35 }
 0x5cb   :  { %8729 = vmatmul.bf16.vlgmr.msra.gmra.mxu2 %v12015_v25  ;;  %8748 = vmatmul.bf16.vlgmr.msra.gmra.mxu3 %v12019_v1 }
 0x5cd   :  { %9121 = vmatpush.bf16.msrb.mxu2 %v13122_v10 }
 0x5d0   :  { %v7908_v22 = vpop.f32.mrf.mxu0  ;;  %v7927_v8 = vpop.f32.mrf.mxu1 }
 0x5d1   :  { %v7928_v16 = vadd.f32 %v7927_v8, %v7908_v22  ;;  %9398 = vmatpush.bf16.msra.mxu2 %v13161_v44 }
 0x5d9   :  { %v7911_v42 = vpop.f32.mrf.mxu0  ;;  %v7930_v30 = vpop.f32.mrf.mxu1 }
 0x5da   :  { %v7931_v39 = vadd.f32 %v7930_v30, %v7911_v42 }
 0x5db   :  { %8734 = vmatmul.bf16.gmra.mxu2 %v12031_v14  ;;  %8753 = vmatmul.bf16.gmra.mxu3 %v12035_v52 }
 0x5de   :  { %v7559_v33 = vpop.f32.mrf.mxu2  ;;  %v7578_v12 = vpop.f32.mrf.mxu3 }
 0x5df   :  { %v7560_v21 = vadd.f32 %v7559_v33, %v15844_v11  ;;  %v13103_v11 = vld [vmem:[#allocation4 + $0x4c] sm:$0xf] }
 0x5e0   :  { %v12195_v53 = vor.u32 %v13103_v11, %v12192_v26 }
 0x5e1   :  { %v7579_v57 = vadd.f32 %v7578_v12, %v7560_v21  ;;  %v7913_v28 = vpop.f32.mrf.mxu0  ;;  %v7932_v55 = vpop.f32.mrf.mxu1  ;;  %v13145_v12 = vld [vmem:[%s16085_s7 + $0x38] sm:$0xff] }
 0x5e2   :  { %v7933_v56 = vadd.f32 %v7932_v55, %v7913_v28  ;;  %9317 = vmatpush.bf16.msrb.mxu1 %v13145_v12  ;;  %v13144_v28 = vld [vmem:[%s16085_s7 + $0x30] sm:$0xff]  ;;  %v13153_v55 = vld [vmem:[%s16085_s7 + $0x78] sm:$0xff] }
 0x5e3   :  { %9256 = vmatpush.bf16.msrb.mxu0 %v13153_v55 }
 0x5e6   :  { %v7561_v37 = vpop.f32.mrf.mxu2  ;;  %v7580_v61 = vpop.f32.mrf.mxu3  ;;  %9318 = vmatpush.bf16.msrb.mxu1 %v13144_v28  ;;  %v13166_v28 = vld [vmem:[%s16085_s7 + $0xe0] sm:$0xff] }
 0x5e7   :  { %v7562_v48 = vadd.f32 %v7561_v37, %v15846_v43 }
 0x5e9   :  { %v7581_v2 = vadd.f32 %v7580_v61, %v7562_v48  ;;  %v15859_v40 = vpop.f32.mrf.mxu0  ;;  %v15861_v27 = vpop.f32.mrf.mxu1  ;;  %v13152_v61 = vld [vmem:[%s16085_s7 + $0x70] sm:$0xff] }
 0x5ea   :  { %9319 = vmatpush.bf16.msrb.mxu1 %v13143_v5  ;;  %9257 = vmatpush.bf16.msrb.mxu0 %v13152_v61 }
 0x5eb   :  { %9122 = vmatmul.bf16.vlgmr.msrb.gmra.mxu2 %v12175_v29  ;;  %9141 = vmatmul.bf16.vlgmr.msrb.gmra.mxu3 %v12179_v60  ;;  %v13141_v29 = vld [vmem:[%s16085_s7 + $0x18] sm:$0xff] }
 0x5ee   :  { %9320 = vmatpush.bf16.msrb.mxu1 %v13142_v18 }
 0x5f1   :  { %v15867_v19 = vpop.f32.mrf.mxu0 }
 0x5f2   :  { %9321 = vmatpush.bf16.msrb.mxu1 %v13141_v29 }
 0x5f9   :  { %v15873_v22 = vpop.f32.mrf.mxu0 }
 0x5fb   :  { %9127 = vmatmul.bf16.gmra.mxu2 %v12191_v15  ;;  %9146 = vmatmul.bf16.gmra.mxu3 %v12195_v53 }
 0x5fe   :  { %v7564_v20 = vpop.f32.mrf.mxu2  ;;  %v7583_v59 = vpop.f32.mrf.mxu3 }
 0x5ff   :  { %v7565_v43 = vadd.f32 %v7564_v20, %v15848_v34 }
 0x601   :  { %v7584_v6 = vadd.f32 %v7583_v59, %v7565_v43  ;;  %v15883_v42 = vpop.f32.mrf.mxu0  ;;  %v13150_v59 = vld [vmem:[%s16085_s7 + $0x60] sm:$0xff]  ;;  %v13140_v43 = vld [vmem:[%s16085_s7 + $0x10] sm:$0xff] }
 0x602   :  { %9322 = vmatpush.bf16.msrb.mxu1 %v13140_v43 }
 0x606   :  { %v7566_v38 = vpop.f32.mrf.mxu2  ;;  %v7585_v51 = vpop.f32.mrf.mxu3 }
 0x607   :  { %v7567_v47 = vadd.f32 %v7566_v38, %v15850_v7  ;;  %v15869_v7 = vpop.f32.mrf.mxu1  ;;  %v13169_v38 = vld [vmem:[%s16085_s7 + $0xf8] sm:$0xff] }
 0x608   :  { %9480 = vmatpush.bf16.msra.mxu3 %v13169_v38  ;;  %v8321_v55 = vadd.f32 %v15869_v7, %v15867_v19  ;;  %v16024_v7 = vld [vmem:[#allocation16] ss:$0 sm:$0xff] }
 0x609   :  { %v7586_v17 = vadd.f32 %v7585_v51, %v7567_v47  ;;  %v13149_v51 = vld [vmem:[%s16085_s7 + $0x58] sm:$0xff]  ;;  %v13139_v47 = vld [vmem:[%s16085_s7 + $0x8] sm:$0xff] }
 0x60a   :  { %9323 = vmatpush.bf16.msrb.mxu1 %v13139_v47 }
 0x60e   :  { %v7944_v9 = vpop.f32.mrf.mxu2  ;;  %v7963_v13 = vpop.f32.mrf.mxu3 }
 0x60f   :  { %v7945_v54 = vadd.f32 %v7944_v9, %v15852_v0  ;;  %v15875_v8 = vpop.f32.mrf.mxu1 }
 0x611   :  { %v7964_v3 = vadd.f32 %v7963_v13, %v7945_v54  ;;  %v13168_v54 = vld [vmem:[%s16085_s7 + $0xf0] sm:$0xff] }
 0x612   :  { %9481 = vmatpush.bf16.msra.mxu3 %v13168_v54 }
 0x613   :  { %v15863_v63 = vadd.f32 %v7964_v3, %v7579_v57  ;;  %v13148_v3 = vld [vmem:[%s16085_s7 + $0x50] sm:$0xff] }
 0x616   :  { %v7946_v50 = vpop.f32.mrf.mxu2  ;;  %v7965_v62 = vpop.f32.mrf.mxu3 }
 0x617   :  { %v7947_v34 = vadd.f32 %v7946_v50, %v7928_v16  ;;  %v15885_v30 = vpop.f32.mrf.mxu1  ;;  %v13138_v50 = vld [vmem:[%s16085_s7] sm:$0xff] }
 0x618   :  { %9324 = vmatpush.bf16.msrb.mxu1 %v13138_v50 }
 0x619   :  { %v7966_v24 = vadd.f32 %v7965_v62, %v7947_v34  ;;  %v13158_v62 = vld [vmem:[%s16085_s7 + $0xa0] sm:$0xff] }
 0x61b   :  { %v15865_v4 = vadd.f32 %v7966_v24, %v7581_v2  ;;  %v13151_v2 = vld [vmem:[%s16085_s7 + $0x68] sm:$0xff] }
 0x61c   :  { %9258 = vmatpush.bf16.msrb.mxu0 %v13151_v2 }
 0x61e   :  { %v7949_v25 = vpop.f32.mrf.mxu2  ;;  %v7968_v1 = vpop.f32.mrf.mxu3 }
 0x61f   :  { %v7950_v0 = vadd.f32 %v7949_v25, %v7931_v39  ;;  %v15891_v39 = vpop.f32.mrf.mxu0  ;;  %v15893_v33 = vpop.f32.mrf.mxu1  ;;  %v13167_v25 = vld [vmem:[%s16085_s7 + $0xe8] sm:$0xff] }
 0x620   :  { %9259 = vmatpush.bf16.msrb.mxu0 %v13150_v59  ;;  %9482 = vmatpush.bf16.msra.mxu3 %v13167_v25 }
 0x621   :  { %v7969_v32 = vadd.f32 %v7968_v1, %v7950_v0  ;;  %v13147_v1 = vld [vmem:[%s16085_s7 + $0x48] sm:$0xff]  ;;  %v13157_v0 = vld [vmem:[%s16085_s7 + $0x98] sm:$0xff] }
 0x623   :  { %v15871_v41 = vadd.f32 %v7969_v32, %v7584_v6  ;;  %v13160_v6 = vld [vmem:[%s16085_s7 + $0xb0] sm:$0xff]  ;;  %v8319_v32 = vadd.f32 %v15861_v27, %v15859_v40  ;;  %v13146_v40 = vld [vmem:[%s16085_s7 + $0x40] sm:$0xff] }
 0x624   :  { %9399 = vmatpush.bf16.msra.mxu2 %v13160_v6  ;;  %9260 = vmatpush.bf16.msrb.mxu0 %v13149_v51  ;;  %v13156_v27 = vld [vmem:[%s16085_s7 + $0x90] sm:$0xff] }
 0x625   :  { %9483 = vmatpush.bf16.msra.mxu3 %v13166_v28 }
 0x626   :  { %v7951_v10 = vpop.f32.mrf.mxu2  ;;  %v7970_v35 = vpop.f32.mrf.mxu3 }
 0x627   :  { %v7952_v16 = vadd.f32 %v7951_v10, %v7933_v56  ;;  %v15908_v56 = vpop.f32.mrf.mxu0  ;;  %v15910_v37 = vpop.f32.mrf.mxu1 }
 0x628   :  { %9261 = vmatpush.bf16.msrb.mxu0 %v13148_v3  ;;  %v8714_v29 = vadd.f32 %v15910_v37, %v15908_v56  ;;  %v13154_v56 = vld [vmem:[%s16085_s7 + $0x80] sm:$0xff]  ;;  %v13163_v37 = vld [vmem:[%s16085_s7 + $0xc8] sm:$0xff] }
 0x629   :  { %v7971_v46 = vadd.f32 %v7970_v35, %v7952_v16  ;;  %v8712_v16 = vadd.f32 %v15893_v33, %v15891_v39  ;;  %v13155_v33 = vld [vmem:[%s16085_s7 + $0x88] sm:$0xff] }
 0x62b   :  { %v15877_v31 = vadd.f32 %v7971_v46, %v7586_v17  ;;  %v13159_v17 = vld [vmem:[%s16085_s7 + $0xa8] sm:$0xff] }
 0x62c   :  { %9400 = vmatpush.bf16.msra.mxu2 %v13159_v17  ;;  %9262 = vmatpush.bf16.msrb.mxu0 %v13147_v1 }
 0x62e   :  { %v15879_v23 = vpop.f32.mrf.mxu2  ;;  %v15881_v45 = vpop.f32.mrf.mxu3 }
 0x62f   :  { %v15934_v36 = vpop.f32.mrf.mxu0  ;;  %v15936_v11 = vpop.f32.mrf.mxu1  ;;  %v8338_v46 = vadd.f32 %v15879_v23, %v8319_v32  ;;  %v13165_v23 = vld [vmem:[%s16085_s7 + $0xd8] sm:$0xff] }
 0x630   :  { %9401 = vmatpush.bf16.msra.mxu2 %v13158_v62  ;;  %9263 = vmatpush.bf16.msrb.mxu0 %v13146_v40  ;;  %v8717_v54 = vadd.f32 %v15936_v11, %v15934_v36 }
 0x631   :  { %v8357_v39 = vadd.f32 %v15881_v45, %v8338_v46  ;;  %9484 = vmatpush.bf16.msra.mxu3 %v13165_v23 }
 0x634   :  { %9402 = vmatpush.bf16.msra.mxu2 %v13157_v0 }
 0x636   :  { %v15887_v14 = vpop.f32.mrf.mxu2  ;;  %v15889_v52 = vpop.f32.mrf.mxu3 }
 0x637   :  { %v15942_v53 = vpop.f32.mrf.mxu0  ;;  %v15944_v20 = vpop.f32.mrf.mxu1  ;;  %v8340_v59 = vadd.f32 %v15887_v14, %v8321_v55 }
 0x638   :  { %9403 = vmatpush.bf16.msra.mxu2 %v13156_v27 }
 0x63c   :  { %9404 = vmatpush.bf16.msra.mxu2 %v13155_v33 }
 0x63e   :  { %v15898_v21 = vpop.f32.mrf.mxu2  ;;  %v15900_v57 = vpop.f32.mrf.mxu3 }
 0x63f   :  { %v9085_v34 = vpop.f32.mrf.mxu0  ;;  %v9104_v24 = vpop.f32.mrf.mxu1 }
 0x640   :  { %v9105_v5 = vadd.f32 %v9104_v24, %v9085_v34  ;;  %9405 = vmatpush.bf16.msra.mxu2 %v13154_v56 }
 0x646   :  { %v15915_v49 = vpop.f32.mrf.mxu2  ;;  %v15917_v48 = vpop.f32.mrf.mxu3 }
 0x647   :  { %v9087_v61 = vpop.f32.mrf.mxu0  ;;  %v9106_v18 = vpop.f32.mrf.mxu1 }
 0x648   :  { %v9107_v51 = vadd.f32 %v9106_v18, %v9087_v61 }
 0x64e   :  { %v8730_v60 = vpop.f32.mrf.mxu2  ;;  %v8749_v58 = vpop.f32.mrf.mxu3 }
 0x64f   :  { %v8731_v12 = vadd.f32 %v8730_v60, %v8712_v16  ;;  %v8370_v60 = vadd.f32 %v8357_v39, %v15863_v63  ;;  %v8359_v63 = vadd.f32 %v15889_v52, %v8340_v59 }
 0x651   :  { %v8750_v44 = vadd.f32 %v8749_v58, %v8731_v12  ;;  %v13164_v58 = vld [vmem:[%s16085_s7 + $0xd0] sm:$0xff]  ;;  %v8371_v50 = vadd.f32 %v8359_v63, %v15865_v4  ;;  %v8326_v4 = vadd.f32 %v15885_v30, %v15883_v42  ;;  %v8719_v12 = vadd.f32 %v15944_v20, %v15942_v53 }
 0x652   :  { %9485 = vmatpush.bf16.msra.mxu3 %v13164_v58  ;;  %v13175_v58 = vld [vmem:[#allocation21 + $0x8] sm:$0xff] }
 0x653   :  { %v8763_v6 = vadd.f32 %v8750_v44, %v8370_v60  ;;  %9586 = vmatpush.bf16.msra.mxu1 %v13175_v58 }
 0x656   :  { %v15938_v26 = vpop.f32.mrf.mxu2  ;;  %v15940_v15 = vpop.f32.mrf.mxu3  ;;  %9486 = vmatpush.bf16.msra.mxu3 %v13163_v37 }
 0x657   :  { %v8733_v38 = vadd.f32 %v15938_v26, %v8714_v29  ;;  %v8324_v26 = vadd.f32 %v15875_v8, %v15873_v22  ;;  %v13162_v22 = vld [vmem:[%s16085_s7 + $0xc0] sm:$0xff]  ;;  %v9090_v8 = vpop.f32.mrf.mxu0 }
 0x659   :  { %v8752_v47 = vadd.f32 %v15940_v15, %v8733_v38  ;;  %v8343_v62 = vadd.f32 %v15898_v21, %v8324_v26  ;;  %v9109_v15 = vpop.f32.mrf.mxu1 }
 0x65a   :  { %9487 = vmatpush.bf16.msra.mxu3 %v13162_v22  ;;  %v9110_v21 = vadd.f32 %v9109_v15, %v9090_v8  ;;  %v13195_v22 = vld [vmem:[#allocation19] ss:$0 sm:$0xff] }
 0x65b   :  { %v8764_v25 = vadd.f32 %v8752_v47, %v8371_v50  ;;  %v8362_v11 = vadd.f32 %v15900_v57, %v8343_v62  ;;  %v8345_v57 = vadd.f32 %v15915_v49, %v8326_v4 }
 0x65d   :  { %v8372_v40 = vadd.f32 %v8362_v11, %v15871_v41 }
 0x65e   :  { %v15967_v9 = vpop.f32.mrf.mxu2  ;;  %v15969_v13 = vpop.f32.mrf.mxu3 }
 0x65f   :  { %v8736_v1 = vadd.f32 %v15967_v9, %v8717_v54  ;;  %v9092_v55 = vpop.f32.mrf.mxu0 }
 0x661   :  { %v8755_v16 = vadd.f32 %v15969_v13, %v8736_v1  ;;  %v9111_v13 = vpop.f32.mrf.mxu1 }
 0x662   :  { %v9112_v53 = vadd.f32 %v9111_v13, %v9092_v55 }
 0x663   :  { %v8765_v23 = vadd.f32 %v8755_v16, %v8372_v40 }
 0x666   :  { %v15994_v10 = vpop.f32.mrf.mxu2  ;;  %v15996_v35 = vpop.f32.mrf.mxu3 }
 0x667   :  { %v8738_v33 = vadd.f32 %v15994_v10, %v8719_v12 }
 0x669   :  { %v8757_v20 = vadd.f32 %v15996_v35, %v8738_v33  ;;  %v13173_v35 = vld [vmem:[%s16087_s9 + $0x18] sm:$0xff] }
 0x66a   :  { %9545 = vmatpush.bf16.msra.mxu0 %v13173_v35 }
 0x66e   :  { %v9123_v2 = vpop.f32.mrf.mxu2  ;;  %v9142_v45 = vpop.f32.mrf.mxu3 }
 0x66f   :  { %v9124_v43 = vadd.f32 %v9123_v2, %v9105_v5  ;;  %v8364_v5 = vadd.f32 %v15917_v48, %v8345_v57 }
 0x671   :  { %v9143_v19 = vadd.f32 %v9142_v45, %v9124_v43  ;;  %v8373_v49 = vadd.f32 %v8364_v5, %v15877_v31  ;;  %v13172_v31 = vld [vmem:[%s16087_s9 + $0x10] sm:$0xff] }
 0x672   :  { %9546 = vmatpush.bf16.msra.mxu0 %v13172_v31 }
 0x673   :  { %v9156_v14 = vadd.f32 %v9143_v19, %v8763_v6  ;;  %v8766_v10 = vadd.f32 %v8757_v20, %v8373_v49  ;;  %v13171_v19 = vld [vmem:[%s16087_s9 + $0x8] sm:$0xff] }
 0x675   :  { %v9169_v17 = vadd.f32 %v16024_v7, %v9156_v14  ;;  %v13174_v14 = vld [vmem:[#allocation21] sm:$0xff] }
 0x676   :  { %v9125_v3 = vpop.f32.mrf.mxu2  ;;  %v9144_v52 = vpop.f32.mrf.mxu3  ;;  %9547 = vmatpush.bf16.msra.mxu0 %v13171_v19  ;;  %9587 = vmatpush.bf16.msra.mxu1 %v13174_v14 }
 0x677   :  { %v9170_v34 = vmax.f32 %v9169_v17, 0.0  ;;  %v9126_v24 = vadd.f32 %v9125_v3, %v9107_v51  ;;  %v13194_v17 = vld [vmem:[#allocation18] ss:$0 sm:$0xff] }
 0x679   :  { %v9171_v0 = vpack.c.bf16 %v9170_v34, %v9170_v34  ;;  %v9145_v36 = vadd.f32 %v9144_v52, %v9126_v24 }
 0x67b   :  { %v9157_v32 = vadd.f32 %v9145_v36, %v8764_v25  ;;  %9325 = vmatmul.bf16.vlgmr.msrb.gmra.mxu1 %v9171_v0  ;;  %v13196_v36 = vld [vmem:[#allocation22] ss:$0 sm:$0xff] }
 0x67d   :  { %v9189_v46 = vadd.f32 %v16024_v7, %v9157_v32 }
 0x67e   :  { %v9128_v28 = vpop.f32.mrf.mxu2  ;;  %v9147_v9 = vpop.f32.mrf.mxu3 }
 0x67f   :  { %v9190_v27 = vmax.f32 %v9189_v46, 0.0  ;;  %v9129_v39 = vadd.f32 %v9128_v28, %v9110_v21 }
 0x681   :  { %v9191_v42 = vpack.c.bf16 %v9190_v27, %v9190_v27  ;;  %v9148_v30 = vadd.f32 %v9147_v9, %v9129_v39 }
 0x683   :  { %v9158_v61 = vadd.f32 %v9148_v30, %v8765_v23  ;;  %9264 = vmatmul.bf16.vlgmr.msrb.gmra.mxu0 %v9191_v42 }
 0x685   :  { %v9331_v41 = vadd.f32 %v16024_v7, %v9158_v61 }
 0x686   :  { %v9130_v18 = vpop.f32.mrf.mxu2  ;;  %v9149_v45 = vpop.f32.mrf.mxu3 }
 0x687   :  { %v9332_v44 = vmax.f32 %v9331_v41, 0.0  ;;  %v9131_v2 = vadd.f32 %v9130_v18, %v9112_v53 }
 0x689   :  { %v9333_v29 = vpack.c.bf16 %v9332_v44, %v9332_v44  ;;  %v9150_v60 = vadd.f32 %v9149_v45, %v9131_v2 }
 0x68b   :  { %v9159_v59 = vadd.f32 %v9150_v60, %v8766_v10  ;;  %9406 = vmatmul.bf16.vlgmr.msra.gmra.mxu2 %v9333_v29 }
 0x68d   :  { %v9413_v48 = vadd.f32 %v16024_v7, %v9159_v59  ;;  %v13170_v7 = vld [vmem:[%s16087_s9] sm:$0xff] }
 0x68e   :  { %9548 = vmatpush.bf16.msra.mxu0 %v13170_v7 }
 0x68f   :  { %v9414_v43 = vmax.f32 %v9413_v48, 0.0 }
 0x691   :  { %v9415_v6 = vpack.c.bf16 %v9414_v43, %v9414_v43 }
 0x693   :  { %9488 = vmatmul.bf16.vlgmr.msra.gmra.mxu3 %v9415_v6 }
 0x6f8   :  { %v9326_v38 = vpop.f32.mrf.mxu1 }
 0x700   :  { %v9265_v56 = vpop.f32.mrf.mxu0  ;;  %v9328_v63 = vpop.f32.mrf.mxu1 }
 0x701   :  { %v9327_v51 = vadd.f32 %v9326_v38, %v9265_v56 }
 0x708   :  { %v9267_v37 = vpop.f32.mrf.mxu0 }
 0x70e   :  { %v9407_v26 = vpop.f32.mrf.mxu2 }
 0x70f   :  { %v9411_v47 = vadd.f32 %v9407_v26, %v9327_v51 }
 0x716   :  { %v9409_v54 = vpop.f32.mrf.mxu2  ;;  %v9489_v3 = vpop.f32.mrf.mxu3 }
 0x717   :  { %v9493_v52 = vadd.f32 %v9489_v3, %v9411_v47 }
 0x719   :  { %v9498_v50 = vadd.f32 %v13194_v17, %v9493_v52 }
 0x71b   :  { %v9499_v62 = vmax.f32 %v9498_v50, 0.0 }
 0x71d   :  { %v9500_v34 = vpack.c.bf16 %v9499_v62, %v9499_v62 }
 0x71e   :  { %v9491_v24 = vpop.f32.mrf.mxu3 }
 0x71f   :  { %12468 = vmatmul.msk.bf16.vlgmr.msra.gmra.mxu0 %vm9537_vm9, %v9500_v34 }
 0x79c   :  { %v9550_v8 = vpop.f32.mrf.mxu0 }
 0x79d   :  { %v9551_v15 = vadd.f32 %v13195_v22, %v9550_v8 }
 0x79f   :  { %v9554_v25 = vmax.f32 %v9551_v15, 0.0 }
 0x7a1   :  { %v9555_v1 = vpack.c.bf16 %v9554_v25, %v9554_v25 }
 0x7a3   :  { %12477 = vmatmul.msk.bf16.vlgmr.msra.gmra.mxu1 %vm9576_vm10, %v9555_v1 }
 0x7a4   :  { %v9552_v0 = vpop.f32.mrf.mxu0 }
 0x820   :  { %v9589_v11 = vpop.f32.mrf.mxu1 }
 0x821   :  { %v9590_v32 = vadd.f32 %v13196_v36, %v9589_v11 }
 0x823   :  { %9593 = vst [vmem:[%s16091_s13] sm:$0xff] %v9590_v32 }
 0x828   :  { %v9591_v4 = vpop.f32.mrf.mxu1 }
 0x829   :  { %9598 = vsyncpa [#allocation9], 1 }
 0x82a   :  { %9599 = vsyncpa [#allocation11], 1 }
 0x82b   :  { %9600 = vsyncpa [#allocation14], 1 }
 0x82c   :  { %9601 = vsyncpa [#allocation17], 1 }
 0x82d   :  { %9602 = vsyncpa [#allocation20], 1 }
 0x82e   :  { %9603 = vsyncpa [#allocation23], 1 }

</bundles_post_ra>
